<compile_context>
chip_gen: v7x
topology: tpu7x:2x2x1
jax: 0.10.0
libtpu: 0.0.40
codegen_flags: <defaults>
</compile_context>

<pallas_src>
import jax
import jax.numpy as jnp
from jax.experimental import pallas as pl
from jax.experimental.pallas import tpu as pltpu

KPAD = 128          # every conv layer's input channels are zero-padded to 128
NUM_CLASSES = 10
CLASS_PAD = 128     # lane-dense classifier output width (sliced to 10 outside)


# ----------------------------------------------------------------------------
# Fused whole-network kernel (one image per grid step)
# ----------------------------------------------------------------------------
def _vgg_kernel(x_ref, w0_ref, b0_ref, w1_ref, b1_ref, w2_ref, b2_ref,
                w3_ref, b3_ref, wl_ref, bl_ref, o_ref,
                a1_ref, a2_ref, a3_ref):
    f32, bf16 = jnp.float32, jnp.bfloat16

    H = a1_ref.shape[0] - 2          # full-res spatial size (16)
    W = a1_ref.shape[1] - 2
    Hh, Wh = H // 2, W // 2          # after first maxpool (8)
    Hq, Wq = Hh // 2, Wh // 2        # after second maxpool (4)

    def conv3x3(xpad, w_ref, b_ref, h, w):
        # xpad: (h+2, w+2, KPAD) value with zero spatial halo + zero channel pad.
        # im2col: concatenate the 9 shifted taps along K.  Each tap is exactly
        # 128 lanes wide, so the lane-dim concat is tile-aligned and the conv
        # becomes a single MXU dot with K = 9*KPAD.
        taps = [xpad[ky:ky + h, kx:kx + w, :].reshape(h * w, KPAD).astype(bf16)
                for ky in range(3) for kx in range(3)]
        pat = jnp.concatenate(taps, axis=1)                      # (h*w, 9*KPAD)
        y = jnp.dot(pat, w_ref[...], preferred_element_type=f32)
        return jnp.maximum(y + b_ref[...], 0.0)                  # (h*w, Cout) f32

    def pool_rows(y, h, w, c):
        # First half of the 2x2 maxpool: max over the H direction.
        y4 = y.reshape(h // 2, 2, w, c)
        return jnp.maximum(y4[:, 0], y4[:, 1])                   # (h//2, w, c)

    # Padded activation buffers: zero halo + unused channel lanes every step
    # (cheap; keeps the batch axis safely "parallel").
    a1_ref[...] = jnp.zeros_like(a1_ref)
    a2_ref[...] = jnp.zeros_like(a2_ref)
    a3_ref[...] = jnp.zeros_like(a3_ref)

    # conv0: 1(->128 pad) -> 32, BN folded, ReLU
    y0 = conv3x3(x_ref[0], w0_ref, b0_ref, H, W)                 # (H*W, 32)
    a1_ref[1:H + 1, 1:W + 1, 0:32] = y0.reshape(H, W, 32)

    # conv1: 32 -> 64, BN folded, ReLU, fused maxpool 2x2
    y1 = conv3x3(a1_ref[...], w1_ref, b1_ref, H, W)              # (H*W, 64)
    r1 = pool_rows(y1, H, W, 64)                                 # (Hh, W, 64)
    for wo in range(Wh):
        col = jnp.maximum(r1[:, 2 * wo:2 * wo + 1, :],
                          r1[:, 2 * wo + 1:2 * wo + 2, :])       # (Hh, 1, 64)
        a2_ref[1:Hh + 1, 1 + wo:2 + wo, 0:64] = col

    # conv2: 64 -> 128, BN folded, ReLU
    y2 = conv3x3(a2_ref[...], w2_ref, b2_ref, Hh, Wh)            # (Hh*Wh, 128)
    a3_ref[1:Hh + 1, 1:Wh + 1, 0:128] = y2.reshape(Hh, Wh, 128)

    # conv3: 128 -> 256, BN folded, ReLU, fused maxpool + flatten + linear
    y3 = conv3x3(a3_ref[...], w3_ref, b3_ref, Hh, Wh)            # (Hh*Wh, 256)
    r3 = pool_rows(y3, Hh, Wh, 256)                              # (Hq, Wh, 256)

    acc = jnp.zeros((1, CLASS_PAD), f32)
    for wo in range(Wq):
        col = jnp.maximum(r3[:, 2 * wo:2 * wo + 1, :],
                          r3[:, 2 * wo + 1:2 * wo + 2, :])       # (Hq, 1, 256)
        for ho in range(Hq):
            q = ho * Wq + wo        # pooled spatial position, (h, w) row-major
            acc = acc + jnp.dot(col[ho].astype(bf16), wl_ref[q],
                                preferred_element_type=f32)
    o_ref[...] = (acc + bl_ref[...]).reshape(1, 1, CLASS_PAD).astype(o_ref.dtype)


# ----------------------------------------------------------------------------
# Wrapper
# ----------------------------------------------------------------------------
def vgg_forward(kparams, x_nchw):
    """Forward pass.  x_nchw: (N, Cin, S, S) f32 in NCHW, like the PyTorch module."""
    N, Cin, S, S2 = x_nchw.shape
    assert S == S2 and S % 16 == 0, "kernel assumes square images with size % 16 == 0"
    H = W = S
    Hh, Wh = H // 2, W // 2
    Q = (H // 4) * (W // 4)
    assert kparams["wl"].shape[0] == Q

    # NCHW -> NHWC, +1 spatial zero halo, zero-pad channels to 128, cast bf16.
    x = jnp.transpose(x_nchw, (0, 2, 3, 1)).astype(jnp.float32)
    x = jnp.pad(x, ((0, 0), (1, 1), (1, 1), (0, KPAD - Cin)))
    x = x.astype(jnp.bfloat16)

    out = pl.pallas_call(
        _vgg_kernel,
        out_shape=jax.ShapeDtypeStruct((N, 1, CLASS_PAD), jnp.float32),
        grid_spec=pltpu.PrefetchScalarGridSpec(
            num_scalar_prefetch=0,
            grid=(N,),
            in_specs=[
                pl.BlockSpec((1, H + 2, W + 2, KPAD), lambda n: (n, 0, 0, 0)),
                pl.BlockSpec((9 * KPAD, 32), lambda n: (0, 0)),
                pl.BlockSpec((1, 32), lambda n: (0, 0)),
                pl.BlockSpec((9 * KPAD, 64), lambda n: (0, 0)),
                pl.BlockSpec((1, 64), lambda n: (0, 0)),
                pl.BlockSpec((9 * KPAD, 128), lambda n: (0, 0)),
                pl.BlockSpec((1, 128), lambda n: (0, 0)),
                pl.BlockSpec((9 * KPAD, 256), lambda n: (0, 0)),
                pl.BlockSpec((1, 256), lambda n: (0, 0)),
                pl.BlockSpec((Q, 256, CLASS_PAD), lambda n: (0, 0, 0)),
                pl.BlockSpec((1, CLASS_PAD), lambda n: (0, 0)),
            ],
            out_specs=pl.BlockSpec((1, 1, CLASS_PAD), lambda n: (n, 0, 0)),
            scratch_shapes=[
                pltpu.VMEM((H + 2, W + 2, KPAD), jnp.float32),    # conv1 input
                pltpu.VMEM((Hh + 2, Wh + 2, KPAD), jnp.float32),  # conv2 input
                pltpu.VMEM((Hh + 2, Wh + 2, KPAD), jnp.float32),  # conv3 input
            ],
        ),
        compiler_params=pltpu.CompilerParams(
            dimension_semantics=("parallel",)),
    )(x, kparams["w0"], kparams["b0"], kparams["w1"], kparams["b1"],
      kparams["w2"], kparams["b2"], kparams["w3"], kparams["b3"],
      kparams["wl"], kparams["bl"])

    return out.reshape(N, CLASS_PAD)[:, :NUM_CLASSES]


# ----------------------------------------------------------------------------
# Parameters: synthetic torch-like init + one-time prep into kernel layouts
# ----------------------------------------------------------------------------
def init_params(key, in_channels=1, image_size=16):
    # Synthetic, deterministic parameters in a torch-like parameterization.
    # Conv weight layout here is (kh, kw, cin, cout); loading real PyTorch
    # OIHW / flattened-NCHW weights would need explicit transposes.
    channels = [in_channels, 32, 64, 128, 256]
    keys = jax.random.split(key, 10)
    params = {}
    for li in range(4):
        cin, cout = channels[li], channels[li + 1]
        params[f"conv{li}_w"] = jax.random.normal(
            keys[2 * li], (3, 3, cin, cout), jnp.float32) * 0.05
        params[f"conv{li}_b"] = jax.random.normal(
            keys[2 * li + 1], (cout,), jnp.float32) * 0.05
    out_sz = image_size // 4            # two 2x2 maxpools
    flat = 256 * out_sz * out_sz
    params["lin_w"] = jax.random.normal(keys[8], (flat, 10), jnp.float32) * 0.02
    params["lin_b"] = jax.random.normal(keys[9], (10,), jnp.float32) * 0.02
    return params


def prepare_params(params, image_size=16):
    """One-time (off the forward path) fold/pad/permute/cast into kernel layouts."""
    eps = 1e-5
    # Eval-mode BatchNorm2d defaults: gamma=1, beta=0, mean=0, var=1.
    bn_scale = 1.0 / jnp.sqrt(1.0 + eps)
    kp = {}
    for li in range(4):
        w = params[f"conv{li}_w"] * bn_scale          # fold BN scale into weights
        b = params[f"conv{li}_b"] * bn_scale          # fused bias
        cin, cout = w.shape[2], w.shape[3]
        w = jnp.pad(w, ((0, 0), (0, 0), (0, KPAD - cin), (0, 0)))
        kp[f"w{li}"] = w.reshape(9 * KPAD, cout).astype(jnp.bfloat16)
        kp[f"b{li}"] = b.reshape(1, cout).astype(jnp.float32)

    out_sz = image_size // 4
    Q = out_sz * out_sz
    # Absorb the PyTorch NCHW-flatten permutation into the classifier weight
    # (rows reordered from (c, q) to (q, c)) and pad the 10 classes to 128 lanes.
    wl = params["lin_w"].reshape(256, Q, NUM_CLASSES).transpose(1, 0, 2)
    wl = jnp.pad(wl, ((0, 0), (0, 0), (0, CLASS_PAD - NUM_CLASSES)))
    kp["wl"] = wl.astype(jnp.bfloat16)                          # (Q, 256, 128)
    kp["bl"] = jnp.pad(params["lin_b"],
                       (0, CLASS_PAD - NUM_CLASSES)).reshape(1, CLASS_PAD)
    kp["bl"] = kp["bl"].astype(jnp.float32)
    return kp


if __name__ == "__main__":
    key = jax.random.PRNGKey(0)
    k_x, k_p = jax.random.split(key)

    N, Cin, S = 2, 1, 16                       # small MNIST-like input
    x = jax.random.normal(k_x, (N, Cin, S, S), jnp.float32)

    params = init_params(k_p, in_channels=Cin, image_size=S)
    kparams = prepare_params(params, image_size=S)

    fwd = jax.jit(vgg_forward)
    out = jax.block_until_ready(fwd(kparams, x))
    assert out.shape == (N, 10), out.shape
    assert bool(jnp.all(jnp.isfinite(out)))
    print("KERNEL_OK")
</pallas_src>

<mosaic_0001>
module attributes {stable_mosaic.version = 11 : i64} {
  func.func @_vgg_kernel(%arg0: i32, %arg1: memref<1x18x18x128xbf16, #tpu.memory_space<vmem>>, %arg2: memref<1152x32xbf16, #tpu.memory_space<vmem>>, %arg3: memref<1x32xf32, #tpu.memory_space<vmem>>, %arg4: memref<1152x64xbf16, #tpu.memory_space<vmem>>, %arg5: memref<1x64xf32, #tpu.memory_space<vmem>>, %arg6: memref<1152x128xbf16, #tpu.memory_space<vmem>>, %arg7: memref<1x128xf32, #tpu.memory_space<vmem>>, %arg8: memref<1152x256xbf16, #tpu.memory_space<vmem>>, %arg9: memref<1x256xf32, #tpu.memory_space<vmem>>, %arg10: memref<16x256x128xbf16, #tpu.memory_space<vmem>>, %arg11: memref<1x128xf32, #tpu.memory_space<vmem>>, %arg12: memref<1x1x128xf32, #tpu.memory_space<vmem>>, %arg13: memref<18x18x128xf32, #tpu.memory_space<vmem>>, %arg14: memref<10x10x128xf32, #tpu.memory_space<vmem>>, %arg15: memref<10x10x128xf32, #tpu.memory_space<vmem>>) attributes {dimension_semantics = [#tpu.dimension_semantics<parallel>], iteration_bounds = array<i64: 2>, scalar_prefetch = 0 : i64, scratch_operands = 3 : i64, tpu.core_type = #tpu.core_type<tc>, window_params = [{transform_indices = @transform_0, window_bounds = array<i64: 1, 18, 18, 128>}, {pipeline_mode = #tpu.pipeline_mode<synchronous>, transform_indices = @transform_1, window_bounds = array<i64: 1152, 32>}, {pipeline_mode = #tpu.pipeline_mode<synchronous>, transform_indices = @transform_2, window_bounds = array<i64: 1, 32>}, {pipeline_mode = #tpu.pipeline_mode<synchronous>, transform_indices = @transform_3, window_bounds = array<i64: 1152, 64>}, {pipeline_mode = #tpu.pipeline_mode<synchronous>, transform_indices = @transform_4, window_bounds = array<i64: 1, 64>}, {pipeline_mode = #tpu.pipeline_mode<synchronous>, transform_indices = @transform_5, window_bounds = array<i64: 1152, 128>}, {pipeline_mode = #tpu.pipeline_mode<synchronous>, transform_indices = @transform_6, window_bounds = array<i64: 1, 128>}, {pipeline_mode = #tpu.pipeline_mode<synchronous>, transform_indices = @transform_7, window_bounds = array<i64: 1152, 256>}, {pipeline_mode = #tpu.pipeline_mode<synchronous>, transform_indices = @transform_8, window_bounds = array<i64: 1, 256>}, {pipeline_mode = #tpu.pipeline_mode<synchronous>, transform_indices = @transform_9, window_bounds = array<i64: 16, 256, 128>}, {pipeline_mode = #tpu.pipeline_mode<synchronous>, transform_indices = @transform_10, window_bounds = array<i64: 1, 128>}, {transform_indices = @transform_11, window_bounds = array<i64: 1, 1, 128>}]} {
    %cst = arith.constant 0.000000e+00 : f32
    %0 = vector.broadcast %cst : f32 to vector<18x18x128xf32>
    %c0 = arith.constant 0 : index
    %c0_0 = arith.constant 0 : index
    %c0_1 = arith.constant 0 : index
    %1 = vector.load %arg13[%c0, %c0_0, %c0_1] : memref<18x18x128xf32, #tpu.memory_space<vmem>>, vector<18x18x128xf32>
    tpu.vector_store %arg13[%c0, %c0_0, %c0_1], %0 {strides = array<i32>} : memref<18x18x128xf32, #tpu.memory_space<vmem>>, vector<18x18x128xf32>,
    %cst_2 = arith.constant 0.000000e+00 : f32
    %2 = vector.broadcast %cst_2 : f32 to vector<10x10x128xf32>
    %c0_3 = arith.constant 0 : index
    %c0_4 = arith.constant 0 : index
    %c0_5 = arith.constant 0 : index
    %3 = vector.load %arg14[%c0_3, %c0_4, %c0_5] : memref<10x10x128xf32, #tpu.memory_space<vmem>>, vector<10x10x128xf32>
    tpu.vector_store %arg14[%c0_3, %c0_4, %c0_5], %2 {strides = array<i32>} : memref<10x10x128xf32, #tpu.memory_space<vmem>>, vector<10x10x128xf32>,
    %cst_6 = arith.constant 0.000000e+00 : f32
    %4 = vector.broadcast %cst_6 : f32 to vector<10x10x128xf32>
    %c0_7 = arith.constant 0 : index
    %c0_8 = arith.constant 0 : index
    %c0_9 = arith.constant 0 : index
    %5 = vector.load %arg15[%c0_7, %c0_8, %c0_9] : memref<10x10x128xf32, #tpu.memory_space<vmem>>, vector<10x10x128xf32>
    tpu.vector_store %arg15[%c0_7, %c0_8, %c0_9], %4 {strides = array<i32>} : memref<10x10x128xf32, #tpu.memory_space<vmem>>, vector<10x10x128xf32>,
    %c0_10 = arith.constant 0 : index
    %c0_11 = arith.constant 0 : index
    %c0_12 = arith.constant 0 : index
    %c0_13 = arith.constant 0 : index
    %6 = vector.load %arg1[%c0_10, %c0_11, %c0_12, %c0_13] : memref<1x18x18x128xbf16, #tpu.memory_space<vmem>>, vector<1x18x18x128xbf16>
    %7 = vector.shape_cast %6 : vector<1x18x18x128xbf16> to vector<18x18x128xbf16>
    %8 = vector.extract_strided_slice %7 {offsets = [0, 0, 0], sizes = [16, 16, 128], strides = [1, 1, 1]} : vector<18x18x128xbf16> to vector<16x16x128xbf16>
    %9 = vector.shape_cast %8 : vector<16x16x128xbf16> to vector<256x128xbf16>
    %10 = vector.extract_strided_slice %7 {offsets = [0, 1, 0], sizes = [16, 16, 128], strides = [1, 1, 1]} : vector<18x18x128xbf16> to vector<16x16x128xbf16>
    %11 = vector.shape_cast %10 : vector<16x16x128xbf16> to vector<256x128xbf16>
    %12 = vector.extract_strided_slice %7 {offsets = [0, 2, 0], sizes = [16, 16, 128], strides = [1, 1, 1]} : vector<18x18x128xbf16> to vector<16x16x128xbf16>
    %13 = vector.shape_cast %12 : vector<16x16x128xbf16> to vector<256x128xbf16>
    %14 = vector.extract_strided_slice %7 {offsets = [1, 0, 0], sizes = [16, 16, 128], strides = [1, 1, 1]} : vector<18x18x128xbf16> to vector<16x16x128xbf16>
    %15 = vector.shape_cast %14 : vector<16x16x128xbf16> to vector<256x128xbf16>
    %16 = vector.extract_strided_slice %7 {offsets = [1, 1, 0], sizes = [16, 16, 128], strides = [1, 1, 1]} : vector<18x18x128xbf16> to vector<16x16x128xbf16>
    %17 = vector.shape_cast %16 : vector<16x16x128xbf16> to vector<256x128xbf16>
    %18 = vector.extract_strided_slice %7 {offsets = [1, 2, 0], sizes = [16, 16, 128], strides = [1, 1, 1]} : vector<18x18x128xbf16> to vector<16x16x128xbf16>
    %19 = vector.shape_cast %18 : vector<16x16x128xbf16> to vector<256x128xbf16>
    %20 = vector.extract_strided_slice %7 {offsets = [2, 0, 0], sizes = [16, 16, 128], strides = [1, 1, 1]} : vector<18x18x128xbf16> to vector<16x16x128xbf16>
    %21 = vector.shape_cast %20 : vector<16x16x128xbf16> to vector<256x128xbf16>
    %22 = vector.extract_strided_slice %7 {offsets = [2, 1, 0], sizes = [16, 16, 128], strides = [1, 1, 1]} : vector<18x18x128xbf16> to vector<16x16x128xbf16>
    %23 = vector.shape_cast %22 : vector<16x16x128xbf16> to vector<256x128xbf16>
    %24 = vector.extract_strided_slice %7 {offsets = [2, 2, 0], sizes = [16, 16, 128], strides = [1, 1, 1]} : vector<18x18x128xbf16> to vector<16x16x128xbf16>
    %25 = vector.shape_cast %24 : vector<16x16x128xbf16> to vector<256x128xbf16>
    %26 = tpu.concatenate %9, %11, %13, %15, %17, %19, %21, %23, %25 in 1 : vector<256x128xbf16>, vector<256x128xbf16>, vector<256x128xbf16>, vector<256x128xbf16>, vector<256x128xbf16>, vector<256x128xbf16>, vector<256x128xbf16>, vector<256x128xbf16>, vector<256x128xbf16> -> vector<256x1152xbf16>
    %c0_14 = arith.constant 0 : index
    %c0_15 = arith.constant 0 : index
    %27 = vector.load %arg2[%c0_14, %c0_15] : memref<1152x32xbf16, #tpu.memory_space<vmem>>, vector<1152x32xbf16>
    %cst_16 = arith.constant dense<0.000000e+00> : vector<256x32xf32>
    %28 = tpu.matmul %26, %27, %cst_16 {dimension_numbers = #tpu.dot_dimension_numbers<[1], [0], [0], [1], [0, 0, 1, 1], [], []>} : vector<256x1152xbf16>, vector<1152x32xbf16>, vector<256x32xf32> -> vector<256x32xf32>
    %c0_17 = arith.constant 0 : index
    %c0_18 = arith.constant 0 : index
    %29 = vector.load %arg3[%c0_17, %c0_18] : memref<1x32xf32, #tpu.memory_space<vmem>>, vector<1x32xf32>
    %30 = vector.broadcast %29 : vector<1x32xf32> to vector<256x32xf32>
    %31 = arith.addf %28, %30 : vector<256x32xf32>
    %cst_19 = arith.constant 0.000000e+00 : f32
    %32 = vector.broadcast %cst_19 : f32 to vector<256x32xf32>
    %33 = arith.maximumf %31, %32 : vector<256x32xf32>
    %34 = vector.shape_cast %33 : vector<256x32xf32> to vector<16x16x32xf32>
    %c1 = arith.constant 1 : index
    %c1_20 = arith.constant 1 : index
    %c0_21 = arith.constant 0 : index
    %35 = vector.load %arg13[%c1, %c1_20, %c0_21] : memref<18x18x128xf32, #tpu.memory_space<vmem>>, vector<16x16x32xf32>
    tpu.vector_store %arg13[%c1, %c1_20, %c0_21], %34 {strides = array<i32>} : memref<18x18x128xf32, #tpu.memory_space<vmem>>, vector<16x16x32xf32>,
    %c0_22 = arith.constant 0 : index
    %c0_23 = arith.constant 0 : index
    %c0_24 = arith.constant 0 : index
    %36 = vector.load %arg13[%c0_22, %c0_23, %c0_24] : memref<18x18x128xf32, #tpu.memory_space<vmem>>, vector<18x18x128xf32>
    %37 = vector.extract_strided_slice %36 {offsets = [0, 0, 0], sizes = [16, 16, 128], strides = [1, 1, 1]} : vector<18x18x128xf32> to vector<16x16x128xf32>
    %38 = vector.shape_cast %37 : vector<16x16x128xf32> to vector<256x128xf32>
    %39 = arith.truncf %38 : vector<256x128xf32> to vector<256x128xbf16>
    %40 = vector.extract_strided_slice %36 {offsets = [0, 1, 0], sizes = [16, 16, 128], strides = [1, 1, 1]} : vector<18x18x128xf32> to vector<16x16x128xf32>
    %41 = vector.shape_cast %40 : vector<16x16x128xf32> to vector<256x128xf32>
    %42 = arith.truncf %41 : vector<256x128xf32> to vector<256x128xbf16>
    %43 = vector.extract_strided_slice %36 {offsets = [0, 2, 0], sizes = [16, 16, 128], strides = [1, 1, 1]} : vector<18x18x128xf32> to vector<16x16x128xf32>
    %44 = vector.shape_cast %43 : vector<16x16x128xf32> to vector<256x128xf32>
    %45 = arith.truncf %44 : vector<256x128xf32> to vector<256x128xbf16>
    %46 = vector.extract_strided_slice %36 {offsets = [1, 0, 0], sizes = [16, 16, 128], strides = [1, 1, 1]} : vector<18x18x128xf32> to vector<16x16x128xf32>
    %47 = vector.shape_cast %46 : vector<16x16x128xf32> to vector<256x128xf32>
    %48 = arith.truncf %47 : vector<256x128xf32> to vector<256x128xbf16>
    %49 = vector.extract_strided_slice %36 {offsets = [1, 1, 0], sizes = [16, 16, 128], strides = [1, 1, 1]} : vector<18x18x128xf32> to vector<16x16x128xf32>
    %50 = vector.shape_cast %49 : vector<16x16x128xf32> to vector<256x128xf32>
    %51 = arith.truncf %50 : vector<256x128xf32> to vector<256x128xbf16>
    %52 = vector.extract_strided_slice %36 {offsets = [1, 2, 0], sizes = [16, 16, 128], strides = [1, 1, 1]} : vector<18x18x128xf32> to vector<16x16x128xf32>
    %53 = vector.shape_cast %52 : vector<16x16x128xf32> to vector<256x128xf32>
    %54 = arith.truncf %53 : vector<256x128xf32> to vector<256x128xbf16>
    %55 = vector.extract_strided_slice %36 {offsets = [2, 0, 0], sizes = [16, 16, 128], strides = [1, 1, 1]} : vector<18x18x128xf32> to vector<16x16x128xf32>
    %56 = vector.shape_cast %55 : vector<16x16x128xf32> to vector<256x128xf32>
    %57 = arith.truncf %56 : vector<256x128xf32> to vector<256x128xbf16>
    %58 = vector.extract_strided_slice %36 {offsets = [2, 1, 0], sizes = [16, 16, 128], strides = [1, 1, 1]} : vector<18x18x128xf32> to vector<16x16x128xf32>
    %59 = vector.shape_cast %58 : vector<16x16x128xf32> to vector<256x128xf32>
    %60 = arith.truncf %59 : vector<256x128xf32> to vector<256x128xbf16>
    %61 = vector.extract_strided_slice %36 {offsets = [2, 2, 0], sizes = [16, 16, 128], strides = [1, 1, 1]} : vector<18x18x128xf32> to vector<16x16x128xf32>
    %62 = vector.shape_cast %61 : vector<16x16x128xf32> to vector<256x128xf32>
    %63 = arith.truncf %62 : vector<256x128xf32> to vector<256x128xbf16>
    %64 = tpu.concatenate %39, %42, %45, %48, %51, %54, %57, %60, %63 in 1 : vector<256x128xbf16>, vector<256x128xbf16>, vector<256x128xbf16>, vector<256x128xbf16>, vector<256x128xbf16>, vector<256x128xbf16>, vector<256x128xbf16>, vector<256x128xbf16>, vector<256x128xbf16> -> vector<256x1152xbf16>
    %c0_25 = arith.constant 0 : index
    %c0_26 = arith.constant 0 : index
    %65 = vector.load %arg4[%c0_25, %c0_26] : memref<1152x64xbf16, #tpu.memory_space<vmem>>, vector<1152x64xbf16>
    %cst_27 = arith.constant dense<0.000000e+00> : vector<256x64xf32>
    %66 = tpu.matmul %64, %65, %cst_27 {dimension_numbers = #tpu.dot_dimension_numbers<[1], [0], [0], [1], [0, 0, 1, 1], [], []>} : vector<256x1152xbf16>, vector<1152x64xbf16>, vector<256x64xf32> -> vector<256x64xf32>
    %c0_28 = arith.constant 0 : index
    %c0_29 = arith.constant 0 : index
    %67 = vector.load %arg5[%c0_28, %c0_29] : memref<1x64xf32, #tpu.memory_space<vmem>>, vector<1x64xf32>
    %68 = vector.broadcast %67 : vector<1x64xf32> to vector<256x64xf32>
    %69 = arith.addf %66, %68 : vector<256x64xf32>
    %cst_30 = arith.constant 0.000000e+00 : f32
    %70 = vector.broadcast %cst_30 : f32 to vector<256x64xf32>
    %71 = arith.maximumf %69, %70 : vector<256x64xf32>
    %72 = vector.shape_cast %71 : vector<256x64xf32> to vector<8x2x16x64xf32>
    %73 = vector.extract_strided_slice %72 {offsets = [0, 0, 0, 0], sizes = [8, 1, 16, 64], strides = [1, 1, 1, 1]} : vector<8x2x16x64xf32> to vector<8x1x16x64xf32>
    %74 = vector.shape_cast %73 : vector<8x1x16x64xf32> to vector<8x16x64xf32>
    %75 = vector.extract_strided_slice %72 {offsets = [0, 1, 0, 0], sizes = [8, 1, 16, 64], strides = [1, 1, 1, 1]} : vector<8x2x16x64xf32> to vector<8x1x16x64xf32>
    %76 = vector.shape_cast %75 : vector<8x1x16x64xf32> to vector<8x16x64xf32>
    %77 = arith.maximumf %74, %76 : vector<8x16x64xf32>
    %78 = vector.extract_strided_slice %77 {offsets = [0, 0, 0], sizes = [8, 1, 64], strides = [1, 1, 1]} : vector<8x16x64xf32> to vector<8x1x64xf32>
    %79 = vector.extract_strided_slice %77 {offsets = [0, 1, 0], sizes = [8, 1, 64], strides = [1, 1, 1]} : vector<8x16x64xf32> to vector<8x1x64xf32>
    %80 = arith.maximumf %78, %79 : vector<8x1x64xf32>
    %c1_31 = arith.constant 1 : index
    %c1_32 = arith.constant 1 : index
    %c0_33 = arith.constant 0 : index
    %81 = vector.load %arg14[%c1_31, %c1_32, %c0_33] : memref<10x10x128xf32, #tpu.memory_space<vmem>>, vector<8x1x64xf32>
    tpu.vector_store %arg14[%c1_31, %c1_32, %c0_33], %80 {strides = array<i32>} : memref<10x10x128xf32, #tpu.memory_space<vmem>>, vector<8x1x64xf32>,
    %82 = vector.extract_strided_slice %77 {offsets = [0, 2, 0], sizes = [8, 1, 64], strides = [1, 1, 1]} : vector<8x16x64xf32> to vector<8x1x64xf32>
    %83 = vector.extract_strided_slice %77 {offsets = [0, 3, 0], sizes = [8, 1, 64], strides = [1, 1, 1]} : vector<8x16x64xf32> to vector<8x1x64xf32>
    %84 = arith.maximumf %82, %83 : vector<8x1x64xf32>
    %c1_34 = arith.constant 1 : index
    %c2 = arith.constant 2 : index
    %c0_35 = arith.constant 0 : index
    %85 = vector.load %arg14[%c1_34, %c2, %c0_35] : memref<10x10x128xf32, #tpu.memory_space<vmem>>, vector<8x1x64xf32>
    tpu.vector_store %arg14[%c1_34, %c2, %c0_35], %84 {strides = array<i32>} : memref<10x10x128xf32, #tpu.memory_space<vmem>>, vector<8x1x64xf32>,
    %86 = vector.extract_strided_slice %77 {offsets = [0, 4, 0], sizes = [8, 1, 64], strides = [1, 1, 1]} : vector<8x16x64xf32> to vector<8x1x64xf32>
    %87 = vector.extract_strided_slice %77 {offsets = [0, 5, 0], sizes = [8, 1, 64], strides = [1, 1, 1]} : vector<8x16x64xf32> to vector<8x1x64xf32>
    %88 = arith.maximumf %86, %87 : vector<8x1x64xf32>
    %c1_36 = arith.constant 1 : index
    %c3 = arith.constant 3 : index
    %c0_37 = arith.constant 0 : index
    %89 = vector.load %arg14[%c1_36, %c3, %c0_37] : memref<10x10x128xf32, #tpu.memory_space<vmem>>, vector<8x1x64xf32>
    tpu.vector_store %arg14[%c1_36, %c3, %c0_37], %88 {strides = array<i32>} : memref<10x10x128xf32, #tpu.memory_space<vmem>>, vector<8x1x64xf32>,
    %90 = vector.extract_strided_slice %77 {offsets = [0, 6, 0], sizes = [8, 1, 64], strides = [1, 1, 1]} : vector<8x16x64xf32> to vector<8x1x64xf32>
    %91 = vector.extract_strided_slice %77 {offsets = [0, 7, 0], sizes = [8, 1, 64], strides = [1, 1, 1]} : vector<8x16x64xf32> to vector<8x1x64xf32>
    %92 = arith.maximumf %90, %91 : vector<8x1x64xf32>
    %c1_38 = arith.constant 1 : index
    %c4 = arith.constant 4 : index
    %c0_39 = arith.constant 0 : index
    %93 = vector.load %arg14[%c1_38, %c4, %c0_39] : memref<10x10x128xf32, #tpu.memory_space<vmem>>, vector<8x1x64xf32>
    tpu.vector_store %arg14[%c1_38, %c4, %c0_39], %92 {strides = array<i32>} : memref<10x10x128xf32, #tpu.memory_space<vmem>>, vector<8x1x64xf32>,
    %94 = vector.extract_strided_slice %77 {offsets = [0, 8, 0], sizes = [8, 1, 64], strides = [1, 1, 1]} : vector<8x16x64xf32> to vector<8x1x64xf32>
    %95 = vector.extract_strided_slice %77 {offsets = [0, 9, 0], sizes = [8, 1, 64], strides = [1, 1, 1]} : vector<8x16x64xf32> to vector<8x1x64xf32>
    %96 = arith.maximumf %94, %95 : vector<8x1x64xf32>
    %c1_40 = arith.constant 1 : index
    %c5 = arith.constant 5 : index
    %c0_41 = arith.constant 0 : index
    %97 = vector.load %arg14[%c1_40, %c5, %c0_41] : memref<10x10x128xf32, #tpu.memory_space<vmem>>, vector<8x1x64xf32>
    tpu.vector_store %arg14[%c1_40, %c5, %c0_41], %96 {strides = array<i32>} : memref<10x10x128xf32, #tpu.memory_space<vmem>>, vector<8x1x64xf32>,
    %98 = vector.extract_strided_slice %77 {offsets = [0, 10, 0], sizes = [8, 1, 64], strides = [1, 1, 1]} : vector<8x16x64xf32> to vector<8x1x64xf32>
    %99 = vector.extract_strided_slice %77 {offsets = [0, 11, 0], sizes = [8, 1, 64], strides = [1, 1, 1]} : vector<8x16x64xf32> to vector<8x1x64xf32>
    %100 = arith.maximumf %98, %99 : vector<8x1x64xf32>
    %c1_42 = arith.constant 1 : index
    %c6 = arith.constant 6 : index
    %c0_43 = arith.constant 0 : index
    %101 = vector.load %arg14[%c1_42, %c6, %c0_43] : memref<10x10x128xf32, #tpu.memory_space<vmem>>, vector<8x1x64xf32>
    tpu.vector_store %arg14[%c1_42, %c6, %c0_43], %100 {strides = array<i32>} : memref<10x10x128xf32, #tpu.memory_space<vmem>>, vector<8x1x64xf32>,
    %102 = vector.extract_strided_slice %77 {offsets = [0, 12, 0], sizes = [8, 1, 64], strides = [1, 1, 1]} : vector<8x16x64xf32> to vector<8x1x64xf32>
    %103 = vector.extract_strided_slice %77 {offsets = [0, 13, 0], sizes = [8, 1, 64], strides = [1, 1, 1]} : vector<8x16x64xf32> to vector<8x1x64xf32>
    %104 = arith.maximumf %102, %103 : vector<8x1x64xf32>
    %c1_44 = arith.constant 1 : index
    %c7 = arith.constant 7 : index
    %c0_45 = arith.constant 0 : index
    %105 = vector.load %arg14[%c1_44, %c7, %c0_45] : memref<10x10x128xf32, #tpu.memory_space<vmem>>, vector<8x1x64xf32>
    tpu.vector_store %arg14[%c1_44, %c7, %c0_45], %104 {strides = array<i32>} : memref<10x10x128xf32, #tpu.memory_space<vmem>>, vector<8x1x64xf32>,
    %106 = vector.extract_strided_slice %77 {offsets = [0, 14, 0], sizes = [8, 1, 64], strides = [1, 1, 1]} : vector<8x16x64xf32> to vector<8x1x64xf32>
    %107 = vector.extract_strided_slice %77 {offsets = [0, 15, 0], sizes = [8, 1, 64], strides = [1, 1, 1]} : vector<8x16x64xf32> to vector<8x1x64xf32>
    %108 = arith.maximumf %106, %107 : vector<8x1x64xf32>
    %c1_46 = arith.constant 1 : index
    %c8 = arith.constant 8 : index
    %c0_47 = arith.constant 0 : index
    %109 = vector.load %arg14[%c1_46, %c8, %c0_47] : memref<10x10x128xf32, #tpu.memory_space<vmem>>, vector<8x1x64xf32>
    tpu.vector_store %arg14[%c1_46, %c8, %c0_47], %108 {strides = array<i32>} : memref<10x10x128xf32, #tpu.memory_space<vmem>>, vector<8x1x64xf32>,
    %c0_48 = arith.constant 0 : index
    %c0_49 = arith.constant 0 : index
    %c0_50 = arith.constant 0 : index
    %110 = vector.load %arg14[%c0_48, %c0_49, %c0_50] : memref<10x10x128xf32, #tpu.memory_space<vmem>>, vector<10x10x128xf32>
    %111 = vector.extract_strided_slice %110 {offsets = [0, 0, 0], sizes = [8, 8, 128], strides = [1, 1, 1]} : vector<10x10x128xf32> to vector<8x8x128xf32>
    %112 = vector.shape_cast %111 : vector<8x8x128xf32> to vector<64x128xf32>
    %113 = arith.truncf %112 : vector<64x128xf32> to vector<64x128xbf16>
    %114 = vector.extract_strided_slice %110 {offsets = [0, 1, 0], sizes = [8, 8, 128], strides = [1, 1, 1]} : vector<10x10x128xf32> to vector<8x8x128xf32>
    %115 = vector.shape_cast %114 : vector<8x8x128xf32> to vector<64x128xf32>
    %116 = arith.truncf %115 : vector<64x128xf32> to vector<64x128xbf16>
    %117 = vector.extract_strided_slice %110 {offsets = [0, 2, 0], sizes = [8, 8, 128], strides = [1, 1, 1]} : vector<10x10x128xf32> to vector<8x8x128xf32>
    %118 = vector.shape_cast %117 : vector<8x8x128xf32> to vector<64x128xf32>
    %119 = arith.truncf %118 : vector<64x128xf32> to vector<64x128xbf16>
    %120 = vector.extract_strided_slice %110 {offsets = [1, 0, 0], sizes = [8, 8, 128], strides = [1, 1, 1]} : vector<10x10x128xf32> to vector<8x8x128xf32>
    %121 = vector.shape_cast %120 : vector<8x8x128xf32> to vector<64x128xf32>
    %122 = arith.truncf %121 : vector<64x128xf32> to vector<64x128xbf16>
    %123 = vector.extract_strided_slice %110 {offsets = [1, 1, 0], sizes = [8, 8, 128], strides = [1, 1, 1]} : vector<10x10x128xf32> to vector<8x8x128xf32>
    %124 = vector.shape_cast %123 : vector<8x8x128xf32> to vector<64x128xf32>
    %125 = arith.truncf %124 : vector<64x128xf32> to vector<64x128xbf16>
    %126 = vector.extract_strided_slice %110 {offsets = [1, 2, 0], sizes = [8, 8, 128], strides = [1, 1, 1]} : vector<10x10x128xf32> to vector<8x8x128xf32>
    %127 = vector.shape_cast %126 : vector<8x8x128xf32> to vector<64x128xf32>
    %128 = arith.truncf %127 : vector<64x128xf32> to vector<64x128xbf16>
    %129 = vector.extract_strided_slice %110 {offsets = [2, 0, 0], sizes = [8, 8, 128], strides = [1, 1, 1]} : vector<10x10x128xf32> to vector<8x8x128xf32>
    %130 = vector.shape_cast %129 : vector<8x8x128xf32> to vector<64x128xf32>
    %131 = arith.truncf %130 : vector<64x128xf32> to vector<64x128xbf16>
    %132 = vector.extract_strided_slice %110 {offsets = [2, 1, 0], sizes = [8, 8, 128], strides = [1, 1, 1]} : vector<10x10x128xf32> to vector<8x8x128xf32>
    %133 = vector.shape_cast %132 : vector<8x8x128xf32> to vector<64x128xf32>
    %134 = arith.truncf %133 : vector<64x128xf32> to vector<64x128xbf16>
    %135 = vector.extract_strided_slice %110 {offsets = [2, 2, 0], sizes = [8, 8, 128], strides = [1, 1, 1]} : vector<10x10x128xf32> to vector<8x8x128xf32>
    %136 = vector.shape_cast %135 : vector<8x8x128xf32> to vector<64x128xf32>
    %137 = arith.truncf %136 : vector<64x128xf32> to vector<64x128xbf16>
    %138 = tpu.concatenate %113, %116, %119, %122, %125, %128, %131, %134, %137 in 1 : vector<64x128xbf16>, vector<64x128xbf16>, vector<64x128xbf16>, vector<64x128xbf16>, vector<64x128xbf16>, vector<64x128xbf16>, vector<64x128xbf16>, vector<64x128xbf16>, vector<64x128xbf16> -> vector<64x1152xbf16>
    %c0_51 = arith.constant 0 : index
    %c0_52 = arith.constant 0 : index
    %139 = vector.load %arg6[%c0_51, %c0_52] : memref<1152x128xbf16, #tpu.memory_space<vmem>>, vector<1152x128xbf16>
    %cst_53 = arith.constant dense<0.000000e+00> : vector<64x128xf32>
    %140 = tpu.matmul %138, %139, %cst_53 {dimension_numbers = #tpu.dot_dimension_numbers<[1], [0], [0], [1], [0, 0, 1, 1], [], []>} : vector<64x1152xbf16>, vector<1152x128xbf16>, vector<64x128xf32> -> vector<64x128xf32>
    %c0_54 = arith.constant 0 : index
    %c0_55 = arith.constant 0 : index
    %141 = vector.load %arg7[%c0_54, %c0_55] : memref<1x128xf32, #tpu.memory_space<vmem>>, vector<1x128xf32>
    %142 = vector.broadcast %141 : vector<1x128xf32> to vector<64x128xf32>
    %143 = arith.addf %140, %142 : vector<64x128xf32>
    %cst_56 = arith.constant 0.000000e+00 : f32
    %144 = vector.broadcast %cst_56 : f32 to vector<64x128xf32>
    %145 = arith.maximumf %143, %144 : vector<64x128xf32>
    %146 = vector.shape_cast %145 : vector<64x128xf32> to vector<8x8x128xf32>
    %c1_57 = arith.constant 1 : index
    %c1_58 = arith.constant 1 : index
    %c0_59 = arith.constant 0 : index
    %147 = vector.load %arg15[%c1_57, %c1_58, %c0_59] : memref<10x10x128xf32, #tpu.memory_space<vmem>>, vector<8x8x128xf32>
    tpu.vector_store %arg15[%c1_57, %c1_58, %c0_59], %146 {strides = array<i32>} : memref<10x10x128xf32, #tpu.memory_space<vmem>>, vector<8x8x128xf32>,
    %c0_60 = arith.constant 0 : index
    %c0_61 = arith.constant 0 : index
    %c0_62 = arith.constant 0 : index
    %148 = vector.load %arg15[%c0_60, %c0_61, %c0_62] : memref<10x10x128xf32, #tpu.memory_space<vmem>>, vector<10x10x128xf32>
    %149 = vector.extract_strided_slice %148 {offsets = [0, 0, 0], sizes = [8, 8, 128], strides = [1, 1, 1]} : vector<10x10x128xf32> to vector<8x8x128xf32>
    %150 = vector.shape_cast %149 : vector<8x8x128xf32> to vector<64x128xf32>
    %151 = arith.truncf %150 : vector<64x128xf32> to vector<64x128xbf16>
    %152 = vector.extract_strided_slice %148 {offsets = [0, 1, 0], sizes = [8, 8, 128], strides = [1, 1, 1]} : vector<10x10x128xf32> to vector<8x8x128xf32>
    %153 = vector.shape_cast %152 : vector<8x8x128xf32> to vector<64x128xf32>
    %154 = arith.truncf %153 : vector<64x128xf32> to vector<64x128xbf16>
    %155 = vector.extract_strided_slice %148 {offsets = [0, 2, 0], sizes = [8, 8, 128], strides = [1, 1, 1]} : vector<10x10x128xf32> to vector<8x8x128xf32>
    %156 = vector.shape_cast %155 : vector<8x8x128xf32> to vector<64x128xf32>
    %157 = arith.truncf %156 : vector<64x128xf32> to vector<64x128xbf16>
    %158 = vector.extract_strided_slice %148 {offsets = [1, 0, 0], sizes = [8, 8, 128], strides = [1, 1, 1]} : vector<10x10x128xf32> to vector<8x8x128xf32>
    %159 = vector.shape_cast %158 : vector<8x8x128xf32> to vector<64x128xf32>
    %160 = arith.truncf %159 : vector<64x128xf32> to vector<64x128xbf16>
    %161 = vector.extract_strided_slice %148 {offsets = [1, 1, 0], sizes = [8, 8, 128], strides = [1, 1, 1]} : vector<10x10x128xf32> to vector<8x8x128xf32>
    %162 = vector.shape_cast %161 : vector<8x8x128xf32> to vector<64x128xf32>
    %163 = arith.truncf %162 : vector<64x128xf32> to vector<64x128xbf16>
    %164 = vector.extract_strided_slice %148 {offsets = [1, 2, 0], sizes = [8, 8, 128], strides = [1, 1, 1]} : vector<10x10x128xf32> to vector<8x8x128xf32>
    %165 = vector.shape_cast %164 : vector<8x8x128xf32> to vector<64x128xf32>
    %166 = arith.truncf %165 : vector<64x128xf32> to vector<64x128xbf16>
    %167 = vector.extract_strided_slice %148 {offsets = [2, 0, 0], sizes = [8, 8, 128], strides = [1, 1, 1]} : vector<10x10x128xf32> to vector<8x8x128xf32>
    %168 = vector.shape_cast %167 : vector<8x8x128xf32> to vector<64x128xf32>
    %169 = arith.truncf %168 : vector<64x128xf32> to vector<64x128xbf16>
    %170 = vector.extract_strided_slice %148 {offsets = [2, 1, 0], sizes = [8, 8, 128], strides = [1, 1, 1]} : vector<10x10x128xf32> to vector<8x8x128xf32>
    %171 = vector.shape_cast %170 : vector<8x8x128xf32> to vector<64x128xf32>
    %172 = arith.truncf %171 : vector<64x128xf32> to vector<64x128xbf16>
    %173 = vector.extract_strided_slice %148 {offsets = [2, 2, 0], sizes = [8, 8, 128], strides = [1, 1, 1]} : vector<10x10x128xf32> to vector<8x8x128xf32>
    %174 = vector.shape_cast %173 : vector<8x8x128xf32> to vector<64x128xf32>
    %175 = arith.truncf %174 : vector<64x128xf32> to vector<64x128xbf16>
    %176 = tpu.concatenate %151, %154, %157, %160, %163, %166, %169, %172, %175 in 1 : vector<64x128xbf16>, vector<64x128xbf16>, vector<64x128xbf16>, vector<64x128xbf16>, vector<64x128xbf16>, vector<64x128xbf16>, vector<64x128xbf16>, vector<64x128xbf16>, vector<64x128xbf16> -> vector<64x1152xbf16>
    %c0_63 = arith.constant 0 : index
    %c0_64 = arith.constant 0 : index
    %177 = vector.load %arg8[%c0_63, %c0_64] : memref<1152x256xbf16, #tpu.memory_space<vmem>>, vector<1152x256xbf16>
    %cst_65 = arith.constant dense<0.000000e+00> : vector<64x256xf32>
    %178 = tpu.matmul %176, %177, %cst_65 {dimension_numbers = #tpu.dot_dimension_numbers<[1], [0], [0], [1], [0, 0, 1, 1], [], []>} : vector<64x1152xbf16>, vector<1152x256xbf16>, vector<64x256xf32> -> vector<64x256xf32>
    %c0_66 = arith.constant 0 : index
    %c0_67 = arith.constant 0 : index
    %179 = vector.load %arg9[%c0_66, %c0_67] : memref<1x256xf32, #tpu.memory_space<vmem>>, vector<1x256xf32>
    %180 = vector.broadcast %179 : vector<1x256xf32> to vector<64x256xf32>
    %181 = arith.addf %178, %180 : vector<64x256xf32>
    %cst_68 = arith.constant 0.000000e+00 : f32
    %182 = vector.broadcast %cst_68 : f32 to vector<64x256xf32>
    %183 = arith.maximumf %181, %182 : vector<64x256xf32>
    %184 = vector.shape_cast %183 : vector<64x256xf32> to vector<4x2x8x256xf32>
    %185 = vector.extract_strided_slice %184 {offsets = [0, 0, 0, 0], sizes = [4, 1, 8, 256], strides = [1, 1, 1, 1]} : vector<4x2x8x256xf32> to vector<4x1x8x256xf32>
    %186 = vector.shape_cast %185 : vector<4x1x8x256xf32> to vector<4x8x256xf32>
    %187 = vector.extract_strided_slice %184 {offsets = [0, 1, 0, 0], sizes = [4, 1, 8, 256], strides = [1, 1, 1, 1]} : vector<4x2x8x256xf32> to vector<4x1x8x256xf32>
    %188 = vector.shape_cast %187 : vector<4x1x8x256xf32> to vector<4x8x256xf32>
    %189 = arith.maximumf %186, %188 : vector<4x8x256xf32>
    %cst_69 = arith.constant 0.000000e+00 : f32
    %190 = vector.broadcast %cst_69 : f32 to vector<1x128xf32>
    %191 = vector.extract_strided_slice %189 {offsets = [0, 0, 0], sizes = [4, 1, 256], strides = [1, 1, 1]} : vector<4x8x256xf32> to vector<4x1x256xf32>
    %192 = vector.extract_strided_slice %189 {offsets = [0, 1, 0], sizes = [4, 1, 256], strides = [1, 1, 1]} : vector<4x8x256xf32> to vector<4x1x256xf32>
    %193 = arith.maximumf %191, %192 : vector<4x1x256xf32>
    %194 = vector.extract_strided_slice %193 {offsets = [0, 0, 0], sizes = [1, 1, 256], strides = [1, 1, 1]} : vector<4x1x256xf32> to vector<1x1x256xf32>
    %195 = vector.shape_cast %194 : vector<1x1x256xf32> to vector<1x256xf32>
    %196 = arith.truncf %195 : vector<1x256xf32> to vector<1x256xbf16>
    %c0_70 = arith.constant 0 : index
    %c0_71 = arith.constant 0 : index
    %c0_72 = arith.constant 0 : index
    %197 = vector.load %arg10[%c0_70, %c0_71, %c0_72] : memref<16x256x128xbf16, #tpu.memory_space<vmem>>, vector<1x256x128xbf16>
    %198 = vector.shape_cast %197 : vector<1x256x128xbf16> to vector<256x128xbf16>
    %cst_73 = arith.constant dense<0.000000e+00> : vector<1x128xf32>
    %199 = tpu.matmul %196, %198, %cst_73 {dimension_numbers = #tpu.dot_dimension_numbers<[1], [0], [0], [1], [0, 0, 1, 1], [], []>} : vector<1x256xbf16>, vector<256x128xbf16>, vector<1x128xf32> -> vector<1x128xf32>
    %200 = arith.addf %190, %199 : vector<1x128xf32>
    %201 = vector.extract_strided_slice %193 {offsets = [1, 0, 0], sizes = [1, 1, 256], strides = [1, 1, 1]} : vector<4x1x256xf32> to vector<1x1x256xf32>
    %202 = vector.shape_cast %201 : vector<1x1x256xf32> to vector<1x256xf32>
    %203 = arith.truncf %202 : vector<1x256xf32> to vector<1x256xbf16>
    %c4_74 = arith.constant 4 : index
    %c0_75 = arith.constant 0 : index
    %c0_76 = arith.constant 0 : index
    %204 = vector.load %arg10[%c4_74, %c0_75, %c0_76] : memref<16x256x128xbf16, #tpu.memory_space<vmem>>, vector<1x256x128xbf16>
    %205 = vector.shape_cast %204 : vector<1x256x128xbf16> to vector<256x128xbf16>
    %cst_77 = arith.constant dense<0.000000e+00> : vector<1x128xf32>
    %206 = tpu.matmul %203, %205, %cst_77 {dimension_numbers = #tpu.dot_dimension_numbers<[1], [0], [0], [1], [0, 0, 1, 1], [], []>} : vector<1x256xbf16>, vector<256x128xbf16>, vector<1x128xf32> -> vector<1x128xf32>
    %207 = arith.addf %200, %206 : vector<1x128xf32>
    %208 = vector.extract_strided_slice %193 {offsets = [2, 0, 0], sizes = [1, 1, 256], strides = [1, 1, 1]} : vector<4x1x256xf32> to vector<1x1x256xf32>
    %209 = vector.shape_cast %208 : vector<1x1x256xf32> to vector<1x256xf32>
    %210 = arith.truncf %209 : vector<1x256xf32> to vector<1x256xbf16>
    %c8_78 = arith.constant 8 : index
    %c0_79 = arith.constant 0 : index
    %c0_80 = arith.constant 0 : index
    %211 = vector.load %arg10[%c8_78, %c0_79, %c0_80] : memref<16x256x128xbf16, #tpu.memory_space<vmem>>, vector<1x256x128xbf16>
    %212 = vector.shape_cast %211 : vector<1x256x128xbf16> to vector<256x128xbf16>
    %cst_81 = arith.constant dense<0.000000e+00> : vector<1x128xf32>
    %213 = tpu.matmul %210, %212, %cst_81 {dimension_numbers = #tpu.dot_dimension_numbers<[1], [0], [0], [1], [0, 0, 1, 1], [], []>} : vector<1x256xbf16>, vector<256x128xbf16>, vector<1x128xf32> -> vector<1x128xf32>
    %214 = arith.addf %207, %213 : vector<1x128xf32>
    %215 = vector.extract_strided_slice %193 {offsets = [3, 0, 0], sizes = [1, 1, 256], strides = [1, 1, 1]} : vector<4x1x256xf32> to vector<1x1x256xf32>
    %216 = vector.shape_cast %215 : vector<1x1x256xf32> to vector<1x256xf32>
    %217 = arith.truncf %216 : vector<1x256xf32> to vector<1x256xbf16>
    %c12 = arith.constant 12 : index
    %c0_82 = arith.constant 0 : index
    %c0_83 = arith.constant 0 : index
    %218 = vector.load %arg10[%c12, %c0_82, %c0_83] : memref<16x256x128xbf16, #tpu.memory_space<vmem>>, vector<1x256x128xbf16>
    %219 = vector.shape_cast %218 : vector<1x256x128xbf16> to vector<256x128xbf16>
    %cst_84 = arith.constant dense<0.000000e+00> : vector<1x128xf32>
    %220 = tpu.matmul %217, %219, %cst_84 {dimension_numbers = #tpu.dot_dimension_numbers<[1], [0], [0], [1], [0, 0, 1, 1], [], []>} : vector<1x256xbf16>, vector<256x128xbf16>, vector<1x128xf32> -> vector<1x128xf32>
    %221 = arith.addf %214, %220 : vector<1x128xf32>
    %222 = vector.extract_strided_slice %189 {offsets = [0, 2, 0], sizes = [4, 1, 256], strides = [1, 1, 1]} : vector<4x8x256xf32> to vector<4x1x256xf32>
    %223 = vector.extract_strided_slice %189 {offsets = [0, 3, 0], sizes = [4, 1, 256], strides = [1, 1, 1]} : vector<4x8x256xf32> to vector<4x1x256xf32>
    %224 = arith.maximumf %222, %223 : vector<4x1x256xf32>
    %225 = vector.extract_strided_slice %224 {offsets = [0, 0, 0], sizes = [1, 1, 256], strides = [1, 1, 1]} : vector<4x1x256xf32> to vector<1x1x256xf32>
    %226 = vector.shape_cast %225 : vector<1x1x256xf32> to vector<1x256xf32>
    %227 = arith.truncf %226 : vector<1x256xf32> to vector<1x256xbf16>
    %c1_85 = arith.constant 1 : index
    %c0_86 = arith.constant 0 : index
    %c0_87 = arith.constant 0 : index
    %228 = vector.load %arg10[%c1_85, %c0_86, %c0_87] : memref<16x256x128xbf16, #tpu.memory_space<vmem>>, vector<1x256x128xbf16>
    %229 = vector.shape_cast %228 : vector<1x256x128xbf16> to vector<256x128xbf16>
    %cst_88 = arith.constant dense<0.000000e+00> : vector<1x128xf32>
    %230 = tpu.matmul %227, %229, %cst_88 {dimension_numbers = #tpu.dot_dimension_numbers<[1], [0], [0], [1], [0, 0, 1, 1], [], []>} : vector<1x256xbf16>, vector<256x128xbf16>, vector<1x128xf32> -> vector<1x128xf32>
    %231 = arith.addf %221, %230 : vector<1x128xf32>
    %232 = vector.extract_strided_slice %224 {offsets = [1, 0, 0], sizes = [1, 1, 256], strides = [1, 1, 1]} : vector<4x1x256xf32> to vector<1x1x256xf32>
    %233 = vector.shape_cast %232 : vector<1x1x256xf32> to vector<1x256xf32>
    %234 = arith.truncf %233 : vector<1x256xf32> to vector<1x256xbf16>
    %c5_89 = arith.constant 5 : index
    %c0_90 = arith.constant 0 : index
    %c0_91 = arith.constant 0 : index
    %235 = vector.load %arg10[%c5_89, %c0_90, %c0_91] : memref<16x256x128xbf16, #tpu.memory_space<vmem>>, vector<1x256x128xbf16>
    %236 = vector.shape_cast %235 : vector<1x256x128xbf16> to vector<256x128xbf16>
    %cst_92 = arith.constant dense<0.000000e+00> : vector<1x128xf32>
    %237 = tpu.matmul %234, %236, %cst_92 {dimension_numbers = #tpu.dot_dimension_numbers<[1], [0], [0], [1], [0, 0, 1, 1], [], []>} : vector<1x256xbf16>, vector<256x128xbf16>, vector<1x128xf32> -> vector<1x128xf32>
    %238 = arith.addf %231, %237 : vector<1x128xf32>
    %239 = vector.extract_strided_slice %224 {offsets = [2, 0, 0], sizes = [1, 1, 256], strides = [1, 1, 1]} : vector<4x1x256xf32> to vector<1x1x256xf32>
    %240 = vector.shape_cast %239 : vector<1x1x256xf32> to vector<1x256xf32>
    %241 = arith.truncf %240 : vector<1x256xf32> to vector<1x256xbf16>
    %c9 = arith.constant 9 : index
    %c0_93 = arith.constant 0 : index
    %c0_94 = arith.constant 0 : index
    %242 = vector.load %arg10[%c9, %c0_93, %c0_94] : memref<16x256x128xbf16, #tpu.memory_space<vmem>>, vector<1x256x128xbf16>
    %243 = vector.shape_cast %242 : vector<1x256x128xbf16> to vector<256x128xbf16>
    %cst_95 = arith.constant dense<0.000000e+00> : vector<1x128xf32>
    %244 = tpu.matmul %241, %243, %cst_95 {dimension_numbers = #tpu.dot_dimension_numbers<[1], [0], [0], [1], [0, 0, 1, 1], [], []>} : vector<1x256xbf16>, vector<256x128xbf16>, vector<1x128xf32> -> vector<1x128xf32>
    %245 = arith.addf %238, %244 : vector<1x128xf32>
    %246 = vector.extract_strided_slice %224 {offsets = [3, 0, 0], sizes = [1, 1, 256], strides = [1, 1, 1]} : vector<4x1x256xf32> to vector<1x1x256xf32>
    %247 = vector.shape_cast %246 : vector<1x1x256xf32> to vector<1x256xf32>
    %248 = arith.truncf %247 : vector<1x256xf32> to vector<1x256xbf16>
    %c13 = arith.constant 13 : index
    %c0_96 = arith.constant 0 : index
    %c0_97 = arith.constant 0 : index
    %249 = vector.load %arg10[%c13, %c0_96, %c0_97] : memref<16x256x128xbf16, #tpu.memory_space<vmem>>, vector<1x256x128xbf16>
    %250 = vector.shape_cast %249 : vector<1x256x128xbf16> to vector<256x128xbf16>
    %cst_98 = arith.constant dense<0.000000e+00> : vector<1x128xf32>
    %251 = tpu.matmul %248, %250, %cst_98 {dimension_numbers = #tpu.dot_dimension_numbers<[1], [0], [0], [1], [0, 0, 1, 1], [], []>} : vector<1x256xbf16>, vector<256x128xbf16>, vector<1x128xf32> -> vector<1x128xf32>
    %252 = arith.addf %245, %251 : vector<1x128xf32>
    %253 = vector.extract_strided_slice %189 {offsets = [0, 4, 0], sizes = [4, 1, 256], strides = [1, 1, 1]} : vector<4x8x256xf32> to vector<4x1x256xf32>
    %254 = vector.extract_strided_slice %189 {offsets = [0, 5, 0], sizes = [4, 1, 256], strides = [1, 1, 1]} : vector<4x8x256xf32> to vector<4x1x256xf32>
    %255 = arith.maximumf %253, %254 : vector<4x1x256xf32>
    %256 = vector.extract_strided_slice %255 {offsets = [0, 0, 0], sizes = [1, 1, 256], strides = [1, 1, 1]} : vector<4x1x256xf32> to vector<1x1x256xf32>
    %257 = vector.shape_cast %256 : vector<1x1x256xf32> to vector<1x256xf32>
    %258 = arith.truncf %257 : vector<1x256xf32> to vector<1x256xbf16>
    %c2_99 = arith.constant 2 : index
    %c0_100 = arith.constant 0 : index
    %c0_101 = arith.constant 0 : index
    %259 = vector.load %arg10[%c2_99, %c0_100, %c0_101] : memref<16x256x128xbf16, #tpu.memory_space<vmem>>, vector<1x256x128xbf16>
    %260 = vector.shape_cast %259 : vector<1x256x128xbf16> to vector<256x128xbf16>
    %cst_102 = arith.constant dense<0.000000e+00> : vector<1x128xf32>
    %261 = tpu.matmul %258, %260, %cst_102 {dimension_numbers = #tpu.dot_dimension_numbers<[1], [0], [0], [1], [0, 0, 1, 1], [], []>} : vector<1x256xbf16>, vector<256x128xbf16>, vector<1x128xf32> -> vector<1x128xf32>
    %262 = arith.addf %252, %261 : vector<1x128xf32>
    %263 = vector.extract_strided_slice %255 {offsets = [1, 0, 0], sizes = [1, 1, 256], strides = [1, 1, 1]} : vector<4x1x256xf32> to vector<1x1x256xf32>
    %264 = vector.shape_cast %263 : vector<1x1x256xf32> to vector<1x256xf32>
    %265 = arith.truncf %264 : vector<1x256xf32> to vector<1x256xbf16>
    %c6_103 = arith.constant 6 : index
    %c0_104 = arith.constant 0 : index
    %c0_105 = arith.constant 0 : index
    %266 = vector.load %arg10[%c6_103, %c0_104, %c0_105] : memref<16x256x128xbf16, #tpu.memory_space<vmem>>, vector<1x256x128xbf16>
    %267 = vector.shape_cast %266 : vector<1x256x128xbf16> to vector<256x128xbf16>
    %cst_106 = arith.constant dense<0.000000e+00> : vector<1x128xf32>
    %268 = tpu.matmul %265, %267, %cst_106 {dimension_numbers = #tpu.dot_dimension_numbers<[1], [0], [0], [1], [0, 0, 1, 1], [], []>} : vector<1x256xbf16>, vector<256x128xbf16>, vector<1x128xf32> -> vector<1x128xf32>
    %269 = arith.addf %262, %268 : vector<1x128xf32>
    %270 = vector.extract_strided_slice %255 {offsets = [2, 0, 0], sizes = [1, 1, 256], strides = [1, 1, 1]} : vector<4x1x256xf32> to vector<1x1x256xf32>
    %271 = vector.shape_cast %270 : vector<1x1x256xf32> to vector<1x256xf32>
    %272 = arith.truncf %271 : vector<1x256xf32> to vector<1x256xbf16>
    %c10 = arith.constant 10 : index
    %c0_107 = arith.constant 0 : index
    %c0_108 = arith.constant 0 : index
    %273 = vector.load %arg10[%c10, %c0_107, %c0_108] : memref<16x256x128xbf16, #tpu.memory_space<vmem>>, vector<1x256x128xbf16>
    %274 = vector.shape_cast %273 : vector<1x256x128xbf16> to vector<256x128xbf16>
    %cst_109 = arith.constant dense<0.000000e+00> : vector<1x128xf32>
    %275 = tpu.matmul %272, %274, %cst_109 {dimension_numbers = #tpu.dot_dimension_numbers<[1], [0], [0], [1], [0, 0, 1, 1], [], []>} : vector<1x256xbf16>, vector<256x128xbf16>, vector<1x128xf32> -> vector<1x128xf32>
    %276 = arith.addf %269, %275 : vector<1x128xf32>
    %277 = vector.extract_strided_slice %255 {offsets = [3, 0, 0], sizes = [1, 1, 256], strides = [1, 1, 1]} : vector<4x1x256xf32> to vector<1x1x256xf32>
    %278 = vector.shape_cast %277 : vector<1x1x256xf32> to vector<1x256xf32>
    %279 = arith.truncf %278 : vector<1x256xf32> to vector<1x256xbf16>
    %c14 = arith.constant 14 : index
    %c0_110 = arith.constant 0 : index
    %c0_111 = arith.constant 0 : index
    %280 = vector.load %arg10[%c14, %c0_110, %c0_111] : memref<16x256x128xbf16, #tpu.memory_space<vmem>>, vector<1x256x128xbf16>
    %281 = vector.shape_cast %280 : vector<1x256x128xbf16> to vector<256x128xbf16>
    %cst_112 = arith.constant dense<0.000000e+00> : vector<1x128xf32>
    %282 = tpu.matmul %279, %281, %cst_112 {dimension_numbers = #tpu.dot_dimension_numbers<[1], [0], [0], [1], [0, 0, 1, 1], [], []>} : vector<1x256xbf16>, vector<256x128xbf16>, vector<1x128xf32> -> vector<1x128xf32>
    %283 = arith.addf %276, %282 : vector<1x128xf32>
    %284 = vector.extract_strided_slice %189 {offsets = [0, 6, 0], sizes = [4, 1, 256], strides = [1, 1, 1]} : vector<4x8x256xf32> to vector<4x1x256xf32>
    %285 = vector.extract_strided_slice %189 {offsets = [0, 7, 0], sizes = [4, 1, 256], strides = [1, 1, 1]} : vector<4x8x256xf32> to vector<4x1x256xf32>
    %286 = arith.maximumf %284, %285 : vector<4x1x256xf32>
    %287 = vector.extract_strided_slice %286 {offsets = [0, 0, 0], sizes = [1, 1, 256], strides = [1, 1, 1]} : vector<4x1x256xf32> to vector<1x1x256xf32>
    %288 = vector.shape_cast %287 : vector<1x1x256xf32> to vector<1x256xf32>
    %289 = arith.truncf %288 : vector<1x256xf32> to vector<1x256xbf16>
    %c3_113 = arith.constant 3 : index
    %c0_114 = arith.constant 0 : index
    %c0_115 = arith.constant 0 : index
    %290 = vector.load %arg10[%c3_113, %c0_114, %c0_115] : memref<16x256x128xbf16, #tpu.memory_space<vmem>>, vector<1x256x128xbf16>
    %291 = vector.shape_cast %290 : vector<1x256x128xbf16> to vector<256x128xbf16>
    %cst_116 = arith.constant dense<0.000000e+00> : vector<1x128xf32>
    %292 = tpu.matmul %289, %291, %cst_116 {dimension_numbers = #tpu.dot_dimension_numbers<[1], [0], [0], [1], [0, 0, 1, 1], [], []>} : vector<1x256xbf16>, vector<256x128xbf16>, vector<1x128xf32> -> vector<1x128xf32>
    %293 = arith.addf %283, %292 : vector<1x128xf32>
    %294 = vector.extract_strided_slice %286 {offsets = [1, 0, 0], sizes = [1, 1, 256], strides = [1, 1, 1]} : vector<4x1x256xf32> to vector<1x1x256xf32>
    %295 = vector.shape_cast %294 : vector<1x1x256xf32> to vector<1x256xf32>
    %296 = arith.truncf %295 : vector<1x256xf32> to vector<1x256xbf16>
    %c7_117 = arith.constant 7 : index
    %c0_118 = arith.constant 0 : index
    %c0_119 = arith.constant 0 : index
    %297 = vector.load %arg10[%c7_117, %c0_118, %c0_119] : memref<16x256x128xbf16, #tpu.memory_space<vmem>>, vector<1x256x128xbf16>
    %298 = vector.shape_cast %297 : vector<1x256x128xbf16> to vector<256x128xbf16>
    %cst_120 = arith.constant dense<0.000000e+00> : vector<1x128xf32>
    %299 = tpu.matmul %296, %298, %cst_120 {dimension_numbers = #tpu.dot_dimension_numbers<[1], [0], [0], [1], [0, 0, 1, 1], [], []>} : vector<1x256xbf16>, vector<256x128xbf16>, vector<1x128xf32> -> vector<1x128xf32>
    %300 = arith.addf %293, %299 : vector<1x128xf32>
    %301 = vector.extract_strided_slice %286 {offsets = [2, 0, 0], sizes = [1, 1, 256], strides = [1, 1, 1]} : vector<4x1x256xf32> to vector<1x1x256xf32>
    %302 = vector.shape_cast %301 : vector<1x1x256xf32> to vector<1x256xf32>
    %303 = arith.truncf %302 : vector<1x256xf32> to vector<1x256xbf16>
    %c11 = arith.constant 11 : index
    %c0_121 = arith.constant 0 : index
    %c0_122 = arith.constant 0 : index
    %304 = vector.load %arg10[%c11, %c0_121, %c0_122] : memref<16x256x128xbf16, #tpu.memory_space<vmem>>, vector<1x256x128xbf16>
    %305 = vector.shape_cast %304 : vector<1x256x128xbf16> to vector<256x128xbf16>
    %cst_123 = arith.constant dense<0.000000e+00> : vector<1x128xf32>
    %306 = tpu.matmul %303, %305, %cst_123 {dimension_numbers = #tpu.dot_dimension_numbers<[1], [0], [0], [1], [0, 0, 1, 1], [], []>} : vector<1x256xbf16>, vector<256x128xbf16>, vector<1x128xf32> -> vector<1x128xf32>
    %307 = arith.addf %300, %306 : vector<1x128xf32>
    %308 = vector.extract_strided_slice %286 {offsets = [3, 0, 0], sizes = [1, 1, 256], strides = [1, 1, 1]} : vector<4x1x256xf32> to vector<1x1x256xf32>
    %309 = vector.shape_cast %308 : vector<1x1x256xf32> to vector<1x256xf32>
    %310 = arith.truncf %309 : vector<1x256xf32> to vector<1x256xbf16>
    %c15 = arith.constant 15 : index
    %c0_124 = arith.constant 0 : index
    %c0_125 = arith.constant 0 : index
    %311 = vector.load %arg10[%c15, %c0_124, %c0_125] : memref<16x256x128xbf16, #tpu.memory_space<vmem>>, vector<1x256x128xbf16>
    %312 = vector.shape_cast %311 : vector<1x256x128xbf16> to vector<256x128xbf16>
    %cst_126 = arith.constant dense<0.000000e+00> : vector<1x128xf32>
    %313 = tpu.matmul %310, %312, %cst_126 {dimension_numbers = #tpu.dot_dimension_numbers<[1], [0], [0], [1], [0, 0, 1, 1], [], []>} : vector<1x256xbf16>, vector<256x128xbf16>, vector<1x128xf32> -> vector<1x128xf32>
    %314 = arith.addf %307, %313 : vector<1x128xf32>
    %c0_127 = arith.constant 0 : index
    %c0_128 = arith.constant 0 : index
    %315 = vector.load %arg11[%c0_127, %c0_128] : memref<1x128xf32, #tpu.memory_space<vmem>>, vector<1x128xf32>
    %316 = arith.addf %314, %315 : vector<1x128xf32>
    %317 = vector.shape_cast %316 : vector<1x128xf32> to vector<1x1x128xf32>
    %c0_129 = arith.constant 0 : index
    %c0_130 = arith.constant 0 : index
    %c0_131 = arith.constant 0 : index
    %318 = vector.load %arg12[%c0_129, %c0_130, %c0_131] : memref<1x1x128xf32, #tpu.memory_space<vmem>>, vector<1x1x128xf32>
    tpu.vector_store %arg12[%c0_129, %c0_130, %c0_131], %317 {strides = array<i32>} : memref<1x1x128xf32, #tpu.memory_space<vmem>>, vector<1x1x128xf32>,
    return
  }
  func.func @transform_0(%arg0: i32) -> (i32, i32, i32, i32) {
    %c0_i32 = arith.constant 0 : i32
    %c0_i32_0 = arith.constant 0 : i32
    %c0_i32_1 = arith.constant 0 : i32
    %c0_i32_2 = arith.constant 0 : i32
    return %arg0, %c0_i32, %c0_i32_0, %c0_i32_1 : i32, i32, i32, i32
  }
  func.func @transform_1(%arg0: i32) -> (i32, i32) {
    %c0_i32 = arith.constant 0 : i32
    %c0_i32_0 = arith.constant 0 : i32
    %c0_i32_1 = arith.constant 0 : i32
    return %c0_i32, %c0_i32_0 : i32, i32
  }
  func.func @transform_2(%arg0: i32) -> (i32, i32) {
    %c0_i32 = arith.constant 0 : i32
    %c0_i32_0 = arith.constant 0 : i32
    %c0_i32_1 = arith.constant 0 : i32
    return %c0_i32, %c0_i32_0 : i32, i32
  }
  func.func @transform_3(%arg0: i32) -> (i32, i32) {
    %c0_i32 = arith.constant 0 : i32
    %c0_i32_0 = arith.constant 0 : i32
    %c0_i32_1 = arith.constant 0 : i32
    return %c0_i32, %c0_i32_0 : i32, i32
  }
  func.func @transform_4(%arg0: i32) -> (i32, i32) {
    %c0_i32 = arith.constant 0 : i32
    %c0_i32_0 = arith.constant 0 : i32
    %c0_i32_1 = arith.constant 0 : i32
    return %c0_i32, %c0_i32_0 : i32, i32
  }
  func.func @transform_5(%arg0: i32) -> (i32, i32) {
    %c0_i32 = arith.constant 0 : i32
    %c0_i32_0 = arith.constant 0 : i32
    %c0_i32_1 = arith.constant 0 : i32
    return %c0_i32, %c0_i32_0 : i32, i32
  }
  func.func @transform_6(%arg0: i32) -> (i32, i32) {
    %c0_i32 = arith.constant 0 : i32
    %c0_i32_0 = arith.constant 0 : i32
    %c0_i32_1 = arith.constant 0 : i32
    return %c0_i32, %c0_i32_0 : i32, i32
  }
  func.func @transform_7(%arg0: i32) -> (i32, i32) {
    %c0_i32 = arith.constant 0 : i32
    %c0_i32_0 = arith.constant 0 : i32
    %c0_i32_1 = arith.constant 0 : i32
    return %c0_i32, %c0_i32_0 : i32, i32
  }
  func.func @transform_8(%arg0: i32) -> (i32, i32) {
    %c0_i32 = arith.constant 0 : i32
    %c0_i32_0 = arith.constant 0 : i32
    %c0_i32_1 = arith.constant 0 : i32
    return %c0_i32, %c0_i32_0 : i32, i32
  }
  func.func @transform_9(%arg0: i32) -> (i32, i32, i32) {
    %c0_i32 = arith.constant 0 : i32
    %c0_i32_0 = arith.constant 0 : i32
    %c0_i32_1 = arith.constant 0 : i32
    %c0_i32_2 = arith.constant 0 : i32
    return %c0_i32, %c0_i32_0, %c0_i32_1 : i32, i32, i32
  }
  func.func @transform_10(%arg0: i32) -> (i32, i32) {
    %c0_i32 = arith.constant 0 : i32
    %c0_i32_0 = arith.constant 0 : i32
    %c0_i32_1 = arith.constant 0 : i32
    return %c0_i32, %c0_i32_0 : i32, i32
  }
  func.func @transform_11(%arg0: i32) -> (i32, i32, i32) {
    %c0_i32 = arith.constant 0 : i32
    %c0_i32_0 = arith.constant 0 : i32
    %c0_i32_1 = arith.constant 0 : i32
    return %arg0, %c0_i32, %c0_i32_0 : i32, i32, i32
  }
}

</mosaic_0001>

<bundles_post_ra>
// kernel: vgg_forward.1
= control target key start
LH: loop header
LB: loop body
LE: loop exit
PB: predicated region body
PF: predicated region fallthrough
CT: control target
= control target key end

     0   :  { %s18130_s0 = inlined_call_operand.vmem [shape: bf16[2,18,18,128], index: 0, kind: input, shape index: {}]   ;;  %s18131_s1 = inlined_call_operand.vmem [shape: bf16[1152,32], index: 1, kind: input, shape index: {}]   ;;  %s18132_s2 = inlined_call_operand.vmem [shape: f32[1,32], index: 2, kind: input, shape index: {}]   ;;  %s18133_s3 = inlined_call_operand.vmem [shape: bf16[1152,64], index: 3, kind: input, shape index: {}]   ;;  %s18134_s4 = inlined_call_operand.hbm [shape: f32[1,64], index: 4, kind: input, shape index: {}]   ;;  %s18135_s5 = inlined_call_operand.vmem [shape: bf16[1152,128], index: 5, kind: input, shape index: {}]   ;;  %s18136_s6 = inlined_call_operand.hbm [shape: f32[1,128], index: 6, kind: input, shape index: {}]   ;;  %s18137_s7 = inlined_call_operand.hbm [shape: bf16[1152,256], index: 7, kind: input, shape index: {}]   ;;  %s18138_s8 = inlined_call_operand.vmem [shape: f32[1,256], index: 8, kind: input, shape index: {}]   ;;  %s18139_s9 = inlined_call_operand.vmem [shape: bf16[16,256,128], index: 9, kind: input, shape index: {}]   ;;  %s18140_s10 = inlined_call_operand.hbm [shape: f32[1,128], index: 10, kind: input, shape index: {}]   ;;  %s18141_s11 = inlined_call_operand.hbm [shape: f32[2,1,128], index: 11, kind: output, shape index: {}]  }
   0x1   :  { %18180 = sst [smem:[#allocation40_spill]] %s18134_s4 }
   0x2   :  { %18181 = sst [smem:[#allocation41_spill]] %s18136_s6 }
   0x3   :  { %16 = vsyncpa [#allocation6], 0 }
   0x4   :  { %17 = vsyncpa [#allocation9], 0 }
   0x5   :  { %18 = vsyncpa [#allocation12], 0 }
   0x6   :  { %19 = vsyncpa [#allocation7], 0 }
   0x7   :  { %21 = vsyncpa [#allocation7 + $0x1], 0  ;;  %s14178_s17 = smov 0   ;;  %s14180_s18 = smov 0  }
   0x8   :  { %s14182_s19 = smov 0   ;;  %s14184_s20 = smov 0  }
   0x9 LB: > { %18182 = sst [smem:[#allocation18_spill]] %s14094_s17  ;;  %s14199_s21 = sadd.s32 4294967295, %s14106_s20   ;;  %s14106_s20 = sphi %s14184_s20, %s18255_s20   ;;  %s14102_s19 = sphi %s14182_s19, %s18257_s19   ;;  %s14098_s18 = sphi %s14180_s18, %s18259_s18   ;;  %s14094_s17 = sphi %s14178_s17, %s18258_s17  }
   0xa   : > { %18183 = sst [smem:[#allocation19_spill]] %s14102_s19  ;;  %s10268_s22 = sadd.s32 4294967294, %s14106_s20  }
   0xb   : > { %s14203_s23 = sadd.s32 1, %s14106_s20   ;;  %s270_s24 = sadd.s32 1, %s14102_s19 }
   0xc   : > { %18184 = sst [smem:[#allocation20_spill]] %s14203_s23  ;;  %s267_s25 = ssub.s32 %s14106_s20, %s14203_s23 }
   0xd   : > { %p280_p0 = scmp.ne.s32.totalorder %s14102_s19, %s14098_s18  ;;  %p268_p1 = scmp.eq.s32.totalorder %s267_s25, 0 }
   0xe   : > { %p281_p2 = scmp.eq.s32.totalorder %s14199_s21, 1  ;;  %p286_p3 = scmp.ne.s32.totalorder %s14098_s18, %s14094_s17 }
   0xf   : > { %p287_p4 = scmp.eq.s32.totalorder %s10268_s22, 1  ;;  %p10269_p7 = scmp.ge.s32.totalorder %s14106_s20, 1 }
  0x10   : > { %s14214_s26 = scalar_select %p268_p1, %s14102_s19, %s270_s24  }
  0x11   : > { %p14216_p5 = por %p281_p2, %p280_p0  ;;  %p14220_p6 = por %p287_p4, %p286_p3 }
  0x12   : > { %18185 = sst [smem:[#allocation21_spill]] %s14214_s26  ;;  %p294_p8 = scmp.lt.s32.totalorder %s14106_s20, 3 }
  0x13   : > { %s18186_s27 = scalar_select %p14216_p5, 1, 0 }
  0x14   : > { %s18187_s28 = scalar_select %p14220_p6, 1, 0 }
  0x15   : > { %p18145_p9 = scmp.eq.s32.totalorder %s14199_s21, 0  ;;  %p14227_p10 = pnand %p10269_p7, %p294_p8 }
  0x16   : > { %18188 = sst [smem:[#allocation22_spill]] %s18187_s28  ;;  %s14108_s30 = smov [#allocation8]  }
  0x17   : > { %s18189_s29 = scalar_select %p14227_p10, 1, 0 }
  0x18   : > { %s330_s12 = sshll.u32 %s14108_s30, 4  ;;  %p13142_p11 = pneg %p14227_p10  ;;  %s331_s12 = int_to_ptr.vmem [resolvable:$true] %s330_s12 }
  0x19   : > { %s14109_s13 = smov [#allocation5]   ;;  %s14110_s16 = smov [#allocation10]  }
  0x1a   : > { %s316_s14 = sshll.u32 %s14109_s13, 4  ;;  %p14235_p12 = pnand %p18145_p9, %p13142_p11  ;;  %s14239_s14 = int_to_ptr.vmem [resolvable:$true] %s316_s14 }
  0x1b   : > { %s340_s22 = sshll.u32 %s14110_s16, 4  ;;  %s18191_s6 = sld [smem:[#allocation41_spill]]  ;;  %s14241_s22 = int_to_ptr.vmem [resolvable:$true] %s340_s22 }
  0x1c   : > { %p14251_p0 = pneg %p14235_p12 }
  0x21   : > { %s13920_s30 = scalar_lea.hbm %s18191_s6, 16 }
  0x22   : > { %p13921_p13 = scmp.ne.s32.totalorder %s18191_s6, %s13920_s30  ;;  %p13927_p3 = scmp.lt.u32.totalorder %s13920_s30, %s18191_s6 }
  0x24   : > { %p13923_p1 = pnand %p14251_p0, %p13921_p13 }
  0x26   : > { %p13924_p2 = pneg %p13923_p1 }
  0x28   : > { %p13929_p4 = pnand %p13927_p3, %p13924_p2 }
  0x2a   : > { %13932 = shalt.err (!%p13929_p4)
}
  0x2b   : > { %s13933_s24 = scalar_lea.vmem %s331_s12, 16  ;;  %s13940_s19 = scalar_lea.vmem %s331_s12, 32 }
  0x2c   : > { %p13934_p7 = scmp.ne.s32.totalorder %s331_s12, %s13933_s24  ;;  %p13941_p9 = scmp.lt.s32.totalorder %s331_s12, %s331_s12 }
  0x2d   : > { %p13942_p6 = scmp.lt.s32.totalorder %s13940_s19, %s13933_s24 }
  0x2e   : > { %p13936_p8 = pnand %p13934_p7, %p14251_p0 }
  0x2f   : > { %p13943_p5 = por %p13942_p6, %p13941_p9 }
  0x30   : > { %p13937_p11 = pneg %p13936_p8 }
  0x32   : > { %p13944_p10 = pnand %p13943_p5, %p13937_p11 }
  0x34   : > { %13947 = shalt.err (!%p13944_p10)
}
  0x35   : > { %13148 = dma.hbm_to_vmem [thread:$0]  (!%p14235_p12), %s18191_s6, 16, %s331_s12, [#allocation9]  }
  0x36   : > { %s18193_s4 = sld [smem:[#allocation40_spill]] }
  0x3c   : > { %s13948_s16 = scalar_lea.hbm %s18193_s4, 16 }
  0x3d   : > { %p13949_p13 = scmp.ne.s32.totalorder %s18193_s4, %s13948_s16  ;;  %p13955_p5 = scmp.lt.u32.totalorder %s13948_s16, %s18193_s4 }
  0x3f   : > { %p13951_p1 = pnand %p13949_p13, %p14251_p0 }
  0x41   : > { %p13952_p6 = pneg %p13951_p1 }
  0x43   : > { %p13957_p9 = pnand %p13955_p5, %p13952_p6 }
  0x45   : > { %13960 = shalt.err (!%p13957_p9)
}
  0x46   : > { %s13961_s12 = scalar_lea.vmem %s14239_s14, 16  ;;  %s13968_s17 = scalar_lea.vmem %s14239_s14, 32 }
  0x47   : > { %p13962_p10 = scmp.ne.s32.totalorder %s14239_s14, %s13961_s12  ;;  %p13969_p4 = scmp.lt.s32.totalorder %s14239_s14, %s14239_s14 }
  0x48   : > { %p13970_p7 = scmp.lt.s32.totalorder %s13968_s17, %s13961_s12 }
  0x49   : > { %p13964_p2 = pnand %p13962_p10, %p14251_p0 }
  0x4a   : > { %p13971_p8 = por %p13970_p7, %p13969_p4 }
  0x4b   : > { %p13965_p3 = pneg %p13964_p2 }
  0x4d   : > { %p13972_p11 = pnand %p13971_p8, %p13965_p3 }
  0x4f   : > { %13975 = shalt.err (!%p13972_p11)
}
  0x50   : > { %13145 = dma.hbm_to_vmem [thread:$0]  (!%p14235_p12), %s18193_s4, 16, %s14239_s14, [#allocation6]  }
  0x51   : > { %s13976_s30 = scalar_lea.hbm %s18137_s7, 18432 }
  0x52   : > { %p13977_p13 = scmp.ne.s32.totalorder %s18137_s7, %s13976_s30  ;;  %p13983_p5 = scmp.lt.u32.totalorder %s13976_s30, %s18137_s7 }
  0x54   : > { %p13979_p1 = pnand %p13977_p13, %p14251_p0 }
  0x56   : > { %p13980_p6 = pneg %p13979_p1 }
  0x58   : > { %p13985_p9 = pnand %p13983_p5, %p13980_p6 }
  0x5a   : > { %13988 = shalt.err (!%p13985_p9)
}
  0x5b   : > { %s13989_s14 = scalar_lea.vmem %s14241_s22, 18432  ;;  %p13997_p4 = scmp.lt.s32.totalorder %s14241_s22, %s14241_s22 }
  0x5c   : > { %p13990_p10 = scmp.ne.s32.totalorder %s14241_s22, %s13989_s14  ;;  %p13998_p7 = scmp.lt.s32.totalorder %s13989_s14, %s13989_s14 }
  0x5e   : > { %p13992_p2 = pnand %p13990_p10, %p14251_p0  ;;  %p13999_p8 = por %p13998_p7, %p13997_p4 }
  0x60   : > { %p13993_p3 = pneg %p13992_p2 }
  0x62   : > { %p14000_p11 = pnand %p13999_p8, %p13993_p3 }
  0x64   : > { %14003 = shalt.err (!%p14000_p11)
}
  0x65   : > { %s14111_s17 = smov 128   ;;  %s14112_s28 = smov 8  }
  0x66   : > { %13151 = dma.hbm_to_vmem [thread:$0]  (!%p14235_p12), %s18137_s7, 18432, %s14241_s22, [#allocation9], %s14111_s17, %s14111_s17, %s14112_s28  }
  0x67   : > { %s14113_s23 = smov [#allocation11]   ;;  %s14004_s19 = scalar_lea.hbm %s18140_s10, 16 }
  0x68   : > { %s360_s30 = sshll.u32 %s14113_s23, 4  ;;  %p14005_p13 = scmp.ne.s32.totalorder %s18140_s10, %s14004_s19  ;;  %s361_s30 = int_to_ptr.vmem [resolvable:$true] %s360_s30 }
  0x69   : > { %p14011_p5 = scmp.lt.u32.totalorder %s14004_s19, %s18140_s10 }
  0x6a   : > { %p14007_p1 = pnand %p14005_p13, %p14251_p0 }
  0x6c   : > { %p14008_p6 = pneg %p14007_p1 }
  0x6e   : > { %p14013_p9 = pnand %p14011_p5, %p14008_p6 }
  0x70   : > { %14016 = shalt.err (!%p14013_p9)
}
  0x71   : > { %s14017_s22 = scalar_lea.vmem %s361_s30, 16  ;;  %s14024_s17 = scalar_lea.vmem %s361_s30, 32 }
  0x72   : > { %p14018_p10 = scmp.ne.s32.totalorder %s361_s30, %s14017_s22  ;;  %p14025_p4 = scmp.lt.s32.totalorder %s361_s30, %s361_s30 }
  0x73   : > { %p14026_p7 = scmp.lt.s32.totalorder %s14024_s17, %s14017_s22 }
  0x74   : > { %p14020_p2 = pnand %p14018_p10, %p14251_p0 }
  0x75   : > { %p14027_p8 = por %p14026_p7, %p14025_p4 }
  0x76   : > { %p14021_p3 = pneg %p14020_p2 }
  0x78   : > { %p14028_p11 = pnand %p14027_p8, %p14021_p3 }
  0x7a   : > { %14031 = shalt.err (!%p14028_p11)
}
  0x7b   : > { %13154 = dma.hbm_to_vmem [thread:$0]  (!%p14235_p12), %s18140_s10, 16, %s361_s30, [#allocation12]  }
  0x7c   : > { %p18194_p13 = scmp.ne.s32.totalorder %s18189_s29, 0 }
  0x7e   : > { %381 = sbr.rel (%p18194_p13) target bundleno = 2522 (0x9da), region = 64 }
  0x85   : > { %p18195_p1 = scmp.eq.s32.totalorder %s14199_s21, 0 }
  0x87   : > { %14077 = dma.done.wait (%p18195_p1), [#allocation6], 16   ;;  %p18196_p0 = pmov %p18195_p1 }
  0x89   : > { %14079 = vsyncadd (%p18196_p0), [#allocation6], 4294967280  ;;  %p18197_p6 = pmov %p18196_p0 }
  0x8a   : > { %p18198_p5 = pmov %p18196_p0 }
  0x8b   : > { %14081 = dma.done.wait (%p18197_p6), [#allocation9], 18448  }
  0x8c   : > { %14083 = vsyncadd (%p18198_p5), [#allocation9], 4294948848  ;;  %p18199_p9 = pmov %p18196_p0 }
  0x8d   : > { %p18200_p12 = pmov %p18196_p0 }
  0x8e   : > { %14085 = dma.done.wait (%p18199_p9), [#allocation12], 16  }
  0x8f   : > { %14087 = vsyncadd (%p18200_p12), [#allocation12], 4294967280  ;;  %v13208_v0 = vld [vmem:[%s18131_s1 + $0x40] sm:$0xff]   ;;  %v13212_v4 = vld [vmem:[%s18131_s1 + $0x48] sm:$0xff]   ;;  %p432_p10 = scmp.lt.s32.totalorder %s14199_s21, 1  ;;  %vm1021_vm2 = vcmask 1042432  }
  0x90   : > { %v13209_v1 = vld [vmem:[%s18131_s1] sm:$0xff]   ;;  %11455 = vmatprep.subr.bf16.mxu0 %v13208_v0  ;;  %v13213_v5 = vld [vmem:[%s18131_s1 + $0x8] sm:$0xff]   ;;  %v13216_v8 = vld [vmem:[%s18131_s1 + $0x50] sm:$0xff]   ;;  %vm586_vm0 = vsmask.f32 3328  ;;  %vm1022_vm3 = vcmask 1046532  }
  0x91   : > { %v13210_v2 = vld [vmem:[%s18131_s1 + $0xc0] sm:$0xff]   ;;  %11456 = vmatpush3.bf16.msra.mxu0 %v13209_v1  ;;  %v13214_v6 = vld [vmem:[%s18131_s1 + $0xc8] sm:$0xff]   ;;  %v13217_v9 = vld [vmem:[%s18131_s1 + $0x10] sm:$0xff]   ;;  %s433_s16 = scalar_select %p432_p10, %s14199_s21, 1  ;;  %vm587_vm1 = vsmask.f32 7440 }
  0x92   : > { %v13211_v3 = vld [vmem:[%s18131_s1 + $0x80] sm:$0xff]   ;;  %11567 = vmatprep.subr.bf16.mxu1 %v13210_v2  ;;  %11457 = vmatprep.subr.bf16.mxu0 %v13212_v4  ;;  %v13215_v7 = vld [vmem:[%s18131_s1 + $0x88] sm:$0xff]   ;;  %v13218_v10 = vld [vmem:[%s18131_s1 + $0xd0] sm:$0xff]   ;;  %vm2992_vm6 = vcmask 1046528   ;;  %vm2841_vm7 = vcmask 261120   ;;  %vm3121_vm8 = vcmask 1045504  }
  0x93   : > { %11568 = vmatpush3.bf16.msra.mxu1 %v13211_v3  ;;  %v13219_v11 = vld [vmem:[%s18131_s1 + $0x90] sm:$0xff]   ;;  %v13220_v12 = vld [vmem:[%s18131_s1 + $0x58] sm:$0xff]   ;;  %v13224_v16 = vld [vmem:[%s18131_s1 + $0x60] sm:$0xff]   ;;  %s13123_s4 = smul.u32 216, %s433_s16  ;;  %vm4759_vm9 = vcmask 516096   ;;  %vm4768_vm10 = vcmask 518146  }
  0x94   : > { %11569 = vmatprep.subr.bf16.mxu1 %v13214_v6  ;;  %v13221_v13 = vld [vmem:[%s18131_s1 + $0x18] sm:$0xff]   ;;  %v13225_v17 = vld [vmem:[%s18131_s1 + $0x20] sm:$0xff]   ;;  %v13228_v20 = vld [vmem:[%s18131_s1 + $0x68] sm:$0xff]   ;;  %vm4777_vm11 = vcmask 520196   ;;  %vm4786_vm12 = vcmask 522246   ;;  %s430_s30 = sand.u32 1, %s14098_s18  }
  0x95   : > { %11458 = vmatpush3.bf16.msra.mxu0 %v13213_v5  ;;  %v13222_v14 = vld [vmem:[%s18131_s1 + $0xd8] sm:$0xff]   ;;  %v13226_v18 = vld [vmem:[%s18131_s1 + $0xe0] sm:$0xff]   ;;  %v13229_v21 = vld [vmem:[%s18131_s1 + $0x28] sm:$0xff]   ;;  %s14438_s12 = scalar_lea.vmem %s18130_s0, %s13123_s4  ;;  %s11452_s16 = sshll.u32 %s14199_s21, 4 }
  0x96   : > { %11459 = vmatprep.subr.bf16.mxu0 %v13216_v8  ;;  %v13223_v15 = vld [vmem:[%s18131_s1 + $0x98] sm:$0xff]   ;;  %v13227_v19 = vld [vmem:[%s18131_s1 + $0xa0] sm:$0xff]   ;;  %v13230_v22 = vld [vmem:[%s18131_s1 + $0xe8] sm:$0xff]   ;;  %s431_s24 = scalar_lea.vmem [#allocation13], %s430_s30  ;;  %s18088_s17 = scalar_lea.hbm %s18141_s11, %s11452_s16 }
  0x97   : > { %11570 = vmatpush3.bf16.msra.mxu1 %v13215_v7  ;;  %v13231_v23 = vld [vmem:[%s18131_s1 + $0xa8] sm:$0xff]   ;;  %v13232_v24 = vld [vmem:[%s18131_s1 + $0x70] sm:$0xff]   ;;  %v13236_v28 = vld [vmem:[%s18131_s1 + $0x78] sm:$0xff]   ;;  %s10172_s19 = sshll.u32 %s431_s24, 4  ;;  %s10160_s28 = scalar_lea.sflag [#allocation7], %s430_s30  ;;  %s18090_s19 = int_to_ptr.vmem [resolvable:$true] %s10172_s19 }
  0x98   : > { %11571 = vmatprep.subr.bf16.mxu1 %v13218_v10  ;;  %v13233_v25 = vld [vmem:[%s18131_s1 + $0x30] sm:$0xff]   ;;  %v13237_v29 = vld [vmem:[%s18131_s1 + $0x38] sm:$0xff]   ;;  %v14447_v31 = vld [vmem:[%s14438_s12] sm:$0xf]  ;;  %s14032_s26 = scalar_lea.vmem %s18090_s19, 16  ;;  %p18251_p3 = scmp.ne.s32.totalorder %s18186_s27, 0 }
  0x99   : > { %11460 = vmatpush3.bf16.msra.mxu0 %v13217_v9  ;;  %v13234_v26 = vld [vmem:[%s18131_s1 + $0xf0] sm:$0xff]   ;;  %v13238_v30 = vld [vmem:[%s18131_s1 + $0xf8] sm:$0xff]   ;;  %v14450_v32 = vld [vmem:[%s14438_s12 + $0x4] sm:$0xf]  ;;  %v590_v34 = vshrl.u32 %v14447_v31, 16  ;;  %v593_v35 = vshll.u32 %v14447_v31, 16  ;;  %p14033_p2 = scmp.ne.s32.totalorder %s18090_s19, %s14032_s26 }
  0x9a   : > { %11461 = vmatprep.subr.bf16.mxu0 %v13220_v12  ;;  %v13235_v27 = vld [vmem:[%s18131_s1 + $0xb0] sm:$0xff]   ;;  %v534_v33 = vld [vmem:[%s14438_s12 + $0x8] sm:$0x1]  ;;  %v599_v36 = vshll.u32 %v14450_v32, 16  ;;  %v603_v37 = vshrl.u32 %v14450_v32, 16  ;;  %v13239_v39 = vld [vmem:[%s18131_s1 + $0xb8] sm:$0xff]   ;;  %v10299_v47 = vcombine.low %v14447_v31, %v14450_v32 }
  0x9b   : > { %11572 = vmatpush3.bf16.msra.mxu1 %v13219_v11  ;;  %v609_v38 = vshll.u32 %v534_v33, 16  ;;  %v13241_v40 = vld [vmem:[%s18131_s1 + $0x140] sm:$0xff]   ;;  %v592_v41 = vrot.slane %v590_v34, 4  ;;  %v595_v42 = vrot.slane %v593_v35, 5  ;;  %v1029_v46 = vrot.slane %v534_v33, 5  ;;  %vm14469_vm4 = vmor %vm586_vm0, %vm587_vm1  ;;  %v13301_v54 = vld [vmem:[%s18133_s3 + $0x8] sm:$0xff]   ;;  %p14034_p4 = pnand %p14033_p2, %p18251_p3 }
  0x9c   : > { %11573 = vmatprep.subr.bf16.mxu1 %v13222_v14  ;;  %v601_v43 = vrot.slane %v599_v36, 5  ;;  %v605_v44 = vrot.slane %v603_v37, 4  ;;  %v535_v48 = vld [vmem:[%s14438_s12 + $0xc] sm:$0xf]  ;;  %v536_v51 = vld [vmem:[%s14438_s12 + $0x10] sm:$0xf]  ;;  %vm14478_vm5 = vmor %vm1021_vm2, %vm1022_vm3 }
  0x9d   : > { %11462 = vmatpush3.bf16.msra.mxu0 %v13221_v13  ;;  %v611_v45 = vrot.slane %v609_v38, 5  ;;  %v596_v49 = vor.u32 %v595_v42, %v592_v41  ;;  %v614_v52 = vshrl.u32 %v535_v48, 16  ;;  %v617_v53 = vshll.u32 %v535_v48, 16  ;;  %v537_v0 = vld [vmem:[%s14438_s12 + $0x14] sm:$0x1]  ;;  %v13243_v12 = vld [vmem:[%s18131_s1 + $0x100] sm:$0xff]   ;;  %p14035_p7 = pneg %p14034_p4 }
  0x9e   : > { %11463 = vmatprep.subr.bf16.mxu0 %v13224_v16  ;;  %v606_v50 = vor.u32 %v605_v44, %v601_v43  ;;  %v623_v55 = vshll.u32 %v536_v51, 16  ;;  %v627_v56 = vshrl.u32 %v536_v51, 16  ;;  %v14473_v57 = vcombine.low %v535_v48, %v536_v51  ;;  %v14486_v5 = vld [vmem:[%s14438_s12 + $0x18] sm:$0xf]  ;;  %v14493_v9 = vld [vmem:[%s14438_s12 + $0x1c] sm:$0xf] }
  0x9f   : > { %11574 = vmatpush3.bf16.msra.mxu1 %v13223_v15  ;;  %v10281_v58 = vrot.slane %v14447_v31, 9  ;;  %v597_v59 = vrot.slane %v596_v49, 4  ;;  %v616_v61 = vrot.slane %v614_v52, 4  ;;  %v619_v62 = vrot.slane %v617_v53, 5  ;;  %v14524_v35 = vld [vmem:[%s14438_s12 + $0x28] sm:$0xf] }
  0xa0   : > { %11575 = vmatprep.subr.bf16.mxu1 %v13226_v18  ;;  %v607_v60 = vrot.slane %v606_v50, 4  ;;  %v629_v1 = vrot.slane %v627_v56, 4  ;;  %2196 = vmatprep.mubr.bf16.mxu1 %v14473_v57  ;;  %v1026_v2 = vrot.slane %v14450_v32, 5  ;;  %v625_v3 = vrot.slane %v623_v55, 5  ;;  %v13247_v36 = vld [vmem:[%s18131_s1 + $0x108] sm:$0xff]   ;;  %v13249_v41 = vld [vmem:[%s18131_s1 + $0x150] sm:$0xff]  }
  0xa1   : > { %11464 = vmatpush3.bf16.msra.mxu0 %v13225_v17  ;;  %v633_v4 = vshll.u32 %v537_v0, 16  ;;  %v602_v6 = vsel %vm14469_vm4, %v597_v59, %v601_v43  ;;  %v620_v8 = vor.u32 %v619_v62, %v616_v61  ;;  %v638_v10 = vshrl.u32 %v14486_v5, 16  ;;  %v13253_v59 = vld [vmem:[%s18131_s1 + $0x158] sm:$0xff]   ;;  %s14117_s21 = smov [#allocation13]  }
  0xa2   : > { %11465 = vmatprep.subr.bf16.mxu0 %v13228_v20  ;;  %v612_v7 = vsel %vm14469_vm4, %v607_v60, %v611_v45  ;;  %v1027_v13 = vsel %vm14478_vm5, %v10281_v58, %v1026_v2  ;;  %v1028_v14 = vrot.slane %v1026_v2, 4  ;;  %v630_v15 = vor.u32 %v629_v1, %v625_v3  ;;  %v13245_v20 = vld [vmem:[%s18131_s1 + $0x148] sm:$0xff]   ;;  %v13251_v58 = vld [vmem:[%s18131_s1 + $0x110] sm:$0xff]   ;;  %s14036_s4 = sshll.u32 %s14117_s21, 4  ;;  %s14037_s4 = int_to_ptr.vmem [resolvable:$false] %s14036_s4 }
  0xa3   : > { %11576 = vmatpush3.bf16.msra.mxu1 %v13227_v19  ;;  %v10315_v11 = vcombine.low %v602_v6, %v612_v7  ;;  %v621_v16 = vrot.slane %v620_v8, 4  ;;  %v635_v17 = vrot.slane %v633_v4, 5  ;;  %v641_v18 = vshll.u32 %v14486_v5, 16  ;;  %s14038_s6 = scalar_lea.vmem %s14037_s4, 32  ;;  %p14039_p8 = scmp.lt.s32.totalorder %s18090_s19, %s14037_s4 }
  0xa4   : > { %11577 = vmatprep.subr.bf16.mxu1 %v13230_v22  ;;  %v651_v19 = vshrl.u32 %v14493_v9, 16  ;;  %v631_v22 = vrot.slane %v630_v15, 4  ;;  %v640_v32 = vrot.slane %v638_v10, 4  ;;  %v647_v34 = vshll.u32 %v14493_v9, 16  ;;  %p14040_p11 = scmp.lt.s32.totalorder %s14038_s6, %s14032_s26 }
  0xa5   : > { %11466 = vmatpush3.bf16.msra.mxu0 %v13229_v21  ;;  %2035 = vmatprep.mubr.bf16.mxu0 %v10315_v11  ;;  %v1030_v21 = vsel %vm14478_vm5, %v1028_v14, %v1029_v46  ;;  %v643_v33 = vrot.slane %v641_v18, 5  ;;  %v14540_v46 = vld [vmem:[%s14438_s12 + $0x2c] sm:$0x1]  ;;  %v675_v49 = vshrl.u32 %v14524_v35, 16  ;;  %v10283_v60 = vrot.slane %v14486_v5, 9  ;;  %v13257_v14 = vld [vmem:[%s18131_s1 + $0x160] sm:$0xff]  }
  0xa6   : > { %11467 = vmatprep.subr.bf16.mxu0 %v13232_v24  ;;  %v10282_v24 = vrot.slane %v535_v48, 9  ;;  %v636_v31 = vsel %vm14469_vm4, %v631_v22, %v635_v17  ;;  %v649_v43 = vrot.slane %v647_v34, 5  ;;  %v1040_v61 = vrot.slane %v14493_v9, 5  ;;  %p14041_p13 = por %p14040_p11, %p14039_p8 }
  0xa7   : > { %11578 = vmatpush3.bf16.msra.mxu1 %v13231_v23  ;;  %v14510_v23 = vcombine.low %v14486_v5, %v14493_v9  ;;  %v644_v42 = vor.u32 %v643_v33, %v640_v32  ;;  %v671_v4 = vshll.u32 %v14524_v35, 16  ;;  %v677_v5 = vrot.slane %v675_v49, 4  ;;  %v14573_v9 = vld [vmem:[%s14438_s12 + $0x34] sm:$0xf] }
  0xa8   : > { %11579 = vmatprep.subr.bf16.mxu1 %v13234_v26  ;;  %v10331_v26 = vcombine.low %v1027_v13, %v1030_v21  ;;  %v1041_v6 = vsel %vm14478_vm5, %v10283_v60, %v1040_v61  ;;  %v1042_v7 = vrot.slane %v1040_v61, 4  ;;  %v681_v8 = vshll.u32 %v14540_v46, 16  ;;  %v14641_v61 = vld [vmem:[%s14438_s12 + $0x44] sm:$0x1]  ;;  %p14042_p1 = pnand %p14041_p13, %p14035_p7 }
  0xa9   : > { %11468 = vmatpush3.bf16.msra.mxu0 %v13233_v25  ;;  %v14513_v25 = vld [vmem:[%s14438_s12 + $0x20] sm:$0x1]  ;;  %v645_v53 = vrot.slane %v644_v42, 4  ;;  %v699_v22 = vshrl.u32 %v14573_v9, 16 }
  0xaa   : > { %11469 = vmatprep.subr.bf16.mxu0 %v13236_v28  ;;  %v1033_v28 = vrot.slane %v536_v51, 5  ;;  %v657_v44 = vshll.u32 %v14513_v25, 16  ;;  %v14552_v51 = vld [vmem:[%s14438_s12 + $0x30] sm:$0xf]  ;;  %v1043_v62 = vrot.slane %v14513_v25, 5  ;;  %v683_v17 = vrot.slane %v681_v8, 5 }
  0xab   : > { %11580 = vmatpush3.bf16.msra.mxu1 %v13235_v27  ;;  %v626_v27 = vsel %vm14469_vm4, %v621_v16, %v625_v3  ;;  %v650_v1 = vsel %vm14469_vm4, %v645_v53, %v649_v43  ;;  %v686_v13 = vshrl.u32 %v14552_v51, 16  ;;  %v689_v18 = vshll.u32 %v14552_v51, 16  ;;  %v14598_v25 = vld [vmem:[%s14438_s12 + $0x3c] sm:$0xf] }
  0xac   : > { %11581 = vmatprep.subr.bf16.mxu1 %v13238_v30  ;;  %v14518_v30 = vld [vmem:[%s14438_s12 + $0x24] sm:$0xf]  ;;  %v14529_v37 = vcombine.low %v626_v27, %v636_v31  ;;  %v1034_v38 = vsel %vm14478_vm5, %v10282_v24, %v1033_v28  ;;  %v659_v56 = vrot.slane %v657_v44, 5  ;;  %v1044_v16 = vsel %vm14478_vm5, %v1042_v7, %v1043_v62  ;;  %v14595_v24 = vld [vmem:[%s14438_s12 + $0x38] sm:$0x1] }
  0xad   : > { %11470 = vmatpush3.bf16.msra.mxu0 %v13237_v29  ;;  %v1036_v29 = vrot.slane %v537_v0, 5  ;;  %v662_v45 = vshrl.u32 %v14518_v30, 16  ;;  %v665_v48 = vshll.u32 %v14518_v30, 16  ;;  %v14549_v50 = vcombine.low %v14518_v30, %v14524_v35  ;;  %v14644_v62 = vld [vmem:[%s14438_s12 + $0x48] sm:$0xf] }
  0xae   : > { %11679 = vmatprep.subr.bf16.mxu0 %v13241_v40  ;;  %v653_v40 = vrot.slane %v651_v19, 4  ;;  %v14591_v19 = vcombine.low %v1041_v6, %v1044_v16  ;;  %v10284_v27 = vrot.slane %v14518_v30, 9  ;;  %v688_v33 = vrot.slane %v686_v13, 4  ;;  %v14653_v6 = vld [vmem:[%s14438_s12 + $0x4c] sm:$0xf] }
  0xaf   : > { %11582 = vmatpush3.bf16.msra.mxu1 %v13239_v39  ;;  %v1035_v39 = vrot.slane %v1033_v28, 4  ;;  %v664_v0 = vrot.slane %v662_v45, 4  ;;  %v667_v3 = vrot.slane %v665_v48, 5  ;;  %v1047_v28 = vrot.slane %v14524_v35, 5  ;;  %v13261_v45 = vld [vmem:[%s18131_s1 + $0x168] sm:$0xff]  }
  0xb0   : > { %2036 = vmatmul.mubr.bf16.vlgmr.msra.gmra.mrb[0].mxu0 %v10299_v47  ;;  %v654_v55 = vor.u32 %v653_v40, %v649_v43  ;;  %v691_v34 = vrot.slane %v689_v18, 5  ;;  %v695_v30 = vshll.u32 %v14573_v9, 16  ;;  %v701_v35 = vrot.slane %v699_v22, 4  ;;  %v14617_v40 = vld [vmem:[%s14438_s12 + $0x40] sm:$0xf] }
  0xb1   : > { %11680 = vmatpush3.bf16.msra.mxu0 %v13243_v12  ;;  %2043 = vmatprep.mubr.bf16.mxu0 %v14529_v37  ;;  %v1037_v47 = vsel %vm14478_vm5, %v1035_v39, %v1036_v29  ;;  %v668_v11 = vor.u32 %v667_v3, %v664_v0  ;;  %v673_v12 = vrot.slane %v671_v4, 5  ;;  %v1050_v29 = vrot.slane %v14540_v46, 5  ;;  %v13265_v0 = vld [vmem:[%s18131_s1 + $0x170] sm:$0xff]  }
  0xb2   : > { %2197 = vmatmul.mubr.bf16.vlgmr.msra.gmra.mrb[0].mxu1 %v10331_v26  ;;  %11681 = vmatprep.subr.bf16.mxu0 %v13245_v20  ;;  %v14554_v52 = vcombine.low %v1034_v38, %v1037_v47  ;;  %v655_v2 = vrot.slane %v654_v55, 4  ;;  %v14603_v26 = vcombine.low %v14552_v51, %v14573_v9  ;;  %v1048_v38 = vsel %vm14478_vm5, %v10284_v27, %v1047_v28 }
  0xb3   : > { %2204 = vmatprep.mubr.bf16.mxu1 %v14510_v23  ;;  %v669_v20 = vrot.slane %v668_v11, 4  ;;  %v678_v21 = vor.u32 %v677_v5, %v673_v12  ;;  %v1049_v39 = vrot.slane %v1047_v28, 4  ;;  %v692_v42 = vor.u32 %v691_v34, %v688_v33 }
  0xb4   : > { %v660_v10 = vsel %vm14469_vm4, %v655_v2, %v659_v56  ;;  %v705_v43 = vshll.u32 %v14595_v24, 16  ;;  %v710_v44 = vshrl.u32 %v14598_v25, 16  ;;  %v697_v48 = vrot.slane %v695_v30, 5  ;;  %v13263_v56 = vld [vmem:[%s18131_s1 + $0x128] sm:$0xff]  }
  0xb5   : > { %11682 = vmatpush3.bf16.msra.mxu0 %v13247_v36  ;;  %v14585_v15 = vcombine.low %v650_v1, %v660_v10  ;;  %v674_v31 = vsel %vm14469_vm4, %v669_v20, %v673_v12  ;;  %v679_v32 = vrot.slane %v678_v21, 4  ;;  %v13259_v36 = vld [vmem:[%s18131_s1 + $0x120] sm:$0xff]   ;;  %v1051_v47 = vsel %vm14478_vm5, %v1049_v39, %v1050_v29  ;;  %v14678_v21 = vld [vmem:[%s14438_s12 + $0x50] sm:$0x1] }
  0xb6   : > { %11683 = vmatprep.subr.bf16.mxu0 %v13249_v41  ;;  %v713_v49 = vshll.u32 %v14598_v25, 16  ;;  %v693_v53 = vrot.slane %v692_v42, 4  ;;  %v723_v55 = vshrl.u32 %v14617_v40, 16  ;;  %v707_v60 = vrot.slane %v705_v43, 5 }
  0xb7   : > { %v684_v41 = vsel %vm14469_vm4, %v679_v32, %v683_v17  ;;  %v10285_v1 = vrot.slane %v14552_v51, 9  ;;  %v1054_v2 = vrot.slane %v14573_v9, 5  ;;  %v712_v3 = vrot.slane %v710_v44, 4  ;;  %v13268_v51 = vld [vmem:[%s18131_s1 + $0x1c0] sm:$0xff]  }
  0xb8   : > { %2044 = vmatmul.mubr.bf16.gmra.mrb[4].mxu0 %v14473_v57  ;;  %v13255_v57 = vld [vmem:[%s18131_s1 + $0x118] sm:$0xff]   ;;  %v14627_v46 = vcombine.low %v674_v31, %v684_v41  ;;  %v715_v4 = vrot.slane %v713_v49, 5  ;;  %v698_v7 = vsel %vm14469_vm4, %v693_v53, %v697_v48  ;;  %v14659_v8 = vcombine.low %v14598_v25, %v14617_v40  ;;  %11791 = vmatprep.subr.bf16.mxu1 %v13268_v51  ;;  %v14685_v31 = vld [vmem:[%s14438_s12 + $0x54] sm:$0xf]  ;;  %v13270_v41 = vld [vmem:[%s18131_s1 + $0x1c8] sm:$0xff]  }
  0xb9   : > { %11684 = vmatpush3.bf16.msra.mxu0 %v13251_v58  ;;  %2051 = vmatprep.mubr.bf16.mxu0 %v14585_v15  ;;  %v14638_v58 = vcombine.low %v1048_v38, %v1051_v47  ;;  %v719_v10 = vshll.u32 %v14617_v40, 16  ;;  %v725_v11 = vrot.slane %v723_v55, 4  ;;  %v729_v12 = vshll.u32 %v14641_v61, 16  ;;  %v13271_v49 = vld [vmem:[%s18131_s1 + $0x188] sm:$0xff]  }
  0xba   : > { %2205 = vmatmul.mubr.bf16.gmra.mrb[4].mxu1 %v14554_v52  ;;  %11685 = vmatprep.subr.bf16.mxu0 %v13253_v59  ;;  %v702_v59 = vor.u32 %v701_v35, %v697_v48  ;;  %18205 = vst [vmem:[#allocation23_spill] sm:$0xff] %v14659_v8  ;;  %v716_v9 = vor.u32 %v715_v4, %v712_v3  ;;  %v734_v13 = vshrl.u32 %v14644_v62, 16  ;;  %v1057_v17 = vrot.slane %v14595_v24, 5  ;;  %v14696_v35 = vld [vmem:[%s14438_s12 + $0x58] sm:$0xf] }
  0xbb   : > { %2212 = vmatprep.mubr.bf16.mxu1 %v14549_v50  ;;  %v721_v18 = vrot.slane %v719_v10, 5  ;;  %v737_v20 = vshll.u32 %v14644_v62, 16  ;;  %v1055_v27 = vsel %vm14478_vm5, %v10285_v1, %v1054_v2  ;;  %v1056_v28 = vrot.slane %v1054_v2, 4  ;;  %v14718_v1 = vld [vmem:[%s14438_s12 + $0x5c] sm:$0x1] }
  0xbc   : > { %v703_v5 = vrot.slane %v702_v59, 4  ;;  %v717_v29 = vrot.slane %v716_v9, 4  ;;  %v731_v32 = vrot.slane %v729_v12, 5  ;;  %v747_v33 = vshrl.u32 %v14653_v6, 16  ;;  %v14737_v12 = vld [vmem:[%s14438_s12 + $0x64] sm:$0xf] }
  0xbd   : > { %11686 = vmatpush3.bf16.msra.mxu0 %v13255_v57  ;;  %v13267_v57 = vld [vmem:[%s18131_s1 + $0x130] sm:$0xff]   ;;  %v726_v24 = vor.u32 %v725_v11, %v721_v18  ;;  %v10286_v34 = vrot.slane %v14598_v25, 9  ;;  %v1061_v38 = vrot.slane %v14617_v40, 5  ;;  %v1064_v39 = vrot.slane %v14641_v61, 5  ;;  %v14734_v11 = vld [vmem:[%s14438_s12 + $0x60] sm:$0xf] }
  0xbe   : > { %11687 = vmatprep.subr.bf16.mxu0 %v13257_v14  ;;  %v13269_v14 = vld [vmem:[%s18131_s1 + $0x180] sm:$0xff]   ;;  %v708_v16 = vsel %vm14469_vm4, %v703_v5, %v707_v60  ;;  %v736_v30 = vrot.slane %v734_v13, 4  ;;  %v739_v42 = vrot.slane %v737_v20, 5  ;;  %v743_v43 = vshll.u32 %v14653_v6, 16 }
  0xbf   : > { %v14680_v22 = vcombine.low %v698_v7, %v708_v16  ;;  %11792 = vmatpush3.bf16.msra.mxu1 %v13269_v14  ;;  %v727_v25 = vrot.slane %v726_v24, 4  ;;  %v749_v44 = vrot.slane %v747_v33, 4  ;;  %v1058_v40 = vsel %vm14478_vm5, %v1056_v28, %v1057_v17  ;;  %v13273_v7 = vld [vmem:[%s18131_s1 + $0x1d0] sm:$0xff]   ;;  %v13275_v28 = vld [vmem:[%s18131_s1 + $0x1d8] sm:$0xff]  }
  0xc0   : > { %2052 = vmatmul.mubr.bf16.gmra.mrb[8].mxu0 %v14510_v23  ;;  %v753_v47 = vshll.u32 %v14678_v21, 16  ;;  %v758_v48 = vshrl.u32 %v14685_v31, 16  ;;  %11793 = vmatprep.subr.bf16.mxu1 %v13270_v41  ;;  %v740_v55 = vor.u32 %v739_v42, %v736_v30  ;;  %v761_v59 = vshll.u32 %v14685_v31, 16  ;;  %v13274_v17 = vld [vmem:[%s18131_s1 + $0x190] sm:$0xff]   ;;  %v14765_v41 = vld [vmem:[%s14438_s12 + $0x68] sm:$0x1] }
  0xc1   : > { %11688 = vmatpush3.bf16.msra.mxu0 %v13259_v36  ;;  %2059 = vmatprep.mubr.bf16.mxu0 %v14627_v46  ;;  %v722_v36 = vsel %vm14469_vm4, %v717_v29, %v721_v18  ;;  %v732_v53 = vsel %vm14469_vm4, %v727_v25, %v731_v32  ;;  %v14720_v2 = vcombine.low %v1055_v27, %v1058_v40  ;;  %v767_v16 = vshll.u32 %v14696_v35, 16 }
  0xc2   : > { %2213 = vmatmul.mubr.bf16.gmra.mrb[8].mxu1 %v14591_v19  ;;  %11689 = vmatprep.subr.bf16.mxu0 %v13261_v45  ;;  %v1063_v45 = vrot.slane %v1061_v38, 4  ;;  %v14714_v60 = vcombine.low %v722_v36, %v732_v53  ;;  %v755_v61 = vrot.slane %v753_v47, 5  ;;  %v741_v3 = vrot.slane %v740_v55, 4  ;;  %v14761_v36 = vld [vmem:[%s14438_s12 + $0x6c] sm:$0xf] }
  0xc3   : > { %2220 = vmatprep.mubr.bf16.mxu1 %v14603_v26  ;;  %11794 = vmatpush3.bf16.msra.mxu1 %v13271_v49  ;;  %v14727_v5 = vcombine.low %v14644_v62, %v14653_v6  ;;  %v1062_v10 = vsel %vm14478_vm5, %v10286_v34, %v1061_v38  ;;  %v760_v9 = vrot.slane %v758_v48, 4  ;;  %v763_v14 = vrot.slane %v761_v59, 5  ;;  %v13277_v49 = vld [vmem:[%s18131_s1 + $0x178] sm:$0xff]  }
  0xc4   : > { %v1065_v51 = vsel %vm14478_vm5, %v1063_v45, %v1064_v39  ;;  %11795 = vmatprep.subr.bf16.mxu1 %v13273_v7  ;;  %v10287_v20 = vrot.slane %v14644_v62, 9  ;;  %v769_v32 = vrot.slane %v767_v16, 5  ;;  %v782_v33 = vshrl.u32 %v14734_v11, 16  ;;  %v13279_v59 = vld [vmem:[%s18131_s1 + $0x138] sm:$0xff]   ;;  %v13280_v16 = vld [vmem:[%s18131_s1 + $0x1e0] sm:$0xff]  }
  0xc5   : > { %11690 = vmatpush3.bf16.msra.mxu0 %v13263_v56  ;;  %v745_v56 = vrot.slane %v743_v43, 5  ;;  %18206 = vst [vmem:[#allocation24_spill] sm:$0xff] %v14727_v5  ;;  %v764_v24 = vor.u32 %v763_v14, %v760_v9  ;;  %v1071_v62 = vrot.slane %v14678_v21, 5  ;;  %v785_v34 = vshll.u32 %v14734_v11, 16  ;;  %v13276_v21 = vld [vmem:[%s18131_s1 + $0x198] sm:$0xff]  }
  0xc6   : > { %11691 = vmatprep.subr.bf16.mxu0 %v13265_v0  ;;  %v771_v0 = vshrl.u32 %v14696_v35, 16  ;;  %v795_v30 = vshrl.u32 %v14737_v12, 16  ;;  %v14767_v25 = vcombine.low %v1062_v10, %v1065_v51  ;;  %v784_v47 = vrot.slane %v782_v33, 4  ;;  %v14807_v14 = vld [vmem:[%s14438_s12 + $0x74] sm:$0x1] }
  0xc7   : > { %v750_v4 = vor.u32 %v749_v44, %v745_v56  ;;  %v746_v18 = vsel %vm14469_vm4, %v741_v3, %v745_v56  ;;  %11796 = vmatpush3.bf16.msra.mxu1 %v13274_v17  ;;  %v14772_v44 = vld [vmem:[%s14438_s12 + $0x70] sm:$0xf]  ;;  %v765_v40 = vrot.slane %v764_v24, 4  ;;  %v787_v48 = vrot.slane %v785_v34, 5  ;;  %v13282_v34 = vld [vmem:[%s18131_s1 + $0x1e8] sm:$0xff]  }
  0xc8   : > { %2060 = vmatmul.mubr.bf16.gmra.mrb[12].mxu0 %v14549_v50  ;;  %v773_v27 = vrot.slane %v771_v0, 4  ;;  %11797 = vmatprep.subr.bf16.mxu1 %v13275_v28  ;;  %v14782_v53 = vcombine.low %v14685_v31, %v14696_v35  ;;  %v791_v55 = vshll.u32 %v14737_v12, 16  ;;  %v797_v56 = vrot.slane %v795_v30, 4 }
  0xc9   : > { %2067 = vmatprep.mubr.bf16.mxu0 %v14680_v22  ;;  %11692 = vmatpush3.bf16.msra.mxu0 %v13267_v57  ;;  %v751_v13 = vrot.slane %v750_v4, 4  ;;  %v1068_v57 = vrot.slane %v14653_v6, 5  ;;  %v777_v6 = vshll.u32 %v14718_v1, 16  ;;  %v1075_v3 = vrot.slane %v14696_v35, 5 }
  0xca   : > { %2221 = vmatmul.mubr.bf16.gmra.mrb[12].mxu1 %v14638_v58  ;;  %v774_v39 = vor.u32 %v773_v27, %v769_v32  ;;  %18208 = vst [vmem:[#allocation26_spill] sm:$0xff] %v14782_v53  ;;  %v806_v4 = vshrl.u32 %v14761_v36, 16  ;;  %11693 = vmatprep.subr.bf16.mxu0 %v13277_v49  ;;  %v788_v7 = vor.u32 %v787_v48, %v784_v47  ;;  %v14796_v10 = vrot.slane %v791_v55, 5  ;;  %v14817_v27 = vld [vmem:[%s14438_s12 + $0x78] sm:$0xf]  ;;  %v13283_v48 = vld [vmem:[%s18131_s1 + $0x1a8] sm:$0xff]  }
  0xcb   : > { %2228 = vmatprep.mubr.bf16.mxu1 %v14659_v8  ;;  %v756_v29 = vsel %vm14469_vm4, %v751_v13, %v755_v61  ;;  %v1070_v38 = vrot.slane %v1068_v57, 4  ;;  %v779_v43 = vrot.slane %v777_v6, 5  ;;  %11798 = vmatpush3.bf16.msra.mxu1 %v13276_v21  ;;  %v1069_v61 = vsel %vm14478_vm5, %v10287_v20, %v1068_v57  ;;  %v14833_v21 = vld [vmem:[%s14438_s12 + $0x7c] sm:$0xf] }
  0xcc   : > { %v14769_v42 = vcombine.low %v746_v18, %v756_v29  ;;  %v775_v45 = vrot.slane %v774_v39, 4  ;;  %v801_v51 = vshll.u32 %v14765_v41, 16  ;;  %v809_v9 = vshll.u32 %v14761_v36, 16  ;;  %11799 = vmatprep.subr.bf16.mxu1 %v13280_v16 }
  0xcd   : > { %v1072_v0 = vsel %vm14478_vm5, %v1070_v38, %v1071_v62  ;;  %11694 = vmatpush3.bf16.msra.mxu0 %v13279_v59  ;;  %v770_v13 = vsel %vm14469_vm4, %v765_v40, %v769_v32  ;;  %v819_v57 = vshrl.u32 %v14772_v44, 16  ;;  %v10288_v17 = vrot.slane %v14685_v31, 9  ;;  %v13281_v32 = vld [vmem:[%s18131_s1 + $0x1a0] sm:$0xff]  }
  0xce   : > { %18207 = vst [vmem:[#allocation25_spill] sm:$0xff] %v14769_v42  ;;  %v780_v35 = vsel %vm14469_vm4, %v775_v45, %v779_v43  ;;  %v1078_v18 = vrot.slane %v14718_v1, 5  ;;  %v798_v20 = vor.u32 %v797_v56, %v14796_v10  ;;  %v14819_v6 = vcombine.low %v1069_v61, %v1072_v0  ;;  %v14855_v0 = vld [vmem:[%s14438_s12 + $0x84] sm:$0xf] }
  0xcf   : > { %v1077_v28 = vrot.slane %v1075_v3, 4  ;;  %v808_v29 = vrot.slane %v806_v4, 4  ;;  %v811_v24 = vrot.slane %v809_v9, 5  ;;  %v14824_v33 = vcombine.low %v770_v13, %v780_v35  ;;  %11800 = vmatpush3.bf16.msra.mxu1 %v13281_v32  ;;  %v14866_v9 = vld [vmem:[%s14438_s12 + $0x88] sm:$0xf] }
  0xd0   : > { %2068 = vmatmul.mubr.bf16.gmra.mrb[16].mxu0 %v14603_v26  ;;  %18209 = vst [vmem:[#allocation27_spill] sm:$0xff] %v14819_v6  ;;  %v789_v31 = vrot.slane %v788_v7, 4  ;;  %v803_v62 = vrot.slane %v801_v51, 5  ;;  %v815_v1 = vshll.u32 %v14772_v44, 16  ;;  %v799_v38 = vrot.slane %v798_v20, 4  ;;  %11801 = vmatprep.subr.bf16.mxu1 %v13282_v34 }
  0xd1   : > { %2075 = vmatprep.mubr.bf16.mxu0 %v14714_v60  ;;  %18210 = vst [vmem:[#allocation28_spill] sm:$0xff] %v14824_v33  ;;  %v1082_v39 = vrot.slane %v14737_v12, 5  ;;  %v821_v30 = vrot.slane %v819_v57, 4  ;;  %v825_v43 = vshll.u32 %v14807_v14, 16  ;;  %v14837_v40 = vcombine.low %v14734_v11, %v14737_v12 }
  0xd2   : > { %2229 = vmatmul.mubr.bf16.gmra.mrb[16].mxu1 %v14720_v2  ;;  %v812_v45 = vor.u32 %v811_v24, %v808_v29  ;;  %v14839_v47 = vrot.slane %v815_v1, 5  ;;  %v830_v49 = vshrl.u32 %v14817_v27, 16  ;;  %v833_v55 = vshll.u32 %v14817_v27, 16 }
  0xd3   : > { %2236 = vmatprep.mubr.bf16.mxu1 %v14727_v5  ;;  %18211 = vst [vmem:[#allocation29_spill] sm:$0xff] %v14837_v40  ;;  %v1076_v12 = vsel %vm14478_vm5, %v10288_v17, %v1075_v3  ;;  %v1079_v56 = vsel %vm14478_vm5, %v1077_v28, %v1078_v18  ;;  %v10289_v59 = vrot.slane %v14734_v11, 9  ;;  %v794_v4 = vsel %vm14469_vm4, %v789_v31, %v14796_v10  ;;  %v13285_v11 = vld [vmem:[%s18131_s1 + $0x1f0] sm:$0xff]   ;;  %v14879_v28 = vld [vmem:[%s14438_s12 + $0x80] sm:$0x1] }
  0xd4   : > { %v822_v61 = vor.u32 %v821_v30, %v14839_v47  ;;  %v804_v7 = vsel %vm14469_vm4, %v799_v38, %v803_v62  ;;  %v1085_v3 = vrot.slane %v14765_v41, 5  ;;  %v843_v51 = vshrl.u32 %v14833_v21, 16  ;;  %11802 = vmatpush3.bf16.msra.mxu1 %v13283_v48  ;;  %v13286_v18 = vld [vmem:[%s18131_s1 + $0x1b0] sm:$0xff]   ;;  %v14895_v30 = vld [vmem:[%s14438_s12 + $0x8c] sm:$0x1] }
  0xd5   : > { %v1084_v13 = vrot.slane %v1082_v39, 4  ;;  %v813_v35 = vrot.slane %v812_v45, 4  ;;  %v827_v57 = vrot.slane %v825_v43, 5  ;;  %v839_v10 = vshll.u32 %v14833_v21, 16  ;;  %11803 = vmatprep.subr.bf16.mxu1 %v13285_v11  ;;  %v13287_v43 = vld [vmem:[%s18131_s1 + $0x1f8] sm:$0xff]  }
  0xd6   : > { %v823_v16 = vrot.slane %v822_v61, 4  ;;  %v832_v41 = vrot.slane %v830_v49, 4  ;;  %v835_v17 = vrot.slane %v833_v55, 5  ;;  %v14876_v20 = vcombine.low %v794_v4, %v804_v7  ;;  %v14909_v55 = vld [vmem:[%s14438_s12 + $0x90] sm:$0xf]  ;;  %v13288_v4 = vld [vmem:[%s18131_s1 + $0x1b8] sm:$0xff]  }
  0xd7   : > { %v854_v29 = vshrl.u32 %v14855_v0, 16  ;;  %v857_v24 = vshll.u32 %v14855_v0, 16  ;;  %v14883_v32 = vcombine.low %v1076_v12, %v1079_v56  ;;  %v14885_v31 = vrot.slane %v839_v10, 5 }
  0xd8   : > { %2076 = vmatmul.mubr.bf16.gmra.mrb[20].mxu0 %v14659_v8  ;;  %18212 = vst [vmem:[#allocation30_spill] sm:$0xff] %v14876_v20  ;;  %v845_v62 = vrot.slane %v843_v51, 4  ;;  %v14889_v1 = vcombine.low %v14761_v36, %v14772_v44  ;;  %v1083_v34 = vsel %vm14478_vm5, %v10289_v59, %v1082_v39  ;;  %v867_v38 = vshrl.u32 %v14866_v9, 16  ;;  %11804 = vmatpush3.bf16.msra.mxu1 %v13286_v18  ;;  %v14928_v51 = vld [vmem:[%s18131_s1 + $0x200] sm:$0xff]  }
  0xd9   : > { %2083 = vmatprep.mubr.bf16.mxu0 %v14769_v42  ;;  %18213 = vst [vmem:[#allocation31_spill] sm:$0xff] %v14883_v32  ;;  %v1086_v45 = vsel %vm14478_vm5, %v1084_v13, %v1085_v3  ;;  %v818_v48 = vsel %vm14469_vm4, %v813_v35, %v14839_v47  ;;  %v10290_v39 = vrot.slane %v14761_v36, 9  ;;  %v1089_v49 = vrot.slane %v14772_v44, 5  ;;  %11805 = vmatprep.subr.bf16.mxu1 %v13287_v43  ;;  %v14923_v3 = vld [vmem:[%s14438_s12 + $0x94] sm:$0xf] }
  0xda   : > { %2237 = vmatmul.mubr.bf16.gmra.mrb[20].mxu1 %v14767_v25  ;;  %18214 = vst [vmem:[#allocation32_spill] sm:$0xff] %v14889_v1  ;;  %v836_v12 = vor.u32 %v835_v17, %v832_v41  ;;  %v856_v56 = vrot.slane %v854_v29, 4  ;;  %v859_v59 = vrot.slane %v857_v24, 5  ;;  %v863_v61 = vshll.u32 %v14866_v9, 16  ;;  %v14944_v17 = vld [vmem:[%s14438_s12 + $0x9c] sm:$0xf]  ;;  %12923 = vmatprep.subr.bf16.mxu0 %v14928_v51 }
  0xdb   : > { %2244 = vmatprep.mubr.bf16.mxu1 %v14782_v53  ;;  %v828_v36 = vsel %vm14469_vm4, %v823_v16, %v827_v57  ;;  %v1092_v44 = vrot.slane %v14807_v14, 5  ;;  %v846_v47 = vor.u32 %v845_v62, %v14885_v31  ;;  %v849_v7 = vshll.u32 %v14879_v28, 16 }
  0xdc   : > { %v869_v13 = vrot.slane %v867_v38, 4  ;;  %v873_v35 = vshll.u32 %v14895_v30, 16  ;;  %v878_v14 = vshrl.u32 %v14909_v55, 16  ;;  %11806 = vmatpush3.bf16.msra.mxu1 %v13288_v4  ;;  %v14934_v57 = vcombine.low %v1083_v34, %v1086_v45 }
  0xdd   : > { %v14938_v10 = vcombine.low %v14817_v27, %v14833_v21  ;;  %v14940_v16 = vrot.slane %v863_v61, 5  ;;  %v881_v41 = vshll.u32 %v14909_v55, 16  ;;  %v14947_v18 = vcombine.low %v818_v48, %v828_v36  ;;  %v14953_v61 = vld [vmem:[%s14438_s12 + $0x98] sm:$0x1]  ;;  %v14958_v48 = vld [vmem:[%s14438_s12 + $0xa0] sm:$0xf] }
  0xde   : > { %18215 = vst [vmem:[#allocation33_spill] sm:$0xff] %v14934_v57  ;;  %v1091_v29 = vrot.slane %v1089_v49, 4  ;;  %v837_v24 = vrot.slane %v836_v12, 4  ;;  %v860_v62 = vor.u32 %v859_v59, %v856_v56  ;;  %v1090_v34 = vsel %vm14478_vm5, %v10290_v39, %v1089_v49 }
  0xdf   : > { %18216 = vst [vmem:[#allocation34_spill] sm:$0xff] %v14938_v10  ;;  %18217 = vst [vmem:[#allocation35_spill] sm:$0xff] %v14947_v18  ;;  %v847_v38 = vrot.slane %v846_v47, 4  ;;  %v851_v43 = vrot.slane %v849_v7, 5  ;;  %v10291_v45 = vrot.slane %v14817_v27, 9  ;;  %v1099_v4 = vrot.slane %v14879_v28, 5 }
  0xe0   : > { %2084 = vmatmul.mubr.bf16.gmra.mrb[24].mxu0 %v14727_v5  ;;  %v891_v11 = vshrl.u32 %v14923_v3, 16  ;;  %v18218_v12 = vrot.slane %v14833_v21, 5  ;;  %v870_v49 = vor.u32 %v869_v13, %v14940_v16  ;;  %v875_v56 = vrot.slane %v873_v35, 5 }
  0xe1   : > { %2091 = vmatprep.mubr.bf16.mxu0 %v14824_v33  ;;  %v887_v27 = vshll.u32 %v14923_v3, 16  ;;  %v1093_v28 = vsel %vm14478_vm5, %v1091_v29, %v1092_v44  ;;  %v842_v59 = vsel %vm14469_vm4, %v837_v24, %v14885_v31  ;;  %v861_v36 = vrot.slane %v860_v62, 4  ;;  %v14978_v44 = vld [vmem:[%s14438_s12 + $0xa8] sm:$0xf] }
  0xe2   : > { %2245 = vmatmul.mubr.bf16.gmra.mrb[24].mxu1 %v14819_v6  ;;  %v1098_v39 = vrot.slane %v18218_v12, 4  ;;  %v902_v47 = vshrl.u32 %v14944_v17, 16  ;;  %v852_v7 = vsel %vm14469_vm4, %v847_v38, %v851_v43  ;;  %v1103_v13 = vrot.slane %v14866_v9, 5  ;;  %v14993_v43 = vld [vmem:[%s14438_s12 + $0xa4] sm:$0x1] }
  0xe3   : > { %2252 = vmatprep.mubr.bf16.mxu1 %v14837_v40  ;;  %v10292_v31 = vrot.slane %v14855_v0, 9  ;;  %v893_v29 = vrot.slane %v891_v11, 4  ;;  %v897_v24 = vshll.u32 %v14953_v61, 16  ;;  %v14985_v62 = vcombine.low %v1090_v34, %v1093_v28 }
  0xe4   : > { %v14989_v38 = vcombine.low %v14855_v0, %v14866_v9  ;;  %v14995_v12 = vcombine.low %v842_v59, %v852_v7  ;;  %v866_v34 = vsel %vm14469_vm4, %v861_v36, %v14940_v16  ;;  %v1105_v0 = vrot.slane %v1103_v13, 4 }
  0xe5   : > { %18219 = vst [vmem:[#allocation36_spill] sm:$0xff] %v14985_v62  ;;  %v15008_v59 = vrot.slane %v897_v24, 5  ;;  %v921_v24 = vshll.u32 %v14993_v43, 16  ;;  %v1120_v33 = vrot.slane %v14993_v43, 5  ;;  %v15103_v8 = vcombine.low %v14944_v17, %v14958_v48 }
  0xe6   : > { %18220 = vst [vmem:[#allocation37_spill] sm:$0xff] %v14995_v12 }
  0xe8   : > { %2092 = vmatmul.mubr.bf16.gmra.mrb[28].mxu0 %v14782_v53  ;;  %v883_v53 = vrot.slane %v881_v41, 5  ;;  %v14982_v41 = vrot.slane %v887_v27, 5  ;;  %v904_v27 = vrot.slane %v902_v47, 4  ;;  %v926_v47 = vshrl.u32 %v14978_v44, 16 }
  0xe9   : > { %2099 = vmatprep.mubr.bf16.mxu0 %v14876_v20  ;;  %v880_v20 = vrot.slane %v878_v14, 4  ;;  %v905_v14 = vshll.u32 %v14944_v17, 16 }
  0xea   : > { %2253 = vmatmul.mubr.bf16.gmra.mrb[28].mxu1 %v14883_v32  ;;  %v894_v28 = vor.u32 %v893_v29, %v14982_v41 }
  0xeb   : > { %2260 = vmatprep.mubr.bf16.mxu1 %v14889_v1  ;;  %v884_v35 = vor.u32 %v883_v53, %v880_v20  ;;  %v871_v53 = vrot.slane %v870_v49, 4  ;;  %v915_v20 = vshrl.u32 %v14958_v48, 16  ;;  %v907_v11 = vrot.slane %v905_v14, 5  ;;  %v15017_v14 = vld [vmem:[%s14438_s12 + $0xb4] sm:$0xf] }
  0xec   : > { %v911_v49 = vshll.u32 %v14958_v48, 16 }
  0xed   : > { %v15004_v9 = vrot.slane %v884_v35, 4  ;;  %v876_v7 = vsel %vm14469_vm4, %v871_v53, %v875_v56  ;;  %v908_v16 = vor.u32 %v907_v11, %v904_v27  ;;  %v917_v36 = vrot.slane %v915_v20, 4  ;;  %v15033_v27 = vld [vmem:[%s14438_s12 + $0xb0] sm:$0x1] }
  0xee   : > { %v929_v35 = vshll.u32 %v14978_v44, 16  ;;  %v15020_v29 = vrot.slane %v911_v49, 5  ;;  %v1100_v56 = vsel %vm14478_vm5, %v1098_v39, %v1099_v4  ;;  %v15036_v11 = vcombine.low %v866_v34, %v876_v7  ;;  %v15048_v34 = vld [vmem:[%s14438_s12 + $0xb8] sm:$0xf] }
  0xef   : > { %v895_v49 = vrot.slane %v894_v28, 4  ;;  %v15043_v4 = vrot.slane %v908_v16, 4  ;;  %v950_v28 = vshrl.u32 %v15017_v14, 16  ;;  %v953_v16 = vshll.u32 %v15017_v14, 16 }
  0xf0   : > { %2100 = vmatmul.mubr.bf16.gmra.mrb[32].mxu0 %v14837_v40  ;;  %v14999_v40 = vld [vmem:[%s14438_s12 + $0xac] sm:$0xf]  ;;  %18222 = vst [vmem:[#allocation38_spill] sm:$0xff] %v15036_v11  ;;  %v931_v39 = vrot.slane %v929_v35, 5  ;;  %v15061_v35 = vld [vmem:[%s14438_s12 + $0xbc] sm:$0x1] }
  0xf1   : > { %2107 = vmatprep.mubr.bf16.mxu0 %v14947_v18  ;;  %v1106_v18 = vrot.slane %v14895_v30, 5  ;;  %v18221_v30 = vrot.slane %v14833_v21, 5  ;;  %v939_v20 = vshrl.u32 %v14999_v40, 16  ;;  %v935_v53 = vshll.u32 %v14999_v40, 16 }
  0xf2   : > { %2261 = vmatmul.mubr.bf16.gmra.mrb[32].mxu1 %v14934_v57  ;;  %v923_v57 = vrot.slane %v921_v24, 5  ;;  %v1117_v24 = vrot.slane %v14958_v48, 5  ;;  %v945_v21 = vshll.u32 %v15033_v27, 16  ;;  %v959_v43 = vshll.u32 %v15048_v34, 16 }
  0xf3   : > { %2268 = vmatprep.mubr.bf16.mxu1 %v14938_v10  ;;  %v941_v32 = vrot.slane %v939_v20, 4 }
  0xf4   : > { %v961_v42 = vrot.slane %v959_v43, 5 }
  0xf8   : > { %2108 = vmatmul.mubr.bf16.gmra.mrb[36].mxu0 %v14889_v1  ;;  %v1097_v1 = vsel %vm14478_vm5, %v10291_v45, %v18221_v30  ;;  %v18223_v45 = vrot.slane %v14923_v3, 5 }
  0xf9   : > { %2115 = vmatprep.mubr.bf16.mxu0 %v14995_v12  ;;  %v928_v12 = vrot.slane %v926_v47, 4  ;;  %v15051_v7 = vcombine.low %v1097_v1, %v1100_v56  ;;  %v15055_v47 = vcombine.low %v14909_v55, %v14923_v3  ;;  %v1107_v1 = vsel %vm14478_vm5, %v1105_v0, %v1106_v18 }
  0xfa   : > { %2269 = vmatmul.mubr.bf16.gmra.mrb[36].mxu1 %v14985_v62  ;;  %v15041_v30 = vrot.slane %v18223_v45, 4  ;;  %v918_v62 = vor.u32 %v917_v36, %v15020_v29  ;;  %v15057_v45 = vrot.slane %v935_v53, 5  ;;  %v1104_v36 = vsel %vm14478_vm5, %v10292_v31, %v1103_v13 }
  0xfb   : > { %2276 = vmatprep.mubr.bf16.mxu1 %v14989_v38  ;;  %18224 = vst [vmem:[#allocation39_spill] sm:$0xff] %v15051_v7  ;;  %v932_v20 = vor.u32 %v931_v39, %v928_v12  ;;  %v890_v56 = vsel %vm14469_vm4, %v15004_v9, %v14982_v41  ;;  %v10294_v53 = vrot.slane %v14944_v17, 9  ;;  %v952_v39 = vrot.slane %v950_v28, 4 }
  0xfc   : > { %v919_v13 = vrot.slane %v918_v62, 4  ;;  %v942_v31 = vor.u32 %v941_v32, %v15057_v45  ;;  %v900_v18 = vsel %vm14469_vm4, %v895_v49, %v15008_v59  ;;  %v963_v41 = vshrl.u32 %v15048_v34, 16 }
  0xfd   : > { %v955_v0 = vrot.slane %v953_v16, 5  ;;  %v1119_v62 = vrot.slane %v1117_v24, 4  ;;  %v933_v32 = vrot.slane %v932_v20, 4  ;;  %v947_v9 = vrot.slane %v945_v21, 5  ;;  %v15099_v21 = vld [vmem:[%s14438_s12 + $0xc4] sm:$0xf] }
  0xfe   : > { %v969_v12 = vshll.u32 %v15061_v35, 16  ;;  %v10295_v28 = vrot.slane %v14978_v44, 9  ;;  %v15092_v59 = vcombine.low %v890_v56, %v900_v18  ;;  %v943_v49 = vrot.slane %v942_v31, 4 }
  0xff   : > { %v18225_v16 = vrot.slane %v14999_v40, 5  ;;  %v15096_v6 = vcombine.low %v1104_v36, %v1107_v1  ;;  %v965_v20 = vrot.slane %v963_v41, 4  ;;  %v1150_v36 = vshrl.u32 %v15099_v21, 16 }
 0x100   : > { %2116 = vmatmul.mubr.bf16.gmra.mrb[40].mxu0 %v14938_v10  ;;  %v956_v10 = vor.u32 %v955_v0, %v952_v39  ;;  %v914_v17 = vsel %vm14469_vm4, %v15043_v4, %v15020_v29  ;;  %v924_v48 = vsel %vm14469_vm4, %v919_v13, %v923_v57  ;;  %v18226_v1 = vrot.slane %v14923_v3, 5 }
 0x101   : > { %2123 = vmatprep.mubr.bf16.mxu0 %v15036_v11  ;;  %v1127_v11 = vrot.slane %v15033_v27, 5  ;;  %v1126_v5 = vrot.slane %v18225_v16, 4  ;;  %v971_v27 = vrot.slane %v969_v12, 5  ;;  %v18228_v18 = vrot.slane %v14953_v61, 5 }
 0x102   : > { %2277 = vmatmul.mubr.bf16.gmra.mrb[40].mxu1 %v15051_v7  ;;  %v15090_v7 = vld [vmem:[%s14438_s12 + $0xc0] sm:$0xf]  ;;  %v957_v31 = vrot.slane %v956_v10, 4  ;;  %v18227_v10 = vrot.slane %v14909_v55, 9  ;;  %v15129_v0 = vcombine.low %v914_v17, %v924_v48  ;;  %v15135_v57 = vcombine.low %v14978_v44, %v14999_v40 }
 0x103   : > { %2284 = vmatprep.mubr.bf16.mxu1 %v15055_v47  ;;  %v1137_v39 = vshrl.u32 %v15090_v7, 16  ;;  %v1140_v56 = vshll.u32 %v15090_v7, 16  ;;  %v1114_v41 = vsel %vm14478_vm5, %v15041_v30, %v18228_v18  ;;  %v966_v3 = vor.u32 %v965_v20, %v961_v42 }
 0x104   : > { %v1111_v12 = vsel %vm14478_vm5, %v18227_v10, %v18226_v1  ;;  %v938_v55 = vsel %vm14469_vm4, %v933_v32, %v15057_v45  ;;  %v948_v61 = vsel %vm14469_vm4, %v943_v49, %v947_v9  ;;  %v1118_v44 = vsel %vm14478_vm5, %v10294_v53, %v1117_v24 }
 0x105   : > { %v15131_v29 = vcombine.low %v1111_v12, %v1114_v41  ;;  %v1121_v30 = vsel %vm14478_vm5, %v1119_v62, %v1120_v33  ;;  %v967_v4 = vrot.slane %v966_v3, 4  ;;  %v1131_v13 = vrot.slane %v15048_v34, 5  ;;  %v582_v62 = vld [vmem:[%s14438_s12 + $0xc8] sm:$0x1] }
 0x106   : > { %v15151_v43 = vcombine.low %v938_v55, %v948_v61  ;;  %v15153_v16 = vcombine.low %v1118_v44, %v1121_v30  ;;  %v1146_v45 = vshll.u32 %v15099_v21, 16  ;;  %v15158_v32 = vcombine.low %v15017_v14, %v15048_v34 }
 0x107   : > { %v1139_v9 = vrot.slane %v1137_v39, 4  ;;  %v1142_v24 = vrot.slane %v1140_v56, 5  ;;  %v1152_v49 = vrot.slane %v1150_v36, 4  ;;  %v962_v33 = vsel %vm14469_vm4, %v957_v31, %v961_v42 }
 0x108   : > { %2124 = vmatmul.mubr.bf16.gmra.mrb[44].mxu0 %v14989_v38  ;;  %v1148_v53 = vrot.slane %v1146_v45, 5  ;;  %v972_v20 = vsel %vm14469_vm4, %v967_v4, %v971_v27  ;;  %v1156_v48 = vshll.u32 %v582_v62, 16  ;;  %v18229_v39 = vrot.slane %v14999_v40, 5 }
 0x109   : > { %2131 = vmatprep.mubr.bf16.mxu0 %v15092_v59  ;;  %v1143_v17 = vor.u32 %v1142_v24, %v1139_v9  ;;  %v1128_v36 = vsel %vm14478_vm5, %v1126_v5, %v1127_v11  ;;  %v15175_v10 = vcombine.low %v962_v33, %v972_v20  ;;  %v10296_v27 = vrot.slane %v15017_v14, 9  ;;  %v18233_v9 = vld [vmem:[#allocation24_spill] sm:$0xff]  ;;  %v18238_v33 = vld [vmem:[#allocation33_spill] sm:$0xff] }
 0x10a   : > { %2285 = vmatmul.mubr.bf16.gmra.mrb[44].mxu1 %v15096_v6  ;;  %v1153_v34 = vor.u32 %v1152_v49, %v1148_v53  ;;  %v1125_v56 = vsel %vm14478_vm5, %v10295_v28, %v18229_v39  ;;  %v1158_v1 = vrot.slane %v1156_v48, 5  ;;  %v15186_v28 = vcombine.low %v15090_v7, %v15099_v21  ;;  %v18234_v24 = vld [vmem:[#allocation28_spill] sm:$0xff]  ;;  %v18237_v49 = vld [vmem:[#allocation30_spill] sm:$0xff]  ;;  %v18244_v48 = vld [vmem:[#allocation39_spill] sm:$0xff] }
 0x10b   : > { %2292 = vmatprep.mubr.bf16.mxu1 %v15103_v8  ;;  %v1144_v42 = vrot.slane %v1143_v17, 4  ;;  %v15177_v12 = vcombine.low %v1125_v56, %v1128_v36  ;;  %v1133_v5 = vrot.slane %v1131_v13, 4  ;;  %v1134_v11 = vrot.slane %v15061_v35, 5  ;;  %v18241_v20 = vld [vmem:[#allocation36_spill] sm:$0xff]  ;;  %v18245_v39 = vld [vmem:[#allocation34_spill] sm:$0xff] }
 0x10c   : > { %v1154_v31 = vrot.slane %v1153_v34, 4  ;;  %v1165_v3 = vrot.slane %v15099_v21, 5  ;;  %v10297_v14 = vrot.slane %v15090_v7, 9  ;;  %v1168_v61 = vrot.slane %v582_v62, 5  ;;  %v13290_v7 = vld [vmem:[%s18131_s1 + $0x208] sm:$0xff]   ;;  %v18242_v17 = vld [vmem:[#allocation32_spill] sm:$0xff] }
 0x10d   : > { %v1149_v18 = vsel %vm14469_vm4, %v1144_v42, %v1148_v53  ;;  %v1132_v44 = vsel %vm14478_vm5, %v10296_v27, %v1131_v13  ;;  %v1135_v35 = vsel %vm14478_vm5, %v1133_v5, %v1134_v11  ;;  %v13291_v13 = vld [vmem:[%s18131_s1 + $0x210] sm:$0xff]   ;;  %v18239_v62 = vld [vmem:[#allocation29_spill] sm:$0xff]  ;;  %v15281_v36 = vld [vmem:[%s18132_s2] ss:$0 sm:$0xff] }
 0x10e   : > { %v1159_v40 = vsel %vm14469_vm4, %v1154_v31, %v1158_v1  ;;  %v1167_v55 = vrot.slane %v1165_v3, 4  ;;  %v1166_v30 = vsel %vm14478_vm5, %v10297_v14, %v1165_v3  ;;  %v15207_v45 = vcombine.low %v1132_v44, %v1135_v35  ;;  %v18236_v53 = vld [vmem:[#allocation26_spill] sm:$0xff]  ;;  %v18243_v34 = vld [vmem:[#allocation37_spill] sm:$0xff] }
 0x10f   : > { %v15189_v41 = vcombine.low %v1149_v18, %v1159_v40  ;;  %v18246_v56 = vld [vmem:[#allocation38_spill] sm:$0xff]  ;;  %v15285_v31 = vld [vmem:[%s14438_s12 + $0xcc] sm:$0xf] }
 0x110   : > { %2132 = vmatmul.mubr.bf16.gmra.mrb[48].mxu0 %v15055_v47  ;;  %v1169_v21 = vsel %vm14478_vm5, %v1167_v55, %v1168_v61  ;;  %v15288_v40 = vld [vmem:[%s14438_s12 + $0xd0] sm:$0xf]  ;;  %v1171_v44 = vshrl.u32 %v15285_v31, 16 }
 0x111   : > { %2139 = vmatprep.mubr.bf16.mxu0 %v15129_v0  ;;  %v15205_v4 = vcombine.low %v1166_v30, %v1169_v21 }
 0x112   : > { %2293 = vmatmul.mubr.bf16.gmra.mrb[48].mxu1 %v15131_v29 }
 0x113   : > { %2300 = vmatprep.mubr.bf16.mxu1 %v15135_v57 }
 0x118   : > { %2140 = vmatmul.mubr.bf16.gmra.mrb[52].mxu0 %v15103_v8 }
 0x119   : > { %2147 = vmatprep.mubr.bf16.mxu0 %v15151_v43 }
 0x11a   : > { %2301 = vmatmul.mubr.bf16.gmra.mrb[52].mxu1 %v15153_v16 }
 0x11b   : > { %2308 = vmatprep.mubr.bf16.mxu1 %v15158_v32 }
 0x120   : > { %2148 = vmatmul.mubr.bf16.gmra.mrb[56].mxu0 %v15135_v57 }
 0x121   : > { %2155 = vmatprep.mubr.bf16.mxu0 %v15175_v10 }
 0x122   : > { %2309 = vmatmul.mubr.bf16.gmra.mrb[56].mxu1 %v15177_v12 }
 0x123   : > { %2316 = vmatprep.mubr.bf16.mxu1 %v15186_v28 }
 0x128   : > { %2156 = vmatmul.mubr.bf16.gmra.mrb[60].mxu0 %v15158_v32 }
 0x129   : > { %2357 = vmatprep.mubr.bf16.mxu0 %v14554_v52  ;;  %v13292_v52 = vld [vmem:[%s18131_s1 + $0x218] sm:$0xff]  }
 0x12a   : > { %2317 = vmatmul.mubr.bf16.gmra.mrb[60].mxu1 %v15207_v45 }
 0x12b   : > { %2518 = vmatprep.mubr.bf16.mxu1 %v14585_v15 }
 0x130   : > { %2358 = vmatmul.mubr.bf16.vlgmr.msra.gmra.mrb[64].mxu0 %v14529_v37  ;;  %v13293_v37 = vld [vmem:[%s18131_s1 + $0x220] sm:$0xff]  }
 0x131   : > { %12924 = vmatpush3.bf16.msra.mxu0 %v14928_v51  ;;  %2365 = vmatprep.mubr.bf16.mxu0 %v14591_v19  ;;  %v18231_v51 = vld [vmem:[#allocation25_spill] sm:$0xff] }
 0x132   : > { %2519 = vmatmul.mubr.bf16.vlgmr.msra.gmra.mrb[64].mxu1 %v14510_v23  ;;  %12925 = vmatprep.subr.bf16.mxu0 %v13290_v7  ;;  %v13294_v23 = vld [vmem:[%s18131_s1 + $0x228] sm:$0xff]  }
 0x133   : > { %2526 = vmatprep.mubr.bf16.mxu1 %v14627_v46 }
 0x135   : > { %12926 = vmatpush3.bf16.msra.mxu0 %v13290_v7  ;;  %v1174_v7 = vshll.u32 %v15285_v31, 16 }
 0x136   : > { %12927 = vmatprep.subr.bf16.mxu0 %v13291_v13 }
 0x138   : > { %2366 = vmatmul.mubr.bf16.gmra.mrb[68].mxu0 %v14585_v15  ;;  %v13295_v15 = vld [vmem:[%s18131_s1 + $0x230] sm:$0xff]  }
 0x139   : > { %2373 = vmatprep.mubr.bf16.mxu0 %v14638_v58  ;;  %12928 = vmatpush3.bf16.msra.mxu0 %v13291_v13  ;;  %v1180_v13 = vshll.u32 %v15288_v40, 16 }
 0x13a   : > { %2527 = vmatmul.mubr.bf16.gmra.mrb[68].mxu1 %v14549_v50  ;;  %12929 = vmatprep.subr.bf16.mxu0 %v13292_v52  ;;  %v13296_v50 = vld [vmem:[%s18131_s1 + $0x238] sm:$0xff]  }
 0x13b   : > { %2534 = vmatprep.mubr.bf16.mxu1 %v14680_v22 }
 0x13d   : > { %12930 = vmatpush3.bf16.msra.mxu0 %v13292_v52 }
 0x13e   : > { %12931 = vmatprep.subr.bf16.mxu0 %v13293_v37 }
 0x140   : > { %2374 = vmatmul.mubr.bf16.gmra.mrb[72].mxu0 %v14627_v46  ;;  %v18230_v46 = vld [vmem:[#allocation23_spill] sm:$0xff] }
 0x141   : > { %2381 = vmatprep.mubr.bf16.mxu0 %v14720_v2  ;;  %12932 = vmatpush3.bf16.msra.mxu0 %v13293_v37 }
 0x142   : > { %2535 = vmatmul.mubr.bf16.gmra.mrb[72].mxu1 %v14603_v26  ;;  %12933 = vmatprep.subr.bf16.mxu0 %v13294_v23  ;;  %v18232_v26 = vld [vmem:[#allocation27_spill] sm:$0xff] }
 0x143   : > { %2542 = vmatprep.mubr.bf16.mxu1 %v14714_v60 }
 0x145   : > { %12934 = vmatpush3.bf16.msra.mxu0 %v13294_v23 }
 0x146   : > { %12935 = vmatprep.subr.bf16.mxu0 %v13295_v15 }
 0x148   : > { %2382 = vmatmul.mubr.bf16.gmra.mrb[76].mxu0 %v14680_v22  ;;  %v18235_v22 = vld [vmem:[#allocation31_spill] sm:$0xff] }
 0x149   : > { %2389 = vmatprep.mubr.bf16.mxu0 %v14767_v25  ;;  %12936 = vmatpush3.bf16.msra.mxu0 %v13295_v15  ;;  %v1173_v15 = vrot.slane %v1171_v44, 4 }
 0x14a   : > { %2543 = vmatmul.mubr.bf16.gmra.mrb[76].mxu1 %v18230_v46  ;;  %12937 = vmatprep.subr.bf16.mxu0 %v13296_v50 }
 0x14b   : > { %2550 = vmatprep.mubr.bf16.mxu1 %v18231_v51 }
 0x14d   : > { %12938 = vmatpush3.bf16.msra.mxu0 %v13296_v50 }
 0x150   : > { %2390 = vmatmul.mubr.bf16.gmra.mrb[80].mxu0 %v14714_v60  ;;  %v18240_v60 = vld [vmem:[#allocation35_spill] sm:$0xff] }
 0x151   : > { %2397 = vmatprep.mubr.bf16.mxu0 %v18232_v26 }
 0x152   : > { %2551 = vmatmul.mubr.bf16.gmra.mrb[80].mxu1 %v18233_v9  ;;  %v1176_v9 = vrot.slane %v1174_v7, 5 }
 0x153   : > { %2558 = vmatprep.mubr.bf16.mxu1 %v18234_v24 }
 0x158   : > { %2398 = vmatmul.mubr.bf16.gmra.mrb[84].mxu0 %v18231_v51 }
 0x159   : > { %2405 = vmatprep.mubr.bf16.mxu0 %v18235_v22 }
 0x15a   : > { %2559 = vmatmul.mubr.bf16.gmra.mrb[84].mxu1 %v18236_v53 }
 0x15b   : > { %2566 = vmatprep.mubr.bf16.mxu1 %v18237_v49 }
 0x160   : > { %2406 = vmatmul.mubr.bf16.gmra.mrb[88].mxu0 %v18234_v24 }
 0x161   : > { %2413 = vmatprep.mubr.bf16.mxu0 %v18238_v33 }
 0x162   : > { %2567 = vmatmul.mubr.bf16.gmra.mrb[88].mxu1 %v18239_v62 }
 0x163   : > { %2574 = vmatprep.mubr.bf16.mxu1 %v18240_v60 }
 0x168   : > { %2414 = vmatmul.mubr.bf16.gmra.mrb[92].mxu0 %v18237_v49  ;;  %v1182_v49 = vrot.slane %v1180_v13, 5 }
 0x169   : > { %2421 = vmatprep.mubr.bf16.mxu0 %v18241_v20 }
 0x16a   : > { %2575 = vmatmul.mubr.bf16.gmra.mrb[92].mxu1 %v18242_v17 }
 0x16b   : > { %2582 = vmatprep.mubr.bf16.mxu1 %v18243_v34 }
 0x170   : > { %2422 = vmatmul.mubr.bf16.gmra.mrb[96].mxu0 %v18240_v60 }
 0x171   : > { %2429 = vmatprep.mubr.bf16.mxu0 %v18244_v48 }
 0x172   : > { %2583 = vmatmul.mubr.bf16.gmra.mrb[96].mxu1 %v18245_v39 }
 0x173   : > { %2590 = vmatprep.mubr.bf16.mxu1 %v18246_v56 }
 0x178   : > { %2430 = vmatmul.mubr.bf16.gmra.mrb[100].mxu0 %v18243_v34  ;;  %v15306_v34 = vld [vmem:[%s14438_s12 + $0xd4] sm:$0x1] }
 0x179   : > { %2437 = vmatprep.mubr.bf16.mxu0 %v15096_v6 }
 0x17a   : > { %2591 = vmatmul.mubr.bf16.gmra.mrb[100].mxu1 %v14989_v38 }
 0x17b   : > { %2598 = vmatprep.mubr.bf16.mxu1 %v15092_v59 }
 0x180   : > { %2438 = vmatmul.mubr.bf16.gmra.mrb[104].mxu0 %v18246_v56 }
 0x181   : > { %2445 = vmatprep.mubr.bf16.mxu0 %v15131_v29 }
 0x182   : > { %2599 = vmatmul.mubr.bf16.gmra.mrb[104].mxu1 %v15055_v47 }
 0x183   : > { %v11471_v42 = vpop.f32.mrb[0].mxu0  ;;  %2606 = vmatprep.mubr.bf16.mxu1 %v15129_v0 }
 0x184   : > { %v11472_v1 = vpop.f32.mrb[1].mxu0 }
 0x185   : > { %v11473_v38 = vadd.f32 %v11472_v1, %v11471_v42  ;;  %v11474_v27 = vpop.f32.mrb[2].mxu0  ;;  %v11583_v18 = vpop.f32.mrb[0].mxu1  ;;  %v13298_v42 = vld [vmem:[%s18133_s3 + $0x40] sm:$0xff]  }
 0x186   : > { %v11475_v5 = vpop.f32.mrb[3].mxu0  ;;  %v11584_v11 = vpop.f32.mrb[1].mxu1  ;;  %v13299_v1 = vld [vmem:[%s18133_s3] sm:$0xff]   ;;  %11927 = vmatprep.subr.bf16.mxu1 %v13298_v42 }
 0x187   : > { %v2038_v47 = vadd.f32 %v11473_v38, %v15281_v36  ;;  %v11476_v3 = vadd.f32 %v11475_v5, %v11474_v27  ;;  %v11585_v14 = vadd.f32 %v11584_v11, %v11583_v18  ;;  %v11586_v55 = vpop.f32.mrb[2].mxu1  ;;  %v1177_v5 = vor.u32 %v1176_v9, %v1173_v15  ;;  %11928 = vmatpush3.bf16.msra.mxu1 %v13299_v1 }
 0x188   : > { %v11587_v61 = vpop.f32.mrb[3].mxu1  ;;  %2446 = vmatmul.mubr.bf16.gmra.mrb[108].mxu0 %v15092_v59  ;;  %v1184_v59 = vshrl.u32 %v15288_v40, 16 }
 0x189   : > { %v2041_v35 = vadd.f32 %v11476_v3, %v15281_v36  ;;  %v15294_v30 = vadd.f32 %v11585_v14, %v2038_v47  ;;  %v11588_v21 = vadd.f32 %v11587_v61, %v11586_v55  ;;  %2453 = vmatprep.mubr.bf16.mxu0 %v15153_v16  ;;  %v1190_v14 = vshll.u32 %v15306_v34, 16 }
 0x18a   : > { %2607 = vmatmul.mubr.bf16.gmra.mrb[108].mxu1 %v15103_v8  ;;  %v1186_v39 = vrot.slane %v1184_v59, 4 }
 0x18b   : > { %v15300_v52 = vadd.f32 %v11588_v21, %v2041_v35  ;;  %v11477_v37 = vpop.f32.mrb[4].mxu0  ;;  %2614 = vmatprep.mubr.bf16.mxu1 %v15151_v43  ;;  %v1178_v35 = vrot.slane %v1177_v5, 4 }
 0x18c   : > { %v11478_v23 = vpop.f32.mrb[5].mxu0  ;;  %v1187_v47 = vor.u32 %v1186_v39, %v1182_v49 }
 0x18d   : > { %v11479_v50 = vadd.f32 %v11478_v23, %v11477_v37  ;;  %v11480_v46 = vpop.f32.mrb[6].mxu0  ;;  %v11589_v51 = vpop.f32.mrb[4].mxu1 }
 0x18e   : > { %v11481_v24 = vpop.f32.mrb[7].mxu0  ;;  %v11590_v53 = vpop.f32.mrb[5].mxu1  ;;  %v1188_v23 = vrot.slane %v1187_v47, 4 }
 0x18f   : > { %v2046_v8 = vadd.f32 %v11479_v50, %v15281_v36  ;;  %v11482_v62 = vadd.f32 %v11481_v24, %v11480_v46  ;;  %v11591_v60 = vadd.f32 %v11590_v53, %v11589_v51  ;;  %v11592_v17 = vpop.f32.mrb[6].mxu1  ;;  %v1192_v50 = vrot.slane %v1190_v14, 5 }
 0x190   : > { %v11593_v56 = vpop.f32.mrb[7].mxu1  ;;  %2454 = vmatmul.mubr.bf16.gmra.mrb[112].mxu0 %v15129_v0 }
 0x191   : > { %v2049_v38 = vadd.f32 %v11482_v62, %v15281_v36  ;;  %v15316_v27 = vadd.f32 %v11591_v60, %v2046_v8  ;;  %v11594_v18 = vadd.f32 %v11593_v56, %v11592_v17  ;;  %2461 = vmatprep.mubr.bf16.mxu0 %v15177_v12  ;;  %v1183_v62 = vsel %vm14469_vm4, %v1178_v35, %v1182_v49  ;;  %v13300_v49 = vld [vmem:[%s18133_s3 + $0x48] sm:$0xff]  }
 0x192   : > { %2615 = vmatmul.mubr.bf16.gmra.mrb[112].mxu1 %v15135_v57  ;;  %11929 = vmatprep.subr.bf16.mxu1 %v13300_v49  ;;  %v13303_v49 = vld [vmem:[%s18133_s3 + $0x10] sm:$0xff]  }
 0x193   : > { %v15320_v0 = vadd.f32 %v11594_v18, %v2049_v38  ;;  %v11483_v11 = vpop.f32.mrb[8].mxu0  ;;  %2622 = vmatprep.mubr.bf16.mxu1 %v15175_v10  ;;  %11930 = vmatpush3.bf16.msra.mxu1 %v13301_v54 }
 0x194   : > { %v11484_v3 = vpop.f32.mrb[9].mxu0 }
 0x195   : > { %v11485_v55 = vadd.f32 %v11484_v3, %v11483_v11  ;;  %v11486_v61 = vpop.f32.mrb[10].mxu0  ;;  %v11595_v44 = vpop.f32.mrb[8].mxu1 }
 0x196   : > { %v11487_v21 = vpop.f32.mrb[11].mxu0  ;;  %v11596_v7 = vpop.f32.mrb[9].mxu1 }
 0x197   : > { %v2054_v13 = vadd.f32 %v11485_v55, %v15281_v36  ;;  %v11488_v57 = vadd.f32 %v11487_v21, %v11486_v61  ;;  %v11597_v37 = vadd.f32 %v11596_v7, %v11595_v44  ;;  %v11598_v59 = vpop.f32.mrb[10].mxu1 }
 0x198   : > { %v11599_v15 = vpop.f32.mrb[11].mxu1  ;;  %2462 = vmatmul.mubr.bf16.gmra.mrb[116].mxu0 %v15151_v43  ;;  %v1193_v43 = vsel %vm14469_vm4, %v1188_v23, %v1192_v50 }
 0x199   : > { %v2057_v46 = vadd.f32 %v11488_v57, %v15281_v36  ;;  %v15327_v51 = vadd.f32 %v11597_v37, %v2054_v13  ;;  %v11600_v9 = vadd.f32 %v11599_v15, %v11598_v59  ;;  %2469 = vmatprep.mubr.bf16.mxu0 %v15207_v45  ;;  %v10351_v5 = vcombine.low %v1183_v62, %v1193_v43 }
 0x19a   : > { %2623 = vmatmul.mubr.bf16.gmra.mrb[116].mxu1 %v15158_v32  ;;  %v10350_v57 = vcombine.low %v15285_v31, %v15288_v40 }
 0x19b   : > { %v15331_v24 = vadd.f32 %v11600_v9, %v2057_v46  ;;  %v11489_v53 = vpop.f32.mrb[12].mxu0  ;;  %2630 = vmatprep.mubr.bf16.mxu1 %v15189_v41 }
 0x19c   : > { %v11490_v8 = vpop.f32.mrb[13].mxu0 }
 0x19d   : > { %v11491_v60 = vadd.f32 %v11490_v8, %v11489_v53  ;;  %v11492_v17 = vpop.f32.mrb[14].mxu0  ;;  %v11601_v39 = vpop.f32.mrb[12].mxu1 }
 0x19e   : > { %v11493_v56 = vpop.f32.mrb[15].mxu0  ;;  %v11602_v42 = vpop.f32.mrb[13].mxu1 }
 0x19f   : > { %v2062_v1 = vadd.f32 %v11491_v60, %v15281_v36  ;;  %v11494_v32 = vadd.f32 %v11493_v56, %v11492_v17  ;;  %v11603_v38 = vadd.f32 %v11602_v42, %v11601_v39  ;;  %v11604_v18 = vpop.f32.mrb[14].mxu1 }
 0x1a0   : > { %v11605_v11 = vpop.f32.mrb[15].mxu1  ;;  %2470 = vmatmul.mubr.bf16.gmra.mrb[120].mxu0 %v15175_v10 }
 0x1a1   : > { %v2065_v47 = vadd.f32 %v11494_v32, %v15281_v36  ;;  %v15347_v3 = vadd.f32 %v11603_v38, %v2062_v1  ;;  %v11606_v14 = vadd.f32 %v11605_v11, %v11604_v18  ;;  %2477 = vmatprep.mubr.bf16.mxu0 %v15205_v4  ;;  %v13302_v11 = vld [vmem:[%s18133_s3 + $0x50] sm:$0xff]  }
 0x1a2   : > { %2631 = vmatmul.mubr.bf16.gmra.mrb[120].mxu1 %v15186_v28  ;;  %11931 = vmatprep.subr.bf16.mxu1 %v13302_v11 }
 0x1a3   : > { %v15351_v55 = vadd.f32 %v11606_v14, %v2065_v47  ;;  %v11495_v10 = vpop.f32.mrb[16].mxu0  ;;  %2638 = vmatprep.mubr.bf16.mxu1 %v10351_v5  ;;  %11932 = vmatpush3.bf16.msra.mxu1 %v13303_v49 }
 0x1a4   : > { %v11496_v61 = vpop.f32.mrb[17].mxu0 }
 0x1a5   : > { %v11497_v44 = vadd.f32 %v11496_v61, %v11495_v10  ;;  %v11498_v35 = vpop.f32.mrb[18].mxu0  ;;  %v11607_v21 = vpop.f32.mrb[16].mxu1 }
 0x1a6   : > { %v11499_v7 = vpop.f32.mrb[19].mxu0  ;;  %v11608_v13 = vpop.f32.mrb[17].mxu1 }
 0x1a7   : > { %v2070_v37 = vadd.f32 %v11497_v44, %v15281_v36  ;;  %v11500_v59 = vadd.f32 %v11499_v7, %v11498_v35  ;;  %v11609_v23 = vadd.f32 %v11608_v13, %v11607_v21  ;;  %v11610_v28 = vpop.f32.mrb[18].mxu1 }
 0x1a8   : > { %v11611_v15 = vpop.f32.mrb[19].mxu1  ;;  %2478 = vmatmul.mubr.bf16.gmra.mrb[124].mxu0 %v15189_v41 }
 0x1a9   : > { %v2073_v50 = vadd.f32 %v11500_v59, %v15281_v36  ;;  %v15358_v46 = vadd.f32 %v11609_v23, %v2070_v37  ;;  %v11612_v9 = vadd.f32 %v11611_v15, %v11610_v28  ;;  %12939 = vmatprep.mubr.bf16.mxu0 %v14591_v19 }
 0x1aa   : > { %2639 = vmatmul.mubr.bf16.gmra.mrb[124].mxu1 %v10350_v57 }
 0x1ab   : > { %v15361_v53 = vadd.f32 %v11612_v9, %v2073_v50  ;;  %v11501_v8 = vpop.f32.mrb[20].mxu0 }
 0x1ac   : > { %v11502_v62 = vpop.f32.mrb[21].mxu0 }
 0x1ad   : > { %v11503_v43 = vadd.f32 %v11502_v62, %v11501_v8  ;;  %v11504_v60 = vpop.f32.mrb[22].mxu0  ;;  %v11613_v17 = vpop.f32.mrb[20].mxu1 }
 0x1ae   : > { %v11505_v39 = vpop.f32.mrb[23].mxu0  ;;  %v11614_v56 = vpop.f32.mrb[21].mxu1 }
 0x1af   : > { %v2078_v42 = vadd.f32 %v11503_v43, %v15281_v36  ;;  %v11506_v41 = vadd.f32 %v11505_v39, %v11504_v60  ;;  %v11615_v1 = vadd.f32 %v11614_v56, %v11613_v17  ;;  %v11616_v32 = vpop.f32.mrb[22].mxu1 }
 0x1b0   : > { %v11617_v38 = vpop.f32.mrb[23].mxu1  ;;  %12940 = vmatmul.mubr.bf16.vlgmr.msra.gmra.mrb[128].mxu0 %v14638_v58 }
 0x1b1   : > { %v2081_v19 = vadd.f32 %v11506_v41, %v15281_v36  ;;  %v15366_v18 = vadd.f32 %v11615_v1, %v2078_v42  ;;  %v11618_v5 = vadd.f32 %v11617_v38, %v11616_v32  ;;  %12943 = vmatprep.mubr.bf16.mxu0 %v14720_v2  ;;  %v13304_v32 = vld [vmem:[%s18133_s3 + $0x58] sm:$0xff]  }
 0x1b2   : > { %v13305_v38 = vld [vmem:[%s18133_s3 + $0x18] sm:$0xff]   ;;  %11933 = vmatprep.subr.bf16.mxu1 %v13304_v32 }
 0x1b3   : > { %v15375_v54 = vadd.f32 %v11618_v5, %v2081_v19  ;;  %v11507_v47 = vpop.f32.mrb[24].mxu0  ;;  %11934 = vmatpush3.bf16.msra.mxu1 %v13305_v38 }
 0x1b4   : > { %v11508_v58 = vpop.f32.mrb[25].mxu0 }
 0x1b5   : > { %v11509_v14 = vadd.f32 %v11508_v58, %v11507_v47  ;;  %v11510_v10 = vpop.f32.mrb[26].mxu0  ;;  %v11619_v61 = vpop.f32.mrb[24].mxu1 }
 0x1b6   : > { %v11511_v44 = vpop.f32.mrb[27].mxu0  ;;  %v11620_v35 = vpop.f32.mrb[25].mxu1 }
 0x1b7   : > { %v2086_v2 = vadd.f32 %v11509_v14, %v15281_v36  ;;  %v11512_v21 = vadd.f32 %v11511_v44, %v11510_v10  ;;  %v11621_v7 = vadd.f32 %v11620_v35, %v11619_v61  ;;  %v11622_v13 = vpop.f32.mrb[26].mxu1 }
 0x1b8   : > { %v11623_v57 = vpop.f32.mrb[27].mxu1  ;;  %12944 = vmatmul.mubr.bf16.gmra.mrb[132].mxu0 %v14767_v25 }
 0x1b9   : > { %v2089_v37 = vadd.f32 %v11512_v21, %v15281_v36  ;;  %v15380_v59 = vadd.f32 %v11621_v7, %v2086_v2  ;;  %v11624_v23 = vadd.f32 %v11623_v57, %v11622_v13  ;;  %12947 = vmatprep.mubr.bf16.mxu0 %v18232_v26 }
 0x1bb   : > { %v15383_v28 = vadd.f32 %v11624_v23, %v2089_v37  ;;  %v11513_v15 = vpop.f32.mrb[28].mxu0 }
 0x1bc   : > { %v11514_v50 = vpop.f32.mrb[29].mxu0 }
 0x1bd   : > { %v11515_v9 = vadd.f32 %v11514_v50, %v11513_v15  ;;  %v11516_v8 = vpop.f32.mrb[30].mxu0  ;;  %v11625_v62 = vpop.f32.mrb[28].mxu1 }
 0x1be   : > { %v11517_v43 = vpop.f32.mrb[31].mxu0  ;;  %v11626_v60 = vpop.f32.mrb[29].mxu1 }
 0x1bf   : > { %v2094_v17 = vadd.f32 %v11515_v9, %v15281_v36  ;;  %v11518_v39 = vadd.f32 %v11517_v43, %v11516_v8  ;;  %v11627_v25 = vadd.f32 %v11626_v60, %v11625_v62  ;;  %v11628_v56 = vpop.f32.mrb[30].mxu1 }
 0x1c0   : > { %v11629_v42 = vpop.f32.mrb[31].mxu1  ;;  %12948 = vmatmul.mubr.bf16.gmra.mrb[136].mxu0 %v18235_v22 }
 0x1c1   : > { %v2097_v41 = vadd.f32 %v11518_v39, %v15281_v36  ;;  %v15388_v26 = vadd.f32 %v11627_v25, %v2094_v17  ;;  %v11630_v1 = vadd.f32 %v11629_v42, %v11628_v56  ;;  %12951 = vmatprep.mubr.bf16.mxu0 %v18238_v33  ;;  %v13306_v56 = vld [vmem:[%s18133_s3 + $0x60] sm:$0xff]  }
 0x1c2   : > { %v13307_v42 = vld [vmem:[%s18133_s3 + $0x20] sm:$0xff]   ;;  %11935 = vmatprep.subr.bf16.mxu1 %v13306_v56 }
 0x1c3   : > { %v15397_v19 = vadd.f32 %v11630_v1, %v2097_v41  ;;  %v11519_v5 = vpop.f32.mrb[32].mxu0  ;;  %11936 = vmatpush3.bf16.msra.mxu1 %v13307_v42 }
 0x1c4   : > { %v11520_v22 = vpop.f32.mrb[33].mxu0 }
 0x1c5   : > { %v11521_v11 = vadd.f32 %v11520_v22, %v11519_v5  ;;  %v11522_v49 = vpop.f32.mrb[34].mxu0  ;;  %v11631_v47 = vpop.f32.mrb[32].mxu1 }
 0x1c6   : > { %v11523_v58 = vpop.f32.mrb[35].mxu0  ;;  %v11632_v14 = vpop.f32.mrb[33].mxu1 }
 0x1c7   : > { %v2102_v33 = vadd.f32 %v11521_v11, %v15281_v36  ;;  %v11524_v10 = vadd.f32 %v11523_v58, %v11522_v49  ;;  %v11633_v61 = vadd.f32 %v11632_v14, %v11631_v47  ;;  %v11634_v44 = vpop.f32.mrb[34].mxu1  ;;  %v1199_v14 = vrot.slane %v15288_v40, 5 }
 0x1c8   : > { %v11635_v35 = vpop.f32.mrb[35].mxu1  ;;  %12952 = vmatmul.mubr.bf16.gmra.mrb[140].mxu0 %v18241_v20 }
 0x1c9   : > { %v2105_v2 = vadd.f32 %v11524_v10, %v15281_v36  ;;  %v15402_v21 = vadd.f32 %v11633_v61, %v2102_v33  ;;  %v11636_v7 = vadd.f32 %v11635_v35, %v11634_v44  ;;  %12955 = vmatprep.mubr.bf16.mxu0 %v18244_v48  ;;  %v10298_v10 = vrot.slane %v15285_v31, 9 }
 0x1cb   : > { %v15405_v13 = vadd.f32 %v11636_v7, %v2105_v2  ;;  %v11525_v57 = vpop.f32.mrb[36].mxu0 }
 0x1cc   : > { %v11526_v37 = vpop.f32.mrb[37].mxu0 }
 0x1cd   : > { %v11527_v23 = vadd.f32 %v11526_v37, %v11525_v57  ;;  %v11528_v15 = vpop.f32.mrb[38].mxu0  ;;  %v11637_v50 = vpop.f32.mrb[36].mxu1  ;;  %v1201_v57 = vrot.slane %v1199_v14, 4 }
 0x1ce   : > { %v11529_v9 = vpop.f32.mrb[39].mxu0  ;;  %v11638_v8 = vpop.f32.mrb[37].mxu1 }
 0x1cf   : > { %v2110_v62 = vadd.f32 %v11527_v23, %v15281_v36  ;;  %v11530_v43 = vadd.f32 %v11529_v9, %v11528_v15  ;;  %v11639_v20 = vadd.f32 %v11638_v8, %v11637_v50  ;;  %v11640_v60 = vpop.f32.mrb[38].mxu1  ;;  %v1202_v23 = vrot.slane %v15306_v34, 5 }
 0x1d0   : > { %v11641_v17 = vpop.f32.mrb[39].mxu1  ;;  %12956 = vmatmul.mubr.bf16.gmra.mrb[144].mxu0 %v15096_v6 }
 0x1d1   : > { %v2113_v39 = vadd.f32 %v11530_v43, %v15281_v36  ;;  %v15410_v48 = vadd.f32 %v11639_v20, %v2110_v62  ;;  %v11642_v25 = vadd.f32 %v11641_v17, %v11640_v60  ;;  %12959 = vmatprep.mubr.bf16.mxu0 %v15131_v29 }
 0x1d3   : > { %v15419_v41 = vadd.f32 %v11642_v25, %v2113_v39  ;;  %v11531_v1 = vpop.f32.mrb[40].mxu0  ;;  %v1203_v39 = vsel %vm14478_vm5, %v1201_v57, %v1202_v23  ;;  %v13308_v25 = vld [vmem:[%s18133_s3 + $0x68] sm:$0xff]  }
 0x1d4   : > { %v11532_v6 = vpop.f32.mrb[41].mxu0  ;;  %11937 = vmatprep.subr.bf16.mxu1 %v13308_v25  ;;  %v13312_v25 = vld [vmem:[%s18133_s3 + $0xc0] sm:$0xff]  }
 0x1d5   : > { %v11533_v32 = vadd.f32 %v11532_v6, %v11531_v1  ;;  %v11534_v38 = vpop.f32.mrb[42].mxu0  ;;  %v11643_v5 = vpop.f32.mrb[40].mxu1  ;;  %12039 = vmatprep.subr.bf16.mxu0 %v13312_v25 }
 0x1d6   : > { %v11535_v22 = vpop.f32.mrb[43].mxu0  ;;  %v11644_v11 = vpop.f32.mrb[41].mxu1 }
 0x1d7   : > { %v2118_v29 = vadd.f32 %v11533_v32, %v15281_v36  ;;  %v11536_v49 = vadd.f32 %v11535_v22, %v11534_v38  ;;  %v11645_v47 = vadd.f32 %v11644_v11, %v11643_v5  ;;  %v11646_v58 = vpop.f32.mrb[42].mxu1  ;;  %v15453_v5 = vld [vmem:[%s18132_s2] ss:$0 sm:$0xff] }
 0x1d8   : > { %v11647_v33 = vpop.f32.mrb[43].mxu1  ;;  %12960 = vmatmul.mubr.bf16.gmra.mrb[148].mxu0 %v15153_v16 }
 0x1d9   : > { %v2121_v61 = vadd.f32 %v11536_v49, %v15281_v36  ;;  %v15426_v44 = vadd.f32 %v11645_v47, %v2118_v29  ;;  %v11648_v35 = vadd.f32 %v11647_v33, %v11646_v58  ;;  %12963 = vmatprep.mubr.bf16.mxu0 %v15177_v12  ;;  %v1200_v12 = vsel %vm14478_vm5, %v10298_v10, %v1199_v14 }
 0x1da   : > { %v10352_v1 = vcombine.low %v1200_v12, %v1203_v39  ;;  %v13311_v12 = vld [vmem:[%s18133_s3 + $0x30] sm:$0xff]  }
 0x1db   : > { %v15429_v2 = vadd.f32 %v11648_v35, %v2121_v61  ;;  %v11537_v7 = vpop.f32.mrb[44].mxu0 }
 0x1dc   : > { %v11538_v37 = vpop.f32.mrb[45].mxu0 }
 0x1dd   : > { %v11539_v40 = vadd.f32 %v11538_v37, %v11537_v7  ;;  %v11540_v15 = vpop.f32.mrb[46].mxu0  ;;  %v11649_v50 = vpop.f32.mrb[44].mxu1 }
 0x1de   : > { %v11541_v16 = vpop.f32.mrb[47].mxu0  ;;  %v11650_v9 = vpop.f32.mrb[45].mxu1 }
 0x1df   : > { %v2126_v31 = vadd.f32 %v11539_v40, %v15281_v36  ;;  %v11542_v8 = vadd.f32 %v11541_v16, %v11540_v15  ;;  %v11651_v62 = vadd.f32 %v11650_v9, %v11649_v50  ;;  %v11652_v43 = vpop.f32.mrb[46].mxu1 }
 0x1e0   : > { %v11653_v20 = vpop.f32.mrb[47].mxu1  ;;  %12964 = vmatmul.mubr.bf16.gmra.mrb[152].mxu0 %v15207_v45  ;;  %v13309_v45 = vld [vmem:[%s18133_s3 + $0x28] sm:$0xff]  }
 0x1e1   : > { %v2129_v60 = vadd.f32 %v11542_v8, %v15281_v36  ;;  %v15437_v17 = vadd.f32 %v11651_v62, %v2126_v31  ;;  %v11654_v34 = vadd.f32 %v11653_v20, %v11652_v43  ;;  %12967 = vmatprep.mubr.bf16.mxu0 %v15205_v4  ;;  %11938 = vmatpush3.bf16.msra.mxu1 %v13309_v45  ;;  %v13310_v20 = vld [vmem:[%s18133_s3 + $0x70] sm:$0xff]  }
 0x1e2   : > { %11939 = vmatprep.subr.bf16.mxu1 %v13310_v20 }
 0x1e3   : > { %v15448_v56 = vadd.f32 %v11654_v34, %v2129_v60  ;;  %v11543_v42 = vpop.f32.mrb[48].mxu0 }
 0x1e4   : > { %v11544_v36 = vpop.f32.mrb[49].mxu0 }
 0x1e5   : > { %v11545_v6 = vadd.f32 %v11544_v36, %v11543_v42  ;;  %v11546_v4 = vpop.f32.mrb[50].mxu0  ;;  %v11655_v32 = vpop.f32.mrb[48].mxu1  ;;  %11940 = vmatpush3.bf16.msra.mxu1 %v13311_v12  ;;  %v15511_v12 = vld [vmem:[%s18133_s3 + $0xd8] sm:$0xff]  }
 0x1e6   : > { %v11547_v63 = vpop.f32.mrb[51].mxu0  ;;  %v11656_v38 = vpop.f32.mrb[49].mxu1 }
 0x1e7   : > { %v2134_v22 = vadd.f32 %v15453_v5, %v11545_v6  ;;  %v11548_v11 = vadd.f32 %v11547_v63, %v11546_v4  ;;  %v11657_v29 = vadd.f32 %v11656_v38, %v11655_v32  ;;  %v11658_v49 = vpop.f32.mrb[50].mxu1 }
 0x1e8   : > { %v11659_v47 = vpop.f32.mrb[51].mxu1  ;;  %12968 = vmatmul.mubr.bf16.gmra.mrb[156].mxu0 %v10352_v1  ;;  %v13313_v1 = vld [vmem:[%s18133_s3 + $0x80] sm:$0xff]  }
 0x1e9   : > { %v2137_v58 = vadd.f32 %v15453_v5, %v11548_v11  ;;  %v15457_v14 = vadd.f32 %v11657_v29, %v2134_v22  ;;  %v11660_v33 = vadd.f32 %v11659_v47, %v11658_v49  ;;  %12040 = vmatpush3.bf16.msra.mxu0 %v13313_v1  ;;  %v13314_v29 = vld [vmem:[%s18133_s3 + $0xc8] sm:$0xff]   ;;  %v13321_v1 = vld [vmem:[%s18133_s3 + $0x98] sm:$0xff]  }
 0x1ea   : > { %12041 = vmatprep.subr.bf16.mxu0 %v13314_v29 }
 0x1eb   : > { %v15459_v10 = vadd.f32 %v11660_v33, %v2137_v58  ;;  %v11549_v61 = vpop.f32.mrb[52].mxu0  ;;  %v13315_v33 = vld [vmem:[%s18133_s3 + $0x88] sm:$0xff]  }
 0x1ec   : > { %v11550_v35 = vpop.f32.mrb[53].mxu0 }
 0x1ed   : > { %v11551_v7 = vadd.f32 %v11550_v35, %v11549_v61  ;;  %v11552_v57 = vpop.f32.mrb[54].mxu0  ;;  %v11661_v37 = vpop.f32.mrb[52].mxu1  ;;  %12042 = vmatpush3.bf16.msra.mxu0 %v13315_v33 }
 0x1ee   : > { %v11553_v23 = vpop.f32.mrb[55].mxu0  ;;  %v11662_v40 = vpop.f32.mrb[53].mxu1 }
 0x1ef   : > { %v2142_v15 = vadd.f32 %v15453_v5, %v11551_v7  ;;  %v11554_v50 = vadd.f32 %v11553_v23, %v11552_v57  ;;  %v11663_v16 = vadd.f32 %v11662_v40, %v11661_v37  ;;  %v11664_v9 = vpop.f32.mrb[54].mxu1  ;;  %v13316_v57 = vld [vmem:[%s18133_s3 + $0xd0] sm:$0xff]  }
 0x1f0   : > { %v11665_v31 = vpop.f32.mrb[55].mxu1  ;;  %12043 = vmatprep.subr.bf16.mxu0 %v13316_v57 }
 0x1f1   : > { %v2145_v8 = vadd.f32 %v15453_v5, %v11554_v50  ;;  %v15463_v62 = vadd.f32 %v11663_v16, %v2142_v15  ;;  %v11666_v43 = vadd.f32 %v11665_v31, %v11664_v9  ;;  %v13317_v15 = vld [vmem:[%s18133_s3 + $0x90] sm:$0xff]  }
 0x1f2   : > { %12044 = vmatpush3.bf16.msra.mxu0 %v13317_v15 }
 0x1f3   : > { %v15471_v60 = vadd.f32 %v11666_v43, %v2145_v8  ;;  %v11555_v34 = vpop.f32.mrb[56].mxu0  ;;  %12045 = vmatprep.subr.bf16.mxu0 %v15511_v12 }
 0x1f4   : > { %v11556_v39 = vpop.f32.mrb[57].mxu0 }
 0x1f5   : > { %v11557_v45 = vadd.f32 %v11556_v39, %v11555_v34  ;;  %v11558_v42 = vpop.f32.mrb[58].mxu0  ;;  %v11667_v36 = vpop.f32.mrb[56].mxu1  ;;  %v14114_v34 = vmov 0.0  }
 0x1f6   : > { %v11559_v6 = vpop.f32.mrb[59].mxu0  ;;  %v11668_v4 = vpop.f32.mrb[57].mxu1  ;;  %444 = vst [vmem:[#allocation2 + $0x30] sm:$0xff] %v14114_v34  ;;  %445 = vst [vmem:[#allocation2 + $0x38] sm:$0xff] %v14114_v34  ;;  %12046 = vmatpush3.bf16.msra.mxu0 %v13321_v1 }
 0x1f7   : > { %v2150_v32 = vadd.f32 %v15453_v5, %v11557_v45  ;;  %v11560_v63 = vadd.f32 %v11559_v6, %v11558_v42  ;;  %v11669_v38 = vadd.f32 %v11668_v4, %v11667_v36  ;;  %v11670_v22 = vpop.f32.mrb[58].mxu1  ;;  %438 = vst [vmem:[#allocation2] sm:$0xff] %v14114_v34  ;;  %440 = vst [vmem:[#allocation2 + $0x10] sm:$0x3] %v14114_v34  ;;  %v13318_v42 = vld [vmem:[%s18133_s3 + $0x78] sm:$0xff]  }
 0x1f8   : > { %v11671_v11 = vpop.f32.mrb[59].mxu1  ;;  %441 = vst [vmem:[#allocation2 + $0x18] sm:$0xff] %v14114_v34  ;;  %442 = vst [vmem:[#allocation2 + $0x20] sm:$0xff] %v14114_v34  ;;  %v13319_v36 = vld [vmem:[%s18133_s3 + $0x38] sm:$0xff]   ;;  %11941 = vmatprep.subr.bf16.mxu1 %v13318_v42  ;;  %v13327_v42 = vld [vmem:[%s18133_s3 + $0xb0] sm:$0xff]  }
 0x1f9   : > { %v2153_v49 = vadd.f32 %v15453_v5, %v11560_v63  ;;  %v11672_v47 = vadd.f32 %v11671_v11, %v11670_v22  ;;  %v15484_v58 = vadd.f32 %v11669_v38, %v2150_v32  ;;  %443 = vst [vmem:[#allocation2 + $0x28] sm:$0x3] %v14114_v34  ;;  %446 = vst [vmem:[#allocation2 + $0x40] sm:$0x3] %v14114_v34  ;;  %11942 = vmatpush3.bf16.msra.mxu1 %v13319_v36  ;;  %v13322_v32 = vld [vmem:[%s18133_s3 + $0xe0] sm:$0xff]  }
 0x1fa   : > { %447 = vst [vmem:[#allocation2 + $0x48] sm:$0xff] %v14114_v34  ;;  %448 = vst [vmem:[#allocation2 + $0x50] sm:$0xff] %v14114_v34  ;;  %v13323_v11 = vld [vmem:[%s18133_s3 + $0xa0] sm:$0xff]   ;;  %12047 = vmatprep.subr.bf16.mxu0 %v13322_v32 }
 0x1fb   : > { %v11561_v61 = vpop.f32.mrb[60].mxu0  ;;  %v15489_v35 = vadd.f32 %v11672_v47, %v2153_v49  ;;  %449 = vst [vmem:[#allocation2 + $0x58] sm:$0x3] %v14114_v34  ;;  %450 = vst [vmem:[#allocation2 + $0x60] sm:$0xff] %v14114_v34  ;;  %12048 = vmatpush3.bf16.msra.mxu0 %v13323_v11  ;;  %v13329_v11 = vld [vmem:[%s18133_s3 + $0xf8] sm:$0xff]  }
 0x1fc   : > { %v11562_v7 = vpop.f32.mrb[61].mxu0  ;;  %451 = vst [vmem:[#allocation2 + $0x68] sm:$0xff] %v14114_v34  ;;  %452 = vst [vmem:[#allocation2 + $0x70] sm:$0x3] %v14114_v34 }
 0x1fd   : > { %v11563_v37 = vadd.f32 %v11562_v7, %v11561_v61  ;;  %v11564_v23 = vpop.f32.mrb[62].mxu0  ;;  %v11673_v40 = vpop.f32.mrb[60].mxu1  ;;  %453 = vst [vmem:[#allocation2 + $0x78] sm:$0xff] %v14114_v34  ;;  %454 = vst [vmem:[#allocation2 + $0x80] sm:$0xff] %v14114_v34 }
 0x1fe   : > { %v11565_v50 = vpop.f32.mrb[63].mxu0  ;;  %v11674_v16 = vpop.f32.mrb[61].mxu1  ;;  %455 = vst [vmem:[#allocation2 + $0x88] sm:$0x3] %v14114_v34  ;;  %456 = vst [vmem:[#allocation2 + $0x90] sm:$0xff] %v14114_v34 }
 0x1ff   : > { %v15498_v9 = vadd.f32 %v15453_v5, %v11563_v37  ;;  %v15500_v31 = vadd.f32 %v11565_v50, %v11564_v23  ;;  %v15502_v8 = vadd.f32 %v11674_v16, %v11673_v40  ;;  %v15504_v43 = vpop.f32.mrb[62].mxu1  ;;  %457 = vst [vmem:[#allocation2 + $0x98] sm:$0xff] %v14114_v34  ;;  %458 = vst [vmem:[#allocation2 + $0xa0] sm:$0x3] %v14114_v34  ;;  %v2876_v57 = vld [vmem:[#allocation2 + $0x10] sm:$0x3] }
 0x200   : > { %v15506_v20 = vpop.f32.mrb[63].mxu1  ;;  %459 = vst [vmem:[#allocation2 + $0xa8] sm:$0xff] %v14114_v34  ;;  %460 = vst [vmem:[#allocation2 + $0xb0] sm:$0xff] %v14114_v34  ;;  %v13324_v23 = vld [vmem:[%s18133_s3 + $0xe8] sm:$0xff]   ;;  %v2993_v40 = vrot.slane %v14114_v34, 1  ;;  %v2996_v15 = vrot.slane %v2876_v57, 1 }
 0x201   : > { %461 = vst [vmem:[#allocation2 + $0xb8] sm:$0x3] %v14114_v34  ;;  %462 = vst [vmem:[#allocation2 + $0xc0] sm:$0xff] %v14114_v34  ;;  %v2161_v39 = vadd.f32 %v15453_v5, %v15500_v31  ;;  %v11678_v25 = vadd.f32 %v15506_v20, %v15504_v43  ;;  %v15606_v45 = vadd.f32 %v15502_v8, %v15498_v9  ;;  %12049 = vmatprep.subr.bf16.mxu0 %v13324_v23  ;;  %v13330_v57 = vld [vmem:[%s18133_s3 + $0x100] sm:$0xff]  }
 0x202   : > { %463 = vst [vmem:[#allocation2 + $0xc8] sm:$0xff] %v14114_v34  ;;  %464 = vst [vmem:[#allocation2 + $0xd0] sm:$0x3] %v14114_v34  ;;  %v2997_v31 = vsel %vm2992_vm6, %v2993_v40, %v2996_v15 }
 0x203   : > { %465 = vst [vmem:[#allocation2 + $0xd8] sm:$0xff] %v14114_v34  ;;  %466 = vst [vmem:[#allocation2 + $0xe0] sm:$0xff] %v14114_v34  ;;  %v11695_v5 = vpop.f32.mrb[64].mxu0  ;;  %v15618_v6 = vadd.f32 %v11678_v25, %v2161_v39  ;;  %v3105_v20 = vpack.c.bf16 %v2997_v31, %v2993_v40 }
 0x204   : > { %467 = vst [vmem:[#allocation2 + $0xe8] sm:$0x3] %v14114_v34  ;;  %468 = vst [vmem:[#allocation2 + $0xf0] sm:$0xff] %v14114_v34  ;;  %v11696_v4 = vpop.f32.mrb[65].mxu0 }
 0x205   : > { %469 = vst [vmem:[#allocation2 + $0xf8] sm:$0xff] %v14114_v34  ;;  %470 = vst [vmem:[#allocation2 + $0x100] sm:$0x3] %v14114_v34  ;;  %v11697_v63 = vadd.f32 %v11696_v4, %v11695_v5  ;;  %v11698_v38 = vpop.f32.mrb[66].mxu0  ;;  %v11807_v22 = vpop.f32.mrb[64].mxu1  ;;  %3905 = vmatprep.mubr.bf16.mxu1 %v3105_v20  ;;  %v14115_v5 = vmov 0.0|0.0  }
 0x206   : > { %471 = vst [vmem:[#allocation2 + $0x108] sm:$0xff] %v14114_v34  ;;  %472 = vst [vmem:[#allocation2 + $0x110] sm:$0xff] %v14114_v34  ;;  %v11699_v29 = vpop.f32.mrb[67].mxu0  ;;  %v11808_v49 = vpop.f32.mrb[65].mxu1  ;;  %3906 = vmatmul.mubr.bf16.vlgmr.msra.gmra.mrb[128].mxu1 %v14115_v5 }
 0x207   : > { %473 = vst [vmem:[#allocation2 + $0x118] sm:$0x3] %v14114_v34  ;;  %474 = vst [vmem:[#allocation2 + $0x120] sm:$0xff] %v14114_v34  ;;  %v11700_v47 = vadd.f32 %v11699_v29, %v11698_v38  ;;  %v11810_v33 = vpop.f32.mrb[66].mxu1  ;;  %v2360_v61 = vadd.f32 %v11697_v63, %v15294_v30  ;;  %v11809_v7 = vadd.f32 %v11808_v49, %v11807_v22  ;;  %v13325_v30 = vld [vmem:[%s18133_s3 + $0xa8] sm:$0xff]  }
 0x208   : > { %475 = vst [vmem:[#allocation2 + $0x128] sm:$0xff] %v14114_v34  ;;  %476 = vst [vmem:[#allocation2 + $0x130] sm:$0x3] %v14114_v34  ;;  %v11811_v37 = vpop.f32.mrb[67].mxu1  ;;  %12050 = vmatpush3.bf16.msra.mxu0 %v13325_v30 }
 0x209   : > { %477 = vst [vmem:[#allocation2 + $0x138] sm:$0xff] %v14114_v34  ;;  %478 = vst [vmem:[#allocation2 + $0x140] sm:$0xff] %v14114_v34  ;;  %v15631_v50 = vadd.f32 %v11809_v7, %v2360_v61  ;;  %v2363_v16 = vadd.f32 %v11700_v47, %v15300_v52  ;;  %v11812_v9 = vadd.f32 %v11811_v37, %v11810_v33  ;;  %v13331_v33 = vld [vmem:[%s18133_s3 + $0xb8] sm:$0xff]  }
 0x20a   : > { %479 = vst [vmem:[#allocation2 + $0x148] sm:$0x3] %v14114_v34  ;;  %480 = vst [vmem:[#allocation2 + $0x150] sm:$0xff] %v14114_v34 }
 0x20b   : > { %481 = vst [vmem:[#allocation2 + $0x158] sm:$0xff] %v14114_v34  ;;  %482 = vst [vmem:[#allocation2 + $0x160] sm:$0x3] %v14114_v34  ;;  %v11701_v8 = vpop.f32.mrb[68].mxu0  ;;  %v15638_v43 = vadd.f32 %v11812_v9, %v2363_v16 }
 0x20c   : > { %483 = vst [vmem:[#allocation2 + $0x168] sm:$0xff] %v14114_v34  ;;  %484 = vst [vmem:[#allocation2 + $0x170] sm:$0xff] %v14114_v34  ;;  %v11702_v12 = vpop.f32.mrb[69].mxu0 }
 0x20d   : > { %485 = vst [vmem:[#allocation2 + $0x178] sm:$0x3] %v14114_v34  ;;  %486 = vst [vmem:[#allocation2 + $0x180] sm:$0xff] %v14114_v34  ;;  %v11703_v52 = vadd.f32 %v11702_v12, %v11701_v8  ;;  %v11704_v39 = vpop.f32.mrb[70].mxu0  ;;  %v11813_v25 = vpop.f32.mrb[68].mxu1 }
 0x20e   : > { %487 = vst [vmem:[#allocation2 + $0x188] sm:$0xff] %v14114_v34  ;;  %488 = vst [vmem:[#allocation2 + $0x190] sm:$0x3] %v14114_v34  ;;  %v11705_v36 = vpop.f32.mrb[71].mxu0  ;;  %v11814_v1 = vpop.f32.mrb[69].mxu1 }
 0x20f   : > { %491 = vst [vmem:[#allocation2 + $0x1a8] sm:$0x3] %v14114_v34  ;;  %493 = vst [vmem:[#allocation3 + $0x8] sm:$0x3] %v14114_v34  ;;  %v11706_v4 = vadd.f32 %v11705_v36, %v11704_v39  ;;  %v11816_v32 = vpop.f32.mrb[70].mxu1  ;;  %v2368_v63 = vadd.f32 %v11703_v52, %v15316_v27  ;;  %v11815_v38 = vadd.f32 %v11814_v1, %v11813_v25  ;;  %v13328_v27 = vld [vmem:[%s18133_s3 + $0x140] sm:$0xff]  }
 0x210   : > { %494 = vst [vmem:[#allocation3 + $0x10] sm:$0xff] %v14114_v34  ;;  %495 = vst [vmem:[#allocation3 + $0x18] sm:$0x3] %v14114_v34  ;;  %v11817_v22 = vpop.f32.mrb[71].mxu1  ;;  %12151 = vmatprep.subr.bf16.mxu1 %v13328_v27  ;;  %v13332_v27 = vld [vmem:[%s18133_s3 + $0x148] sm:$0xff]  }
 0x211   : > { %496 = vst [vmem:[#allocation3 + $0x20] sm:$0xff] %v14114_v34  ;;  %497 = vst [vmem:[#allocation3 + $0x28] sm:$0x3] %v14114_v34  ;;  %v15650_v29 = vadd.f32 %v11815_v38, %v2368_v63  ;;  %v2371_v49 = vadd.f32 %v11706_v4, %v15320_v0  ;;  %v11818_v47 = vadd.f32 %v11817_v22, %v11816_v32  ;;  %12152 = vmatpush3.bf16.msra.mxu1 %v13330_v57  ;;  %v13333_v57 = vld [vmem:[%s18133_s3 + $0x108] sm:$0xff]  }
 0x212   : > { %498 = vst [vmem:[#allocation3 + $0x30] sm:$0xff] %v14114_v34  ;;  %499 = vst [vmem:[#allocation3 + $0x38] sm:$0x3] %v14114_v34  ;;  %12153 = vmatprep.subr.bf16.mxu1 %v13332_v27  ;;  %v13334_v27 = vld [vmem:[%s18133_s3 + $0x150] sm:$0xff]  }
 0x213   : > { %500 = vst [vmem:[#allocation3 + $0x40] sm:$0xff] %v14114_v34  ;;  %501 = vst [vmem:[#allocation3 + $0x48] sm:$0x3] %v14114_v34  ;;  %v11707_v61 = vpop.f32.mrb[72].mxu0  ;;  %v15656_v7 = vadd.f32 %v11818_v47, %v2371_v49 }
 0x214   : > { %502 = vst [vmem:[#allocation3 + $0x50] sm:$0xff] %v14114_v34  ;;  %503 = vst [vmem:[#allocation3 + $0x58] sm:$0x3] %v14114_v34  ;;  %v11708_v37 = vpop.f32.mrb[73].mxu0 }
 0x215   : > { %504 = vst [vmem:[#allocation3 + $0x60] sm:$0xff] %v14114_v34  ;;  %505 = vst [vmem:[#allocation3 + $0x68] sm:$0x3] %v14114_v34  ;;  %v11709_v0 = vadd.f32 %v11708_v37, %v11707_v61  ;;  %v11710_v23 = vpop.f32.mrb[74].mxu0  ;;  %v11819_v40 = vpop.f32.mrb[72].mxu1  ;;  %12154 = vmatpush3.bf16.msra.mxu1 %v13333_v57  ;;  %v13335_v57 = vld [vmem:[%s18133_s3 + $0x110] sm:$0xff]  }
 0x216   : > { %506 = vst [vmem:[#allocation3 + $0x70] sm:$0xff] %v14114_v34  ;;  %507 = vst [vmem:[#allocation3 + $0x78] sm:$0x3] %v14114_v34  ;;  %v11711_v15 = vpop.f32.mrb[75].mxu0  ;;  %v11820_v16 = vpop.f32.mrb[73].mxu1  ;;  %12155 = vmatprep.subr.bf16.mxu1 %v13334_v27  ;;  %v13336_v27 = vld [vmem:[%s18133_s3 + $0x158] sm:$0xff]  }
 0x217   : > { %508 = vst [vmem:[#allocation3 + $0x80] sm:$0xff] %v14114_v34  ;;  %509 = vst [vmem:[#allocation3 + $0x88] sm:$0x3] %v14114_v34  ;;  %v11712_v9 = vadd.f32 %v11711_v15, %v11710_v23  ;;  %v11822_v30 = vpop.f32.mrb[74].mxu1  ;;  %v2376_v31 = vadd.f32 %v11709_v0, %v15327_v51  ;;  %v11821_v8 = vadd.f32 %v11820_v16, %v11819_v40 }
 0x218   : > { %511 = vst [vmem:[#allocation3 + $0x98] sm:$0x3] %v14114_v34  ;;  %513 = vst [vmem:[#allocation4 + $0x8] sm:$0x3] %v14114_v34  ;;  %v11823_v20 = vpop.f32.mrb[75].mxu1 }
 0x219   : > { %514 = vst [vmem:[#allocation4 + $0x10] sm:$0xff] %v14114_v34  ;;  %515 = vst [vmem:[#allocation4 + $0x18] sm:$0x3] %v14114_v34  ;;  %v15665_v12 = vadd.f32 %v11821_v8, %v2376_v31  ;;  %v11824_v52 = vadd.f32 %v11823_v20, %v11822_v30  ;;  %12156 = vmatpush3.bf16.msra.mxu1 %v13335_v57  ;;  %v13337_v57 = vld [vmem:[%s18133_s3 + $0x118] sm:$0xff]  }
 0x21a   : > { %516 = vst [vmem:[#allocation4 + $0x20] sm:$0xff] %v14114_v34  ;;  %517 = vst [vmem:[#allocation4 + $0x28] sm:$0x3] %v14114_v34  ;;  %12157 = vmatprep.subr.bf16.mxu1 %v13336_v27  ;;  %v13340_v27 = vld [vmem:[%s18133_s3 + $0x1c0] sm:$0xff]  }
 0x21b   : > { %518 = vst [vmem:[#allocation4 + $0x30] sm:$0xff] %v14114_v34  ;;  %519 = vst [vmem:[#allocation4 + $0x38] sm:$0x3] %v14114_v34  ;;  %v11713_v39 = vpop.f32.mrb[76].mxu0 }
 0x21c   : > { %520 = vst [vmem:[#allocation4 + $0x40] sm:$0xff] %v14114_v34  ;;  %521 = vst [vmem:[#allocation4 + $0x48] sm:$0x3] %v14114_v34 }
 0x21d   : > { %522 = vst [vmem:[#allocation4 + $0x50] sm:$0xff] %v14114_v34  ;;  %523 = vst [vmem:[#allocation4 + $0x58] sm:$0x3] %v14114_v34  ;;  %v11825_v5 = vpop.f32.mrb[76].mxu1  ;;  %12158 = vmatpush3.bf16.msra.mxu1 %v13337_v57 }
 0x21e   : > { %524 = vst [vmem:[#allocation4 + $0x60] sm:$0xff] %v14114_v34  ;;  %525 = vst [vmem:[#allocation4 + $0x68] sm:$0x3] %v14114_v34  ;;  %v11826_v32 = vpop.f32.mrb[77].mxu1 }
 0x21f   : > { %526 = vst [vmem:[#allocation4 + $0x70] sm:$0xff] %v14114_v34  ;;  %527 = vst [vmem:[#allocation4 + $0x78] sm:$0x3] %v14114_v34  ;;  %v11828_v38 = vpop.f32.mrb[78].mxu1  ;;  %v11827_v22 = vadd.f32 %v11826_v32, %v11825_v5 }
 0x220   : > { %528 = vst [vmem:[#allocation4 + $0x80] sm:$0xff] %v14114_v34  ;;  %529 = vst [vmem:[#allocation4 + $0x88] sm:$0x3] %v14114_v34 }
 0x221   : > { %531 = vst [vmem:[#allocation4 + $0x98] sm:$0x3] %v14114_v34  ;;  %v13326_v34 = vld [vmem:[%s18133_s3 + $0xf0] sm:$0xff]  }
 0x222   : > { %12051 = vmatprep.subr.bf16.mxu0 %v13326_v34  ;;  %v2379_v34 = vadd.f32 %v11712_v9, %v15331_v24 }
 0x223   : > { %12052 = vmatpush3.bf16.msra.mxu0 %v13327_v42  ;;  %v11714_v42 = vpop.f32.mrb[77].mxu0 }
 0x224   : > { %12053 = vmatprep.subr.bf16.mxu0 %v13329_v11  ;;  %v15668_v25 = vadd.f32 %v11824_v52, %v2379_v34  ;;  %v11715_v36 = vadd.f32 %v11714_v42, %v11713_v39  ;;  %v11716_v1 = vpop.f32.mrb[78].mxu0  ;;  %v11829_v11 = vpop.f32.mrb[79].mxu1 }
 0x225   : > { %v11717_v4 = vpop.f32.mrb[79].mxu0  ;;  %v11830_v47 = vadd.f32 %v11829_v11, %v11828_v38  ;;  %v11831_v23 = vpop.f32.mrb[80].mxu1 }
 0x226   : > { %v11718_v63 = vadd.f32 %v11717_v4, %v11716_v1  ;;  %v2384_v51 = vadd.f32 %v11715_v36, %v15347_v3  ;;  %v11832_v15 = vpop.f32.mrb[81].mxu1 }
 0x227   : > { %12054 = vmatpush3.bf16.msra.mxu0 %v13331_v33  ;;  %v11719_v33 = vpop.f32.mrb[80].mxu0  ;;  %v11833_v16 = vadd.f32 %v11832_v15, %v11831_v23  ;;  %v11834_v9 = vpop.f32.mrb[82].mxu1 }
 0x228   : > { %v15671_v49 = vadd.f32 %v11827_v22, %v2384_v51  ;;  %v2387_v24 = vadd.f32 %v11718_v63, %v15351_v55  ;;  %v11720_v37 = vpop.f32.mrb[81].mxu0  ;;  %v11835_v31 = vpop.f32.mrb[83].mxu1  ;;  %12263 = vmatprep.subr.bf16.mxu0 %v13340_v27 }
 0x229   : > { %v11721_v3 = vadd.f32 %v11720_v37, %v11719_v33  ;;  %v11722_v0 = vpop.f32.mrb[82].mxu0  ;;  %v11836_v8 = vadd.f32 %v11835_v31, %v11834_v9 }
 0x22a   : > { %v15674_v61 = vadd.f32 %v11830_v47, %v2387_v24  ;;  %v11723_v40 = vpop.f32.mrb[83].mxu0 }
 0x22b   : > { %v11724_v55 = vadd.f32 %v11723_v40, %v11722_v0  ;;  %v2392_v30 = vadd.f32 %v11721_v3, %v15358_v46  ;;  %v11725_v52 = vpop.f32.mrb[84].mxu0 }
 0x22c   : > { %v11726_v42 = vpop.f32.mrb[85].mxu0 }
 0x22d   : > { %v15683_v20 = vadd.f32 %v11833_v16, %v2392_v30  ;;  %v2395_v34 = vadd.f32 %v11724_v55, %v15361_v53  ;;  %v11727_v36 = vadd.f32 %v11726_v42, %v11725_v52  ;;  %v11728_v1 = vpop.f32.mrb[86].mxu0  ;;  %v11837_v5 = vpop.f32.mrb[84].mxu1 }
 0x22e   : > { %v11729_v4 = vpop.f32.mrb[87].mxu0  ;;  %v11838_v32 = vpop.f32.mrb[85].mxu1 }
 0x22f   : > { %v15686_v39 = vadd.f32 %v11836_v8, %v2395_v34  ;;  %v11730_v63 = vadd.f32 %v11729_v4, %v11728_v1  ;;  %v11839_v38 = vadd.f32 %v11838_v32, %v11837_v5  ;;  %v11840_v51 = vpop.f32.mrb[86].mxu1  ;;  %v2400_v46 = vadd.f32 %v11727_v36, %v15366_v18 }
 0x230   : > { %v11841_v22 = vpop.f32.mrb[87].mxu1 }
 0x231   : > { %v11842_v11 = vadd.f32 %v11841_v22, %v11840_v51  ;;  %v15689_v24 = vadd.f32 %v11839_v38, %v2400_v46  ;;  %v2403_v53 = vadd.f32 %v11730_v63, %v15375_v54 }
 0x233   : > { %v11731_v47 = vpop.f32.mrb[88].mxu0  ;;  %v15692_v33 = vadd.f32 %v11842_v11, %v2403_v53 }
 0x234   : > { %v11732_v37 = vpop.f32.mrb[89].mxu0 }
 0x235   : > { %v11733_v3 = vadd.f32 %v11732_v37, %v11731_v47  ;;  %v11734_v18 = vpop.f32.mrb[90].mxu0  ;;  %v11843_v0 = vpop.f32.mrb[88].mxu1 }
 0x236   : > { %v11735_v23 = vpop.f32.mrb[91].mxu0  ;;  %v11844_v40 = vpop.f32.mrb[89].mxu1 }
 0x237   : > { %v11736_v54 = vadd.f32 %v11735_v23, %v11734_v18  ;;  %v11845_v15 = vadd.f32 %v11844_v40, %v11843_v0  ;;  %v11846_v55 = vpop.f32.mrb[90].mxu1  ;;  %v2408_v16 = vadd.f32 %v11733_v3, %v15380_v59 }
 0x238   : > { %v11847_v9 = vpop.f32.mrb[91].mxu1 }
 0x239   : > { %v11848_v30 = vadd.f32 %v11847_v9, %v11846_v55  ;;  %v15701_v31 = vadd.f32 %v11845_v15, %v2408_v16  ;;  %v2411_v8 = vadd.f32 %v11736_v54, %v15383_v28 }
 0x23b   : > { %v11737_v34 = vpop.f32.mrb[92].mxu0  ;;  %v15704_v52 = vadd.f32 %v11848_v30, %v2411_v8 }
 0x23c   : > { %v11738_v42 = vpop.f32.mrb[93].mxu0 }
 0x23d   : > { %v11739_v36 = vadd.f32 %v11738_v42, %v11737_v34  ;;  %v11740_v1 = vpop.f32.mrb[94].mxu0  ;;  %v11849_v5 = vpop.f32.mrb[92].mxu1 }
 0x23e   : > { %v11741_v4 = vpop.f32.mrb[95].mxu0  ;;  %v11850_v32 = vpop.f32.mrb[93].mxu1 }
 0x23f   : > { %v11742_v63 = vadd.f32 %v11741_v4, %v11740_v1  ;;  %v11851_v38 = vadd.f32 %v11850_v32, %v11849_v5  ;;  %v11852_v51 = vpop.f32.mrb[94].mxu1  ;;  %v2416_v59 = vadd.f32 %v11739_v36, %v15388_v26 }
 0x240   : > { %v11853_v46 = vpop.f32.mrb[95].mxu1 }
 0x241   : > { %v11854_v22 = vadd.f32 %v11853_v46, %v11852_v51  ;;  %v15707_v11 = vadd.f32 %v11851_v38, %v2416_v59  ;;  %v2419_v28 = vadd.f32 %v11742_v63, %v15397_v19 }
 0x243   : > { %v11743_v53 = vpop.f32.mrb[96].mxu0  ;;  %v15710_v47 = vadd.f32 %v11854_v22, %v2419_v28  ;;  %v13338_v28 = vld [vmem:[%s18133_s3 + $0x160] sm:$0xff]  }
 0x244   : > { %v11744_v37 = vpop.f32.mrb[97].mxu0  ;;  %12159 = vmatprep.subr.bf16.mxu1 %v13338_v28  ;;  %v13342_v28 = vld [vmem:[%s18133_s3 + $0x168] sm:$0xff]  }
 0x245   : > { %v11745_v3 = vadd.f32 %v11744_v37, %v11743_v53  ;;  %v11746_v26 = vpop.f32.mrb[98].mxu0  ;;  %v11855_v18 = vpop.f32.mrb[96].mxu1  ;;  %v13339_v53 = vld [vmem:[%s18133_s3 + $0x120] sm:$0xff]  }
 0x246   : > { %v11747_v0 = vpop.f32.mrb[99].mxu0  ;;  %v11856_v23 = vpop.f32.mrb[97].mxu1  ;;  %12160 = vmatpush3.bf16.msra.mxu1 %v13339_v53  ;;  %v13343_v53 = vld [vmem:[%s18133_s3 + $0x128] sm:$0xff]  }
 0x247   : > { %v11748_v19 = vadd.f32 %v11747_v0, %v11746_v26  ;;  %v11857_v40 = vadd.f32 %v11856_v23, %v11855_v18  ;;  %v11858_v54 = vpop.f32.mrb[98].mxu1  ;;  %v2424_v15 = vadd.f32 %v11745_v3, %v15402_v21  ;;  %12161 = vmatprep.subr.bf16.mxu1 %v13342_v28  ;;  %v13347_v28 = vld [vmem:[%s18133_s3 + $0x130] sm:$0xff]  }
 0x248   : > { %v11859_v55 = vpop.f32.mrb[99].mxu1 }
 0x249   : > { %v11860_v16 = vadd.f32 %v11859_v55, %v11858_v54  ;;  %v15719_v9 = vadd.f32 %v11857_v40, %v2424_v15  ;;  %v2427_v30 = vadd.f32 %v11748_v19, %v15405_v13 }
 0x24a   : > { %12162 = vmatpush3.bf16.msra.mxu1 %v13343_v53 }
 0x24b   : > { %v11749_v8 = vpop.f32.mrb[100].mxu0  ;;  %v15722_v34 = vadd.f32 %v11860_v16, %v2427_v30 }
 0x24c   : > { %v11750_v42 = vpop.f32.mrb[101].mxu0 }
 0x24d   : > { %v11751_v36 = vadd.f32 %v11750_v42, %v11749_v8  ;;  %v11752_v1 = vpop.f32.mrb[102].mxu0  ;;  %v11861_v5 = vpop.f32.mrb[100].mxu1 }
 0x24e   : > { %v11753_v4 = vpop.f32.mrb[103].mxu0  ;;  %v11862_v32 = vpop.f32.mrb[101].mxu1 }
 0x24f   : > { %v11754_v63 = vadd.f32 %v11753_v4, %v11752_v1  ;;  %v11863_v38 = vadd.f32 %v11862_v32, %v11861_v5  ;;  %v11864_v51 = vpop.f32.mrb[102].mxu1  ;;  %v2432_v21 = vadd.f32 %v11751_v36, %v15410_v48 }
 0x250   : > { %v11865_v59 = vpop.f32.mrb[103].mxu1 }
 0x251   : > { %v11866_v46 = vadd.f32 %v11865_v59, %v11864_v51  ;;  %v15725_v22 = vadd.f32 %v11863_v38, %v2432_v21  ;;  %v2435_v13 = vadd.f32 %v11754_v63, %v15419_v41 }
 0x253   : > { %v11755_v57 = vpop.f32.mrb[104].mxu0  ;;  %v15737_v48 = vadd.f32 %v11866_v46, %v2435_v13 }
 0x254   : > { %v11756_v37 = vpop.f32.mrb[105].mxu0 }
 0x255   : > { %v11757_v41 = vadd.f32 %v11756_v37, %v11755_v57  ;;  %v11758_v3 = vpop.f32.mrb[106].mxu0  ;;  %v11867_v26 = vpop.f32.mrb[104].mxu1 }
 0x256   : > { %v11759_v18 = vpop.f32.mrb[107].mxu0  ;;  %v11868_v0 = vpop.f32.mrb[105].mxu1 }
 0x257   : > { %v11760_v23 = vadd.f32 %v11759_v18, %v11758_v3  ;;  %v11869_v19 = vadd.f32 %v11868_v0, %v11867_v26  ;;  %v11870_v40 = vpop.f32.mrb[106].mxu1  ;;  %v2440_v54 = vadd.f32 %v11757_v41, %v15426_v44 }
 0x258   : > { %v11871_v15 = vpop.f32.mrb[107].mxu1 }
 0x259   : > { %v11872_v55 = vadd.f32 %v11871_v15, %v11870_v40  ;;  %v15740_v16 = vadd.f32 %v11869_v19, %v2440_v54  ;;  %v2443_v30 = vadd.f32 %v11760_v23, %v15429_v2 }
 0x25b   : > { %v11761_v8 = vpop.f32.mrb[108].mxu0  ;;  %v15743_v42 = vadd.f32 %v11872_v55, %v2443_v30 }
 0x25c   : > { %v11762_v36 = vpop.f32.mrb[109].mxu0 }
 0x25d   : > { %v11763_v1 = vadd.f32 %v11762_v36, %v11761_v8  ;;  %v11764_v5 = vpop.f32.mrb[110].mxu0  ;;  %v11873_v4 = vpop.f32.mrb[108].mxu1 }
 0x25e   : > { %v11765_v32 = vpop.f32.mrb[111].mxu0  ;;  %v11874_v63 = vpop.f32.mrb[109].mxu1 }
 0x25f   : > { %v11766_v38 = vadd.f32 %v11765_v32, %v11764_v5  ;;  %v11875_v51 = vadd.f32 %v11874_v63, %v11873_v4  ;;  %v11876_v21 = vpop.f32.mrb[110].mxu1  ;;  %v2448_v44 = vadd.f32 %v11763_v1, %v15437_v17 }
 0x260   : > { %v11877_v59 = vpop.f32.mrb[111].mxu1 }
 0x261   : > { %v11878_v46 = vadd.f32 %v11877_v59, %v11876_v21  ;;  %v15746_v13 = vadd.f32 %v11875_v51, %v2448_v44  ;;  %v2451_v2 = vadd.f32 %v11766_v38, %v15448_v56 }
 0x263   : > { %v11767_v27 = vpop.f32.mrb[112].mxu0  ;;  %v15755_v57 = vadd.f32 %v11878_v46, %v2451_v2  ;;  %v13346_v2 = vld [vmem:[%s18133_s3 + $0x170] sm:$0xff]  }
 0x264   : > { %v11768_v37 = vpop.f32.mrb[113].mxu0  ;;  %12163 = vmatprep.subr.bf16.mxu1 %v13346_v2  ;;  %v13351_v2 = vld [vmem:[%s18133_s3 + $0x138] sm:$0xff]  }
 0x265   : > { %v11769_v17 = vadd.f32 %v11768_v37, %v11767_v27  ;;  %v11770_v41 = vpop.f32.mrb[114].mxu0  ;;  %v11879_v3 = vpop.f32.mrb[112].mxu1  ;;  %12164 = vmatpush3.bf16.msra.mxu1 %v13347_v28 }
 0x266   : > { %v11771_v26 = vpop.f32.mrb[115].mxu0  ;;  %v11880_v18 = vpop.f32.mrb[113].mxu1 }
 0x267   : > { %v11772_v56 = vadd.f32 %v11771_v26, %v11770_v41  ;;  %v11881_v0 = vadd.f32 %v11880_v18, %v11879_v3  ;;  %v11882_v23 = vpop.f32.mrb[114].mxu1  ;;  %v2456_v19 = vadd.f32 %v11769_v17, %v15457_v14 }
 0x268   : > { %v11883_v40 = vpop.f32.mrb[115].mxu1 }
 0x269   : > { %v11884_v54 = vadd.f32 %v11883_v40, %v11882_v23  ;;  %v15758_v15 = vadd.f32 %v11881_v0, %v2456_v19  ;;  %v2459_v55 = vadd.f32 %v11772_v56, %v15459_v10 }
 0x26b   : > { %v11773_v30 = vpop.f32.mrb[116].mxu0  ;;  %v15761_v8 = vadd.f32 %v11884_v54, %v2459_v55 }
 0x26c   : > { %v11774_v36 = vpop.f32.mrb[117].mxu0 }
 0x26d   : > { %v11775_v1 = vadd.f32 %v11774_v36, %v11773_v30  ;;  %v11776_v5 = vpop.f32.mrb[118].mxu0  ;;  %v11885_v4 = vpop.f32.mrb[116].mxu1 }
 0x26e   : > { %v11777_v32 = vpop.f32.mrb[119].mxu0  ;;  %v11886_v63 = vpop.f32.mrb[117].mxu1 }
 0x26f   : > { %v11778_v38 = vadd.f32 %v11777_v32, %v11776_v5  ;;  %v11887_v51 = vadd.f32 %v11886_v63, %v11885_v4  ;;  %v11888_v21 = vpop.f32.mrb[118].mxu1  ;;  %v2464_v14 = vadd.f32 %v11775_v1, %v15463_v62 }
 0x270   : > { %v11889_v44 = vpop.f32.mrb[119].mxu1 }
 0x271   : > { %v11890_v59 = vadd.f32 %v11889_v44, %v11888_v21  ;;  %v15764_v46 = vadd.f32 %v11887_v51, %v2464_v14  ;;  %v2467_v10 = vadd.f32 %v11778_v38, %v15471_v60 }
 0x273   : > { %v11779_v53 = vpop.f32.mrb[120].mxu0  ;;  %v15773_v27 = vadd.f32 %v11890_v59, %v2467_v10  ;;  %v13350_v10 = vld [vmem:[%s18133_s3 + $0x178] sm:$0xff]  }
 0x274   : > { %v11780_v37 = vpop.f32.mrb[121].mxu0  ;;  %12165 = vmatprep.subr.bf16.mxu1 %v13350_v10 }
 0x275   : > { %v11781_v62 = vadd.f32 %v11780_v37, %v11779_v53  ;;  %v11782_v17 = vpop.f32.mrb[122].mxu0  ;;  %v11891_v41 = vpop.f32.mrb[120].mxu1  ;;  %12166 = vmatpush3.bf16.msra.mxu1 %v13351_v2 }
 0x276   : > { %v11783_v3 = vpop.f32.mrb[123].mxu0  ;;  %v11892_v26 = vpop.f32.mrb[121].mxu1 }
 0x277   : > { %v2472_v60 = vadd.f32 %v11781_v62, %v15484_v58  ;;  %v11784_v18 = vadd.f32 %v11783_v3, %v11782_v17  ;;  %v11893_v56 = vadd.f32 %v11892_v26, %v11891_v41  ;;  %v11894_v0 = vpop.f32.mrb[122].mxu1 }
 0x278   : > { %v11895_v23 = vpop.f32.mrb[123].mxu1 }
 0x279   : > { %v2475_v19 = vadd.f32 %v11784_v18, %v15489_v35  ;;  %v11896_v40 = vadd.f32 %v11895_v23, %v11894_v0  ;;  %v15777_v54 = vadd.f32 %v11893_v56, %v2472_v60  ;;  %v13916_v23 = vld [vmem:[#allocation2 + $0x10] sm:$0x3] }
 0x27b   : > { %v11785_v55 = vpop.f32.mrb[124].mxu0  ;;  %v15779_v30 = vadd.f32 %v11896_v40, %v2475_v19  ;;  %v3125_v19 = vrot.slane %v13916_v23, 2 }
 0x27c   : > { %v11786_v36 = vpop.f32.mrb[125].mxu0 }
 0x27d   : > { %v11787_v1 = vadd.f32 %v11786_v36, %v11785_v55  ;;  %v11788_v5 = vpop.f32.mrb[126].mxu0  ;;  %v11897_v4 = vpop.f32.mrb[124].mxu1 }
 0x27e   : > { %v11789_v32 = vpop.f32.mrb[127].mxu0  ;;  %v11898_v63 = vpop.f32.mrb[125].mxu1 }
 0x27f   : > { %v2480_v58 = vadd.f32 %v11787_v1, %v15606_v45  ;;  %v11790_v38 = vadd.f32 %v11789_v32, %v11788_v5  ;;  %v11899_v51 = vadd.f32 %v11898_v63, %v11897_v4  ;;  %v11900_v21 = vpop.f32.mrb[126].mxu1 }
 0x280   : > { %v11901_v14 = vpop.f32.mrb[127].mxu1 }
 0x281   : > { %v2483_v35 = vadd.f32 %v11790_v38, %v15618_v6  ;;  %v11902_v44 = vadd.f32 %v11901_v14, %v11900_v21  ;;  %v15783_v59 = vadd.f32 %v11899_v51, %v2480_v58 }
 0x283   : > { %v12941_v28 = vpop.f32.mrb[128].mxu0  ;;  %v15791_v53 = vadd.f32 %v11902_v44, %v2483_v35 }
 0x284   : > { %v2690_v45 = vadd.f32 %v12941_v28, %v15650_v29  ;;  %v2681_v37 = vpop.f32.mrb[129].mxu0  ;;  %v13915_v29 = vld [vmem:[#allocation2] sm:$0xff] }
 0x285   : > { %v2682_v6 = vadd.f32 %v2681_v37, %v15631_v50  ;;  %v12942_v62 = vpop.f32.mrb[130].mxu0  ;;  %v3122_v0 = vrot.slane %v13915_v29, 2  ;;  %v13344_v29 = vld [vmem:[%s18133_s3 + $0x1c8] sm:$0xff]  }
 0x286   : > { %v2810_v17 = vmax.f32 %v2690_v45, 0.0  ;;  %v2693_v41 = vadd.f32 %v12942_v62, %v15656_v7  ;;  %v2684_v3 = vpop.f32.mrb[131].mxu0 }
 0x287   : > { %v2808_v26 = vmax.f32 %v2682_v6, 0.0  ;;  %v2685_v60 = vadd.f32 %v2684_v3, %v15638_v43  ;;  %v3126_v63 = vsel %vm3121_vm8, %v3122_v0, %v3125_v19 }
 0x288   : > { %2844 = vst.msk [vmem:[#allocation2 + $0x31] sm:$0xff] %vm2841_vm7, %v2810_v17  ;;  %v2811_v18 = vmax.f32 %v2693_v41, 0.0  ;;  %v3234_v35 = vpack.c.bf16 %v3126_v63, %v3122_v0  ;;  %v13341_v17 = vld [vmem:[%s18133_s3 + $0x180] sm:$0xff]  }
 0x289   : > { %2842 = vst.msk [vmem:[#allocation2 + $0x19] sm:$0xff] %vm2841_vm7, %v2808_v26  ;;  %v2809_v56 = vmax.f32 %v2685_v60, 0.0  ;;  %v15829_v41 = vld [vmem:[%s18133_s3 + $0x200] sm:$0xff]  }
 0x28a   : > { %2845 = vst.msk [vmem:[#allocation2 + $0x39] sm:$0xff] %vm2841_vm7, %v2811_v18  ;;  %12971 = vmatprep.subr.bf16.mxu1 %v15829_v41 }
 0x28b   : > { %2843 = vst.msk [vmem:[#allocation2 + $0x21] sm:$0xff] %vm2841_vm7, %v2809_v56  ;;  %v12945_v50 = vpop.f32.mrb[132].mxu0 }
 0x28c   : > { %v2706_v7 = vadd.f32 %v12945_v50, %v15671_v49  ;;  %v2697_v40 = vpop.f32.mrb[133].mxu0 }
 0x28d   : > { %v2698_v43 = vadd.f32 %v2697_v40, %v15665_v12  ;;  %v12946_v55 = vpop.f32.mrb[134].mxu0 }
 0x28e   : > { %v2814_v36 = vmax.f32 %v2706_v7, 0.0  ;;  %v2709_v1 = vadd.f32 %v12946_v55, %v15674_v61  ;;  %v2700_v5 = vpop.f32.mrb[135].mxu0 }
 0x28f   : > { %v2812_v4 = vmax.f32 %v2698_v43, 0.0  ;;  %v2701_v32 = vadd.f32 %v2700_v5, %v15668_v25  ;;  %v15806_v58 = vld [vmem:[#allocation2 + $0x30] sm:$0xff]  ;;  %v13345_v5 = vld [vmem:[%s18133_s3 + $0x188] sm:$0xff]  }
 0x290   : > { %2848 = vst.msk [vmem:[#allocation2 + $0x61] sm:$0xff] %vm2841_vm7, %v2814_v36  ;;  %v2815_v38 = vmax.f32 %v2709_v1, 0.0  ;;  %v2877_v49 = vld [vmem:[#allocation2 + $0x18] sm:$0xff]  ;;  %v3003_v21 = vrot.slane %v15806_v58, 1 }
 0x291   : > { %2846 = vst.msk [vmem:[#allocation2 + $0x49] sm:$0xff] %vm2841_vm7, %v2812_v4  ;;  %v2813_v51 = vmax.f32 %v2701_v32, 0.0  ;;  %v15810_v12 = vld [vmem:[#allocation2 + $0x38] sm:$0xff]  ;;  %v15813_v61 = vld [vmem:[#allocation2 + $0x40] sm:$0x3]  ;;  %v2998_v14 = vrot.slane %v2877_v49, 1 }
 0x292   : > { %2849 = vst.msk [vmem:[#allocation2 + $0x69] sm:$0xff] %vm2841_vm7, %v2815_v38  ;;  %v2878_v25 = vld [vmem:[#allocation2 + $0x20] sm:$0xff]  ;;  %v3004_v44 = vrot.slane %v15810_v12, 1  ;;  %v2879_v10 = vld [vmem:[#allocation2 + $0x28] sm:$0x3]  ;;  %v3006_v2 = vrot.slane %v15813_v61, 1  ;;  %v15821_v6 = vpack.c.bf16 %v15810_v12, %v15806_v58 }
 0x293   : > { %2847 = vst.msk [vmem:[#allocation2 + $0x51] sm:$0xff] %vm2841_vm7, %v2813_v51  ;;  %v12949_v28 = vpop.f32.mrb[136].mxu0  ;;  %v2929_v45 = vpack.c.bf16 %v2878_v25, %v2877_v49  ;;  %v2999_v37 = vrot.slane %v2878_v25, 1  ;;  %v3001_v62 = vrot.slane %v2879_v10, 1  ;;  %v3128_v60 = vrot.slane %v2878_v25, 2 }
 0x294   : > { %v2722_v3 = vadd.f32 %v12949_v28, %v15689_v24  ;;  %v2713_v26 = vpop.f32.mrb[137].mxu0  ;;  %v3005_v18 = vsel %vm2992_vm6, %v3003_v21, %v3004_v44  ;;  %v3007_v56 = vsel %vm2992_vm6, %v3004_v44, %v3006_v2  ;;  %v3130_v7 = vrot.slane %v2879_v10, 2  ;;  %v13349_v10 = vld [vmem:[%s18133_s3 + $0x190] sm:$0xff]  }
 0x295   : > { %v2714_v0 = vadd.f32 %v2713_v26, %v15683_v20  ;;  %v12950_v50 = vpop.f32.mrb[138].mxu0  ;;  %4066 = vmatprep.mubr.bf16.mxu0 %v2929_v45  ;;  %v3000_v23 = vsel %vm2992_vm6, %v2998_v14, %v2999_v37  ;;  %v3002_v19 = vsel %vm2992_vm6, %v2999_v37, %v3001_v62  ;;  %v3127_v1 = vrot.slane %v2877_v49, 2 }
 0x296   : > { %v2818_v24 = vmax.f32 %v2722_v3, 0.0  ;;  %v2725_v40 = vadd.f32 %v12950_v50, %v15692_v33  ;;  %v2716_v43 = vpop.f32.mrb[139].mxu0  ;;  %4067 = vmatmul.mubr.bf16.vlgmr.msra.gmra.mrb[160].mxu0 %v3234_v35  ;;  %v15841_v55 = vpack.c.bf16 %v3002_v19, %v3000_v23  ;;  %v15851_v4 = vpack.c.bf16 %v3007_v56, %v3005_v18 }
 0x297   : > { %v2816_v36 = vmax.f32 %v2714_v0, 0.0  ;;  %v2717_v20 = vadd.f32 %v2716_v43, %v15686_v39  ;;  %4074 = vmatprep.mubr.bf16.mxu0 %v15821_v6  ;;  %12264 = vmatpush3.bf16.msra.mxu0 %v13341_v17  ;;  %v13348_v39 = vld [vmem:[%s18133_s3 + $0x1d0] sm:$0xff]   ;;  %v3129_v38 = vsel %vm3121_vm8, %v3127_v1, %v3128_v60  ;;  %v3131_v49 = vsel %vm3121_vm8, %v3128_v60, %v3130_v7  ;;  %v13352_v17 = vld [vmem:[%s18133_s3 + $0x1d8] sm:$0xff]  }
 0x298   : > { %2852 = vst.msk [vmem:[#allocation2 + $0x91] sm:$0xff] %vm2841_vm7, %v2818_v24  ;;  %v2819_v33 = vmax.f32 %v2725_v40, 0.0  ;;  %3913 = vmatprep.mubr.bf16.mxu1 %v15841_v55  ;;  %v15853_v32 = vld [vmem:[#allocation2 + $0x48] sm:$0xff]  ;;  %12265 = vmatprep.subr.bf16.mxu0 %v13344_v29  ;;  %v3133_v2 = vrot.slane %v15810_v12, 2  ;;  %v15876_v37 = vpack.c.bf16 %v3131_v49, %v3129_v38  ;;  %v3135_v62 = vrot.slane %v15813_v61, 2  ;;  %v15905_v24 = vld [vmem:[#allocation2 + $0x60] sm:$0xff] }
 0x299   : > { %2850 = vst.msk [vmem:[#allocation2 + $0x79] sm:$0xff] %vm2841_vm7, %v2816_v36  ;;  %v2817_v63 = vmax.f32 %v2717_v20, 0.0  ;;  %3914 = vmatmul.mubr.bf16.gmra.mrb[132].mxu1 %v2929_v45  ;;  %v3008_v14 = vrot.slane %v15853_v32, 1  ;;  %v3132_v18 = vrot.slane %v15806_v58, 2  ;;  %v15892_v0 = vld [vmem:[#allocation2 + $0x68] sm:$0xff]  ;;  %v13353_v58 = vld [vmem:[%s18133_s3 + $0x198] sm:$0xff]  }
 0x29a   : > { %2853 = vst.msk [vmem:[#allocation2 + $0x99] sm:$0xff] %vm2841_vm7, %v2819_v33  ;;  %3921 = vmatprep.mubr.bf16.mxu1 %v15851_v4  ;;  %v15863_v51 = vld [vmem:[#allocation2 + $0x50] sm:$0xff]  ;;  %v15865_v21 = vld [vmem:[#allocation2 + $0x58] sm:$0x3]  ;;  %v3136_v43 = vsel %vm3121_vm8, %v3133_v2, %v3135_v62  ;;  %v3014_v36 = vrot.slane %v15892_v0, 1  ;;  %v13355_v33 = vld [vmem:[%s18133_s3 + $0x1a0] sm:$0xff]  }
 0x29b   : > { %2851 = vst.msk [vmem:[#allocation2 + $0x81] sm:$0xff] %vm2841_vm7, %v2817_v63  ;;  %v12953_v25 = vpop.f32.mrb[140].mxu0  ;;  %v3009_v35 = vrot.slane %v15863_v51, 1  ;;  %v3011_v44 = vrot.slane %v15865_v21, 1  ;;  %12266 = vmatpush3.bf16.msra.mxu0 %v13345_v5  ;;  %v15885_v60 = vpack.c.bf16 %v15863_v51, %v15853_v32  ;;  %v3134_v7 = vsel %vm3121_vm8, %v3132_v18, %v3133_v2 }
 0x29c   : > { %v2738_v28 = vadd.f32 %v12953_v25, %v15707_v11  ;;  %v2729_v45 = vpop.f32.mrb[141].mxu0  ;;  %12267 = vmatprep.subr.bf16.mxu0 %v13348_v39  ;;  %v3013_v5 = vrot.slane %v15905_v24, 1  ;;  %v3138_v39 = vrot.slane %v15863_v51, 2  ;;  %v15924_v49 = vpack.c.bf16 %v3136_v43, %v3134_v7 }
 0x29d   : > { %v2730_v3 = vadd.f32 %v2729_v45, %v15701_v31  ;;  %v12954_v26 = vpop.f32.mrb[142].mxu0  ;;  %v3010_v12 = vsel %vm2992_vm6, %v3008_v14, %v3009_v35  ;;  %v3012_v11 = vsel %vm2992_vm6, %v3009_v35, %v3011_v44  ;;  %v15894_v31 = vld [vmem:[#allocation2 + $0x70] sm:$0x3]  ;;  %v15928_v25 = vpack.c.bf16 %v15892_v0, %v15905_v24  ;;  %v13356_v14 = vld [vmem:[%s18133_s3 + $0x1e8] sm:$0xff]  }
 0x29e   : > { %v2822_v56 = vmax.f32 %v2738_v28, 0.0  ;;  %v2741_v61 = vadd.f32 %v12954_v26, %v15710_v47  ;;  %v2732_v29 = vpop.f32.mrb[143].mxu0  ;;  %4075 = vmatmul.mubr.bf16.gmra.mrb[164].mxu0 %v15876_v37  ;;  %v15902_v19 = vpack.c.bf16 %v3012_v11, %v3010_v12  ;;  %v3016_v1 = vrot.slane %v15894_v31, 1 }
 0x29f   : > { %v2820_v50 = vmax.f32 %v2730_v3, 0.0  ;;  %v2733_v23 = vadd.f32 %v2732_v29, %v15704_v52  ;;  %4082 = vmatprep.mubr.bf16.mxu0 %v15885_v60  ;;  %12268 = vmatpush3.bf16.msra.mxu0 %v13349_v10  ;;  %v13354_v52 = vld [vmem:[%s18133_s3 + $0x1e0] sm:$0xff]   ;;  %v3015_v10 = vsel %vm2992_vm6, %v3013_v5, %v3014_v36  ;;  %v3137_v2 = vrot.slane %v15853_v32, 2  ;;  %v13357_v32 = vld [vmem:[%s18133_s3 + $0x1a8] sm:$0xff]  }
 0x2a0   : > { %2856 = vst.msk [vmem:[#allocation2 + $0xc1] sm:$0xff] %vm2841_vm7, %v2822_v56  ;;  %v2823_v47 = vmax.f32 %v2741_v61, 0.0  ;;  %12269 = vmatprep.subr.bf16.mxu0 %v13352_v17  ;;  %v3017_v51 = vsel %vm2992_vm6, %v3014_v36, %v3016_v1  ;;  %v15953_v11 = vld [vmem:[#allocation2 + $0x78] sm:$0xff]  ;;  %v3145_v43 = vrot.slane %v15894_v31, 2 }
 0x2a1   : > { %2854 = vst.msk [vmem:[#allocation2 + $0xa9] sm:$0xff] %vm2841_vm7, %v2820_v50  ;;  %v2821_v40 = vmax.f32 %v2733_v23, 0.0  ;;  %3922 = vmatmul.mubr.bf16.gmra.mrb[136].mxu1 %v15821_v6  ;;  %v3139_v12 = vsel %vm3121_vm8, %v3137_v2, %v3138_v39  ;;  %v3018_v23 = vrot.slane %v15953_v11, 1  ;;  %v13361_v36 = vld [vmem:[%s18133_s3 + $0x1f8] sm:$0xff]  }
 0x2a2   : > { %2857 = vst.msk [vmem:[#allocation2 + $0xc9] sm:$0xff] %vm2841_vm7, %v2823_v47  ;;  %3929 = vmatprep.mubr.bf16.mxu1 %v15902_v19  ;;  %v15940_v17 = vld [vmem:[#allocation2 + $0x80] sm:$0xff]  ;;  %v15942_v3 = vld [vmem:[#allocation2 + $0x88] sm:$0x3]  ;;  %v3143_v47 = vrot.slane %v15892_v0, 2 }
 0x2a3   : > { %2855 = vst.msk [vmem:[#allocation2 + $0xb1] sm:$0xff] %vm2841_vm7, %v2821_v40  ;;  %v12957_v20 = vpop.f32.mrb[144].mxu0  ;;  %12270 = vmatpush3.bf16.msra.mxu0 %v13353_v58  ;;  %v3019_v61 = vrot.slane %v15940_v17, 1  ;;  %v3021_v29 = vrot.slane %v15942_v3, 1  ;;  %v13359_v58 = vld [vmem:[%s18133_s3 + $0x1b0] sm:$0xff]   ;;  %v15981_v5 = vpack.c.bf16 %v15940_v17, %v15953_v11 }
 0x2a4   : > { %v2754_v63 = vadd.f32 %v12957_v20, %v15725_v22  ;;  %v2745_v38 = vpop.f32.mrb[145].mxu0  ;;  %12271 = vmatprep.subr.bf16.mxu0 %v13354_v52  ;;  %v3140_v22 = vrot.slane %v15865_v21, 2  ;;  %v15950_v21 = vpack.c.bf16 %v3017_v51, %v3015_v10  ;;  %v16001_v51 = vld [vmem:[#allocation2 + $0x90] sm:$0xff] }
 0x2a5   : > { %v2746_v35 = vadd.f32 %v2745_v38, %v15719_v9  ;;  %v12958_v44 = vpop.f32.mrb[146].mxu0  ;;  %v3020_v0 = vsel %vm2992_vm6, %v3018_v23, %v3019_v61  ;;  %v15988_v38 = vld [vmem:[#allocation2 + $0x98] sm:$0xff] }
 0x2a6   : > { %v2826_v28 = vmax.f32 %v2754_v63, 0.0  ;;  %v2757_v45 = vadd.f32 %v12958_v44, %v15737_v48  ;;  %v2748_v62 = vpop.f32.mrb[147].mxu0  ;;  %4083 = vmatmul.mubr.bf16.gmra.mrb[168].mxu0 %v15924_v49  ;;  %v3141_v56 = vsel %vm3121_vm8, %v3138_v39, %v3140_v22  ;;  %v3146_v22 = vsel %vm3121_vm8, %v3143_v47, %v3145_v43 }
 0x2a7   : > { %v2824_v9 = vmax.f32 %v2746_v35, 0.0  ;;  %v2749_v26 = vadd.f32 %v2748_v62, %v15722_v34  ;;  %4090 = vmatprep.mubr.bf16.mxu0 %v15928_v25  ;;  %12272 = vmatpush3.bf16.msra.mxu0 %v13355_v33  ;;  %v13358_v34 = vld [vmem:[%s18133_s3 + $0x1f0] sm:$0xff]   ;;  %v15972_v40 = vpack.c.bf16 %v3141_v56, %v3139_v12  ;;  %v3142_v33 = vrot.slane %v15905_v24, 2  ;;  %v13362_v24 = vld [vmem:[%s18133_s3 + $0x1b8] sm:$0xff]  }
 0x2a8   : > { %2860 = vst.msk [vmem:[#allocation2 + $0xf1] sm:$0xff] %vm2841_vm7, %v2826_v28  ;;  %v2827_v48 = vmax.f32 %v2757_v45, 0.0  ;;  %12273 = vmatprep.subr.bf16.mxu0 %v13356_v14  ;;  %v3024_v2 = vrot.slane %v15988_v38, 1  ;;  %v3023_v62 = vrot.slane %v16001_v51, 1  ;;  %v16018_v12 = vpack.c.bf16 %v15988_v38, %v16001_v51 }
 0x2a9   : > { %2858 = vst.msk [vmem:[#allocation2 + $0xd9] sm:$0xff] %vm2841_vm7, %v2824_v9  ;;  %v2825_v18 = vmax.f32 %v2749_v26, 0.0  ;;  %3930 = vmatmul.mubr.bf16.gmra.mrb[140].mxu1 %v15885_v60  ;;  %v3144_v10 = vsel %vm3121_vm8, %v3142_v33, %v3143_v47  ;;  %v3148_v9 = vrot.slane %v15940_v17, 2  ;;  %v3147_v17 = vrot.slane %v15953_v11, 2 }
 0x2aa   : > { %2861 = vst.msk [vmem:[#allocation2 + $0xf9] sm:$0xff] %vm2841_vm7, %v2827_v48  ;;  %3937 = vmatprep.mubr.bf16.mxu1 %v15950_v21  ;;  %v16014_v48 = vpack.c.bf16 %v3146_v22, %v3144_v10  ;;  %v3025_v56 = vsel %vm2992_vm6, %v3023_v62, %v3024_v2  ;;  %v16029_v47 = vld [vmem:[#allocation2 + $0xb8] sm:$0x3] }
 0x2ab   : > { %2859 = vst.msk [vmem:[#allocation2 + $0xe1] sm:$0xff] %vm2841_vm7, %v2825_v18  ;;  %v12961_v50 = vpop.f32.mrb[148].mxu0  ;;  %12274 = vmatpush3.bf16.msra.mxu0 %v13357_v32  ;;  %v3149_v11 = vsel %vm3121_vm8, %v3147_v17, %v3148_v9 }
 0x2ac   : > { %v2770_v7 = vadd.f32 %v12961_v50, %v15746_v13  ;;  %v2761_v52 = vpop.f32.mrb[149].mxu0  ;;  %12275 = vmatprep.subr.bf16.mxu0 %v13358_v34  ;;  %v3022_v13 = vsel %vm2992_vm6, %v3019_v61, %v3021_v29  ;;  %v3150_v29 = vrot.slane %v15942_v3, 2 }
 0x2ad   : > { %v2762_v1 = vadd.f32 %v2761_v52, %v15740_v16  ;;  %v12962_v20 = vpop.f32.mrb[150].mxu0  ;;  %v15990_v16 = vld [vmem:[#allocation2 + $0xa0] sm:$0x3]  ;;  %v15998_v44 = vpack.c.bf16 %v3022_v13, %v3020_v0  ;;  %v3153_v13 = vrot.slane %v15988_v38, 2  ;;  %v3152_v38 = vrot.slane %v16001_v51, 2 }
 0x2ae   : > { %v2830_v39 = vmax.f32 %v2770_v7, 0.0  ;;  %v2773_v31 = vadd.f32 %v12962_v20, %v15755_v57  ;;  %v2764_v63 = vpop.f32.mrb[151].mxu0  ;;  %4091 = vmatmul.mubr.bf16.gmra.mrb[172].mxu0 %v15972_v40  ;;  %v3026_v28 = vrot.slane %v15990_v16, 1 }
 0x2af   : > { %v2828_v14 = vmax.f32 %v2762_v1, 0.0  ;;  %v2765_v35 = vadd.f32 %v2764_v63, %v15743_v42  ;;  %4098 = vmatprep.mubr.bf16.mxu0 %v15981_v5  ;;  %12276 = vmatpush3.bf16.msra.mxu0 %v13359_v58  ;;  %v16027_v58 = vld [vmem:[#allocation2 + $0xb0] sm:$0xff]  ;;  %v3031_v1 = vrot.slane %v16029_v47, 1  ;;  %v3155_v63 = vrot.slane %v15990_v16, 2  ;;  %v16063_v16 = vld [vmem:[#allocation2 + $0xc8] sm:$0xff] }
 0x2b0   : > { %2864 = vst.msk [vmem:[#allocation2 + $0x121] sm:$0xff] %vm2841_vm7, %v2830_v39  ;;  %v2831_v57 = vmax.f32 %v2773_v31, 0.0  ;;  %12277 = vmatprep.subr.bf16.mxu0 %v13361_v36  ;;  %v3027_v61 = vsel %vm2992_vm6, %v3024_v2, %v3026_v28  ;;  %v3151_v36 = vsel %vm3121_vm8, %v3148_v9, %v3150_v29  ;;  %v3154_v51 = vsel %vm3121_vm8, %v3152_v38, %v3153_v13 }
 0x2b1   : > { %2862 = vst.msk [vmem:[#allocation2 + $0x109] sm:$0xff] %vm2841_vm7, %v2828_v14  ;;  %v2829_v42 = vmax.f32 %v2765_v35, 0.0  ;;  %3938 = vmatmul.mubr.bf16.gmra.mrb[144].mxu1 %v15928_v25  ;;  %v16034_v52 = vpack.c.bf16 %v3027_v61, %v3025_v56  ;;  %v16050_v31 = vpack.c.bf16 %v3151_v36, %v3149_v11  ;;  %v3158_v61 = vrot.slane %v16027_v58, 2 }
 0x2b2   : > { %2865 = vst.msk [vmem:[#allocation2 + $0x129] sm:$0xff] %vm2841_vm7, %v2831_v57  ;;  %3945 = vmatprep.mubr.bf16.mxu1 %v15998_v44 }
 0x2b3   : > { %2863 = vst.msk [vmem:[#allocation2 + $0x111] sm:$0xff] %vm2841_vm7, %v2829_v42  ;;  %v12965_v45 = vpop.f32.mrb[152].mxu0  ;;  %12278 = vmatpush3.bf16.msra.mxu0 %v13362_v24 }
 0x2b4   : > { %v2786_v26 = vadd.f32 %v12965_v45, %v15764_v46  ;;  %v2777_v32 = vpop.f32.mrb[153].mxu0 }
 0x2b5   : > { %v2778_v34 = vadd.f32 %v2777_v32, %v15758_v15  ;;  %v12966_v18 = vpop.f32.mrb[154].mxu0  ;;  %v3034_v32 = vrot.slane %v16063_v16, 1 }
 0x2b6   : > { %v2834_v50 = vmax.f32 %v2786_v26, 0.0  ;;  %v2789_v46 = vadd.f32 %v12966_v18, %v15773_v27  ;;  %v2780_v23 = vpop.f32.mrb[155].mxu0  ;;  %4099 = vmatmul.mubr.bf16.gmra.mrb[176].mxu0 %v16014_v48  ;;  %v16037_v27 = vld [vmem:[#allocation2 + $0xa8] sm:$0xff]  ;;  %v3156_v26 = vsel %vm3121_vm8, %v3153_v13, %v3155_v63 }
 0x2b7   : > { %v2832_v15 = vmax.f32 %v2778_v34, 0.0  ;;  %v2781_v7 = vadd.f32 %v2780_v23, %v15761_v8  ;;  %4106 = vmatprep.mubr.bf16.mxu0 %v16018_v12  ;;  %v3029_v8 = vrot.slane %v16027_v58, 1  ;;  %v3028_v0 = vrot.slane %v16037_v27, 1  ;;  %v16093_v23 = vld [vmem:[#allocation2 + $0xe8] sm:$0x3] }
 0x2b8   : > { %2868 = vst.msk [vmem:[#allocation2 + $0x151] sm:$0xff] %vm2841_vm7, %v2834_v50  ;;  %v2835_v3 = vmax.f32 %v2789_v46, 0.0  ;;  %v16056_v24 = vpack.c.bf16 %v16027_v58, %v16037_v27  ;;  %v16081_v18 = vpack.c.bf16 %v3156_v26, %v3154_v51  ;;  %v3160_v50 = vrot.slane %v16029_v47, 2  ;;  %v16091_v46 = vld [vmem:[#allocation2 + $0xe0] sm:$0xff] }
 0x2b9   : > { %2866 = vst.msk [vmem:[#allocation2 + $0x139] sm:$0xff] %vm2841_vm7, %v2832_v15  ;;  %v2833_v43 = vmax.f32 %v2781_v7, 0.0  ;;  %3946 = vmatmul.mubr.bf16.gmra.mrb[148].mxu1 %v15981_v5  ;;  %v3030_v57 = vsel %vm2992_vm6, %v3028_v0, %v3029_v8  ;;  %v3032_v10 = vsel %vm2992_vm6, %v3029_v8, %v3031_v1  ;;  %v3157_v15 = vrot.slane %v16037_v27, 2 }
 0x2ba   : > { %2869 = vst.msk [vmem:[#allocation2 + $0x159] sm:$0xff] %vm2841_vm7, %v2835_v3  ;;  %3953 = vmatprep.mubr.bf16.mxu1 %v16034_v52  ;;  %v16070_v62 = vpack.c.bf16 %v3032_v10, %v3030_v57  ;;  %v2901_v3 = vld [vmem:[#allocation2 + $0xd8] sm:$0xff]  ;;  %v3161_v11 = vsel %vm3121_vm8, %v3158_v61, %v3160_v50  ;;  %v3039_v47 = vrot.slane %v16091_v46, 1  ;;  %v3163_v1 = vrot.slane %v16063_v16, 2 }
 0x2bb   : > { %2867 = vst.msk [vmem:[#allocation2 + $0x141] sm:$0xff] %vm2841_vm7, %v2833_v43  ;;  %v12969_v20 = vpop.f32.mrb[156].mxu0  ;;  %v3159_v58 = vsel %vm3121_vm8, %v3157_v15, %v3158_v61  ;;  %v3041_v43 = vrot.slane %v16093_v23, 1  ;;  %v3168_v15 = vrot.slane %v16091_v46, 2 }
 0x2bc   : > { %v2802_v33 = vadd.f32 %v12969_v20, %v15783_v59  ;;  %v2793_v39 = vpop.f32.mrb[157].mxu0  ;;  %v3038_v20 = vrot.slane %v2901_v3, 1 }
 0x2bd   : > { %v2794_v14 = vadd.f32 %v2793_v39, %v15777_v54  ;;  %v12970_v35 = vpop.f32.mrb[158].mxu0  ;;  %v16065_v54 = vld [vmem:[#allocation2 + $0xd0] sm:$0x3]  ;;  %v16114_v39 = vpack.c.bf16 %v16091_v46, %v2901_v3  ;;  %v3042_v57 = vsel %vm2992_vm6, %v3039_v47, %v3041_v43 }
 0x2be   : > { %v2838_v42 = vmax.f32 %v2802_v33, 0.0  ;;  %v2805_v59 = vadd.f32 %v12970_v35, %v15791_v53  ;;  %v2796_v22 = vpop.f32.mrb[159].mxu0  ;;  %4107 = vmatmul.mubr.bf16.gmra.mrb[180].mxu0 %v16050_v31  ;;  %v2898_v53 = vld [vmem:[#allocation2 + $0xc0] sm:$0xff]  ;;  %v3165_v0 = vrot.slane %v16065_v54, 2  ;;  %v16111_v33 = vpack.c.bf16 %v3161_v11, %v3159_v58  ;;  %v2908_v43 = vld [vmem:[#allocation2 + $0x110] sm:$0xff] }
 0x2bf   : > { %v2836_v2 = vmax.f32 %v2794_v14, 0.0  ;;  %v2797_v28 = vadd.f32 %v2796_v22, %v15779_v30  ;;  %4114 = vmatprep.mubr.bf16.mxu0 %v16056_v24  ;;  %v3036_v30 = vrot.slane %v16065_v54, 1  ;;  %v3033_v34 = vrot.slane %v2898_v53, 1 }
 0x2c0   : > { %2872 = vst.msk [vmem:[#allocation2 + $0x181] sm:$0xff] %vm2841_vm7, %v2838_v42  ;;  %v2839_v45 = vmax.f32 %v2805_v59, 0.0  ;;  %v16084_v56 = vpack.c.bf16 %v16063_v16, %v2898_v53  ;;  %v3162_v27 = vrot.slane %v2898_v53, 2  ;;  %v3040_v35 = vsel %vm2992_vm6, %v3038_v20, %v3039_v47  ;;  %v2905_v42 = vld [vmem:[#allocation2 + $0xf8] sm:$0xff]  ;;  %v2906_v59 = vld [vmem:[#allocation2 + $0x100] sm:$0x3] }
 0x2c1   : > { %2870 = vst.msk [vmem:[#allocation2 + $0x169] sm:$0xff] %vm2841_vm7, %v2836_v2  ;;  %v2837_v9 = vmax.f32 %v2797_v28, 0.0  ;;  %3954 = vmatmul.mubr.bf16.gmra.mrb[152].mxu1 %v16018_v12  ;;  %v3035_v29 = vsel %vm2992_vm6, %v3033_v34, %v3034_v32  ;;  %v3037_v17 = vsel %vm2992_vm6, %v3034_v32, %v3036_v30  ;;  %v3166_v51 = vsel %vm3121_vm8, %v3163_v1, %v3165_v0  ;;  %v2904_v53 = vld [vmem:[#allocation2 + $0xf0] sm:$0xff]  ;;  %v2907_v0 = vld [vmem:[#allocation2 + $0x108] sm:$0xff] }
 0x2c2   : > { %2873 = vst.msk [vmem:[#allocation2 + $0x189] sm:$0xff] %vm2841_vm7, %v2839_v45  ;;  %3961 = vmatprep.mubr.bf16.mxu1 %v16070_v62  ;;  %v16097_v7 = vpack.c.bf16 %v3037_v17, %v3035_v29  ;;  %v3164_v2 = vsel %vm3121_vm8, %v3162_v27, %v3163_v1  ;;  %v16127_v45 = vpack.c.bf16 %v3042_v57, %v3040_v35  ;;  %v3044_v32 = vrot.slane %v2905_v42, 1  ;;  %v2909_v27 = vld [vmem:[#allocation2 + $0x118] sm:$0x3] }
 0x2c3   : > { %2871 = vst.msk [vmem:[#allocation2 + $0x171] sm:$0xff] %vm2841_vm7, %v2837_v9  ;;  %v3046_v30 = vrot.slane %v2906_v59, 1  ;;  %v3043_v29 = vrot.slane %v2904_v53, 1  ;;  %v16138_v17 = vpack.c.bf16 %v3166_v51, %v3164_v2  ;;  %v16140_v50 = vpack.c.bf16 %v2905_v42, %v2904_v53  ;;  %v2910_v51 = vld [vmem:[#allocation2 + $0x120] sm:$0xff] }
 0x2c4   : > { %v3170_v47 = vrot.slane %v16093_v23, 2  ;;  %v3167_v1 = vrot.slane %v2901_v3, 2  ;;  %v3048_v23 = vrot.slane %v2907_v0, 1  ;;  %v3173_v35 = vrot.slane %v2905_v42, 2 }
 0x2c5   : > { %v3045_v58 = vsel %vm2992_vm6, %v3043_v29, %v3044_v32  ;;  %v3047_v11 = vsel %vm2992_vm6, %v3044_v32, %v3046_v30  ;;  %v16156_v3 = vpack.c.bf16 %v2908_v43, %v2907_v0  ;;  %v3172_v2 = vrot.slane %v2904_v53, 2 }
 0x2c6   : > { %4115 = vmatmul.mubr.bf16.gmra.mrb[184].mxu0 %v16081_v18  ;;  %v16148_v20 = vpack.c.bf16 %v3047_v11, %v3045_v58  ;;  %v3169_v46 = vsel %vm3121_vm8, %v3167_v1, %v3168_v15  ;;  %v3053_v29 = vrot.slane %v2910_v51, 1  ;;  %v3178_v58 = vrot.slane %v2908_v43, 2 }
 0x2c7   : > { %4122 = vmatprep.mubr.bf16.mxu0 %v16084_v56  ;;  %v16104_v36 = vld [vmem:[#allocation2 + $0x180] sm:$0xff]  ;;  %v3174_v42 = vsel %vm3121_vm8, %v3172_v2, %v3173_v35 }
 0x2c8   : > { %v3254_v63 = vrot.slane %v16104_v36, 1  ;;  %v3262_v10 = vrot.slane %v16104_v36, 2 }
 0x2c9   : > { %3962 = vmatmul.mubr.bf16.gmra.mrb[156].mxu1 %v16056_v24  ;;  %v16106_v8 = vld [vmem:[#allocation2 + $0x188] sm:$0xff]  ;;  %v2924_v13 = vld [vmem:[#allocation2 + $0x190] sm:$0x3] }
 0x2ca   : > { %3969 = vmatprep.mubr.bf16.mxu1 %v16097_v7  ;;  %v3255_v14 = vrot.slane %v16106_v8, 1  ;;  %v3263_v38 = vrot.slane %v16106_v8, 2  ;;  %v3257_v16 = vrot.slane %v2924_v13, 1  ;;  %v3265_v54 = vrot.slane %v2924_v13, 2 }
 0x2cb   : > { %v3171_v13 = vsel %vm3121_vm8, %v3168_v15, %v3170_v47 }
 0x2cc   : > { %v3256_v22 = vsel %vm2992_vm6, %v3254_v63, %v3255_v14  ;;  %v3264_v28 = vsel %vm3121_vm8, %v3262_v10, %v3263_v38  ;;  %v3258_v9 = vsel %vm2992_vm6, %v3255_v14, %v3257_v16  ;;  %v3266_v26 = vsel %vm3121_vm8, %v3263_v38, %v3265_v54  ;;  %v2911_v16 = vld [vmem:[#allocation2 + $0x128] sm:$0xff]  ;;  %v2912_v54 = vld [vmem:[#allocation2 + $0x130] sm:$0x3] }
 0x2cd   : > { %v16133_v34 = vpack.c.bf16 %v3258_v9, %v3256_v22  ;;  %v16135_v61 = vpack.c.bf16 %v3266_v26, %v3264_v28  ;;  %v3049_v63 = vrot.slane %v2908_v43, 1  ;;  %v3051_v14 = vrot.slane %v2909_v27, 1 }
 0x2ce   : > { %4123 = vmatmul.mubr.bf16.gmra.mrb[188].mxu0 %v16111_v33  ;;  %v16154_v57 = vpack.c.bf16 %v3171_v13, %v3169_v46  ;;  %v3175_v22 = vrot.slane %v2906_v59, 2  ;;  %v3054_v26 = vrot.slane %v2911_v16, 1  ;;  %v3056_v32 = vrot.slane %v2912_v54, 1 }
 0x2cf   : > { %4130 = vmatprep.mubr.bf16.mxu0 %v16114_v39  ;;  %18247 = vst [vmem:[#allocation23_spill] sm:$0xff] %v16133_v34  ;;  %18248 = vst [vmem:[#allocation25_spill] sm:$0xff] %v16135_v61  ;;  %v3050_v10 = vsel %vm2992_vm6, %v3048_v23, %v3049_v63  ;;  %v3052_v38 = vsel %vm2992_vm6, %v3049_v63, %v3051_v14  ;;  %v16172_v47 = vpack.c.bf16 %v2911_v16, %v2910_v51  ;;  %v2914_v23 = vld [vmem:[#allocation2 + $0x140] sm:$0xff]  ;;  %v2919_v61 = vld [vmem:[#allocation2 + $0x168] sm:$0xff] }
 0x2d0   : > { %v16162_v28 = vpack.c.bf16 %v3052_v38, %v3050_v10  ;;  %v3176_v9 = vsel %vm3121_vm8, %v3173_v35, %v3175_v22  ;;  %v3055_v46 = vsel %vm2992_vm6, %v3053_v29, %v3054_v26  ;;  %v3057_v13 = vsel %vm2992_vm6, %v3054_v26, %v3056_v32  ;;  %v2915_v35 = vld [vmem:[#allocation2 + $0x148] sm:$0x3]  ;;  %v2913_v38 = vld [vmem:[#allocation2 + $0x138] sm:$0xff] }
 0x2d1   : > { %3970 = vmatmul.mubr.bf16.gmra.mrb[160].mxu1 %v16084_v56  ;;  %v16170_v11 = vpack.c.bf16 %v3176_v9, %v3174_v42  ;;  %v3180_v63 = vrot.slane %v2909_v27, 2  ;;  %v3177_v10 = vrot.slane %v2907_v0, 2  ;;  %v16180_v43 = vpack.c.bf16 %v3057_v13, %v3055_v46  ;;  %v2916_v13 = vld [vmem:[#allocation2 + $0x150] sm:$0xff] }
 0x2d2   : > { %3977 = vmatprep.mubr.bf16.mxu1 %v16127_v45  ;;  %v3059_v42 = vrot.slane %v2914_v23, 1  ;;  %v3061_v27 = vrot.slane %v2915_v35, 1  ;;  %v3058_v9 = vrot.slane %v2913_v38, 1  ;;  %v3183_v26 = vrot.slane %v2911_v16, 2 }
 0x2d3   : > { %v3179_v22 = vsel %vm3121_vm8, %v3177_v10, %v3178_v58  ;;  %v3181_v2 = vsel %vm3121_vm8, %v3178_v58, %v3180_v63  ;;  %v16188_v0 = vpack.c.bf16 %v2914_v23, %v2913_v38  ;;  %v3185_v29 = vrot.slane %v2912_v54, 2 }
 0x2d4   : > { %v16186_v32 = vpack.c.bf16 %v3181_v2, %v3179_v22  ;;  %v3182_v58 = vrot.slane %v2910_v51, 2  ;;  %v3063_v54 = vrot.slane %v2916_v13, 1  ;;  %v3188_v2 = vrot.slane %v2914_v23, 2 }
 0x2d5   : > { %v3186_v63 = vsel %vm3121_vm8, %v3183_v26, %v3185_v29 }
 0x2d6   : > { %4131 = vmatmul.mubr.bf16.gmra.mrb[192].mxu0 %v16138_v17  ;;  %v3184_v16 = vsel %vm3121_vm8, %v3182_v58, %v3183_v26  ;;  %v2921_v58 = vld [vmem:[#allocation2 + $0x178] sm:$0x3]  ;;  %v3187_v26 = vrot.slane %v2913_v38, 2 }
 0x2d7   : > { %4138 = vmatprep.mubr.bf16.mxu0 %v16140_v50 }
 0x2d8   : > { %v3189_v23 = vsel %vm3121_vm8, %v3187_v26, %v3188_v2  ;;  %v3192_v26 = vrot.slane %v2916_v13, 2 }
 0x2d9   : > { %3978 = vmatmul.mubr.bf16.gmra.mrb[164].mxu1 %v16114_v39  ;;  %v11943_v30 = vpop.f32.mrb[128].mxu1 }
 0x2da   : > { %3985 = vmatprep.mubr.bf16.mxu1 %v16148_v20  ;;  %v11944_v59 = vpop.f32.mrb[129].mxu1 }
 0x2db   : > { %v16168_v15 = vadd.f32 %v11944_v59, %v11943_v30  ;;  %v11946_v53 = vpop.f32.mrb[130].mxu1  ;;  %v3060_v30 = vsel %vm2992_vm6, %v3058_v9, %v3059_v42  ;;  %v3062_v59 = vsel %vm2992_vm6, %v3059_v42, %v3061_v27  ;;  %v16200_v42 = vpack.c.bf16 %v3186_v63, %v3184_v16 }
 0x2dc   : > { %v11947_v1 = vpop.f32.mrb[131].mxu1  ;;  %v16194_v46 = vpack.c.bf16 %v3062_v59, %v3060_v30  ;;  %v3190_v30 = vrot.slane %v2915_v35, 2  ;;  %v2920_v59 = vld [vmem:[#allocation2 + $0x170] sm:$0xff]  ;;  %v3068_v35 = vrot.slane %v2919_v61, 1 }
 0x2dd   : > { %v16176_v14 = vadd.f32 %v11947_v1, %v11946_v53  ;;  %v2917_v53 = vld [vmem:[#allocation2 + $0x158] sm:$0xff]  ;;  %v2918_v1 = vld [vmem:[#allocation2 + $0x160] sm:$0x3]  ;;  %v3069_v63 = vrot.slane %v2920_v59, 1  ;;  %v16216_v38 = vpack.c.bf16 %v2920_v59, %v2919_v61 }
 0x2de   : > { %4139 = vmatmul.mubr.bf16.gmra.mrb[196].mxu0 %v16154_v57  ;;  %v3064_v10 = vrot.slane %v2917_v53, 1  ;;  %v3066_v22 = vrot.slane %v2918_v1, 1  ;;  %v16202_v51 = vpack.c.bf16 %v2917_v53, %v2916_v13  ;;  %v3191_v16 = vsel %vm3121_vm8, %v3188_v2, %v3190_v30 }
 0x2df   : > { %4146 = vmatprep.mubr.bf16.mxu0 %v16156_v3  ;;  %v3195_v34 = vrot.slane %v2918_v1, 2  ;;  %v16232_v1 = vpack.c.bf16 %v16106_v8, %v16104_v36  ;;  %v3200_v13 = vrot.slane %v2921_v58, 2  ;;  %v13363_v36 = vld [vmem:[%s18133_s3 + $0x208] sm:$0xff]   ;;  %v13365_v8 = vld [vmem:[%s18133_s3 + $0x218] sm:$0xff]  }
 0x2e0   : > { %v3065_v27 = vsel %vm2992_vm6, %v3063_v54, %v3064_v10  ;;  %v3067_v9 = vsel %vm2992_vm6, %v3064_v10, %v3066_v22  ;;  %v3071_v54 = vrot.slane %v2921_v58, 1  ;;  %v3193_v10 = vrot.slane %v2917_v53, 2 }
 0x2e1   : > { %3986 = vmatmul.mubr.bf16.gmra.mrb[168].mxu1 %v16140_v50  ;;  %v16208_v29 = vpack.c.bf16 %v3067_v9, %v3065_v27  ;;  %v16214_v22 = vpack.c.bf16 %v3191_v16, %v3189_v23  ;;  %v3070_v27 = vsel %vm2992_vm6, %v3068_v35, %v3069_v63  ;;  %v3198_v16 = vrot.slane %v2920_v59, 2 }
 0x2e2   : > { %3993 = vmatprep.mubr.bf16.mxu1 %v16162_v28  ;;  %v3072_v9 = vsel %vm2992_vm6, %v3069_v63, %v3071_v54  ;;  %v3194_v53 = vsel %vm3121_vm8, %v3192_v26, %v3193_v10  ;;  %v3196_v30 = vsel %vm3121_vm8, %v3193_v10, %v3195_v34  ;;  %v3197_v63 = vrot.slane %v2919_v61, 2 }
 0x2e3   : > { %v16222_v2 = vpack.c.bf16 %v3072_v9, %v3070_v27  ;;  %v16228_v23 = vpack.c.bf16 %v3196_v30, %v3194_v53  ;;  %v3201_v34 = vsel %vm3121_vm8, %v3198_v16, %v3200_v13  ;;  %v16335_v13 = vld [vmem:[#allocation2 + $0x1a8] sm:$0x3] }
 0x2e4   : > { %v3199_v54 = vsel %vm3121_vm8, %v3197_v63, %v3198_v16 }
 0x2e5   : > { %v16240_v35 = vpack.c.bf16 %v3201_v34, %v3199_v54 }
 0x2e6   : > { %4147 = vmatmul.mubr.bf16.gmra.mrb[200].mxu0 %v16170_v11 }
 0x2e7   : > { %4154 = vmatprep.mubr.bf16.mxu0 %v16172_v47 }
 0x2e9   : > { %3994 = vmatmul.mubr.bf16.gmra.mrb[172].mxu1 %v16156_v3 }
 0x2ea   : > { %4001 = vmatprep.mubr.bf16.mxu1 %v16180_v43 }
 0x2ee   : > { %4155 = vmatmul.mubr.bf16.gmra.mrb[204].mxu0 %v16186_v32 }
 0x2ef   : > { %4162 = vmatprep.mubr.bf16.mxu0 %v16188_v0 }
 0x2f1   : > { %4002 = vmatmul.mubr.bf16.gmra.mrb[176].mxu1 %v16172_v47 }
 0x2f2   : > { %4009 = vmatprep.mubr.bf16.mxu1 %v16194_v46 }
 0x2f6   : > { %4163 = vmatmul.mubr.bf16.gmra.mrb[208].mxu0 %v16200_v42 }
 0x2f7   : > { %4170 = vmatprep.mubr.bf16.mxu0 %v16202_v51 }
 0x2f9   : > { %4010 = vmatmul.mubr.bf16.gmra.mrb[180].mxu1 %v16188_v0 }
 0x2fa   : > { %4017 = vmatprep.mubr.bf16.mxu1 %v16208_v29 }
 0x2fe   : > { %4171 = vmatmul.mubr.bf16.gmra.mrb[212].mxu0 %v16214_v22 }
 0x2ff   : > { %4178 = vmatprep.mubr.bf16.mxu0 %v16216_v38 }
 0x301   : > { %4018 = vmatmul.mubr.bf16.gmra.mrb[184].mxu1 %v16202_v51 }
 0x302   : > { %4025 = vmatprep.mubr.bf16.mxu1 %v16222_v2 }
 0x306   : > { %4179 = vmatmul.mubr.bf16.gmra.mrb[216].mxu0 %v16228_v23 }
 0x307   : > { %4186 = vmatprep.mubr.bf16.mxu0 %v16232_v1 }
 0x309   : > { %4026 = vmatmul.mubr.bf16.gmra.mrb[188].mxu1 %v16216_v38 }
 0x30a   : > { %4227 = vmatprep.mubr.bf16.mxu1 %v15876_v37  ;;  %v13364_v37 = vld [vmem:[%s18133_s3 + $0x210] sm:$0xff]  }
 0x30e   : > { %4187 = vmatmul.mubr.bf16.gmra.mrb[220].mxu0 %v16240_v35 }
 0x30f   : > { %4388 = vmatprep.mubr.bf16.mxu0 %v15851_v4 }
 0x311   : > { %4228 = vmatmul.mubr.bf16.vlgmr.msra.gmra.mrb[192].mxu1 %v15841_v55  ;;  %v13368_v55 = vld [vmem:[%s18133_s3 + $0x230] sm:$0xff]  }
 0x312   : > { %4235 = vmatprep.mubr.bf16.mxu1 %v15924_v49  ;;  %12972 = vmatpush3.bf16.msra.mxu1 %v15829_v41  ;;  %v13366_v41 = vld [vmem:[%s18133_s3 + $0x220] sm:$0xff]  }
 0x313   : > { %12973 = vmatprep.subr.bf16.mxu1 %v13363_v36 }
 0x316   : > { %4389 = vmatmul.mubr.bf16.vlgmr.msra.gmra.mrb[224].mxu0 %v15821_v6  ;;  %12974 = vmatpush3.bf16.msra.mxu1 %v13363_v36  ;;  %v13367_v6 = vld [vmem:[%s18133_s3 + $0x228] sm:$0xff]  }
 0x317   : > { %4396 = vmatprep.mubr.bf16.mxu0 %v15902_v19  ;;  %12975 = vmatprep.subr.bf16.mxu1 %v13364_v37 }
 0x319   : > { %4236 = vmatmul.mubr.bf16.gmra.mrb[196].mxu1 %v15851_v4  ;;  %v13369_v4 = vld [vmem:[%s18133_s3 + $0x238] sm:$0xff]  }
 0x31a   : > { %4243 = vmatprep.mubr.bf16.mxu1 %v15972_v40  ;;  %12976 = vmatpush3.bf16.msra.mxu1 %v13364_v37 }
 0x31b   : > { %12977 = vmatprep.subr.bf16.mxu1 %v13365_v8 }
 0x31e   : > { %4397 = vmatmul.mubr.bf16.gmra.mrb[228].mxu0 %v15885_v60  ;;  %12978 = vmatpush3.bf16.msra.mxu1 %v13365_v8  ;;  %v16310_v60 = vld [vmem:[#allocation5] ss:$0 sm:$0xff]  ;;  %v16339_v8 = vld [vmem:[#allocation2] sm:$0xff] }
 0x31f   : > { %4404 = vmatprep.mubr.bf16.mxu0 %v15950_v21  ;;  %12979 = vmatprep.subr.bf16.mxu1 %v13366_v41 }
 0x321   : > { %4244 = vmatmul.mubr.bf16.gmra.mrb[200].mxu1 %v15902_v19 }
 0x322   : > { %4251 = vmatprep.mubr.bf16.mxu1 %v16014_v48  ;;  %12980 = vmatpush3.bf16.msra.mxu1 %v13366_v41  ;;  %v3274_v41 = vrot.slane %v16339_v8, 1 }
 0x323   : > { %12981 = vmatprep.subr.bf16.mxu1 %v13367_v6 }
 0x326   : > { %4405 = vmatmul.mubr.bf16.gmra.mrb[232].mxu0 %v15928_v25  ;;  %12982 = vmatpush3.bf16.msra.mxu1 %v13367_v6  ;;  %v3277_v6 = vrot.slane %v16335_v13, 1 }
 0x327   : > { %4412 = vmatprep.mubr.bf16.mxu0 %v15998_v44  ;;  %12983 = vmatprep.subr.bf16.mxu1 %v13368_v55 }
 0x329   : > { %4252 = vmatmul.mubr.bf16.gmra.mrb[204].mxu1 %v15950_v21  ;;  %v3908_v21 = vadd.f32 %v16168_v15, %v16310_v60 }
 0x32a   : > { %4259 = vmatprep.mubr.bf16.mxu1 %v16050_v31  ;;  %12984 = vmatpush3.bf16.msra.mxu1 %v13368_v55 }
 0x32b   : > { %12985 = vmatprep.subr.bf16.mxu1 %v13369_v4 }
 0x32e   : > { %4413 = vmatmul.mubr.bf16.gmra.mrb[236].mxu0 %v15981_v5  ;;  %12986 = vmatpush3.bf16.msra.mxu1 %v13369_v4 }
 0x32f   : > { %4420 = vmatprep.mubr.bf16.mxu0 %v16034_v52 }
 0x331   : > { %4260 = vmatmul.mubr.bf16.gmra.mrb[208].mxu1 %v15998_v44 }
 0x332   : > { %4267 = vmatprep.mubr.bf16.mxu1 %v16081_v18 }
 0x336   : > { %4421 = vmatmul.mubr.bf16.gmra.mrb[240].mxu0 %v16018_v12 }
 0x337   : > { %4428 = vmatprep.mubr.bf16.mxu0 %v16070_v62 }
 0x339   : > { %4268 = vmatmul.mubr.bf16.gmra.mrb[212].mxu1 %v16034_v52 }
 0x33a   : > { %4275 = vmatprep.mubr.bf16.mxu1 %v16111_v33 }
 0x33e   : > { %4429 = vmatmul.mubr.bf16.gmra.mrb[244].mxu0 %v16056_v24  ;;  %v3911_v24 = vadd.f32 %v16176_v14, %v16310_v60 }
 0x33f   : > { %4436 = vmatprep.mubr.bf16.mxu0 %v16097_v7 }
 0x341   : > { %4276 = vmatmul.mubr.bf16.gmra.mrb[216].mxu1 %v16070_v62 }
 0x342   : > { %4283 = vmatprep.mubr.bf16.mxu1 %v16138_v17 }
 0x346   : > { %4437 = vmatmul.mubr.bf16.gmra.mrb[248].mxu0 %v16084_v56 }
 0x347   : > { %4444 = vmatprep.mubr.bf16.mxu0 %v16127_v45 }
 0x349   : > { %4284 = vmatmul.mubr.bf16.gmra.mrb[220].mxu1 %v16097_v7 }
 0x34a   : > { %4291 = vmatprep.mubr.bf16.mxu1 %v16154_v57 }
 0x34e   : > { %4445 = vmatmul.mubr.bf16.gmra.mrb[252].mxu0 %v16114_v39 }
 0x34f   : > { %4452 = vmatprep.mubr.bf16.mxu0 %v16148_v20 }
 0x351   : > { %4292 = vmatmul.mubr.bf16.gmra.mrb[224].mxu1 %v16127_v45 }
 0x352   : > { %4299 = vmatprep.mubr.bf16.mxu1 %v16170_v11 }
 0x356   : > { %4453 = vmatmul.mubr.bf16.gmra.mrb[0].mxu0 %v16140_v50 }
 0x357   : > { %4460 = vmatprep.mubr.bf16.mxu0 %v16162_v28 }
 0x359   : > { %4300 = vmatmul.mubr.bf16.gmra.mrb[228].mxu1 %v16148_v20 }
 0x35a   : > { %4307 = vmatprep.mubr.bf16.mxu1 %v16186_v32 }
 0x35e   : > { %4461 = vmatmul.mubr.bf16.gmra.mrb[4].mxu0 %v16156_v3 }
 0x35f   : > { %4468 = vmatprep.mubr.bf16.mxu0 %v16180_v43 }
 0x361   : > { %4308 = vmatmul.mubr.bf16.gmra.mrb[232].mxu1 %v16162_v28 }
 0x362   : > { %4315 = vmatprep.mubr.bf16.mxu1 %v16200_v42 }
 0x366   : > { %4469 = vmatmul.mubr.bf16.gmra.mrb[8].mxu0 %v16172_v47 }
 0x367   : > { %4476 = vmatprep.mubr.bf16.mxu0 %v16194_v46 }
 0x369   : > { %v12055_v19 = vpop.f32.mrb[160].mxu0  ;;  %4316 = vmatmul.mubr.bf16.gmra.mrb[236].mxu1 %v16180_v43 }
 0x36a   : > { %v12056_v25 = vpop.f32.mrb[161].mxu0  ;;  %4323 = vmatprep.mubr.bf16.mxu1 %v16214_v22 }
 0x36b   : > { %v12057_v5 = vadd.f32 %v12056_v25, %v12055_v19  ;;  %v12058_v44 = vpop.f32.mrb[162].mxu0 }
 0x36c   : > { %v11949_v12 = vpop.f32.mrb[132].mxu1  ;;  %v12059_v52 = vpop.f32.mrb[163].mxu0 }
 0x36d   : > { %v16318_v62 = vadd.f32 %v12057_v5, %v3908_v21  ;;  %v12060_v56 = vadd.f32 %v12059_v52, %v12058_v44  ;;  %v11950_v7 = vpop.f32.mrb[133].mxu1 }
 0x36e   : > { %v11951_v39 = vadd.f32 %v11950_v7, %v11949_v12  ;;  %v11952_v45 = vpop.f32.mrb[134].mxu1  ;;  %4477 = vmatmul.mubr.bf16.gmra.mrb[12].mxu0 %v16188_v0  ;;  %v18249_v12 = vld [vmem:[#allocation23_spill] sm:$0xff] }
 0x36f   : > { %v16321_v61 = vadd.f32 %v12060_v56, %v3911_v24  ;;  %v11953_v50 = vpop.f32.mrb[135].mxu1  ;;  %4484 = vmatprep.mubr.bf16.mxu0 %v16208_v29  ;;  %v3278_v24 = vsel %vm2992_vm6, %v3274_v41, %v3277_v6 }
 0x370   : > { %v11954_v20 = vadd.f32 %v11953_v50, %v11952_v45  ;;  %v3916_v15 = vadd.f32 %v11951_v39, %v16310_v60  ;;  %v18250_v39 = vld [vmem:[#allocation25_spill] sm:$0xff] }
 0x371   : > { %v12061_v3 = vpop.f32.mrb[164].mxu0  ;;  %4324 = vmatmul.mubr.bf16.gmra.mrb[240].mxu1 %v16194_v46 }
 0x372   : > { %v12062_v28 = vpop.f32.mrb[165].mxu0  ;;  %4331 = vmatprep.mubr.bf16.mxu1 %v16228_v23  ;;  %v3919_v0 = vadd.f32 %v11954_v20, %v16310_v60 }
 0x373   : > { %v12063_v47 = vadd.f32 %v12062_v28, %v12061_v3  ;;  %v12064_v14 = vpop.f32.mrb[166].mxu0  ;;  %v3281_v3 = vpack.c.bf16 %v3278_v24, %v3274_v41 }
 0x374   : > { %v11955_v43 = vpop.f32.mrb[136].mxu1  ;;  %v12065_v59 = vpop.f32.mrb[167].mxu0 }
 0x375   : > { %v16328_v58 = vadd.f32 %v12063_v47, %v3916_v15  ;;  %v12066_v10 = vadd.f32 %v12065_v59, %v12064_v14  ;;  %v11956_v27 = vpop.f32.mrb[137].mxu1 }
 0x376   : > { %v11957_v9 = vadd.f32 %v11956_v27, %v11955_v43  ;;  %v11958_v26 = vpop.f32.mrb[138].mxu1  ;;  %4485 = vmatmul.mubr.bf16.gmra.mrb[16].mxu0 %v16202_v51 }
 0x377   : > { %v16331_v46 = vadd.f32 %v12066_v10, %v3919_v0  ;;  %v11959_v53 = vpop.f32.mrb[139].mxu1  ;;  %4492 = vmatprep.mubr.bf16.mxu0 %v16222_v2 }
 0x378   : > { %v11960_v30 = vadd.f32 %v11959_v53, %v11958_v26  ;;  %v3924_v54 = vadd.f32 %v11957_v9, %v16310_v60  ;;  %v3270_v53 = vpack.c.bf16 %v16339_v8, %v16339_v8 }
 0x379   : > { %v12067_v16 = vpop.f32.mrb[168].mxu0  ;;  %4332 = vmatmul.mubr.bf16.gmra.mrb[244].mxu1 %v16208_v29 }
 0x37a   : > { %v12068_v63 = vpop.f32.mrb[169].mxu0  ;;  %4339 = vmatprep.mubr.bf16.mxu1 %v16240_v35  ;;  %v3927_v55 = vadd.f32 %v11960_v30, %v16310_v60 }
 0x37b   : > { %v12069_v34 = vadd.f32 %v12068_v63, %v12067_v16  ;;  %v12070_v36 = vpop.f32.mrb[170].mxu0 }
 0x37c   : > { %v11961_v37 = vpop.f32.mrb[140].mxu1  ;;  %v12071_v51 = vpop.f32.mrb[171].mxu0 }
 0x37d   : > { %v16344_v29 = vadd.f32 %v12069_v34, %v3924_v54  ;;  %v12072_v4 = vadd.f32 %v12071_v51, %v12070_v36  ;;  %v11962_v19 = vpop.f32.mrb[141].mxu1 }
 0x37e   : > { %v11963_v25 = vadd.f32 %v11962_v19, %v11961_v37  ;;  %v11964_v21 = vpop.f32.mrb[142].mxu1  ;;  %4493 = vmatmul.mubr.bf16.gmra.mrb[20].mxu0 %v16216_v38 }
 0x37f   : > { %v16347_v5 = vadd.f32 %v12072_v4, %v3927_v55  ;;  %v11965_v44 = vpop.f32.mrb[143].mxu1  ;;  %4500 = vmatprep.mubr.bf16.mxu0 %v18249_v12 }
 0x380   : > { %v11966_v52 = vadd.f32 %v11965_v44, %v11964_v21  ;;  %v3932_v45 = vadd.f32 %v11963_v25, %v16310_v60 }
 0x381   : > { %v12073_v56 = vpop.f32.mrb[172].mxu0  ;;  %4340 = vmatmul.mubr.bf16.gmra.mrb[248].mxu1 %v16222_v2 }
 0x382   : > { %v12074_v7 = vpop.f32.mrb[173].mxu0  ;;  %4347 = vmatprep.mubr.bf16.mxu1 %v18250_v39  ;;  %v3935_v15 = vadd.f32 %v11966_v52, %v16310_v60 }
 0x383   : > { %v12075_v50 = vadd.f32 %v12074_v7, %v12073_v56  ;;  %v12076_v20 = vpop.f32.mrb[174].mxu0 }
 0x384   : > { %v11967_v38 = vpop.f32.mrb[144].mxu1  ;;  %v12077_v28 = vpop.f32.mrb[175].mxu0 }
 0x385   : > { %v16355_v47 = vadd.f32 %v12075_v50, %v3932_v45  ;;  %v12078_v14 = vadd.f32 %v12077_v28, %v12076_v20  ;;  %v11968_v43 = vpop.f32.mrb[145].mxu1 }
 0x386   : > { %v11969_v59 = vadd.f32 %v11968_v43, %v11967_v38  ;;  %v11970_v0 = vpop.f32.mrb[146].mxu1  ;;  %4501 = vmatmul.mubr.bf16.gmra.mrb[24].mxu0 %v16232_v1  ;;  %v13371_v43 = vld [vmem:[%s18135_s5] sm:$0xff]  }
 0x387   : > { %v16358_v2 = vadd.f32 %v12078_v14, %v3935_v15  ;;  %v11971_v10 = vpop.f32.mrb[147].mxu1  ;;  %4508 = vmatprep.mubr.bf16.mxu0 %v3281_v3  ;;  %v13370_v14 = vld [vmem:[%s18135_s5 + $0x40] sm:$0xff]  }
 0x388   : > { %v11972_v27 = vadd.f32 %v11971_v10, %v11970_v0  ;;  %v3940_v30 = vadd.f32 %v11969_v59, %v16310_v60  ;;  %12399 = vmatprep.subr.bf16.mxu0 %v13370_v14 }
 0x389   : > { %v12079_v9 = vpop.f32.mrb[176].mxu0  ;;  %4348 = vmatmul.mubr.bf16.gmra.mrb[252].mxu1 %v18249_v12  ;;  %12400 = vmatpush3.bf16.msra.mxu0 %v13371_v43 }
 0x38a   : > { %v12080_v26 = vpop.f32.mrb[177].mxu0  ;;  %12987 = vmatprep.mubr.bf16.mxu1 %v15924_v49  ;;  %v3943_v34 = vadd.f32 %v11972_v27, %v16310_v60 }
 0x38b   : > { %v12081_v16 = vadd.f32 %v12080_v26, %v12079_v9  ;;  %v12082_v63 = vpop.f32.mrb[178].mxu0 }
 0x38c   : > { %v11973_v54 = vpop.f32.mrb[148].mxu1  ;;  %v12083_v1 = vpop.f32.mrb[179].mxu0 }
 0x38d   : > { %v16366_v36 = vadd.f32 %v12081_v16, %v3940_v30  ;;  %v12084_v37 = vadd.f32 %v12083_v1, %v12082_v63  ;;  %v11974_v51 = vpop.f32.mrb[149].mxu1 }
 0x38e   : > { %v11975_v41 = vadd.f32 %v11974_v51, %v11973_v54  ;;  %v11976_v6 = vpop.f32.mrb[150].mxu1  ;;  %4509 = vmatmul.mubr.bf16.gmra.mrb[28].mxu0 %v3270_v53 }
 0x38f   : > { %v16368_v55 = vadd.f32 %v12084_v37, %v3943_v34  ;;  %v11977_v49 = vpop.f32.mrb[151].mxu1 }
 0x390   : > { %v11978_v4 = vadd.f32 %v11977_v49, %v11976_v6  ;;  %v3948_v21 = vadd.f32 %v11975_v41, %v16310_v60 }
 0x391   : > { %v12085_v19 = vpop.f32.mrb[180].mxu0  ;;  %12988 = vmatmul.mubr.bf16.vlgmr.msra.gmra.mrb[0].mxu1 %v15972_v40 }
 0x392   : > { %v12086_v25 = vpop.f32.mrb[181].mxu0  ;;  %12991 = vmatprep.mubr.bf16.mxu1 %v16014_v48  ;;  %v3951_v56 = vadd.f32 %v11978_v4, %v16310_v60 }
 0x393   : > { %v12087_v44 = vadd.f32 %v12086_v25, %v12085_v19  ;;  %v12088_v12 = vpop.f32.mrb[182].mxu0 }
 0x394   : > { %v11979_v52 = vpop.f32.mrb[152].mxu1  ;;  %v12089_v24 = vpop.f32.mrb[183].mxu0 }
 0x395   : > { %v16374_v7 = vadd.f32 %v12087_v44, %v3948_v21  ;;  %v12090_v45 = vadd.f32 %v12089_v24, %v12088_v12  ;;  %v11980_v50 = vpop.f32.mrb[153].mxu1 }
 0x396   : > { %v11981_v20 = vadd.f32 %v11980_v50, %v11979_v52  ;;  %v11982_v3 = vpop.f32.mrb[154].mxu1  ;;  %v13372_v50 = vld [vmem:[%s18135_s5 + $0x48] sm:$0xff]  }
 0x397   : > { %v16376_v38 = vadd.f32 %v12090_v45, %v3951_v56  ;;  %v11983_v40 = vpop.f32.mrb[155].mxu1  ;;  %12401 = vmatprep.subr.bf16.mxu0 %v13372_v50 }
 0x398   : > { %v11984_v28 = vadd.f32 %v11983_v40, %v11982_v3  ;;  %v3956_v59 = vadd.f32 %v11981_v20, %v16310_v60  ;;  %v13373_v20 = vld [vmem:[%s18135_s5 + $0x8] sm:$0xff]  }
 0x399   : > { %v12091_v15 = vpop.f32.mrb[184].mxu0  ;;  %12992 = vmatmul.mubr.bf16.gmra.mrb[4].mxu1 %v16050_v31  ;;  %12402 = vmatpush3.bf16.msra.mxu0 %v13373_v20 }
 0x39a   : > { %v12092_v48 = vpop.f32.mrb[185].mxu0  ;;  %12995 = vmatprep.mubr.bf16.mxu1 %v16081_v18  ;;  %v3959_v31 = vadd.f32 %v11984_v28, %v16310_v60 }
 0x39b   : > { %v12093_v0 = vadd.f32 %v12092_v48, %v12091_v15  ;;  %v12094_v10 = vpop.f32.mrb[186].mxu0 }
 0x39c   : > { %v11985_v27 = vpop.f32.mrb[156].mxu1  ;;  %v12095_v9 = vpop.f32.mrb[187].mxu0 }
 0x39d   : > { %v16388_v26 = vadd.f32 %v12093_v0, %v3956_v59  ;;  %v12096_v18 = vadd.f32 %v12095_v9, %v12094_v10  ;;  %v11986_v53 = vpop.f32.mrb[157].mxu1 }
 0x39e   : > { %v11987_v30 = vadd.f32 %v11986_v53, %v11985_v27  ;;  %v11988_v16 = vpop.f32.mrb[158].mxu1 }
 0x39f   : > { %v16390_v63 = vadd.f32 %v12096_v18, %v3959_v31  ;;  %v11989_v54 = vpop.f32.mrb[159].mxu1 }
 0x3a0   : > { %v11990_v1 = vadd.f32 %v11989_v54, %v11988_v16  ;;  %v3964_v51 = vadd.f32 %v11987_v30, %v16310_v60 }
 0x3a1   : > { %v12097_v34 = vpop.f32.mrb[188].mxu0  ;;  %12996 = vmatmul.mubr.bf16.gmra.mrb[8].mxu1 %v16111_v33 }
 0x3a2   : > { %v12098_v37 = vpop.f32.mrb[189].mxu0  ;;  %12999 = vmatprep.mubr.bf16.mxu1 %v16138_v17  ;;  %v3967_v19 = vadd.f32 %v11990_v1, %v16310_v60 }
 0x3a3   : > { %v12099_v41 = vadd.f32 %v12098_v37, %v12097_v34  ;;  %v12100_v6 = vpop.f32.mrb[190].mxu0 }
 0x3a4   : > { %v11991_v49 = vpop.f32.mrb[160].mxu1  ;;  %v12101_v4 = vpop.f32.mrb[191].mxu0 }
 0x3a5   : > { %v16396_v25 = vadd.f32 %v12099_v41, %v3964_v51  ;;  %v12102_v21 = vadd.f32 %v12101_v4, %v12100_v6  ;;  %v11992_v44 = vpop.f32.mrb[161].mxu1 }
 0x3a6   : > { %v11993_v12 = vadd.f32 %v11992_v44, %v11991_v49  ;;  %v11994_v52 = vpop.f32.mrb[162].mxu1  ;;  %v13374_v44 = vld [vmem:[%s18135_s5 + $0x50] sm:$0xff]  }
 0x3a7   : > { %v16398_v24 = vadd.f32 %v12102_v21, %v3967_v19  ;;  %v11995_v33 = vpop.f32.mrb[163].mxu1  ;;  %12403 = vmatprep.subr.bf16.mxu0 %v13374_v44 }
 0x3a8   : > { %v11996_v56 = vadd.f32 %v11995_v33, %v11994_v52  ;;  %v3972_v3 = vadd.f32 %v11993_v12, %v16310_v60  ;;  %v13375_v12 = vld [vmem:[%s18135_s5 + $0x10] sm:$0xff]  }
 0x3a9   : > { %v12103_v45 = vpop.f32.mrb[192].mxu0  ;;  %13000 = vmatmul.mubr.bf16.gmra.mrb[12].mxu1 %v16154_v57  ;;  %12404 = vmatpush3.bf16.msra.mxu0 %v13375_v12 }
 0x3aa   : > { %v12104_v17 = vpop.f32.mrb[193].mxu0  ;;  %13003 = vmatprep.mubr.bf16.mxu1 %v16170_v11  ;;  %v3975_v57 = vadd.f32 %v11996_v56, %v16310_v60 }
 0x3ab   : > { %v12105_v40 = vadd.f32 %v12104_v17, %v12103_v45  ;;  %v12106_v28 = vpop.f32.mrb[194].mxu0 }
 0x3ac   : > { %v11997_v15 = vpop.f32.mrb[164].mxu1  ;;  %v12107_v48 = vpop.f32.mrb[195].mxu0 }
 0x3ad   : > { %v16410_v14 = vadd.f32 %v12105_v40, %v3972_v3  ;;  %v12108_v11 = vadd.f32 %v12107_v48, %v12106_v28  ;;  %v11998_v43 = vpop.f32.mrb[165].mxu1  ;;  %v3282_v3 = vrot.slane %v16339_v8, 2  ;;  %v3285_v40 = vrot.slane %v16335_v13, 2 }
 0x3ae   : > { %v11999_v59 = vadd.f32 %v11998_v43, %v11997_v15  ;;  %v12000_v0 = vpop.f32.mrb[166].mxu1 }
 0x3af   : > { %v16412_v10 = vadd.f32 %v12108_v11, %v3975_v57  ;;  %v12001_v27 = vpop.f32.mrb[167].mxu1 }
 0x3b0   : > { %v12002_v9 = vadd.f32 %v12001_v27, %v12000_v0  ;;  %v3980_v53 = vadd.f32 %v11999_v59, %v16310_v60  ;;  %v3286_v59 = vsel %vm3121_vm8, %v3282_v3, %v3285_v40 }
 0x3b1   : > { %v12109_v31 = vpop.f32.mrb[196].mxu0  ;;  %13004 = vmatmul.mubr.bf16.gmra.mrb[16].mxu1 %v16186_v32 }
 0x3b2   : > { %v12110_v18 = vpop.f32.mrb[197].mxu0  ;;  %13007 = vmatprep.mubr.bf16.mxu1 %v16200_v42  ;;  %v3983_v34 = vadd.f32 %v12002_v9, %v16310_v60 }
 0x3b3   : > { %v12111_v30 = vadd.f32 %v12110_v18, %v12109_v31  ;;  %v12112_v16 = vpop.f32.mrb[198].mxu0  ;;  %v3289_v18 = vpack.c.bf16 %v3286_v59, %v3282_v3 }
 0x3b4   : > { %v12003_v54 = vpop.f32.mrb[168].mxu1  ;;  %v12113_v1 = vpop.f32.mrb[199].mxu0 }
 0x3b5   : > { %v16418_v37 = vadd.f32 %v12111_v30, %v3980_v53  ;;  %v12114_v51 = vadd.f32 %v12113_v1, %v12112_v16  ;;  %v12004_v41 = vpop.f32.mrb[169].mxu1 }
 0x3b6   : > { %v12005_v6 = vadd.f32 %v12004_v41, %v12003_v54  ;;  %v12006_v49 = vpop.f32.mrb[170].mxu1 }
 0x3b7   : > { %v16420_v4 = vadd.f32 %v12114_v51, %v3983_v34  ;;  %v12007_v32 = vpop.f32.mrb[171].mxu1 }
 0x3b8   : > { %v12008_v19 = vadd.f32 %v12007_v32, %v12006_v49  ;;  %v3988_v52 = vadd.f32 %v12005_v6, %v16310_v60  ;;  %v13376_v49 = vld [vmem:[%s18135_s5 + $0x58] sm:$0xff]  }
 0x3b9   : > { %v12115_v21 = vpop.f32.mrb[200].mxu0  ;;  %13008 = vmatmul.mubr.bf16.gmra.mrb[20].mxu1 %v16214_v22  ;;  %v13377_v32 = vld [vmem:[%s18135_s5 + $0x18] sm:$0xff]   ;;  %12405 = vmatprep.subr.bf16.mxu0 %v13376_v49 }
 0x3ba   : > { %v12116_v42 = vpop.f32.mrb[201].mxu0  ;;  %13011 = vmatprep.mubr.bf16.mxu1 %v16228_v23  ;;  %v3991_v22 = vadd.f32 %v12008_v19, %v16310_v60  ;;  %12406 = vmatpush3.bf16.msra.mxu0 %v13377_v32 }
 0x3bb   : > { %v12117_v33 = vadd.f32 %v12116_v42, %v12115_v21  ;;  %v12118_v56 = vpop.f32.mrb[202].mxu0 }
 0x3bc   : > { %v12009_v45 = vpop.f32.mrb[172].mxu1  ;;  %v12119_v17 = vpop.f32.mrb[203].mxu0 }
 0x3bd   : > { %v16432_v50 = vadd.f32 %v12117_v33, %v3988_v52  ;;  %v12120_v23 = vadd.f32 %v12119_v17, %v12118_v56  ;;  %v12010_v20 = vpop.f32.mrb[173].mxu1 }
 0x3be   : > { %v12011_v28 = vadd.f32 %v12010_v20, %v12009_v45  ;;  %v12012_v15 = vpop.f32.mrb[174].mxu1 }
 0x3bf   : > { %v16436_v48 = vadd.f32 %v12120_v23, %v3991_v22  ;;  %v12013_v57 = vpop.f32.mrb[175].mxu1 }
 0x3c0   : > { %v12014_v11 = vadd.f32 %v12013_v57, %v12012_v15  ;;  %v3996_v27 = vadd.f32 %v12011_v28, %v16310_v60 }
 0x3c1   : > { %v12121_v43 = vpop.f32.mrb[204].mxu0  ;;  %13012 = vmatmul.mubr.bf16.gmra.mrb[24].mxu1 %v16240_v35 }
 0x3c2   : > { %v12122_v0 = vpop.f32.mrb[205].mxu0  ;;  %13015 = vmatprep.mubr.bf16.mxu1 %v18250_v39  ;;  %v3999_v53 = vadd.f32 %v12014_v11, %v16310_v60 }
 0x3c3   : > { %v12123_v9 = vadd.f32 %v12122_v0, %v12121_v43  ;;  %v12124_v8 = vpop.f32.mrb[206].mxu0 }
 0x3c4   : > { %v12015_v31 = vpop.f32.mrb[176].mxu1  ;;  %v12125_v13 = vpop.f32.mrb[207].mxu0 }
 0x3c5   : > { %v16443_v30 = vadd.f32 %v12123_v9, %v3996_v27  ;;  %v12126_v16 = vadd.f32 %v12125_v13, %v12124_v8  ;;  %v12016_v54 = vpop.f32.mrb[177].mxu1 }
 0x3c6   : > { %v12017_v1 = vadd.f32 %v12016_v54, %v12015_v31  ;;  %v12018_v35 = vpop.f32.mrb[178].mxu1 }
 0x3c7   : > { %v16445_v34 = vadd.f32 %v12126_v16, %v3999_v53  ;;  %v12019_v51 = vpop.f32.mrb[179].mxu1 }
 0x3c8   : > { %v12020_v41 = vadd.f32 %v12019_v51, %v12018_v35  ;;  %v4004_v19 = vadd.f32 %v12017_v1, %v16310_v60  ;;  %v13378_v35 = vld [vmem:[%s18135_s5 + $0x60] sm:$0xff]  }
 0x3c9   : > { %v12127_v39 = vpop.f32.mrb[208].mxu0  ;;  %13016 = vmatmul.mubr.bf16.gmra.mrb[28].mxu1 %v3289_v18  ;;  %v13379_v51 = vld [vmem:[%s18135_s5 + $0x20] sm:$0xff]   ;;  %12407 = vmatprep.subr.bf16.mxu0 %v13378_v35 }
 0x3ca   : > { %v12128_v6 = vpop.f32.mrb[209].mxu0  ;;  %v4007_v52 = vadd.f32 %v12020_v41, %v16310_v60  ;;  %12408 = vmatpush3.bf16.msra.mxu0 %v13379_v51 }
 0x3cb   : > { %v12129_v21 = vadd.f32 %v12128_v6, %v12127_v39  ;;  %v12130_v42 = vpop.f32.mrb[210].mxu0 }
 0x3cc   : > { %v12021_v44 = vpop.f32.mrb[180].mxu1  ;;  %v12131_v12 = vpop.f32.mrb[211].mxu0 }
 0x3cd   : > { %v16455_v33 = vadd.f32 %v12129_v21, %v4004_v19  ;;  %v12132_v56 = vadd.f32 %v12131_v12, %v12130_v42  ;;  %v12022_v45 = vpop.f32.mrb[181].mxu1 }
 0x3ce   : > { %v12023_v17 = vadd.f32 %v12022_v45, %v12021_v44  ;;  %v12024_v22 = vpop.f32.mrb[182].mxu1 }
 0x3cf   : > { %v16457_v23 = vadd.f32 %v12132_v56, %v4007_v52  ;;  %v12025_v20 = vpop.f32.mrb[183].mxu1 }
 0x3d0   : > { %v12026_v3 = vadd.f32 %v12025_v20, %v12024_v22  ;;  %v4012_v15 = vadd.f32 %v12023_v17, %v16310_v60 }
 0x3d1   : > { %v12133_v40 = vpop.f32.mrb[212].mxu0 }
 0x3d2   : > { %v12134_v28 = vpop.f32.mrb[213].mxu0  ;;  %v4015_v0 = vadd.f32 %v12026_v3, %v16310_v60 }
 0x3d3   : > { %v12135_v57 = vadd.f32 %v12134_v28, %v12133_v40  ;;  %v12136_v11 = vpop.f32.mrb[214].mxu0 }
 0x3d4   : > { %v12027_v43 = vpop.f32.mrb[184].mxu1  ;;  %v12137_v59 = vpop.f32.mrb[215].mxu0 }
 0x3d5   : > { %v16461_v27 = vadd.f32 %v12135_v57, %v4012_v15  ;;  %v12138_v9 = vadd.f32 %v12137_v59, %v12136_v11  ;;  %v12028_v8 = vpop.f32.mrb[185].mxu1 }
 0x3d6   : > { %v12029_v31 = vadd.f32 %v12028_v8, %v12027_v43  ;;  %v12030_v13 = vpop.f32.mrb[186].mxu1 }
 0x3d7   : > { %v16463_v18 = vadd.f32 %v12138_v9, %v4015_v0  ;;  %v12031_v53 = vpop.f32.mrb[187].mxu1 }
 0x3d8   : > { %v12032_v16 = vadd.f32 %v12031_v53, %v12030_v13  ;;  %v4020_v41 = vadd.f32 %v12029_v31, %v16310_v60 }
 0x3d9   : > { %v12139_v54 = vpop.f32.mrb[216].mxu0 }
 0x3da   : > { %v12140_v1 = vpop.f32.mrb[217].mxu0  ;;  %v4023_v19 = vadd.f32 %v12032_v16, %v16310_v60 }
 0x3db   : > { %v12141_v39 = vadd.f32 %v12140_v1, %v12139_v54  ;;  %v12142_v6 = vpop.f32.mrb[218].mxu0 }
 0x3dc   : > { %v12033_v49 = vpop.f32.mrb[188].mxu1  ;;  %v12143_v32 = vpop.f32.mrb[219].mxu0 }
 0x3dd   : > { %v16473_v21 = vadd.f32 %v12141_v39, %v4020_v41  ;;  %v12144_v42 = vadd.f32 %v12143_v32, %v12142_v6  ;;  %v12034_v44 = vpop.f32.mrb[189].mxu1 }
 0x3de   : > { %v12035_v12 = vadd.f32 %v12034_v44, %v12033_v49  ;;  %v12036_v52 = vpop.f32.mrb[190].mxu1 }
 0x3df   : > { %v16475_v56 = vadd.f32 %v12144_v42, %v4023_v19  ;;  %v12037_v45 = vpop.f32.mrb[191].mxu1  ;;  %v13380_v19 = vld [vmem:[%s18135_s5 + $0xc0] sm:$0xff]  }
 0x3e0   : > { %v12038_v17 = vadd.f32 %v12037_v45, %v12036_v52  ;;  %v4028_v3 = vadd.f32 %v12035_v12, %v16310_v60  ;;  %12439 = vmatprep.subr.bf16.mxu1 %v13380_v19 }
 0x3e1   : > { %v12145_v22 = vpop.f32.mrb[220].mxu0 }
 0x3e2   : > { %v12146_v20 = vpop.f32.mrb[221].mxu0  ;;  %v4031_v11 = vadd.f32 %v12038_v17, %v16310_v60 }
 0x3e3   : > { %v12147_v40 = vadd.f32 %v12146_v20, %v12145_v22  ;;  %v12148_v28 = vpop.f32.mrb[222].mxu0  ;;  %v13384_v22 = vld [vmem:[%s18135_s5 + $0xc8] sm:$0xff]  }
 0x3e4   : > { %v12149_v15 = vpop.f32.mrb[223].mxu0  ;;  %v12167_v57 = vpop.f32.mrb[192].mxu1 }
 0x3e5   : > { %v16479_v43 = vadd.f32 %v12147_v40, %v4028_v3  ;;  %v12150_v59 = vadd.f32 %v12149_v15, %v12148_v28  ;;  %v12168_v0 = vpop.f32.mrb[193].mxu1  ;;  %v13382_v40 = vld [vmem:[%s18135_s5 + $0x68] sm:$0xff]  }
 0x3e6   : > { %v12169_v9 = vadd.f32 %v12168_v0, %v12167_v57  ;;  %v12170_v8 = vpop.f32.mrb[194].mxu1  ;;  %v13383_v28 = vld [vmem:[%s18135_s5 + $0x28] sm:$0xff]   ;;  %12409 = vmatprep.subr.bf16.mxu0 %v13382_v40 }
 0x3e7   : > { %v16481_v31 = vadd.f32 %v12150_v59, %v4031_v11  ;;  %v12171_v13 = vpop.f32.mrb[195].mxu1  ;;  %12410 = vmatpush3.bf16.msra.mxu0 %v13383_v28 }
 0x3e8   : > { %v4230_v53 = vadd.f32 %v12169_v9, %v16318_v62  ;;  %v12172_v16 = vadd.f32 %v12171_v13, %v12170_v8  ;;  %v13381_v62 = vld [vmem:[%s18135_s5 + $0x80] sm:$0xff]   ;;  %v13386_v8 = vld [vmem:[%s18135_s5 + $0xd0] sm:$0xff]  }
 0x3e9   : > { %v12279_v54 = vpop.f32.mrb[224].mxu0  ;;  %12440 = vmatpush3.bf16.msra.mxu1 %v13381_v62 }
 0x3ea   : > { %v4233_v1 = vadd.f32 %v12172_v16, %v16321_v61  ;;  %v12280_v35 = vpop.f32.mrb[225].mxu0  ;;  %12441 = vmatprep.subr.bf16.mxu1 %v13384_v22  ;;  %v13387_v16 = vld [vmem:[%s18135_s5 + $0x90] sm:$0xff]   ;;  %v13391_v22 = vld [vmem:[%s18135_s5 + $0xa0] sm:$0xff]  }
 0x3eb   : > { %v12281_v51 = vadd.f32 %v12280_v35, %v12279_v54  ;;  %v12282_v41 = vpop.f32.mrb[226].mxu0 }
 0x3ec   : > { %v12173_v39 = vpop.f32.mrb[196].mxu1  ;;  %v12283_v60 = vpop.f32.mrb[227].mxu0 }
 0x3ed   : > { %v12284_v6 = vadd.f32 %v12283_v60, %v12282_v41  ;;  %v12174_v49 = vpop.f32.mrb[197].mxu1  ;;  %v16485_v32 = vadd.f32 %v12281_v51, %v4230_v53 }
 0x3ee   : > { %v12175_v42 = vadd.f32 %v12174_v49, %v12173_v39  ;;  %v12176_v44 = vpop.f32.mrb[198].mxu1  ;;  %v13388_v39 = vld [vmem:[%s18135_s5 + $0xd8] sm:$0xff]  }
 0x3ef   : > { %v12177_v61 = vpop.f32.mrb[199].mxu1  ;;  %v16493_v12 = vadd.f32 %v12284_v6, %v4233_v1  ;;  %v13389_v49 = vld [vmem:[%s18135_s5 + $0x98] sm:$0xff]  }
 0x3f0   : > { %v4238_v52 = vadd.f32 %v12175_v42, %v16328_v58  ;;  %v12178_v45 = vadd.f32 %v12177_v61, %v12176_v44  ;;  %v13385_v58 = vld [vmem:[%s18135_s5 + $0x88] sm:$0xff]  }
 0x3f1   : > { %v12285_v17 = vpop.f32.mrb[228].mxu0  ;;  %12442 = vmatpush3.bf16.msra.mxu1 %v13385_v58  ;;  %v13392_v58 = vld [vmem:[%s18135_s5 + $0x70] sm:$0xff]  }
 0x3f2   : > { %v4241_v20 = vadd.f32 %v12178_v45, %v16331_v46  ;;  %v12286_v3 = vpop.f32.mrb[229].mxu0  ;;  %12443 = vmatprep.subr.bf16.mxu1 %v13386_v8  ;;  %v13390_v45 = vld [vmem:[%s18135_s5 + $0xe0] sm:$0xff]   ;;  %12411 = vmatprep.subr.bf16.mxu0 %v13392_v58 }
 0x3f3   : > { %v12287_v15 = vadd.f32 %v12286_v3, %v12285_v17  ;;  %v12288_v57 = vpop.f32.mrb[230].mxu0 }
 0x3f4   : > { %v12179_v11 = vpop.f32.mrb[200].mxu1  ;;  %v12289_v59 = vpop.f32.mrb[231].mxu0 }
 0x3f5   : > { %v12290_v46 = vadd.f32 %v12289_v59, %v12288_v57  ;;  %v12180_v0 = vpop.f32.mrb[201].mxu1  ;;  %v16509_v9 = vadd.f32 %v12287_v15, %v4238_v52  ;;  %12444 = vmatpush3.bf16.msra.mxu1 %v13387_v16  ;;  %v13393_v57 = vld [vmem:[%s18135_s5 + $0x30] sm:$0xff]  }
 0x3f6   : > { %v12181_v13 = vadd.f32 %v12180_v0, %v12179_v11  ;;  %v12182_v53 = vpop.f32.mrb[202].mxu1  ;;  %12445 = vmatprep.subr.bf16.mxu1 %v13388_v39  ;;  %v13394_v11 = vld [vmem:[%s18135_s5 + $0xe8] sm:$0xff]   ;;  %v13396_v0 = vld [vmem:[%s18135_s5 + $0x78] sm:$0xff]   ;;  %12412 = vmatpush3.bf16.msra.mxu0 %v13393_v57 }
 0x3f7   : > { %v12183_v54 = vpop.f32.mrb[203].mxu1  ;;  %v16517_v1 = vadd.f32 %v12290_v46, %v4241_v20  ;;  %12413 = vmatprep.subr.bf16.mxu0 %v13396_v0 }
 0x3f8   : > { %v4246_v35 = vadd.f32 %v12181_v13, %v16344_v29  ;;  %v12184_v51 = vadd.f32 %v12183_v54, %v12182_v53 }
 0x3f9   : > { %v12291_v41 = vpop.f32.mrb[232].mxu0  ;;  %12446 = vmatpush3.bf16.msra.mxu1 %v13389_v49 }
 0x3fa   : > { %v4249_v60 = vadd.f32 %v12184_v51, %v16347_v5  ;;  %v12292_v6 = vpop.f32.mrb[233].mxu0  ;;  %12447 = vmatprep.subr.bf16.mxu1 %v13390_v45  ;;  %v13397_v51 = vld [vmem:[%s18135_s5 + $0x38] sm:$0xff]  }
 0x3fb   : > { %v12293_v19 = vadd.f32 %v12292_v6, %v12291_v41  ;;  %v12294_v42 = vpop.f32.mrb[234].mxu0  ;;  %v13398_v41 = vld [vmem:[%s18135_s5 + $0xf0] sm:$0xff]   ;;  %12414 = vmatpush3.bf16.msra.mxu0 %v13397_v51 }
 0x3fc   : > { %v12185_v44 = vpop.f32.mrb[204].mxu1  ;;  %v12295_v62 = vpop.f32.mrb[235].mxu0  ;;  %v13399_v6 = vld [vmem:[%s18135_s5 + $0xb0] sm:$0xff]  }
 0x3fd   : > { %v12296_v29 = vadd.f32 %v12295_v62, %v12294_v42  ;;  %v12186_v61 = vpop.f32.mrb[205].mxu1  ;;  %v16527_v52 = vadd.f32 %v12293_v19, %v4246_v35  ;;  %12448 = vmatpush3.bf16.msra.mxu1 %v13391_v22 }
 0x3fe   : > { %v12187_v5 = vadd.f32 %v12186_v61, %v12185_v44  ;;  %v12188_v17 = vpop.f32.mrb[206].mxu1  ;;  %12449 = vmatprep.subr.bf16.mxu1 %v13394_v11 }
 0x3ff   : > { %v12189_v20 = vpop.f32.mrb[207].mxu1  ;;  %v16535_v3 = vadd.f32 %v12296_v29, %v4249_v60  ;;  %v13400_v29 = vld [vmem:[%s18135_s5 + $0xf8] sm:$0xff]  }
 0x400   : > { %v4254_v40 = vadd.f32 %v12187_v5, %v16355_v47  ;;  %v12190_v28 = vadd.f32 %v12189_v20, %v12188_v17  ;;  %v13395_v47 = vld [vmem:[%s18135_s5 + $0xa8] sm:$0xff]   ;;  %v13401_v5 = vld [vmem:[%s18135_s5 + $0xb8] sm:$0xff]  }
 0x401   : > { %v12297_v15 = vpop.f32.mrb[236].mxu0  ;;  %12450 = vmatpush3.bf16.msra.mxu1 %v13395_v47 }
 0x402   : > { %v4257_v59 = vadd.f32 %v12190_v28, %v16358_v2  ;;  %v12298_v46 = vpop.f32.mrb[237].mxu0  ;;  %12451 = vmatprep.subr.bf16.mxu1 %v13398_v41 }
 0x403   : > { %v12299_v8 = vadd.f32 %v12298_v46, %v12297_v15  ;;  %v12300_v13 = vpop.f32.mrb[238].mxu0 }
 0x404   : > { %v12191_v53 = vpop.f32.mrb[208].mxu1  ;;  %v12301_v16 = vpop.f32.mrb[239].mxu0 }
 0x405   : > { %v12302_v54 = vadd.f32 %v12301_v16, %v12300_v13  ;;  %v12192_v2 = vpop.f32.mrb[209].mxu1  ;;  %v16554_v35 = vadd.f32 %v12299_v8, %v4254_v40  ;;  %12452 = vmatpush3.bf16.msra.mxu1 %v13399_v6 }
 0x406   : > { %v12193_v39 = vadd.f32 %v12192_v2, %v12191_v53  ;;  %v12194_v60 = vpop.f32.mrb[210].mxu1  ;;  %12453 = vmatprep.subr.bf16.mxu1 %v13400_v29 }
 0x407   : > { %v12195_v49 = vpop.f32.mrb[211].mxu1  ;;  %v16565_v19 = vadd.f32 %v12302_v54, %v4257_v59 }
 0x408   : > { %v4262_v42 = vadd.f32 %v12193_v39, %v16366_v36  ;;  %v12196_v44 = vadd.f32 %v12195_v49, %v12194_v60 }
 0x409   : > { %v12303_v62 = vpop.f32.mrb[240].mxu0  ;;  %12454 = vmatpush3.bf16.msra.mxu1 %v13401_v5 }
 0x40a   : > { %v4265_v61 = vadd.f32 %v12196_v44, %v16368_v55  ;;  %v12304_v45 = vpop.f32.mrb[241].mxu0 }
 0x40b   : > { %v12305_v17 = vadd.f32 %v12304_v45, %v12303_v62  ;;  %v12306_v22 = vpop.f32.mrb[242].mxu0 }
 0x40c   : > { %v12197_v20 = vpop.f32.mrb[212].mxu1  ;;  %v12307_v40 = vpop.f32.mrb[243].mxu0 }
 0x40d   : > { %v12308_v36 = vadd.f32 %v12307_v40, %v12306_v22  ;;  %v12198_v28 = vpop.f32.mrb[213].mxu1  ;;  %v16575_v58 = vadd.f32 %v12305_v17, %v4262_v42 }
 0x40e   : > { %v12199_v15 = vadd.f32 %v12198_v28, %v12197_v20  ;;  %v12200_v57 = vpop.f32.mrb[214].mxu1 }
 0x40f   : > { %v12201_v11 = vpop.f32.mrb[215].mxu1  ;;  %v16577_v59 = vadd.f32 %v12308_v36, %v4265_v61 }
 0x410   : > { %v4270_v55 = vadd.f32 %v12199_v15, %v16374_v7  ;;  %v12202_v46 = vadd.f32 %v12201_v11, %v12200_v57 }
 0x411   : > { %v12309_v47 = vpop.f32.mrb[244].mxu0 }
 0x412   : > { %v4273_v0 = vadd.f32 %v12202_v46, %v16376_v38  ;;  %v12310_v8 = vpop.f32.mrb[245].mxu0 }
 0x413   : > { %v12311_v13 = vadd.f32 %v12310_v8, %v12309_v47  ;;  %v12312_v53 = vpop.f32.mrb[246].mxu0 }
 0x414   : > { %v12203_v16 = vpop.f32.mrb[216].mxu1  ;;  %v12313_v54 = vpop.f32.mrb[247].mxu0 }
 0x415   : > { %v12314_v2 = vadd.f32 %v12313_v54, %v12312_v53  ;;  %v12204_v51 = vpop.f32.mrb[217].mxu1  ;;  %v16581_v41 = vadd.f32 %v12311_v13, %v4270_v55 }
 0x416   : > { %v12205_v39 = vadd.f32 %v12204_v51, %v12203_v16  ;;  %v12206_v60 = vpop.f32.mrb[218].mxu1 }
 0x417   : > { %v12207_v6 = vpop.f32.mrb[219].mxu1  ;;  %v16583_v49 = vadd.f32 %v12314_v2, %v4273_v0 }
 0x418   : > { %v4278_v7 = vadd.f32 %v12205_v39, %v16388_v26  ;;  %v12208_v42 = vadd.f32 %v12207_v6, %v12206_v60 }
 0x419   : > { %v12315_v44 = vpop.f32.mrb[248].mxu0 }
 0x41a   : > { %v4281_v38 = vadd.f32 %v12208_v42, %v16390_v63  ;;  %v12316_v62 = vpop.f32.mrb[249].mxu0  ;;  %v13402_v63 = vld [vmem:[%s18135_s5 + $0x140] sm:$0xff]  }
 0x41b   : > { %v12317_v29 = vadd.f32 %v12316_v62, %v12315_v44  ;;  %v12318_v61 = vpop.f32.mrb[250].mxu0  ;;  %12479 = vmatprep.subr.bf16.mxu0 %v13402_v63 }
 0x41c   : > { %v12209_v45 = vpop.f32.mrb[220].mxu1  ;;  %v12319_v5 = vpop.f32.mrb[251].mxu0 }
 0x41d   : > { %v12320_v17 = vadd.f32 %v12319_v5, %v12318_v61  ;;  %v12210_v22 = vpop.f32.mrb[221].mxu1  ;;  %v16587_v20 = vadd.f32 %v12317_v29, %v4278_v7 }
 0x41e   : > { %v12211_v40 = vadd.f32 %v12210_v22, %v12209_v45  ;;  %v12212_v36 = vpop.f32.mrb[222].mxu1 }
 0x41f   : > { %v12213_v28 = vpop.f32.mrb[223].mxu1  ;;  %v16589_v15 = vadd.f32 %v12320_v17, %v4281_v38 }
 0x420   : > { %v4286_v26 = vadd.f32 %v12211_v40, %v16396_v25  ;;  %v12214_v57 = vadd.f32 %v12213_v28, %v12212_v36  ;;  %v13406_v25 = vld [vmem:[%s18135_s5 + $0x1c0] sm:$0xff]  }
 0x421   : > { %v12321_v11 = vpop.f32.mrb[252].mxu0  ;;  %12519 = vmatprep.subr.bf16.mxu1 %v13406_v25 }
 0x422   : > { %v4289_v55 = vadd.f32 %v12214_v57, %v16398_v24  ;;  %v12322_v46 = vpop.f32.mrb[253].mxu0 }
 0x423   : > { %v12323_v47 = vadd.f32 %v12322_v46, %v12321_v11  ;;  %v12324_v0 = vpop.f32.mrb[254].mxu0 }
 0x424   : > { %v12215_v8 = vpop.f32.mrb[224].mxu1  ;;  %v12325_v13 = vpop.f32.mrb[255].mxu0 }
 0x425   : > { %v12326_v53 = vadd.f32 %v12325_v13, %v12324_v0  ;;  %v12216_v16 = vpop.f32.mrb[225].mxu1  ;;  %v16596_v54 = vadd.f32 %v12323_v47, %v4286_v26 }
 0x426   : > { %v12217_v2 = vadd.f32 %v12216_v16, %v12215_v8  ;;  %v12218_v51 = vpop.f32.mrb[226].mxu1 }
 0x427   : > { %v12219_v39 = vpop.f32.mrb[227].mxu1  ;;  %v16601_v60 = vadd.f32 %v12326_v53, %v4289_v55 }
 0x428   : > { %v4294_v24 = vadd.f32 %v12217_v2, %v16410_v14  ;;  %v12220_v6 = vadd.f32 %v12219_v39, %v12218_v51 }
 0x429   : > { %v12327_v7 = vpop.f32.mrb[0].mxu0 }
 0x42a   : > { %v4297_v42 = vadd.f32 %v12220_v6, %v16412_v10  ;;  %v12328_v44 = vpop.f32.mrb[1].mxu0 }
 0x42b   : > { %v12329_v38 = vadd.f32 %v12328_v44, %v12327_v7  ;;  %v12330_v62 = vpop.f32.mrb[2].mxu0 }
 0x42c   : > { %v12221_v29 = vpop.f32.mrb[228].mxu1  ;;  %v12331_v61 = vpop.f32.mrb[3].mxu0 }
 0x42d   : > { %v12332_v45 = vadd.f32 %v12331_v61, %v12330_v62  ;;  %v12222_v5 = vpop.f32.mrb[229].mxu1  ;;  %v16605_v17 = vadd.f32 %v12329_v38, %v4294_v24 }
 0x42e   : > { %v12223_v22 = vadd.f32 %v12222_v5, %v12221_v29  ;;  %v12224_v40 = vpop.f32.mrb[230].mxu1 }
 0x42f   : > { %v12225_v36 = vpop.f32.mrb[231].mxu1  ;;  %v16607_v28 = vadd.f32 %v12332_v45, %v4297_v42 }
 0x430   : > { %v4302_v14 = vadd.f32 %v12223_v22, %v16418_v37  ;;  %v12226_v26 = vadd.f32 %v12225_v36, %v12224_v40 }
 0x431   : > { %v12333_v57 = vpop.f32.mrb[4].mxu0 }
 0x432   : > { %v4305_v10 = vadd.f32 %v12226_v26, %v16420_v4  ;;  %v12334_v63 = vpop.f32.mrb[5].mxu0 }
 0x433   : > { %v12335_v11 = vadd.f32 %v12334_v63, %v12333_v57  ;;  %v12336_v55 = vpop.f32.mrb[6].mxu0 }
 0x434   : > { %v12227_v46 = vpop.f32.mrb[232].mxu1  ;;  %v12337_v47 = vpop.f32.mrb[7].mxu0 }
 0x435   : > { %v12338_v0 = vadd.f32 %v12337_v47, %v12336_v55  ;;  %v12228_v8 = vpop.f32.mrb[233].mxu1  ;;  %v16611_v13 = vadd.f32 %v12335_v11, %v4302_v14 }
 0x436   : > { %v12229_v53 = vadd.f32 %v12228_v8, %v12227_v46  ;;  %v12230_v16 = vpop.f32.mrb[234].mxu1 }
 0x437   : > { %v12231_v25 = vpop.f32.mrb[235].mxu1  ;;  %v16613_v2 = vadd.f32 %v12338_v0, %v4305_v10 }
 0x438   : > { %v4310_v37 = vadd.f32 %v12229_v53, %v16432_v50  ;;  %v12232_v51 = vadd.f32 %v12231_v25, %v12230_v16 }
 0x439   : > { %v12339_v39 = vpop.f32.mrb[8].mxu0 }
 0x43a   : > { %v4313_v4 = vadd.f32 %v12232_v51, %v16436_v48  ;;  %v12340_v24 = vpop.f32.mrb[9].mxu0 }
 0x43b   : > { %v12341_v6 = vadd.f32 %v12340_v24, %v12339_v39  ;;  %v12342_v7 = vpop.f32.mrb[10].mxu0 }
 0x43c   : > { %v12233_v42 = vpop.f32.mrb[236].mxu1  ;;  %v12343_v44 = vpop.f32.mrb[11].mxu0 }
 0x43d   : > { %v12344_v38 = vadd.f32 %v12343_v44, %v12342_v7  ;;  %v12234_v62 = vpop.f32.mrb[237].mxu1  ;;  %v16617_v29 = vadd.f32 %v12341_v6, %v4310_v37 }
 0x43e   : > { %v12235_v61 = vadd.f32 %v12234_v62, %v12233_v42  ;;  %v12236_v45 = vpop.f32.mrb[238].mxu1 }
 0x43f   : > { %v12237_v5 = vpop.f32.mrb[239].mxu1  ;;  %v16619_v22 = vadd.f32 %v12344_v38, %v4313_v4 }
 0x440   : > { %v4318_v50 = vadd.f32 %v12235_v61, %v16443_v30  ;;  %v12238_v40 = vadd.f32 %v12237_v5, %v12236_v45 }
 0x441   : > { %v12345_v36 = vpop.f32.mrb[12].mxu0 }
 0x442   : > { %v4321_v48 = vadd.f32 %v12238_v40, %v16445_v34  ;;  %v12346_v14 = vpop.f32.mrb[13].mxu0 }
 0x443   : > { %v12347_v26 = vadd.f32 %v12346_v14, %v12345_v36  ;;  %v12348_v57 = vpop.f32.mrb[14].mxu0 }
 0x444   : > { %v12239_v10 = vpop.f32.mrb[240].mxu1  ;;  %v12349_v63 = vpop.f32.mrb[15].mxu0 }
 0x445   : > { %v12350_v11 = vadd.f32 %v12349_v63, %v12348_v57  ;;  %v12240_v55 = vpop.f32.mrb[241].mxu1  ;;  %v16623_v46 = vadd.f32 %v12347_v26, %v4318_v50 }
 0x446   : > { %v12241_v47 = vadd.f32 %v12240_v55, %v12239_v10  ;;  %v12242_v0 = vpop.f32.mrb[242].mxu1 }
 0x447   : > { %v12243_v8 = vpop.f32.mrb[243].mxu1  ;;  %v16625_v53 = vadd.f32 %v12350_v11, %v4321_v48 }
 0x448   : > { %v4326_v30 = vadd.f32 %v12241_v47, %v16455_v33  ;;  %v12244_v16 = vadd.f32 %v12243_v8, %v12242_v0 }
 0x449   : > { %v12351_v25 = vpop.f32.mrb[16].mxu0 }
 0x44a   : > { %v4329_v34 = vadd.f32 %v12244_v16, %v16457_v23  ;;  %v12352_v37 = vpop.f32.mrb[17].mxu0 }
 0x44b   : > { %v12353_v51 = vadd.f32 %v12352_v37, %v12351_v25  ;;  %v12354_v39 = vpop.f32.mrb[18].mxu0 }
 0x44c   : > { %v12245_v4 = vpop.f32.mrb[244].mxu1  ;;  %v12355_v24 = vpop.f32.mrb[19].mxu0 }
 0x44d   : > { %v12356_v6 = vadd.f32 %v12355_v24, %v12354_v39  ;;  %v12246_v7 = vpop.f32.mrb[245].mxu1  ;;  %v16629_v42 = vadd.f32 %v12353_v51, %v4326_v30 }
 0x44e   : > { %v12247_v44 = vadd.f32 %v12246_v7, %v12245_v4  ;;  %v12248_v38 = vpop.f32.mrb[246].mxu1 }
 0x44f   : > { %v12249_v62 = vpop.f32.mrb[247].mxu1  ;;  %v16631_v61 = vadd.f32 %v12356_v6, %v4329_v34 }
 0x450   : > { %v4334_v33 = vadd.f32 %v12247_v44, %v16461_v27  ;;  %v12250_v45 = vadd.f32 %v12249_v62, %v12248_v38 }
 0x451   : > { %v12357_v5 = vpop.f32.mrb[20].mxu0 }
 0x452   : > { %v4337_v23 = vadd.f32 %v12250_v45, %v16463_v18  ;;  %v12358_v50 = vpop.f32.mrb[21].mxu0 }
 0x453   : > { %v12359_v40 = vadd.f32 %v12358_v50, %v12357_v5  ;;  %v12360_v36 = vpop.f32.mrb[22].mxu0 }
 0x454   : > { %v12251_v48 = vpop.f32.mrb[248].mxu1  ;;  %v12361_v14 = vpop.f32.mrb[23].mxu0 }
 0x455   : > { %v12362_v26 = vadd.f32 %v12361_v14, %v12360_v36  ;;  %v12252_v57 = vpop.f32.mrb[249].mxu1  ;;  %v16635_v10 = vadd.f32 %v12359_v40, %v4334_v33 }
 0x456   : > { %v12253_v63 = vadd.f32 %v12252_v57, %v12251_v48  ;;  %v12254_v11 = vpop.f32.mrb[250].mxu1 }
 0x457   : > { %v12255_v55 = vpop.f32.mrb[251].mxu1  ;;  %v16637_v47 = vadd.f32 %v12362_v26, %v4337_v23 }
 0x458   : > { %v4342_v27 = vadd.f32 %v12253_v63, %v16473_v21  ;;  %v12256_v0 = vadd.f32 %v12255_v55, %v12254_v11 }
 0x459   : > { %v12363_v8 = vpop.f32.mrb[24].mxu0 }
 0x45a   : > { %v4345_v18 = vadd.f32 %v12256_v0, %v16475_v56  ;;  %v12364_v30 = vpop.f32.mrb[25].mxu0 }
 0x45b   : > { %v12365_v16 = vadd.f32 %v12364_v30, %v12363_v8  ;;  %v12366_v25 = vpop.f32.mrb[26].mxu0 }
 0x45c   : > { %v12257_v34 = vpop.f32.mrb[252].mxu1  ;;  %v12367_v37 = vpop.f32.mrb[27].mxu0 }
 0x45d   : > { %v12368_v51 = vadd.f32 %v12367_v37, %v12366_v25  ;;  %v12258_v39 = vpop.f32.mrb[253].mxu1  ;;  %v16641_v4 = vadd.f32 %v12365_v16, %v4342_v27 }
 0x45e   : > { %v12259_v24 = vadd.f32 %v12258_v39, %v12257_v34  ;;  %v12260_v6 = vpop.f32.mrb[254].mxu1 }
 0x45f   : > { %v12261_v7 = vpop.f32.mrb[255].mxu1  ;;  %v16643_v44 = vadd.f32 %v12368_v51, %v4345_v18 }
 0x460   : > { %v4350_v21 = vadd.f32 %v12259_v24, %v16479_v43  ;;  %v12262_v38 = vadd.f32 %v12261_v7, %v12260_v6 }
 0x461   : > { %v12369_v62 = vpop.f32.mrb[28].mxu0 }
 0x462   : > { %v4353_v56 = vadd.f32 %v12262_v38, %v16481_v31  ;;  %v12370_v33 = vpop.f32.mrb[29].mxu0 }
 0x463   : > { %v12371_v45 = vadd.f32 %v12370_v33, %v12369_v62  ;;  %v12372_v5 = vpop.f32.mrb[30].mxu0  ;;  %v4860_v33 = vld [vmem:[#allocation3 + $0x8] sm:$0x3] }
 0x464   : > { %v12373_v23 = vpop.f32.mrb[31].mxu0  ;;  %v12989_v50 = vpop.f32.mrb[0].mxu1 }
 0x465   : > { %v12374_v40 = vadd.f32 %v12373_v23, %v12372_v5  ;;  %v4560_v36 = vadd.f32 %v12989_v50, %v16509_v9  ;;  %v4551_v48 = vpop.f32.mrb[1].mxu1  ;;  %v16648_v14 = vadd.f32 %v12371_v45, %v4350_v21 }
 0x466   : > { %v4552_v26 = vadd.f32 %v4551_v48, %v16485_v32  ;;  %v12990_v57 = vpop.f32.mrb[2].mxu1 }
 0x467   : > { %v4680_v63 = vmax.f32 %v4560_v36, 0.0  ;;  %v4563_v43 = vadd.f32 %v12990_v57, %v16517_v1  ;;  %v4554_v11 = vpop.f32.mrb[3].mxu1  ;;  %v16652_v55 = vadd.f32 %v12374_v40, %v4353_v56  ;;  %v16670_v57 = vld [vmem:[#allocation2] sm:$0xff] }
 0x468   : > { %v4678_v31 = vmax.f32 %v4552_v26, 0.0  ;;  %v4555_v27 = vadd.f32 %v4554_v11, %v16493_v12 }
 0x469   : > { %v4681_v0 = vmax.f32 %v4563_v43, 0.0  ;;  %v4900_v43 = vrot.slane %v4860_v33, 1 }
 0x46a   : > { %v4710_v8 = vmax.f32 %v4678_v31, %v4680_v63  ;;  %v4679_v18 = vmax.f32 %v4555_v27, 0.0  ;;  %v4899_v63 = vrot.slane %v16670_v57, 1 }
 0x46c   : > { %v4734_v30 = vrot.slane %v4710_v8, 1  ;;  %v4711_v9 = vmax.f32 %v4679_v18, %v4681_v0  ;;  %v12993_v16 = vpop.f32.mrb[4].mxu1 }
 0x46d   : > { %v4576_v32 = vadd.f32 %v12993_v16, %v16554_v35  ;;  %v4567_v25 = vpop.f32.mrb[5].mxu1  ;;  %v4936_v16 = vrot.slane %v4860_v33, 2 }
 0x46e   : > { %v4750_v1 = vmax.f32 %v4710_v8, %v4734_v30  ;;  %v4803_v34 = vrot.slane %v4711_v9, 1  ;;  %v4568_v37 = vadd.f32 %v4567_v25, %v16527_v52  ;;  %v12994_v51 = vpop.f32.mrb[6].mxu1  ;;  %v4901_v30 = vsel %vm2992_vm6, %v4899_v63, %v4900_v43  ;;  %v13408_v43 = vld [vmem:[%s18135_s5 + $0x150] sm:$0xff]  }
 0x46f   : > { %v4684_v39 = vmax.f32 %v4576_v32, 0.0  ;;  %v4579_v12 = vadd.f32 %v12994_v51, %v16565_v19  ;;  %v4570_v24 = vpop.f32.mrb[7].mxu1 }
 0x470   : > { %4760 = vst.msk [vmem:[#allocation3 + $0x11] sm:$0x1] %vm4759_vm9, %v4750_v1  ;;  %v4819_v6 = vmax.f32 %v4711_v9, %v4803_v34  ;;  %v4682_v35 = vmax.f32 %v4568_v37, 0.0  ;;  %v4571_v7 = vadd.f32 %v4570_v24, %v16535_v3 }
 0x471   : > { %4769 = vst.msk [vmem:[#allocation3 + $0x10] sm:$0x4] %vm4768_vm10, %v4750_v1  ;;  %v4685_v21 = vmax.f32 %v4579_v12, 0.0 }
 0x472   : > { %4778 = vst.msk [vmem:[#allocation3 + $0xf] sm:$0x10] %vm4777_vm11, %v4750_v1  ;;  %4843 = vst.msk [vmem:[#allocation3 + $0x13] sm:$0x10] %vm4777_vm11, %v4819_v6  ;;  %v4712_v52 = vmax.f32 %v4682_v35, %v4684_v39  ;;  %v4683_v19 = vmax.f32 %v4571_v7, 0.0 }
 0x473   : > { %4787 = vst.msk [vmem:[#allocation3 + $0xe] sm:$0x40] %vm4786_vm12, %v4750_v1  ;;  %4851 = vst.msk [vmem:[#allocation3 + $0x12] sm:$0x40] %vm4786_vm12, %v4819_v6 }
 0x474   : > { %4827 = vst.msk [vmem:[#allocation3 + $0x15] sm:$0x1] %vm4759_vm9, %v4819_v6  ;;  %v4735_v38 = vrot.slane %v4712_v52, 1  ;;  %v4713_v62 = vmax.f32 %v4683_v19, %v4685_v21  ;;  %v12997_v56 = vpop.f32.mrb[8].mxu1 }
 0x475   : > { %4835 = vst.msk [vmem:[#allocation3 + $0x14] sm:$0x4] %vm4768_vm10, %v4819_v6  ;;  %v4592_v45 = vadd.f32 %v12997_v56, %v16581_v41  ;;  %v4583_v5 = vpop.f32.mrb[9].mxu1 }
 0x476   : > { %v4751_v23 = vmax.f32 %v4712_v52, %v4735_v38  ;;  %v4804_v3 = vrot.slane %v4713_v62, 1  ;;  %v4584_v50 = vadd.f32 %v4583_v5, %v16575_v58  ;;  %v12998_v40 = vpop.f32.mrb[10].mxu1  ;;  %v13403_v52 = vld [vmem:[%s18135_s5 + $0x100] sm:$0xff]  }
 0x477   : > { %v4688_v36 = vmax.f32 %v4592_v45, 0.0  ;;  %v4595_v48 = vadd.f32 %v12998_v40, %v16583_v49  ;;  %v4586_v26 = vpop.f32.mrb[11].mxu1 }
 0x478   : > { %4761 = vst.msk [vmem:[#allocation3 + $0x21] sm:$0x1] %vm4759_vm9, %v4751_v23  ;;  %v4820_v41 = vmax.f32 %v4713_v62, %v4804_v3  ;;  %v4686_v58 = vmax.f32 %v4584_v50, 0.0  ;;  %v4587_v11 = vadd.f32 %v4586_v26, %v16577_v59  ;;  %v4935_v59 = vrot.slane %v16670_v57, 2 }
 0x479   : > { %4770 = vst.msk [vmem:[#allocation3 + $0x20] sm:$0x4] %vm4768_vm10, %v4751_v23  ;;  %v4689_v31 = vmax.f32 %v4595_v48, 0.0  ;;  %v13407_v48 = vld [vmem:[%s18135_s5 + $0x180] sm:$0xff]  }
 0x47a   : > { %4779 = vst.msk [vmem:[#allocation3 + $0x1f] sm:$0x10] %vm4777_vm11, %v4751_v23  ;;  %v4862_v27 = vld [vmem:[#allocation3 + $0x18] sm:$0x3]  ;;  %4844 = vst.msk [vmem:[#allocation3 + $0x23] sm:$0x10] %vm4777_vm11, %v4820_v41  ;;  %v4714_v0 = vmax.f32 %v4686_v58, %v4688_v36  ;;  %v4937_v56 = vsel %vm3121_vm8, %v4935_v59, %v4936_v16 }
 0x47b   : > { %4788 = vst.msk [vmem:[#allocation3 + $0x1e] sm:$0x40] %vm4786_vm12, %v4751_v23  ;;  %4852 = vst.msk [vmem:[#allocation3 + $0x22] sm:$0x40] %vm4786_vm12, %v4820_v41  ;;  %v4687_v8 = vmax.f32 %v4587_v11, 0.0  ;;  %v4903_v9 = vrot.slane %v4862_v27, 1 }
 0x47c   : > { %v4861_v49 = vld [vmem:[#allocation3 + $0x10] sm:$0xff]  ;;  %4828 = vst.msk [vmem:[#allocation3 + $0x25] sm:$0x1] %vm4759_vm9, %v4820_v41  ;;  %v4736_v32 = vrot.slane %v4714_v0, 1  ;;  %v13001_v1 = vpop.f32.mrb[12].mxu1  ;;  %v4939_v37 = vrot.slane %v4862_v27, 2 }
 0x47d   : > { %4836 = vst.msk [vmem:[#allocation3 + $0x24] sm:$0x4] %vm4768_vm10, %v4820_v41  ;;  %v4902_v18 = vrot.slane %v4861_v49, 1  ;;  %v4715_v25 = vmax.f32 %v4687_v8, %v4689_v31  ;;  %v4938_v34 = vrot.slane %v4861_v49, 2  ;;  %v4608_v51 = vadd.f32 %v13001_v1, %v16596_v54  ;;  %v4599_v39 = vpop.f32.mrb[13].mxu1  ;;  %v13405_v36 = vld [vmem:[%s18135_s5 + $0x108] sm:$0xff]  }
 0x47e   : > { %v4752_v24 = vmax.f32 %v4714_v0, %v4736_v32  ;;  %v4600_v35 = vadd.f32 %v4599_v39, %v16587_v20  ;;  %v13002_v7 = vpop.f32.mrb[14].mxu1  ;;  %v4879_v54 = vpack.c.bf16 %v4861_v49, %v16670_v57  ;;  %v13404_v20 = vld [vmem:[%s18135_s5 + $0x148] sm:$0xff]   ;;  %v13409_v16 = vld [vmem:[%s18135_s5 + $0x110] sm:$0xff]  }
 0x47f   : > { %v16688_v12 = vsel %vm2992_vm6, %v4902_v18, %v4903_v9  ;;  %v4805_v6 = vrot.slane %v4715_v25, 1  ;;  %v4692_v19 = vmax.f32 %v4608_v51, 0.0  ;;  %v4611_v38 = vadd.f32 %v13002_v7, %v16601_v60  ;;  %v4602_v62 = vpop.f32.mrb[15].mxu1  ;;  %v13410_v41 = vld [vmem:[%s18135_s5 + $0x1c8] sm:$0xff]  }
 0x480   : > { %v4931_v21 = vpack.c.bf16 %v16688_v12, %v4901_v30  ;;  %4762 = vst.msk [vmem:[#allocation3 + $0x31] sm:$0x1] %vm4759_vm9, %v4752_v24  ;;  %v4690_v33 = vmax.f32 %v4600_v35, 0.0  ;;  %v4603_v45 = vadd.f32 %v4602_v62, %v16589_v15  ;;  %v16709_v5 = vsel %vm3121_vm8, %v4938_v34, %v4939_v37  ;;  %v13411_v32 = vld [vmem:[%s18135_s5 + $0x188] sm:$0xff]   ;;  %v13414_v34 = vld [vmem:[%s18135_s5 + $0x1d0] sm:$0xff]  }
 0x481   : > { %4771 = vst.msk [vmem:[#allocation3 + $0x30] sm:$0x4] %vm4768_vm10, %v4752_v24  ;;  %v4821_v60 = vmax.f32 %v4715_v25, %v4805_v6  ;;  %v4693_v23 = vmax.f32 %v4611_v38, 0.0  ;;  %v4967_v26 = vpack.c.bf16 %v16709_v5, %v4937_v56  ;;  %v13416_v56 = vld [vmem:[%s18135_s5 + $0x160] sm:$0xff]  }
 0x482   : > { %4780 = vst.msk [vmem:[#allocation3 + $0x2f] sm:$0x10] %vm4777_vm11, %v4752_v24  ;;  %5621 = vmatprep.mubr.bf16.mxu0 %v4931_v21  ;;  %v4716_v50 = vmax.f32 %v4690_v33, %v4692_v19  ;;  %v4691_v40 = vmax.f32 %v4603_v45, 0.0  ;;  %v16733_v9 = vld [vmem:[#allocation3 + $0x28] sm:$0x3]  ;;  %v13415_v19 = vld [vmem:[%s18135_s5 + $0x190] sm:$0xff]  }
 0x483   : > { %4789 = vst.msk [vmem:[#allocation3 + $0x2e] sm:$0x40] %vm4786_vm12, %v4752_v24  ;;  %5622 = vmatmul.mubr.bf16.vlgmr.msra.gmra.mrb[32].mxu0 %v4879_v54  ;;  %4853 = vst.msk [vmem:[#allocation3 + $0x32] sm:$0x40] %vm4786_vm12, %v4821_v60  ;;  %v4906_v7 = vrot.slane %v16733_v9, 1 }
 0x484   : > { %v16711_v3 = vld [vmem:[#allocation3 + $0x20] sm:$0xff]  ;;  %4829 = vst.msk [vmem:[#allocation3 + $0x35] sm:$0x1] %vm4759_vm9, %v4821_v60  ;;  %12480 = vmatpush3.bf16.msra.mxu0 %v13403_v52  ;;  %v4737_v58 = vrot.slane %v4716_v50, 1  ;;  %v4717_v11 = vmax.f32 %v4691_v40, %v4693_v23  ;;  %v13005_v31 = vpop.f32.mrb[16].mxu1 }
 0x485   : > { %4837 = vst.msk [vmem:[#allocation3 + $0x34] sm:$0x4] %vm4768_vm10, %v4821_v60  ;;  %v4971_v15 = vpack.c.bf16 %v16711_v3, %v4861_v49  ;;  %12481 = vmatprep.subr.bf16.mxu0 %v13404_v20  ;;  %v4624_v49 = vadd.f32 %v13005_v31, %v16611_v13  ;;  %v4615_v27 = vpop.f32.mrb[17].mxu1  ;;  %v4905_v35 = vrot.slane %v16711_v3, 1  ;;  %v4941_v38 = vrot.slane %v16711_v3, 2  ;;  %v13418_v20 = vld [vmem:[%s18135_s5 + $0x1d8] sm:$0xff]  }
 0x486   : > { %4845 = vst.msk [vmem:[#allocation3 + $0x33] sm:$0x10] %vm4777_vm11, %v4821_v60  ;;  %v4753_v0 = vmax.f32 %v4716_v50, %v4737_v58  ;;  %v4806_v8 = vrot.slane %v4717_v11, 1  ;;  %v4616_v18 = vadd.f32 %v4615_v27, %v16605_v17  ;;  %v13006_v30 = vpop.f32.mrb[18].mxu1  ;;  %v13412_v17 = vld [vmem:[%s18135_s5 + $0x158] sm:$0xff]  }
 0x487   : > { %5686 = vmatprep.mubr.bf16.mxu1 %v4971_v15  ;;  %v4696_v13 = vmax.f32 %v4624_v49, 0.0  ;;  %v4627_v25 = vadd.f32 %v13006_v30, %v16613_v2  ;;  %v4618_v1 = vpop.f32.mrb[19].mxu1  ;;  %v13419_v49 = vld [vmem:[%s18135_s5 + $0x198] sm:$0xff]   ;;  %v13422_v30 = vld [vmem:[%s18135_s5 + $0x1e0] sm:$0xff]  }
 0x488   : > { %5687 = vmatmul.mubr.bf16.vlgmr.msra.gmra.mrb[32].mxu1 %v4967_v26  ;;  %12482 = vmatpush3.bf16.msra.mxu0 %v13405_v36  ;;  %4763 = vst.msk [vmem:[#allocation3 + $0x41] sm:$0x1] %vm4759_vm9, %v4753_v0  ;;  %v4822_v2 = vmax.f32 %v4717_v11, %v4806_v8  ;;  %v4694_v37 = vmax.f32 %v4616_v18, 0.0  ;;  %v4619_v51 = vadd.f32 %v4618_v1, %v16607_v28  ;;  %v13413_v28 = vld [vmem:[%s18135_s5 + $0x118] sm:$0xff]   ;;  %v4942_v26 = vrot.slane %v16733_v9, 2  ;;  %v13420_v18 = vld [vmem:[%s18135_s5 + $0x168] sm:$0xff]  }
 0x489   : > { %12520 = vmatpush3.bf16.msra.mxu1 %v13407_v48  ;;  %12483 = vmatprep.subr.bf16.mxu0 %v13408_v43  ;;  %4772 = vst.msk [vmem:[#allocation3 + $0x40] sm:$0x4] %vm4768_vm10, %v4753_v0  ;;  %v4697_v24 = vmax.f32 %v4627_v25, 0.0  ;;  %v16778_v36 = vsel %vm2992_vm6, %v4905_v35, %v4906_v7 }
 0x48a   : > { %12521 = vmatprep.subr.bf16.mxu1 %v13410_v41  ;;  %4781 = vst.msk [vmem:[#allocation3 + $0x3f] sm:$0x10] %vm4777_vm11, %v4753_v0  ;;  %v4866_v6 = vld [vmem:[#allocation3 + $0x38] sm:$0x3]  ;;  %4846 = vst.msk [vmem:[#allocation3 + $0x43] sm:$0x10] %vm4777_vm11, %v4822_v2  ;;  %v4718_v21 = vmax.f32 %v4694_v37, %v4696_v13  ;;  %v16823_v1 = vsel %vm3121_vm8, %v4941_v38, %v4942_v26 }
 0x48b   : > { %4790 = vst.msk [vmem:[#allocation3 + $0x3e] sm:$0x40] %vm4786_vm12, %v4753_v0  ;;  %4854 = vst.msk [vmem:[#allocation3 + $0x42] sm:$0x40] %vm4786_vm12, %v4822_v2  ;;  %v4695_v52 = vmax.f32 %v4619_v51, 0.0  ;;  %v4909_v54 = vrot.slane %v4866_v6, 1 }
 0x48c   : > { %4830 = vst.msk [vmem:[#allocation3 + $0x45] sm:$0x1] %vm4759_vm9, %v4822_v2  ;;  %12484 = vmatpush3.bf16.msra.mxu0 %v13409_v16  ;;  %v4738_v33 = vrot.slane %v4718_v21, 1  ;;  %v13009_v23 = vpop.f32.mrb[20].mxu1  ;;  %v4945_v50 = vrot.slane %v4866_v6, 2  ;;  %v13424_v51 = vld [vmem:[%s18135_s5 + $0x170] sm:$0xff]  }
 0x48d   : > { %v16753_v39 = vld [vmem:[#allocation3 + $0x30] sm:$0xff]  ;;  %4838 = vst.msk [vmem:[#allocation3 + $0x44] sm:$0x4] %vm4768_vm10, %v4822_v2  ;;  %12522 = vmatpush3.bf16.msra.mxu1 %v13411_v32  ;;  %12485 = vmatprep.subr.bf16.mxu0 %v13412_v17  ;;  %v4719_v45 = vmax.f32 %v4695_v52, %v4697_v24  ;;  %v4640_v40 = vadd.f32 %v13009_v23, %v16623_v46  ;;  %v4631_v15 = vpop.f32.mrb[21].mxu1 }
 0x48e   : > { %v4908_v62 = vrot.slane %v16753_v39, 1  ;;  %12523 = vmatprep.subr.bf16.mxu1 %v13414_v34  ;;  %v4944_v60 = vrot.slane %v16753_v39, 2  ;;  %v4754_v43 = vmax.f32 %v4718_v21, %v4738_v33  ;;  %v4632_v58 = vadd.f32 %v4631_v15, %v16617_v29  ;;  %v13010_v11 = vpop.f32.mrb[22].mxu1  ;;  %v13417_v46 = vld [vmem:[%s18135_s5 + $0x120] sm:$0xff]   ;;  %v13421_v34 = vld [vmem:[%s18135_s5 + $0x128] sm:$0xff]   ;;  %v13430_v33 = vld [vmem:[%s18135_s5 + $0x1f0] sm:$0xff]  }
 0x48f   : > { %v4807_v41 = vrot.slane %v4719_v45, 1  ;;  %v16797_v27 = vpack.c.bf16 %v16753_v39, %v16711_v3  ;;  %v4700_v29 = vmax.f32 %v4640_v40, 0.0  ;;  %v4643_v0 = vadd.f32 %v13010_v11, %v16625_v53  ;;  %v4634_v8 = vpop.f32.mrb[23].mxu1  ;;  %v13423_v2 = vld [vmem:[%s18135_s5 + $0x1a0] sm:$0xff]   ;;  %v13431_v11 = vld [vmem:[%s18135_s5 + $0x1b0] sm:$0xff]  }
 0x490   : > { %v16781_v48 = vsel %vm2992_vm6, %v4908_v62, %v4909_v54  ;;  %12486 = vmatpush3.bf16.msra.mxu0 %v13413_v28  ;;  %4764 = vst.msk [vmem:[#allocation3 + $0x51] sm:$0x1] %vm4759_vm9, %v4754_v43  ;;  %v4698_v3 = vmax.f32 %v4632_v58, 0.0  ;;  %v4635_v9 = vadd.f32 %v4634_v8, %v16619_v22  ;;  %v16812_v16 = vsel %vm3121_vm8, %v4944_v60, %v4945_v50  ;;  %v13425_v54 = vld [vmem:[%s18135_s5 + $0x130] sm:$0xff]   ;;  %v13433_v8 = vld [vmem:[%s18135_s5 + $0x1f8] sm:$0xff]  }
 0x491   : > { %v16787_v31 = vpack.c.bf16 %v16781_v48, %v16778_v36  ;;  %12524 = vmatpush3.bf16.msra.mxu1 %v13415_v19  ;;  %12487 = vmatprep.subr.bf16.mxu0 %v13416_v56  ;;  %4773 = vst.msk [vmem:[#allocation3 + $0x50] sm:$0x4] %vm4768_vm10, %v4754_v43  ;;  %v4823_v53 = vmax.f32 %v4719_v45, %v4807_v41  ;;  %v4701_v32 = vmax.f32 %v4643_v0, 0.0  ;;  %v16885_v0 = vld [vmem:[%s18135_s5 + $0x200] sm:$0xff]  }
 0x492   : > { %12525 = vmatprep.subr.bf16.mxu1 %v13418_v20  ;;  %4782 = vst.msk [vmem:[#allocation3 + $0x4f] sm:$0x10] %vm4777_vm11, %v4754_v43  ;;  %v4720_v25 = vmax.f32 %v4698_v3, %v4700_v29  ;;  %v4699_v22 = vmax.f32 %v4635_v9, 0.0  ;;  %v16835_v37 = vpack.c.bf16 %v16812_v16, %v16823_v1  ;;  %v16846_v62 = vld [vmem:[#allocation3 + $0x48] sm:$0x3] }
 0x493   : > { %4791 = vst.msk [vmem:[#allocation3 + $0x4e] sm:$0x40] %vm4786_vm12, %v4754_v43  ;;  %5629 = vmatprep.mubr.bf16.mxu0 %v16787_v31  ;;  %4855 = vst.msk [vmem:[#allocation3 + $0x52] sm:$0x40] %vm4786_vm12, %v4823_v53  ;;  %v4912_v43 = vrot.slane %v16846_v62, 1 }
 0x494   : > { %5630 = vmatmul.mubr.bf16.gmra.mrb[36].mxu0 %v16797_v27  ;;  %v16816_v13 = vld [vmem:[#allocation3 + $0x40] sm:$0xff]  ;;  %4831 = vst.msk [vmem:[#allocation3 + $0x55] sm:$0x1] %vm4759_vm9, %v4823_v53  ;;  %v4739_v24 = vrot.slane %v4720_v25, 1  ;;  %v4721_v6 = vmax.f32 %v4699_v22, %v4701_v32  ;;  %v13013_v35 = vpop.f32.mrb[24].mxu1 }
 0x495   : > { %4839 = vst.msk [vmem:[#allocation3 + $0x54] sm:$0x4] %vm4768_vm10, %v4823_v53  ;;  %v4972_v17 = vpack.c.bf16 %v16816_v13, %v16753_v39  ;;  %12488 = vmatpush3.bf16.msra.mxu0 %v13417_v46  ;;  %12526 = vmatpush3.bf16.msra.mxu1 %v13419_v49  ;;  %v13426_v39 = vld [vmem:[%s18135_s5 + $0x1e8] sm:$0xff]   ;;  %v4656_v7 = vadd.f32 %v13013_v35, %v16635_v10  ;;  %v4647_v21 = vpop.f32.mrb[25].mxu1  ;;  %v4911_v26 = vrot.slane %v16816_v13, 1  ;;  %v4947_v46 = vrot.slane %v16816_v13, 2 }
 0x496   : > { %4847 = vst.msk [vmem:[#allocation3 + $0x53] sm:$0x10] %vm4777_vm11, %v4823_v53  ;;  %12489 = vmatprep.subr.bf16.mxu0 %v13420_v18  ;;  %12527 = vmatprep.subr.bf16.mxu1 %v13422_v30  ;;  %v4755_v52 = vmax.f32 %v4720_v25, %v4739_v24  ;;  %v4808_v28 = vrot.slane %v4721_v6, 1  ;;  %v4648_v19 = vadd.f32 %v4647_v21, %v16629_v42  ;;  %v13014_v38 = vpop.f32.mrb[26].mxu1  ;;  %v13427_v10 = vld [vmem:[%s18135_s5 + $0x1a8] sm:$0xff]   ;;  %v13428_v42 = vld [vmem:[%s18135_s5 + $0x178] sm:$0xff]  }
 0x497   : > { %5694 = vmatprep.mubr.bf16.mxu1 %v4972_v17  ;;  %v4704_v56 = vmax.f32 %v4656_v7, 0.0  ;;  %v4659_v20 = vadd.f32 %v13014_v38, %v16637_v47  ;;  %v4650_v60 = vpop.f32.mrb[27].mxu1  ;;  %v16893_v22 = vsel %vm2992_vm6, %v4911_v26, %v4912_v43 }
 0x498   : > { %5695 = vmatmul.mubr.bf16.gmra.mrb[36].mxu1 %v16835_v37  ;;  %4765 = vst.msk [vmem:[#allocation3 + $0x61] sm:$0x1] %vm4759_vm9, %v4755_v52  ;;  %v4824_v47 = vmax.f32 %v4721_v6, %v4808_v28  ;;  %v4702_v45 = vmax.f32 %v4648_v19, 0.0  ;;  %v4651_v23 = vadd.f32 %v4650_v60, %v16631_v61  ;;  %v13429_v61 = vld [vmem:[%s18135_s5 + $0x138] sm:$0xff]  }
 0x499   : > { %12490 = vmatpush3.bf16.msra.mxu0 %v13421_v34  ;;  %12528 = vmatpush3.bf16.msra.mxu1 %v13423_v2  ;;  %4774 = vst.msk [vmem:[#allocation3 + $0x60] sm:$0x4] %vm4768_vm10, %v4755_v52  ;;  %v4705_v40 = vmax.f32 %v4659_v20, 0.0  ;;  %v4948_v34 = vrot.slane %v16846_v62, 2 }
 0x49a   : > { %12491 = vmatprep.subr.bf16.mxu0 %v13424_v51  ;;  %12529 = vmatprep.subr.bf16.mxu1 %v13426_v39  ;;  %4783 = vst.msk [vmem:[#allocation3 + $0x5f] sm:$0x10] %vm4777_vm11, %v4755_v52  ;;  %v4870_v15 = vld [vmem:[#allocation3 + $0x58] sm:$0x3]  ;;  %4848 = vst.msk [vmem:[#allocation3 + $0x63] sm:$0x10] %vm4777_vm11, %v4824_v47  ;;  %v4722_v41 = vmax.f32 %v4702_v45, %v4704_v56 }
 0x49b   : > { %4792 = vst.msk [vmem:[#allocation3 + $0x5e] sm:$0x40] %vm4786_vm12, %v4755_v52  ;;  %4856 = vst.msk [vmem:[#allocation3 + $0x62] sm:$0x40] %vm4786_vm12, %v4824_v47  ;;  %v4703_v58 = vmax.f32 %v4651_v23, 0.0  ;;  %v4915_v29 = vrot.slane %v4870_v15, 1 }
 0x49c   : > { %4832 = vst.msk [vmem:[#allocation3 + $0x65] sm:$0x1] %vm4759_vm9, %v4824_v47  ;;  %v4740_v30 = vrot.slane %v4722_v41, 1  ;;  %v13017_v3 = vpop.f32.mrb[28].mxu1  ;;  %v4951_v9 = vrot.slane %v4870_v15, 2 }
 0x49d   : > { %v16866_v50 = vld [vmem:[#allocation3 + $0x50] sm:$0xff]  ;;  %4840 = vst.msk [vmem:[#allocation3 + $0x64] sm:$0x4] %vm4768_vm10, %v4824_v47  ;;  %12492 = vmatpush3.bf16.msra.mxu0 %v13425_v54  ;;  %12530 = vmatpush3.bf16.msra.mxu1 %v13427_v10  ;;  %v4723_v53 = vmax.f32 %v4703_v58, %v4705_v40  ;;  %v4672_v32 = vadd.f32 %v13017_v3, %v16648_v14  ;;  %v4663_v25 = vpop.f32.mrb[29].mxu1  ;;  %v13434_v14 = vld [vmem:[%s18135_s5 + $0x1b8] sm:$0xff]  }
 0x49e   : > { %v4914_v49 = vrot.slane %v16866_v50, 1  ;;  %12493 = vmatprep.subr.bf16.mxu0 %v13428_v42  ;;  %12531 = vmatprep.subr.bf16.mxu1 %v13430_v33  ;;  %v4950_v18 = vrot.slane %v16866_v50, 2  ;;  %v4756_v2 = vmax.f32 %v4722_v41, %v4740_v30  ;;  %v4664_v39 = vadd.f32 %v4663_v25, %v16641_v4  ;;  %v13018_v24 = vpop.f32.mrb[30].mxu1 }
 0x49f   : > { %v4809_v51 = vrot.slane %v4723_v53, 1  ;;  %v16909_v35 = vpack.c.bf16 %v16866_v50, %v16816_v13  ;;  %v4708_v7 = vmax.f32 %v4672_v32, 0.0  ;;  %v4675_v21 = vadd.f32 %v13018_v24, %v16652_v55  ;;  %v4666_v52 = vpop.f32.mrb[31].mxu1 }
 0x4a0   : > { %v16896_v17 = vsel %vm2992_vm6, %v4914_v49, %v4915_v29  ;;  %4766 = vst.msk [vmem:[#allocation3 + $0x71] sm:$0x1] %vm4759_vm9, %v4756_v2  ;;  %v4706_v28 = vmax.f32 %v4664_v39, 0.0  ;;  %v4667_v13 = vadd.f32 %v4666_v52, %v16643_v44  ;;  %v16919_v19 = vsel %vm3121_vm8, %v4950_v18, %v4951_v9 }
 0x4a1   : > { %v16902_v6 = vpack.c.bf16 %v16896_v17, %v16893_v22  ;;  %12494 = vmatpush3.bf16.msra.mxu0 %v13429_v61  ;;  %12532 = vmatpush3.bf16.msra.mxu1 %v13431_v11  ;;  %4775 = vst.msk [vmem:[#allocation3 + $0x70] sm:$0x4] %vm4768_vm10, %v4756_v2  ;;  %v4825_v4 = vmax.f32 %v4723_v53, %v4809_v51  ;;  %v4709_v55 = vmax.f32 %v4675_v21, 0.0 }
 0x4a2   : > { %13019 = vmatprep.subr.bf16.mxu0 %v16885_v0  ;;  %12533 = vmatprep.subr.bf16.mxu1 %v13433_v8  ;;  %4784 = vst.msk [vmem:[#allocation3 + $0x6f] sm:$0x10] %vm4777_vm11, %v4756_v2  ;;  %v4724_v62 = vmax.f32 %v4706_v28, %v4708_v7  ;;  %v4707_v54 = vmax.f32 %v4667_v13, 0.0  ;;  %v4949_v44 = vsel %vm3121_vm8, %v4947_v46, %v4948_v34  ;;  %v4872_v42 = vld [vmem:[#allocation3 + $0x68] sm:$0x3]  ;;  %v13436_v34 = vld [vmem:[%s18135_s5 + $0x210] sm:$0xff]  }
 0x4a3   : > { %4793 = vst.msk [vmem:[#allocation3 + $0x6e] sm:$0x40] %vm4786_vm12, %v4756_v2  ;;  %5637 = vmatprep.mubr.bf16.mxu0 %v16902_v6  ;;  %4857 = vst.msk [vmem:[#allocation3 + $0x72] sm:$0x40] %vm4786_vm12, %v4825_v4  ;;  %v16930_v56 = vpack.c.bf16 %v16919_v19, %v4949_v44  ;;  %v4954_v8 = vrot.slane %v4872_v42, 2  ;;  %v4989_v18 = vpack.c.bf16 %v16823_v1, %v16709_v5  ;;  %v13435_v5 = vld [vmem:[%s18135_s5 + $0x208] sm:$0xff]  }
 0x4a4   : > { %5638 = vmatmul.mubr.bf16.gmra.mrb[40].mxu0 %v16909_v35  ;;  %v4871_v38 = vld [vmem:[#allocation3 + $0x60] sm:$0xff]  ;;  %4833 = vst.msk [vmem:[#allocation3 + $0x75] sm:$0x1] %vm4759_vm9, %v4825_v4  ;;  %v4741_v20 = vrot.slane %v4724_v62, 1  ;;  %v4725_v60 = vmax.f32 %v4707_v54, %v4709_v55  ;;  %v4981_v25 = vpack.c.bf16 %v16778_v36, %v16688_v12  ;;  %v4990_v1 = vpack.c.bf16 %v4949_v44, %v16812_v16  ;;  %v13441_v28 = vld [vmem:[%s18135_s5 + $0x238] sm:$0xff]  }
 0x4a5   : > { %4841 = vst.msk [vmem:[#allocation3 + $0x74] sm:$0x4] %vm4768_vm10, %v4825_v4  ;;  %v4973_v10 = vpack.c.bf16 %v4871_v38, %v16866_v50  ;;  %12534 = vmatpush3.bf16.msra.mxu1 %v13434_v14  ;;  %v4917_v23 = vrot.slane %v4871_v38, 1  ;;  %v4918_v50 = vrot.slane %v4872_v42, 1  ;;  %v4953_v29 = vrot.slane %v4871_v38, 2  ;;  %v13439_v14 = vld [vmem:[%s18135_s5 + $0x228] sm:$0xff]  }
 0x4a6   : > { %4849 = vst.msk [vmem:[#allocation3 + $0x73] sm:$0x10] %vm4777_vm11, %v4825_v4  ;;  %v4757_v33 = vmax.f32 %v4724_v62, %v4741_v20  ;;  %v4810_v47 = vrot.slane %v4725_v60, 1  ;;  %v4982_v36 = vpack.c.bf16 %v16893_v22, %v16781_v48  ;;  %v4878_v48 = vld [vmem:[#allocation3 + $0x98] sm:$0x3] }
 0x4a7   : > { %5702 = vmatprep.mubr.bf16.mxu1 %v4973_v10  ;;  %v4919_v58 = vsel %vm2992_vm6, %v4917_v23, %v4918_v50  ;;  %v4955_v3 = vsel %vm3121_vm8, %v4953_v29, %v4954_v8  ;;  %v4997_v24 = vrot.slane %v4878_v48, 1  ;;  %v5002_v13 = vrot.slane %v4878_v48, 2  ;;  %v13444_v62 = vld [vmem:[#allocation10 + $0x4] ss:$8 sps:$4 sm:$0xff]   ;;  %v13447_v54 = vld [vmem:[#allocation10 + $0x14] ss:$8 sps:$4 sm:$0xff]  }
 0x4a8   : > { %5703 = vmatmul.mubr.bf16.gmra.mrb[40].mxu1 %v16930_v56  ;;  %4767 = vst.msk [vmem:[#allocation3 + $0x81] sm:$0x1] %vm4759_vm9, %v4757_v33  ;;  %v4826_v45 = vmax.f32 %v4725_v60, %v4810_v47  ;;  %v4991_v16 = vpack.c.bf16 %v4955_v3, %v16919_v19  ;;  %6954 = vmatprep.subr.bf16.mxu1 %v13444_v62  ;;  %v13448_v44 = vld [vmem:[#allocation10 + $0x20] ss:$8 sps:$4 sm:$0xff]   ;;  %v13450_v10 = vld [vmem:[#allocation10 + $0x24] ss:$8 sps:$4 sm:$0xff]  }
 0x4a9   : > { %4776 = vst.msk [vmem:[#allocation3 + $0x80] sm:$0x4] %vm4768_vm10, %v4757_v33  ;;  %v5003_v19 = vsel %vm3121_vm8, %v4935_v59, %v5002_v13  ;;  %v13453_v20 = vld [vmem:[#allocation10 + $0x34] ss:$8 sps:$4 sm:$0xff]   ;;  %v13456_v59 = vld [vmem:[#allocation10 + $0x44] ss:$8 sps:$4 sm:$0xff]  }
 0x4aa   : > { %4785 = vst.msk [vmem:[#allocation3 + $0x7f] sm:$0x10] %vm4777_vm11, %v4757_v33  ;;  %v4874_v15 = vld [vmem:[#allocation3 + $0x78] sm:$0x3]  ;;  %4850 = vst.msk [vmem:[#allocation3 + $0x83] sm:$0x10] %vm4777_vm11, %v4826_v45 }
 0x4ab   : > { %4794 = vst.msk [vmem:[#allocation3 + $0x7e] sm:$0x40] %vm4786_vm12, %v4757_v33  ;;  %4858 = vst.msk [vmem:[#allocation3 + $0x82] sm:$0x40] %vm4786_vm12, %v4826_v45  ;;  %v4921_v43 = vrot.slane %v4874_v15, 1  ;;  %v4957_v11 = vrot.slane %v4874_v15, 2 }
 0x4ac   : > { %4834 = vst.msk [vmem:[#allocation3 + $0x85] sm:$0x1] %vm4759_vm9, %v4826_v45  ;;  %v13459_v60 = vld [vmem:[#allocation10 + $0x54] ss:$8 sps:$4 sm:$0xff]   ;;  %v13457_v42 = vld [vmem:[#allocation10 + $0x50] ss:$8 sps:$4 sm:$0xff]  }
 0x4ad   : > { %v4873_v40 = vld [vmem:[#allocation3 + $0x70] sm:$0xff]  ;;  %4842 = vst.msk [vmem:[#allocation3 + $0x84] sm:$0x4] %vm4768_vm10, %v4826_v45  ;;  %v13460_v33 = vld [vmem:[#allocation10 + $0x60] ss:$8 sps:$4 sm:$0xff]  }
 0x4ae   : > { %v4920_v26 = vrot.slane %v4873_v40, 1  ;;  %v4956_v41 = vrot.slane %v4873_v40, 2  ;;  %v4882_v49 = vpack.c.bf16 %v4873_v40, %v4871_v38  ;;  %v13442_v38 = vld [vmem:[#allocation10] ss:$8 sps:$4 sm:$0xff]   ;;  %v13462_v47 = vld [vmem:[#allocation10 + $0x64] ss:$8 sps:$4 sm:$0xff]  }
 0x4af   : > { %v13465_v45 = vld [vmem:[#allocation10 + $0x74] ss:$8 sps:$4 sm:$0xff]   ;;  %v13463_v23 = vld [vmem:[#allocation10 + $0x70] ss:$8 sps:$4 sm:$0xff]   ;;  %v13466_v50 = vld [vmem:[#allocation10 + $0x80] ss:$8 sps:$4 sm:$0xff]  }
 0x4b0   : > { %v16943_v61 = vsel %vm2992_vm6, %v4920_v26, %v4921_v43  ;;  %v4958_v30 = vsel %vm3121_vm8, %v4956_v41, %v4957_v11  ;;  %v13471_v15 = vld [vmem:[#allocation10 + $0x94] ss:$8 sps:$4 sm:$0xff]   ;;  %v13469_v26 = vld [vmem:[#allocation10 + $0x90] ss:$8 sps:$4 sm:$0xff]   ;;  %v13472_v43 = vld [vmem:[#allocation10 + $0xa0] ss:$8 sps:$4 sm:$0xff]  }
 0x4b1   : > { %v4934_v46 = vpack.c.bf16 %v16943_v61, %v4919_v58  ;;  %v4970_v32 = vpack.c.bf16 %v4958_v30, %v4955_v3  ;;  %v13474_v41 = vld [vmem:[#allocation10 + $0xa4] ss:$8 sps:$4 sm:$0xff]   ;;  %v13478_v11 = vld [vmem:[#allocation10 + $0xc0] ss:$8 sps:$4 sm:$0xff]   ;;  %v13481_v29 = vld [vmem:[#allocation10 + $0xd0] ss:$8 sps:$4 sm:$0xff]  }
 0x4b2   : > { %v4876_v12 = vld [vmem:[#allocation3 + $0x88] sm:$0x3]  ;;  %v13484_v8 = vld [vmem:[#allocation10 + $0xe0] ss:$8 sps:$4 sm:$0xff]  }
 0x4b3   : > { %5645 = vmatprep.mubr.bf16.mxu0 %v4934_v46  ;;  %v4986_v2 = vrot.slane %v4876_v12, 2  ;;  %v4978_v39 = vrot.slane %v4876_v12, 1  ;;  %v13492_v3 = vld [vmem:[#allocation10 + $0x104] ss:$8 sps:$4 sm:$0xff]  }
 0x4b4   : > { %5646 = vmatmul.mubr.bf16.gmra.mrb[44].mxu0 %v4882_v49  ;;  %v4875_v53 = vld [vmem:[#allocation3 + $0x80] sm:$0xff] }
 0x4b5   : > { %5751 = vmatprep.mubr.bf16.mxu0 %v4989_v18  ;;  %v4974_v9 = vpack.c.bf16 %v4875_v53, %v4873_v40  ;;  %v4977_v51 = vrot.slane %v4875_v53, 1  ;;  %v13468_v40 = vld [vmem:[#allocation10 + $0x84] ss:$8 sps:$4 sm:$0xff]  }
 0x4b6   : > { %v13486_v18 = vld [vmem:[#allocation10 + $0xe4] ss:$8 sps:$4 sm:$0xff]  }
 0x4b7   : > { %5710 = vmatprep.mubr.bf16.mxu1 %v4974_v9  ;;  %v4979_v21 = vsel %vm2992_vm6, %v4977_v51, %v4978_v39 }
 0x4b8   : > { %5711 = vmatmul.mubr.bf16.gmra.mrb[44].mxu1 %v4970_v32  ;;  %v4984_v4 = vpack.c.bf16 %v4979_v21, %v16943_v61  ;;  %v13475_v61 = vld [vmem:[#allocation10 + $0xb0] ss:$8 sps:$4 sm:$0xff]  }
 0x4b9   : > { %5816 = vmatprep.mubr.bf16.mxu1 %v16787_v31  ;;  %v13437_v31 = vld [vmem:[%s18135_s5 + $0x218] sm:$0xff]  }
 0x4bc   : > { %5752 = vmatmul.mubr.bf16.vlgmr.msra.gmra.mrb[48].mxu0 %v4981_v25 }
 0x4bd   : > { %5759 = vmatprep.mubr.bf16.mxu0 %v4990_v1  ;;  %13020 = vmatpush3.bf16.msra.mxu0 %v16885_v0  ;;  %v4985_v0 = vrot.slane %v4875_v53, 2  ;;  %v10499_v1 = vld [vmem:[#allocation8] ss:$0 sm:$0xff] }
 0x4be   : > { %13021 = vmatprep.subr.bf16.mxu0 %v13435_v5 }
 0x4bf   : > { %v4987_v22 = vsel %vm3121_vm8, %v4985_v0, %v4986_v2 }
 0x4c0   : > { %5817 = vmatmul.mubr.bf16.vlgmr.msra.gmra.mrb[48].mxu1 %v16797_v27  ;;  %v13438_v27 = vld [vmem:[%s18135_s5 + $0x220] sm:$0xff]   ;;  %v4992_v7 = vpack.c.bf16 %v4987_v22, %v4958_v30  ;;  %v5005_v55 = vpack.c.bf16 %v5003_v19, %v4987_v22  ;;  %v13489_v30 = vld [vmem:[#allocation10 + $0xf4] ss:$8 sps:$4 sm:$0xff]  }
 0x4c1   : > { %13022 = vmatpush3.bf16.msra.mxu0 %v13435_v5  ;;  %5824 = vmatprep.mubr.bf16.mxu1 %v16902_v6  ;;  %v4983_v6 = vpack.c.bf16 %v4919_v58, %v16896_v17  ;;  %v13440_v17 = vld [vmem:[%s18135_s5 + $0x230] sm:$0xff]  }
 0x4c2   : > { %13023 = vmatprep.subr.bf16.mxu0 %v13436_v34  ;;  %6955 = vmatpush1.bf16.msra.mxu1 %v13442_v38  ;;  %v13477_v58 = vld [vmem:[#allocation10 + $0xb4] ss:$8 sps:$4 sm:$0xff]  }
 0x4c3   : > { %6956 = vmatprep.subr.bf16.mxu1 %v13447_v54 }
 0x4c4   : > { %5760 = vmatmul.mubr.bf16.gmra.mrb[52].mxu0 %v4982_v36 }
 0x4c5   : > { %5767 = vmatprep.mubr.bf16.mxu0 %v4991_v16  ;;  %13024 = vmatpush3.bf16.msra.mxu0 %v13436_v34 }
 0x4c6   : > { %13025 = vmatprep.subr.bf16.mxu0 %v13437_v31 }
 0x4c8   : > { %5825 = vmatmul.mubr.bf16.gmra.mrb[52].mxu1 %v16909_v35  ;;  %v4998_v35 = vsel %vm2992_vm6, %v4899_v63, %v4997_v24  ;;  %v4993_v63 = vpack.c.bf16 %v16670_v57, %v4875_v53  ;;  %v13454_v57 = vld [vmem:[#allocation10 + $0x40] ss:$8 sps:$4 sm:$0xff]   ;;  %v13487_v53 = vld [vmem:[#allocation10 + $0xf0] ss:$8 sps:$4 sm:$0xff]  }
 0x4c9   : > { %13026 = vmatpush3.bf16.msra.mxu0 %v13437_v31  ;;  %5832 = vmatprep.mubr.bf16.mxu1 %v4934_v46  ;;  %v5000_v52 = vpack.c.bf16 %v4998_v35, %v4979_v21  ;;  %v13480_v46 = vld [vmem:[#allocation10 + $0xc4] ss:$8 sps:$4 sm:$0xff]  }
 0x4ca   : > { %13027 = vmatprep.subr.bf16.mxu0 %v13438_v27 }
 0x4cc   : > { %5768 = vmatmul.mubr.bf16.gmra.mrb[56].mxu0 %v4983_v6 }
 0x4cd   : > { %5775 = vmatprep.mubr.bf16.mxu0 %v4992_v7  ;;  %13028 = vmatpush3.bf16.msra.mxu0 %v13438_v27 }
 0x4ce   : > { %13029 = vmatprep.subr.bf16.mxu0 %v13439_v14 }
 0x4d0   : > { %5833 = vmatmul.mubr.bf16.gmra.mrb[56].mxu1 %v4882_v49  ;;  %v13483_v49 = vld [vmem:[#allocation10 + $0xd4] ss:$8 sps:$4 sm:$0xff]  }
 0x4d1   : > { %13030 = vmatpush3.bf16.msra.mxu0 %v13439_v14  ;;  %5840 = vmatprep.mubr.bf16.mxu1 %v5000_v52 }
 0x4d2   : > { %13031 = vmatprep.subr.bf16.mxu0 %v13440_v17 }
 0x4d4   : > { %5776 = vmatmul.mubr.bf16.gmra.mrb[60].mxu0 %v4984_v4 }
 0x4d5   : > { %13032 = vmatpush3.bf16.msra.mxu0 %v13440_v17  ;;  %13035 = vmatprep.mubr.bf16.mxu0 %v16835_v37  ;;  %v13445_v37 = vld [vmem:[#allocation10 + $0x10] ss:$8 sps:$4 sm:$0xff]  }
 0x4d6   : > { %13033 = vmatprep.subr.bf16.mxu0 %v13441_v28  ;;  %6957 = vmatpush1.bf16.msra.mxu1 %v13445_v37 }
 0x4d7   : > { %6958 = vmatprep.subr.bf16.mxu1 %v13450_v10 }
 0x4d8   : > { %5841 = vmatmul.mubr.bf16.gmra.mrb[60].mxu1 %v4993_v63 }
 0x4d9   : > { %13034 = vmatpush3.bf16.msra.mxu0 %v13441_v28 }
 0x4da   : > { %6959 = vmatpush1.bf16.msra.mxu1 %v13448_v44 }
 0x4db   : > { %6960 = vmatprep.subr.bf16.mxu1 %v13453_v20 }
 0x4dc   : > { %13036 = vmatmul.mubr.bf16.vlgmr.msra.gmra.mrb[64].mxu0 %v16930_v56  ;;  %v13451_v56 = vld [vmem:[#allocation10 + $0x30] ss:$8 sps:$4 sm:$0xff]  }
 0x4dd   : > { %13039 = vmatprep.mubr.bf16.mxu0 %v4970_v32 }
 0x4de   : > { %6961 = vmatpush1.bf16.msra.mxu1 %v13451_v56 }
 0x4df   : > { %6962 = vmatprep.subr.bf16.mxu1 %v13456_v59 }
 0x4e2   : > { %6963 = vmatpush1.bf16.msra.mxu1 %v13454_v57 }
 0x4e3   : > { %6964 = vmatprep.subr.bf16.mxu1 %v13459_v60 }
 0x4e4   : > { %13040 = vmatmul.mubr.bf16.gmra.mrb[68].mxu0 %v5005_v55 }
 0x4e6   : > { %6965 = vmatpush1.bf16.msra.mxu1 %v13457_v42 }
 0x4e7   : > { %6966 = vmatprep.subr.bf16.mxu1 %v13462_v47 }
 0x4ea   : > { %6967 = vmatpush1.bf16.msra.mxu1 %v13460_v33 }
 0x4eb   : > { %6968 = vmatprep.subr.bf16.mxu1 %v13465_v45 }
 0x4ee   : > { %6969 = vmatpush1.bf16.msra.mxu1 %v13463_v23 }
 0x4ef   : > { %6970 = vmatprep.subr.bf16.mxu1 %v13468_v40 }
 0x4f2   : > { %6971 = vmatpush1.bf16.msra.mxu1 %v13466_v50 }
 0x4f3   : > { %6972 = vmatprep.subr.bf16.mxu1 %v13471_v15 }
 0x4f6   : > { %6973 = vmatpush1.bf16.msra.mxu1 %v13469_v26 }
 0x4f7   : > { %6974 = vmatprep.subr.bf16.mxu1 %v13474_v41 }
 0x4fa   : > { %6975 = vmatpush1.bf16.msra.mxu1 %v13472_v43 }
 0x4fb   : > { %6976 = vmatprep.subr.bf16.mxu1 %v13477_v58 }
 0x4fe   : > { %6977 = vmatpush1.bf16.msra.mxu1 %v13475_v61 }
 0x4ff   : > { %6978 = vmatprep.subr.bf16.mxu1 %v13480_v46 }
 0x502   : > { %6979 = vmatpush1.bf16.msra.mxu1 %v13478_v11 }
 0x503   : > { %6980 = vmatprep.subr.bf16.mxu1 %v13483_v49 }
 0x506   : > { %6981 = vmatpush1.bf16.msra.mxu1 %v13481_v29 }
 0x507   : > { %6982 = vmatprep.subr.bf16.mxu1 %v13486_v18 }
 0x50a   : > { %6983 = vmatpush1.bf16.msra.mxu1 %v13484_v8 }
 0x50b   : > { %6984 = vmatprep.subr.bf16.mxu1 %v13489_v30 }
 0x50e   : > { %6985 = vmatpush1.bf16.msra.mxu1 %v13487_v53 }
 0x50f   : > { %7027 = vmatprep.subr.bf16.mxu1 %v13492_v3 }
 0x556   : > { %v12415_v9 = vpop.f32.mrb[32].mxu0 }
 0x557   : > { %v12416_v32 = vpop.f32.mrb[33].mxu0 }
 0x558   : > { %v12417_v25 = vadd.f32 %v12416_v32, %v12415_v9  ;;  %v12418_v5 = vpop.f32.mrb[34].mxu0 }
 0x559   : > { %v12419_v34 = vpop.f32.mrb[35].mxu0 }
 0x55a   : > { %v12420_v12 = vadd.f32 %v12419_v34, %v12418_v5  ;;  %v5624_v16 = vadd.f32 %v12417_v25, %v10499_v1 }
 0x55b   : > { %v12455_v36 = vpop.f32.mrb[32].mxu1 }
 0x55c   : > { %v12456_v31 = vpop.f32.mrb[33].mxu1  ;;  %v5627_v48 = vadd.f32 %v12420_v12, %v10499_v1 }
 0x55d   : > { %v12457_v0 = vadd.f32 %v12456_v31, %v12455_v36  ;;  %v12458_v2 = vpop.f32.mrb[34].mxu1 }
 0x55e   : > { %v12459_v27 = vpop.f32.mrb[35].mxu1 }
 0x55f   : > { %v5689_v22 = vadd.f32 %v12457_v0, %v5624_v16  ;;  %v12460_v51 = vadd.f32 %v12459_v27, %v12458_v2 }
 0x561   : > { %v5692_v39 = vadd.f32 %v12460_v51, %v5627_v48 }
 0x567   : > { %v12421_v24 = vpop.f32.mrb[36].mxu0 }
 0x568   : > { %v12422_v6 = vpop.f32.mrb[37].mxu0 }
 0x569   : > { %v12423_v14 = vadd.f32 %v12422_v6, %v12421_v24  ;;  %v12424_v7 = vpop.f32.mrb[38].mxu0 }
 0x56a   : > { %v12425_v21 = vpop.f32.mrb[39].mxu0 }
 0x56b   : > { %v12426_v35 = vadd.f32 %v12425_v21, %v12424_v7  ;;  %v12461_v17 = vpop.f32.mrb[36].mxu1  ;;  %v5632_v4 = vadd.f32 %v12423_v14, %v10499_v1 }
 0x56c   : > { %v12462_v52 = vpop.f32.mrb[37].mxu1 }
 0x56d   : > { %v12463_v28 = vadd.f32 %v12462_v52, %v12461_v17  ;;  %v12464_v63 = vpop.f32.mrb[38].mxu1  ;;  %v5635_v19 = vadd.f32 %v12426_v35, %v10499_v1 }
 0x56e   : > { %v12465_v13 = vpop.f32.mrb[39].mxu1 }
 0x56f   : > { %v5697_v55 = vadd.f32 %v12463_v28, %v5632_v4  ;;  %v12466_v38 = vadd.f32 %v12465_v13, %v12464_v63 }
 0x571   : > { %v5700_v62 = vadd.f32 %v12466_v38, %v5635_v19 }
 0x577   : > { %v12427_v54 = vpop.f32.mrb[40].mxu0 }
 0x578   : > { %v12428_v37 = vpop.f32.mrb[41].mxu0 }
 0x579   : > { %v12429_v44 = vadd.f32 %v12428_v37, %v12427_v54  ;;  %v12430_v10 = vpop.f32.mrb[42].mxu0 }
 0x57a   : > { %v12431_v56 = vpop.f32.mrb[43].mxu0 }
 0x57b   : > { %v12432_v20 = vadd.f32 %v12431_v56, %v12430_v10  ;;  %v12467_v57 = vpop.f32.mrb[40].mxu1  ;;  %v5640_v60 = vadd.f32 %v12429_v44, %v10499_v1 }
 0x57c   : > { %v12468_v59 = vpop.f32.mrb[41].mxu1 }
 0x57d   : > { %v12469_v42 = vadd.f32 %v12468_v59, %v12467_v57  ;;  %v12470_v33 = vpop.f32.mrb[42].mxu1  ;;  %v5643_v45 = vadd.f32 %v12432_v20, %v10499_v1 }
 0x57e   : > { %v12471_v47 = vpop.f32.mrb[43].mxu1 }
 0x57f   : > { %v5705_v23 = vadd.f32 %v12469_v42, %v5640_v60  ;;  %v12472_v50 = vadd.f32 %v12471_v47, %v12470_v33 }
 0x581   : > { %v5708_v40 = vadd.f32 %v12472_v50, %v5643_v45 }
 0x587   : > { %v12433_v15 = vpop.f32.mrb[44].mxu0 }
 0x588   : > { %v12434_v26 = vpop.f32.mrb[45].mxu0 }
 0x589   : > { %v12435_v43 = vadd.f32 %v12434_v26, %v12433_v15  ;;  %v12436_v41 = vpop.f32.mrb[46].mxu0 }
 0x58a   : > { %v12437_v58 = vpop.f32.mrb[47].mxu0 }
 0x58b   : > { %v12438_v61 = vadd.f32 %v12437_v58, %v12436_v41  ;;  %v12473_v11 = vpop.f32.mrb[44].mxu1  ;;  %v5648_v49 = vadd.f32 %v12435_v43, %v10499_v1 }
 0x58c   : > { %v12474_v46 = vpop.f32.mrb[45].mxu1 }
 0x58d   : > { %v12475_v29 = vadd.f32 %v12474_v46, %v12473_v11  ;;  %v12476_v8 = vpop.f32.mrb[46].mxu1  ;;  %v5651_v53 = vadd.f32 %v12438_v61, %v10499_v1 }
 0x58e   : > { %v12477_v18 = vpop.f32.mrb[47].mxu1 }
 0x58f   : > { %v12495_v30 = vpop.f32.mrb[48].mxu0  ;;  %v5713_v3 = vadd.f32 %v12475_v29, %v5648_v49  ;;  %v12478_v9 = vadd.f32 %v12477_v18, %v12476_v8 }
 0x590   : > { %v12496_v32 = vpop.f32.mrb[49].mxu0 }
 0x591   : > { %v12497_v25 = vadd.f32 %v12496_v32, %v12495_v30  ;;  %v12498_v5 = vpop.f32.mrb[50].mxu0  ;;  %v5716_v34 = vadd.f32 %v12478_v9, %v5651_v53 }
 0x592   : > { %v12499_v12 = vpop.f32.mrb[51].mxu0 }
 0x593   : > { %v5754_v36 = vadd.f32 %v12497_v25, %v5689_v22  ;;  %v12500_v31 = vadd.f32 %v12499_v12, %v12498_v5  ;;  %v12535_v16 = vpop.f32.mrb[48].mxu1 }
 0x594   : > { %v12536_v2 = vpop.f32.mrb[49].mxu1 }
 0x595   : > { %v5757_v0 = vadd.f32 %v12500_v31, %v5692_v39  ;;  %v12537_v27 = vadd.f32 %v12536_v2, %v12535_v16  ;;  %v12538_v48 = vpop.f32.mrb[50].mxu1 }
 0x596   : > { %v12539_v24 = vpop.f32.mrb[51].mxu1 }
 0x597   : > { %v12501_v51 = vpop.f32.mrb[52].mxu0  ;;  %v12540_v6 = vadd.f32 %v12539_v24, %v12538_v48  ;;  %v5819_v7 = vadd.f32 %v12537_v27, %v5754_v36 }
 0x598   : > { %v12502_v14 = vpop.f32.mrb[53].mxu0 }
 0x599   : > { %v12503_v1 = vadd.f32 %v12502_v14, %v12501_v51  ;;  %v12504_v21 = vpop.f32.mrb[54].mxu0  ;;  %v5822_v17 = vadd.f32 %v12540_v6, %v5757_v0  ;;  %v5932_v51 = vld [vmem:[#allocation4 + $0x8] sm:$0x3] }
 0x59a   : > { %v12505_v35 = vpop.f32.mrb[55].mxu0 }
 0x59b   : > { %v5762_v52 = vadd.f32 %v12503_v1, %v5697_v55  ;;  %v12506_v4 = vadd.f32 %v12505_v35, %v12504_v21  ;;  %v12541_v28 = vpop.f32.mrb[52].mxu1  ;;  %v16995_v1 = vld [vmem:[#allocation2] sm:$0xff]  ;;  %v5972_v21 = vrot.slane %v5932_v51, 1 }
 0x59c   : > { %v12542_v22 = vpop.f32.mrb[53].mxu1 }
 0x59d   : > { %v5765_v63 = vadd.f32 %v12506_v4, %v5700_v62  ;;  %v12543_v13 = vadd.f32 %v12542_v22, %v12541_v28  ;;  %v12544_v19 = vpop.f32.mrb[54].mxu1  ;;  %v6007_v4 = vrot.slane %v16995_v1, 2 }
 0x59e   : > { %v12545_v38 = vpop.f32.mrb[55].mxu1 }
 0x59f   : > { %v12507_v39 = vpop.f32.mrb[56].mxu0  ;;  %v12546_v54 = vadd.f32 %v12545_v38, %v12544_v19  ;;  %v5827_v44 = vadd.f32 %v12543_v13, %v5762_v52 }
 0x5a0   : > { %v12508_v37 = vpop.f32.mrb[57].mxu0 }
 0x5a1   : > { %v12509_v10 = vadd.f32 %v12508_v37, %v12507_v39  ;;  %v12510_v56 = vpop.f32.mrb[58].mxu0  ;;  %v5830_v57 = vadd.f32 %v12546_v54, %v5765_v63 }
 0x5a2   : > { %v12511_v20 = vpop.f32.mrb[59].mxu0 }
 0x5a3   : > { %v5770_v59 = vadd.f32 %v12509_v10, %v5705_v23  ;;  %v12512_v60 = vadd.f32 %v12511_v20, %v12510_v56  ;;  %v12547_v42 = vpop.f32.mrb[56].mxu1 }
 0x5a4   : > { %v12548_v55 = vpop.f32.mrb[57].mxu1 }
 0x5a5   : > { %v5773_v33 = vadd.f32 %v12512_v60, %v5708_v40  ;;  %v12549_v47 = vadd.f32 %v12548_v55, %v12547_v42  ;;  %v12550_v45 = vpop.f32.mrb[58].mxu1 }
 0x5a6   : > { %v12551_v50 = vpop.f32.mrb[59].mxu1 }
 0x5a7   : > { %v12513_v62 = vpop.f32.mrb[60].mxu0  ;;  %v12552_v15 = vadd.f32 %v12551_v50, %v12550_v45  ;;  %v5835_v43 = vadd.f32 %v12549_v47, %v5770_v59 }
 0x5a8   : > { %v12514_v26 = vpop.f32.mrb[61].mxu0 }
 0x5a9   : > { %v12515_v41 = vadd.f32 %v12514_v26, %v12513_v62  ;;  %v12516_v58 = vpop.f32.mrb[62].mxu0  ;;  %v5838_v11 = vadd.f32 %v12552_v15, %v5773_v33 }
 0x5aa   : > { %v12517_v61 = vpop.f32.mrb[63].mxu0 }
 0x5ab   : > { %v5778_v46 = vadd.f32 %v12515_v41, %v5713_v3  ;;  %v12518_v49 = vadd.f32 %v12517_v61, %v12516_v58  ;;  %v12553_v29 = vpop.f32.mrb[60].mxu1 }
 0x5ac   : > { %v12554_v23 = vpop.f32.mrb[61].mxu1 }
 0x5ad   : > { %v5781_v8 = vadd.f32 %v12518_v49, %v5716_v34  ;;  %v12555_v18 = vadd.f32 %v12554_v23, %v12553_v29  ;;  %v12556_v30 = vpop.f32.mrb[62].mxu1  ;;  %v13490_v49 = vld [vmem:[#allocation10 + $0x100] ss:$8 sps:$4 sm:$0xff]  }
 0x5ae   : > { %v12557_v40 = vpop.f32.mrb[63].mxu1 }
 0x5af   : > { %v13037_v53 = vpop.f32.mrb[64].mxu0  ;;  %v12558_v9 = vadd.f32 %v12557_v40, %v12556_v30  ;;  %v5843_v5 = vadd.f32 %v12555_v18, %v5778_v46  ;;  %v13495_v40 = vld [vmem:[#allocation10 + $0x114] ss:$8 sps:$4 sm:$0xff]  }
 0x5b0   : > { %v5892_v32 = vadd.f32 %v13037_v53, %v5827_v44  ;;  %v5883_v25 = vpop.f32.mrb[65].mxu0 }
 0x5b1   : > { %v5884_v12 = vadd.f32 %v5883_v25, %v5819_v7  ;;  %v13038_v36 = vpop.f32.mrb[66].mxu0  ;;  %v5846_v2 = vadd.f32 %v12558_v9, %v5781_v8  ;;  %v5971_v7 = vrot.slane %v16995_v1, 1  ;;  %v17039_v9 = vld [vmem:[#allocation4 + $0x98] sm:$0x3] }
 0x5b2   : > { %v5916_v31 = vmax.f32 %v5892_v32, 0.0  ;;  %v5895_v16 = vadd.f32 %v13038_v36, %v5830_v57  ;;  %v5886_v0 = vpop.f32.mrb[67].mxu0 }
 0x5b3   : > { %v5914_v27 = vmax.f32 %v5884_v12, 0.0  ;;  %v5887_v3 = vadd.f32 %v5886_v0, %v5822_v17  ;;  %v6008_v17 = vrot.slane %v5932_v51, 2  ;;  %v5973_v10 = vsel %vm2992_vm6, %v5971_v7, %v5972_v21 }
 0x5b4   : > { %5925 = vst [vmem:[#allocation4 + $0x31] sm:$0xff] %v5916_v31  ;;  %v5917_v48 = vmax.f32 %v5895_v16, 0.0  ;;  %v13493_v31 = vld [vmem:[#allocation10 + $0x110] ss:$8 sps:$4 sm:$0xff]   ;;  %v13498_v16 = vld [vmem:[#allocation10 + $0x124] ss:$8 sps:$4 sm:$0xff]  }
 0x5b5   : > { %5923 = vst [vmem:[#allocation4 + $0x11] sm:$0xff] %v5914_v27  ;;  %v5915_v34 = vmax.f32 %v5887_v3, 0.0  ;;  %v17011_v42 = vsel %vm3121_vm8, %v6007_v4, %v6008_v17 }
 0x5b6   : > { %5926 = vst [vmem:[#allocation4 + $0x41] sm:$0xff] %v5917_v48 }
 0x5b7   : > { %5924 = vst [vmem:[#allocation4 + $0x21] sm:$0xff] %v5915_v34  ;;  %v13041_v24 = vpop.f32.mrb[68].mxu0 }
 0x5b8   : > { %v5908_v6 = vadd.f32 %v13041_v24, %v5843_v5  ;;  %v5899_v14 = vpop.f32.mrb[69].mxu0  ;;  %v6074_v24 = vrot.slane %v17039_v9, 2 }
 0x5b9   : > { %v5900_v35 = vadd.f32 %v5899_v14, %v5835_v43  ;;  %v13042_v52 = vpop.f32.mrb[70].mxu0 }
 0x5ba   : > { %v5920_v28 = vmax.f32 %v5908_v6, 0.0  ;;  %v5911_v63 = vadd.f32 %v13042_v52, %v5846_v2  ;;  %v5902_v22 = vpop.f32.mrb[71].mxu0  ;;  %v6069_v52 = vrot.slane %v17039_v9, 1 }
 0x5bb   : > { %v5918_v13 = vmax.f32 %v5900_v35, 0.0  ;;  %v5903_v19 = vadd.f32 %v5902_v22, %v5838_v11  ;;  %v16999_v39 = vld [vmem:[#allocation4 + $0x30] sm:$0xff]  ;;  %v5938_v38 = vld [vmem:[#allocation4 + $0x38] sm:$0x3] }
 0x5bc   : > { %5929 = vst [vmem:[#allocation4 + $0x71] sm:$0xff] %v5920_v28  ;;  %v5921_v54 = vmax.f32 %v5911_v63, 0.0  ;;  %v17001_v37 = vld [vmem:[#allocation4 + $0x10] sm:$0xff]  ;;  %v5934_v44 = vld [vmem:[#allocation4 + $0x18] sm:$0x3]  ;;  %v5980_v56 = vrot.slane %v16999_v39, 1 }
 0x5bd   : > { %v5981_v20 = vrot.slane %v5938_v38, 1  ;;  %5927 = vst [vmem:[#allocation4 + $0x51] sm:$0xff] %v5918_v13  ;;  %v5919_v57 = vmax.f32 %v5903_v19, 0.0  ;;  %v5974_v59 = vrot.slane %v17001_v37, 1  ;;  %v5975_v60 = vrot.slane %v5934_v44, 1  ;;  %v17021_v15 = vld [vmem:[#allocation4 + $0x40] sm:$0xff] }
 0x5be   : > { %5930 = vst [vmem:[#allocation4 + $0x81] sm:$0xff] %v5921_v54  ;;  %v5951_v33 = vpack.c.bf16 %v17001_v37, %v16995_v1  ;;  %v6010_v55 = vrot.slane %v17001_v37, 2  ;;  %v6011_v47 = vrot.slane %v5934_v44, 2  ;;  %v17016_v45 = vld [vmem:[#allocation4 + $0x20] sm:$0xff]  ;;  %v5936_v62 = vld [vmem:[#allocation4 + $0x28] sm:$0x3] }
 0x5bf   : > { %v17019_v50 = vsel %vm2992_vm6, %v5980_v56, %v5981_v20  ;;  %5928 = vst [vmem:[#allocation4 + $0x61] sm:$0xff] %v5919_v57  ;;  %v17024_v26 = vsel %vm2992_vm6, %v5974_v59, %v5975_v60  ;;  %v5977_v43 = vrot.slane %v17016_v45, 1  ;;  %v5978_v41 = vrot.slane %v5936_v62, 1  ;;  %v5940_v61 = vld [vmem:[#allocation4 + $0x48] sm:$0x3] }
 0x5c0   : > { %v6016_v58 = vrot.slane %v16999_v39, 2  ;;  %v6003_v11 = vpack.c.bf16 %v17024_v26, %v5973_v10  ;;  %v17030_v46 = vsel %vm3121_vm8, %v6010_v55, %v6011_v47  ;;  %v6013_v29 = vrot.slane %v17016_v45, 2  ;;  %v13496_v57 = vld [vmem:[#allocation10 + $0x120] ss:$8 sps:$4 sm:$0xff]  }
 0x5c1   : > { %v6014_v8 = vrot.slane %v5936_v62, 2  ;;  %v6039_v23 = vpack.c.bf16 %v17030_v46, %v17011_v42  ;;  %v17036_v18 = vsel %vm2992_vm6, %v5977_v43, %v5978_v41  ;;  %v6017_v30 = vrot.slane %v5938_v38, 2  ;;  %v13501_v62 = vld [vmem:[#allocation10 + $0x134] ss:$8 sps:$4 sm:$0xff]   ;;  %v13552_v42 = vld [vmem:[#allocation10 + $0x244] ss:$8 sps:$4 sm:$0xff]  }
 0x5c2   : > { %v5983_v53 = vrot.slane %v17021_v15, 1  ;;  %6986 = vmatprep.mubr.bf16.mxu1 %v6003_v11  ;;  %v17043_v32 = vpack.c.bf16 %v17019_v50, %v17036_v18  ;;  %v6053_v5 = vpack.c.bf16 %v17036_v18, %v17024_v26  ;;  %v5984_v12 = vrot.slane %v5940_v61, 1  ;;  %v13595_v26 = vld [vmem:[#allocation10 + $0x330] ss:$8 sps:$4 sm:$0xff]   ;;  %v13600_v18 = vld [vmem:[#allocation10 + $0x344] ss:$8 sps:$4 sm:$0xff]  }
 0x5c3   : > { %v17046_v25 = vsel %vm3121_vm8, %v6013_v29, %v6014_v8  ;;  %6987 = vmatmul.mubr.bf16.vlgmr.msra.gmra.mrb[64].mxu1 %v5951_v33  ;;  %v17051_v36 = vsel %vm3121_vm8, %v6016_v58, %v6017_v30  ;;  %v6019_v0 = vrot.slane %v17021_v15, 2  ;;  %v6020_v2 = vrot.slane %v5940_v61, 2  ;;  %v17064_v51 = vld [vmem:[#allocation4 + $0x70] sm:$0xff]  ;;  %v5946_v35 = vld [vmem:[#allocation4 + $0x78] sm:$0x3] }
 0x5c4   : > { %7028 = vmatpush1.bf16.msra.mxu1 %v13490_v49  ;;  %v17056_v27 = vpack.c.bf16 %v17051_v36, %v17046_v25  ;;  %6996 = vmatprep.mubr.bf16.mxu1 %v17043_v32  ;;  %v17059_v3 = vld [vmem:[#allocation4 + $0x50] sm:$0xff]  ;;  %v5942_v48 = vld [vmem:[#allocation4 + $0x58] sm:$0x3]  ;;  %v17062_v34 = vsel %vm2992_vm6, %v5983_v53, %v5984_v12  ;;  %v17074_v17 = vpack.c.bf16 %v16999_v39, %v17016_v45  ;;  %v5992_v20 = vrot.slane %v17064_v51, 1 }
 0x5c5   : > { %7029 = vmatprep.subr.bf16.mxu1 %v13495_v40  ;;  %v5986_v6 = vrot.slane %v17059_v3, 1  ;;  %v5987_v14 = vrot.slane %v5942_v48, 1  ;;  %v17069_v21 = vsel %vm3121_vm8, %v6019_v0, %v6020_v2  ;;  %v6022_v28 = vrot.slane %v17059_v3, 2  ;;  %v17084_v54 = vld [vmem:[#allocation4 + $0x80] sm:$0xff]  ;;  %v5948_v44 = vld [vmem:[#allocation4 + $0x88] sm:$0x3] }
 0x5c6   : > { %v6023_v63 = vrot.slane %v5942_v48, 2  ;;  %v6054_v22 = vpack.c.bf16 %v17062_v34, %v17019_v50  ;;  %v17079_v13 = vld [vmem:[#allocation4 + $0x60] sm:$0xff]  ;;  %v5944_v19 = vld [vmem:[#allocation4 + $0x68] sm:$0x3]  ;;  %v5993_v60 = vrot.slane %v5946_v35, 1  ;;  %v6028_v41 = vrot.slane %v17064_v51, 2 }
 0x5c7   : > { %v17082_v38 = vsel %vm2992_vm6, %v5986_v6, %v5987_v14  ;;  %v5989_v10 = vrot.slane %v17079_v13, 1  ;;  %v5990_v56 = vrot.slane %v5944_v19, 1  ;;  %v6025_v33 = vrot.slane %v17079_v13, 2  ;;  %v13499_v53 = vld [vmem:[#allocation10 + $0x130] ss:$8 sps:$4 sm:$0xff]  }
 0x5c8   : > { %7030 = vmatpush1.bf16.msra.mxu1 %v13493_v31  ;;  %v17089_v59 = vsel %vm3121_vm8, %v6022_v28, %v6023_v63  ;;  %v6026_v55 = vrot.slane %v5944_v19, 2  ;;  %v6029_v58 = vrot.slane %v5946_v35, 2  ;;  %v17102_v61 = vpack.c.bf16 %v17082_v38, %v17062_v34  ;;  %v13504_v0 = vld [vmem:[#allocation10 + $0x144] ss:$8 sps:$4 sm:$0xff]   ;;  %v13502_v28 = vld [vmem:[#allocation10 + $0x140] ss:$8 sps:$4 sm:$0xff]  }
 0x5c9   : > { %7031 = vmatprep.subr.bf16.mxu1 %v13498_v16  ;;  %v17094_v47 = vpack.c.bf16 %v17089_v59, %v17069_v21  ;;  %v17097_v43 = vsel %vm2992_vm6, %v5989_v10, %v5990_v56  ;;  %v6049_v49 = vrot.slane %v17084_v54, 1  ;;  %v6050_v29 = vrot.slane %v5948_v44, 1  ;;  %v13507_v10 = vld [vmem:[#allocation10 + $0x154] ss:$8 sps:$4 sm:$0xff]   ;;  %v13510_v56 = vld [vmem:[#allocation10 + $0x164] ss:$8 sps:$4 sm:$0xff]  }
 0x5ca   : > { %v17105_v11 = vsel %vm3121_vm8, %v6025_v33, %v6026_v55  ;;  %v17110_v8 = vsel %vm3121_vm8, %v6028_v41, %v6029_v58  ;;  %v6055_v30 = vpack.c.bf16 %v17097_v43, %v17082_v38  ;;  %v17117_v40 = vsel %vm2992_vm6, %v5971_v7, %v6069_v52  ;;  %v13511_v55 = vld [vmem:[#allocation10 + $0x170] ss:$8 sps:$4 sm:$0xff]   ;;  %v13514_v41 = vld [vmem:[#allocation10 + $0x180] ss:$8 sps:$4 sm:$0xff]   ;;  %v13519_v58 = vld [vmem:[#allocation10 + $0x194] ss:$8 sps:$4 sm:$0xff]  }
 0x5cb   : > { %6997 = vmatmul.mubr.bf16.gmra.mrb[68].mxu1 %v17074_v17  ;;  %v17121_v9 = vsel %vm2992_vm6, %v5992_v20, %v5993_v60  ;;  %v17125_v12 = vpack.c.bf16 %v17110_v8, %v17105_v11  ;;  %v17128_v31 = vsel %vm2992_vm6, %v6049_v49, %v6050_v29  ;;  %v6057_v16 = vrot.slane %v17084_v54, 2  ;;  %v13508_v20 = vld [vmem:[#allocation10 + $0x160] ss:$8 sps:$4 sm:$0xff]   ;;  %v13513_v60 = vld [vmem:[#allocation10 + $0x174] ss:$8 sps:$4 sm:$0xff]  }
 0x5cc   : > { %7032 = vmatpush1.bf16.msra.mxu1 %v13496_v57  ;;  %7006 = vmatprep.mubr.bf16.mxu1 %v17102_v61  ;;  %v6056_v7 = vpack.c.bf16 %v17128_v31, %v17121_v9  ;;  %v6061_v2 = vpack.c.bf16 %v17046_v25, %v17030_v46  ;;  %v6062_v48 = vpack.c.bf16 %v17069_v21, %v17051_v36  ;;  %v6058_v14 = vrot.slane %v5948_v44, 2  ;;  %v13517_v49 = vld [vmem:[#allocation10 + $0x190] ss:$8 sps:$4 sm:$0xff]   ;;  %v13522_v29 = vld [vmem:[#allocation10 + $0x1a4] ss:$8 sps:$4 sm:$0xff]  }
 0x5cd   : > { %7033 = vmatprep.subr.bf16.mxu1 %v13501_v62  ;;  %v6063_v6 = vpack.c.bf16 %v17105_v11, %v17089_v59  ;;  %v17142_v35 = vsel %vm3121_vm8, %v6007_v4, %v6074_v24  ;;  %v6072_v52 = vpack.c.bf16 %v17117_v40, %v17128_v31  ;;  %v17151_v19 = vpack.c.bf16 %v17059_v3, %v17021_v15  ;;  %v13505_v24 = vld [vmem:[#allocation10 + $0x150] ss:$8 sps:$4 sm:$0xff]   ;;  %v13516_v62 = vld [vmem:[#allocation10 + $0x184] ss:$8 sps:$4 sm:$0xff]   ;;  %v13574_v25 = vld [vmem:[#allocation10 + $0x2c0] ss:$8 sps:$4 sm:$0xff]  }
 0x5ce   : > { %v17147_v63 = vsel %vm3121_vm8, %v6057_v16, %v6058_v14  ;;  %v17157_v4 = vpack.c.bf16 %v17121_v9, %v17097_v43  ;;  %v17163_v57 = vpack.c.bf16 %v17064_v51, %v17079_v13  ;;  %v6043_v33 = vpack.c.bf16 %v17016_v45, %v17001_v37  ;;  %v13525_v16 = vld [vmem:[#allocation10 + $0x1b4] ss:$8 sps:$4 sm:$0xff]   ;;  %v13523_v37 = vld [vmem:[#allocation10 + $0x1b0] ss:$8 sps:$4 sm:$0xff]   ;;  %v13528_v45 = vld [vmem:[#allocation10 + $0x1c4] ss:$8 sps:$4 sm:$0xff]  }
 0x5cf   : > { %v6077_v44 = vpack.c.bf16 %v17142_v35, %v17147_v63  ;;  %v13531_v14 = vld [vmem:[#allocation10 + $0x1d4] ss:$8 sps:$4 sm:$0xff]   ;;  %v13576_v46 = vld [vmem:[#allocation10 + $0x2c4] ss:$8 sps:$4 sm:$0xff]   ;;  %v6064_v21 = vpack.c.bf16 %v17147_v63, %v17110_v8  ;;  %v13601_v50 = vld [vmem:[#allocation10 + $0x350] ss:$8 sps:$4 sm:$0xff]  }
 0x5d0   : > { %7034 = vmatpush1.bf16.msra.mxu1 %v13499_v53  ;;  %v13520_v53 = vld [vmem:[#allocation10 + $0x1a0] ss:$8 sps:$4 sm:$0xff]   ;;  %v13603_v36 = vld [vmem:[#allocation10 + $0x354] ss:$8 sps:$4 sm:$0xff]   ;;  %v13606_v34 = vld [vmem:[#allocation10 + $0x364] ss:$8 sps:$4 sm:$0xff]  }
 0x5d1   : > { %7035 = vmatprep.subr.bf16.mxu1 %v13504_v0  ;;  %v13526_v0 = vld [vmem:[#allocation10 + $0x1c0] ss:$8 sps:$4 sm:$0xff]   ;;  %v13609_v59 = vld [vmem:[#allocation10 + $0x374] ss:$8 sps:$4 sm:$0xff]   ;;  %v13607_v11 = vld [vmem:[#allocation10 + $0x370] ss:$8 sps:$4 sm:$0xff]  }
 0x5d2   : > { %v13612_v38 = vld [vmem:[#allocation10 + $0x384] ss:$8 sps:$4 sm:$0xff]   ;;  %v13610_v43 = vld [vmem:[#allocation10 + $0x380] ss:$8 sps:$4 sm:$0xff]   ;;  %v13615_v8 = vld [vmem:[#allocation10 + $0x394] ss:$8 sps:$4 sm:$0xff]  }
 0x5d3   : > { %7007 = vmatmul.mubr.bf16.gmra.mrb[72].mxu1 %v17151_v19  ;;  %v13619_v9 = vld [vmem:[#allocation10 + $0x3b0] ss:$8 sps:$4 sm:$0xff]   ;;  %v13670_v35 = vld [vmem:[%s18139_s9 + $0x258] sm:$0xff]  }
 0x5d4   : > { %7036 = vmatpush1.bf16.msra.mxu1 %v13502_v28  ;;  %7016 = vmatprep.mubr.bf16.mxu1 %v17157_v4  ;;  %v13529_v28 = vld [vmem:[#allocation10 + $0x1d0] ss:$8 sps:$4 sm:$0xff]   ;;  %v13671_v63 = vld [vmem:[%s18139_s9 + $0x218] sm:$0xff]  }
 0x5d5   : > { %7037 = vmatprep.subr.bf16.mxu1 %v13507_v10  ;;  %v13534_v10 = vld [vmem:[#allocation10 + $0x1e4] ss:$8 sps:$4 sm:$0xff]  }
 0x5d6   : > { %v13660_v40 = vld [vmem:[%s18139_s9 + $0x340] sm:$0xff]  }
 0x5d7   : > { %v13661_v31 = vld [vmem:[%s18139_s9 + $0x300] sm:$0xff]  }
 0x5d8   : > { %7038 = vmatpush1.bf16.msra.mxu1 %v13505_v24  ;;  %v13532_v24 = vld [vmem:[#allocation10 + $0x1e0] ss:$8 sps:$4 sm:$0xff]  }
 0x5d9   : > { %7039 = vmatprep.subr.bf16.mxu1 %v13510_v56  ;;  %v13537_v56 = vld [vmem:[#allocation10 + $0x1f4] ss:$8 sps:$4 sm:$0xff]  }
 0x5db   : > { %7017 = vmatmul.mubr.bf16.gmra.mrb[76].mxu1 %v17163_v57 }
 0x5dc   : > { %7040 = vmatpush1.bf16.msra.mxu1 %v13508_v20  ;;  %7059 = vmatprep.mubr.bf16.mxu1 %v6043_v33  ;;  %v13535_v20 = vld [vmem:[#allocation10 + $0x1f0] ss:$8 sps:$4 sm:$0xff]   ;;  %v13538_v33 = vld [vmem:[#allocation10 + $0x200] ss:$8 sps:$4 sm:$0xff]  }
 0x5dd   : > { %7041 = vmatprep.subr.bf16.mxu1 %v13513_v60  ;;  %v13540_v60 = vld [vmem:[#allocation10 + $0x204] ss:$8 sps:$4 sm:$0xff]  }
 0x5e0   : > { %7042 = vmatpush1.bf16.msra.mxu1 %v13511_v55  ;;  %v13543_v55 = vld [vmem:[#allocation10 + $0x214] ss:$8 sps:$4 sm:$0xff]  }
 0x5e1   : > { %7043 = vmatprep.subr.bf16.mxu1 %v13516_v62  ;;  %v6044_v62 = vpack.c.bf16 %v17021_v15, %v16999_v39  ;;  %v13547_v39 = vld [vmem:[#allocation10 + $0x230] ss:$8 sps:$4 sm:$0xff]   ;;  %v13550_v15 = vld [vmem:[#allocation10 + $0x240] ss:$8 sps:$4 sm:$0xff]  }
 0x5e4   : > { %7044 = vmatpush1.bf16.msra.mxu1 %v13514_v41  ;;  %v13541_v41 = vld [vmem:[#allocation10 + $0x210] ss:$8 sps:$4 sm:$0xff]  }
 0x5e5   : > { %7045 = vmatprep.subr.bf16.mxu1 %v13519_v58  ;;  %v13546_v58 = vld [vmem:[#allocation10 + $0x224] ss:$8 sps:$4 sm:$0xff]  }
 0x5e8   : > { %7046 = vmatpush1.bf16.msra.mxu1 %v13517_v49  ;;  %v13544_v49 = vld [vmem:[#allocation10 + $0x220] ss:$8 sps:$4 sm:$0xff]  }
 0x5e9   : > { %7047 = vmatprep.subr.bf16.mxu1 %v13522_v29  ;;  %v13549_v29 = vld [vmem:[#allocation10 + $0x234] ss:$8 sps:$4 sm:$0xff]  }
 0x5ec   : > { %7048 = vmatpush1.bf16.msra.mxu1 %v13520_v53  ;;  %v6045_v53 = vpack.c.bf16 %v17079_v13, %v17059_v3  ;;  %v13558_v3 = vld [vmem:[#allocation10 + $0x264] ss:$8 sps:$4 sm:$0xff]   ;;  %v13556_v13 = vld [vmem:[#allocation10 + $0x260] ss:$8 sps:$4 sm:$0xff]  }
 0x5ed   : > { %7049 = vmatprep.subr.bf16.mxu1 %v13525_v16  ;;  %v6046_v16 = vpack.c.bf16 %v17084_v54, %v17064_v51  ;;  %v13564_v51 = vld [vmem:[#allocation10 + $0x284] ss:$8 sps:$4 sm:$0xff]  }
 0x5f0   : > { %7050 = vmatpush1.bf16.msra.mxu1 %v13523_v37  ;;  %v13553_v37 = vld [vmem:[#allocation10 + $0x250] ss:$8 sps:$4 sm:$0xff]  }
 0x5f1   : > { %7051 = vmatprep.subr.bf16.mxu1 %v13528_v45  ;;  %v13561_v45 = vld [vmem:[#allocation10 + $0x274] ss:$8 sps:$4 sm:$0xff]  }
 0x5f4   : > { %7052 = vmatpush1.bf16.msra.mxu1 %v13526_v0  ;;  %v13559_v0 = vld [vmem:[#allocation10 + $0x270] ss:$8 sps:$4 sm:$0xff]  }
 0x5f5   : > { %7053 = vmatprep.subr.bf16.mxu1 %v13531_v14  ;;  %v13562_v14 = vld [vmem:[#allocation10 + $0x280] ss:$8 sps:$4 sm:$0xff]  }
 0x5f8   : > { %7054 = vmatpush1.bf16.msra.mxu1 %v13529_v28  ;;  %v13567_v28 = vld [vmem:[#allocation10 + $0x294] ss:$8 sps:$4 sm:$0xff]  }
 0x5f9   : > { %7055 = vmatprep.subr.bf16.mxu1 %v13534_v10  ;;  %v13565_v10 = vld [vmem:[#allocation10 + $0x290] ss:$8 sps:$4 sm:$0xff]  }
 0x5fc   : > { %7056 = vmatpush1.bf16.msra.mxu1 %v13532_v24  ;;  %v13570_v24 = vld [vmem:[#allocation10 + $0x2a4] ss:$8 sps:$4 sm:$0xff]  }
 0x5fd   : > { %7057 = vmatprep.subr.bf16.mxu1 %v13537_v56  ;;  %v13568_v56 = vld [vmem:[#allocation10 + $0x2a0] ss:$8 sps:$4 sm:$0xff]  }
 0x600   : > { %7058 = vmatpush1.bf16.msra.mxu1 %v13535_v20  ;;  %v13573_v20 = vld [vmem:[#allocation10 + $0x2b4] ss:$8 sps:$4 sm:$0xff]  }
 0x601   : > { %7100 = vmatprep.subr.bf16.mxu1 %v13540_v60  ;;  %v13571_v60 = vld [vmem:[#allocation10 + $0x2b0] ss:$8 sps:$4 sm:$0xff]  }
 0x603   : > { %7060 = vmatmul.mubr.bf16.vlgmr.msra.gmra.mrb[64].mxu1 %v6039_v23  ;;  %v13555_v23 = vld [vmem:[#allocation10 + $0x254] ss:$8 sps:$4 sm:$0xff]  }
 0x604   : > { %7069 = vmatprep.mubr.bf16.mxu1 %v6044_v62  ;;  %7101 = vmatpush1.bf16.msra.mxu1 %v13538_v33  ;;  %v13577_v33 = vld [vmem:[#allocation10 + $0x2d0] ss:$8 sps:$4 sm:$0xff]   ;;  %v13580_v62 = vld [vmem:[#allocation10 + $0x2e0] ss:$8 sps:$4 sm:$0xff]  }
 0x605   : > { %7102 = vmatprep.subr.bf16.mxu1 %v13543_v55  ;;  %v13582_v55 = vld [vmem:[#allocation10 + $0x2e4] ss:$8 sps:$4 sm:$0xff]  }
 0x608   : > { %7103 = vmatpush1.bf16.msra.mxu1 %v13541_v41  ;;  %v13585_v41 = vld [vmem:[#allocation10 + $0x2f4] ss:$8 sps:$4 sm:$0xff]  }
 0x609   : > { %7104 = vmatprep.subr.bf16.mxu1 %v13546_v58  ;;  %v13658_v58 = vld [vmem:[%s18139_s9 + $0x240] sm:$0xff]  }
 0x60a   : > { %12571 = vmatprep.subr.bf16.mxu0 %v13658_v58  ;;  %v6065_v58 = vpack.c.bf16 %v16995_v1, %v17084_v54  ;;  %v13664_v1 = vld [vmem:[%s18139_s9 + $0x348] sm:$0xff]  }
 0x60b   : > { %7070 = vmatmul.mubr.bf16.gmra.mrb[68].mxu1 %v17056_v27  ;;  %v13665_v54 = vld [vmem:[%s18139_s9 + $0x308] sm:$0xff]  }
 0x60c   : > { %7079 = vmatprep.mubr.bf16.mxu1 %v6045_v53  ;;  %7105 = vmatpush1.bf16.msra.mxu1 %v13544_v49  ;;  %v13659_v49 = vld [vmem:[%s18139_s9 + $0x200] sm:$0xff]   ;;  %v13662_v53 = vld [vmem:[%s18139_s9 + $0x248] sm:$0xff]  }
 0x60d   : > { %7106 = vmatprep.subr.bf16.mxu1 %v13549_v29  ;;  %v13583_v29 = vld [vmem:[#allocation10 + $0x2f0] ss:$8 sps:$4 sm:$0xff]   ;;  %12572 = vmatpush3.bf16.msra.mxu0 %v13659_v49  ;;  %v13657_v49 = vld [vmem:[#allocation10 + $0x474] ss:$8 sps:$4 sm:$0xff]  }
 0x60e   : > { %12573 = vmatprep.subr.bf16.mxu0 %v13662_v53  ;;  %v14116_v53 = vmov 0  }
 0x610   : > { %7107 = vmatpush1.bf16.msra.mxu1 %v13547_v39  ;;  %v13588_v39 = vld [vmem:[#allocation10 + $0x304] ss:$8 sps:$4 sm:$0xff]  }
 0x611   : > { %7108 = vmatprep.subr.bf16.mxu1 %v13552_v42  ;;  %v13663_v42 = vld [vmem:[%s18139_s9 + $0x208] sm:$0xff]  }
 0x612   : > { %12574 = vmatpush3.bf16.msra.mxu0 %v13663_v42  ;;  %v13675_v42 = vld [vmem:[%s18139_s9 + $0x220] sm:$0xff]  }
 0x613   : > { %7080 = vmatmul.mubr.bf16.gmra.mrb[72].mxu1 %v17094_v47 }
 0x614   : > { %7089 = vmatprep.mubr.bf16.mxu1 %v6046_v16  ;;  %7109 = vmatpush1.bf16.msra.mxu1 %v13550_v15  ;;  %v13586_v15 = vld [vmem:[#allocation10 + $0x300] ss:$8 sps:$4 sm:$0xff]   ;;  %v13589_v16 = vld [vmem:[#allocation10 + $0x310] ss:$8 sps:$4 sm:$0xff]  }
 0x615   : > { %7110 = vmatprep.subr.bf16.mxu1 %v13555_v23  ;;  %v13591_v23 = vld [vmem:[#allocation10 + $0x314] ss:$8 sps:$4 sm:$0xff]  }
 0x618   : > { %7111 = vmatpush1.bf16.msra.mxu1 %v13553_v37  ;;  %v13594_v37 = vld [vmem:[#allocation10 + $0x324] ss:$8 sps:$4 sm:$0xff]  }
 0x619   : > { %7112 = vmatprep.subr.bf16.mxu1 %v13558_v3  ;;  %v13592_v3 = vld [vmem:[#allocation10 + $0x320] ss:$8 sps:$4 sm:$0xff]  }
 0x61b   : > { %7090 = vmatmul.mubr.bf16.gmra.mrb[76].mxu1 %v17125_v12 }
 0x61c   : > { %7113 = vmatpush1.bf16.msra.mxu1 %v13556_v13  ;;  %7132 = vmatprep.mubr.bf16.mxu1 %v6061_v2  ;;  %v13579_v2 = vld [vmem:[#allocation10 + $0x2d4] ss:$8 sps:$4 sm:$0xff]  }
 0x61d   : > { %7114 = vmatprep.subr.bf16.mxu1 %v13561_v45  ;;  %v13597_v13 = vld [vmem:[#allocation10 + $0x334] ss:$8 sps:$4 sm:$0xff]  }
 0x61e   : > { %v13621_v45 = vld [vmem:[#allocation10 + $0x3b4] ss:$8 sps:$4 sm:$0xff]  }
 0x620   : > { %7115 = vmatpush1.bf16.msra.mxu1 %v13559_v0  ;;  %v13627_v0 = vld [vmem:[#allocation10 + $0x3d4] ss:$8 sps:$4 sm:$0xff]  }
 0x621   : > { %7116 = vmatprep.subr.bf16.mxu1 %v13564_v51  ;;  %v13625_v51 = vld [vmem:[#allocation10 + $0x3d0] ss:$8 sps:$4 sm:$0xff]  }
 0x624   : > { %7117 = vmatpush1.bf16.msra.mxu1 %v13562_v14  ;;  %v13630_v14 = vld [vmem:[#allocation10 + $0x3e4] ss:$8 sps:$4 sm:$0xff]  }
 0x625   : > { %7118 = vmatprep.subr.bf16.mxu1 %v13567_v28  ;;  %v13628_v28 = vld [vmem:[#allocation10 + $0x3e0] ss:$8 sps:$4 sm:$0xff]  }
 0x628   : > { %7119 = vmatpush1.bf16.msra.mxu1 %v13565_v10  ;;  %v13633_v10 = vld [vmem:[#allocation10 + $0x3f4] ss:$8 sps:$4 sm:$0xff]  }
 0x629   : > { %7120 = vmatprep.subr.bf16.mxu1 %v13570_v24  ;;  %v13631_v24 = vld [vmem:[#allocation10 + $0x3f0] ss:$8 sps:$4 sm:$0xff]  }
 0x62c   : > { %7121 = vmatpush1.bf16.msra.mxu1 %v13568_v56  ;;  %v13636_v56 = vld [vmem:[#allocation10 + $0x404] ss:$8 sps:$4 sm:$0xff]  }
 0x62d   : > { %7122 = vmatprep.subr.bf16.mxu1 %v13573_v20  ;;  %v13634_v20 = vld [vmem:[#allocation10 + $0x400] ss:$8 sps:$4 sm:$0xff]  }
 0x630   : > { %7123 = vmatpush1.bf16.msra.mxu1 %v13571_v60  ;;  %v13639_v60 = vld [vmem:[#allocation10 + $0x414] ss:$8 sps:$4 sm:$0xff]  }
 0x631   : > { %7124 = vmatprep.subr.bf16.mxu1 %v13576_v46  ;;  %v13637_v46 = vld [vmem:[#allocation10 + $0x410] ss:$8 sps:$4 sm:$0xff]  }
 0x634   : > { %7125 = vmatpush1.bf16.msra.mxu1 %v13574_v25  ;;  %v13642_v25 = vld [vmem:[#allocation10 + $0x424] ss:$8 sps:$4 sm:$0xff]  }
 0x635   : > { %7126 = vmatprep.subr.bf16.mxu1 %v13579_v2  ;;  %v13640_v2 = vld [vmem:[#allocation10 + $0x420] ss:$8 sps:$4 sm:$0xff]  }
 0x638   : > { %7127 = vmatpush1.bf16.msra.mxu1 %v13577_v33  ;;  %v13645_v33 = vld [vmem:[#allocation10 + $0x434] ss:$8 sps:$4 sm:$0xff]  }
 0x639   : > { %7128 = vmatprep.subr.bf16.mxu1 %v13582_v55  ;;  %v13643_v55 = vld [vmem:[#allocation10 + $0x430] ss:$8 sps:$4 sm:$0xff]  }
 0x63c   : > { %7129 = vmatpush1.bf16.msra.mxu1 %v13580_v62  ;;  %v13648_v62 = vld [vmem:[#allocation10 + $0x444] ss:$8 sps:$4 sm:$0xff]  }
 0x63d   : > { %7130 = vmatprep.subr.bf16.mxu1 %v13585_v41  ;;  %v13649_v41 = vld [vmem:[#allocation10 + $0x450] ss:$8 sps:$4 sm:$0xff]  }
 0x640   : > { %7131 = vmatpush1.bf16.msra.mxu1 %v13583_v29  ;;  %v13655_v29 = vld [vmem:[#allocation10 + $0x470] ss:$8 sps:$4 sm:$0xff]  }
 0x641   : > { %7173 = vmatprep.subr.bf16.mxu1 %v13588_v39  ;;  %v13674_v39 = vld [vmem:[%s18139_s9 + $0x260] sm:$0xff]  }
 0x643   : > { %7133 = vmatmul.mubr.bf16.vlgmr.msra.gmra.mrb[64].mxu1 %v6053_v5  ;;  %v13598_v5 = vld [vmem:[#allocation10 + $0x340] ss:$8 sps:$4 sm:$0xff]  }
 0x644   : > { %7142 = vmatprep.mubr.bf16.mxu1 %v6062_v48  ;;  %7174 = vmatpush1.bf16.msra.mxu1 %v13586_v15  ;;  %v13618_v48 = vld [vmem:[#allocation10 + $0x3a4] ss:$8 sps:$4 sm:$0xff]  }
 0x645   : > { %7175 = vmatprep.subr.bf16.mxu1 %v13591_v23  ;;  %v13676_v15 = vld [vmem:[%s18139_s9 + $0x360] sm:$0xff]  }
 0x646   : > { %v13677_v23 = vld [vmem:[%s18139_s9 + $0x320] sm:$0xff]  }
 0x648   : > { %7176 = vmatpush1.bf16.msra.mxu1 %v13589_v16  ;;  %v13678_v16 = vld [vmem:[%s18139_s9 + $0x268] sm:$0xff]  }
 0x649   : > { %7177 = vmatprep.subr.bf16.mxu1 %v13594_v37  ;;  %v13679_v37 = vld [vmem:[%s18139_s9 + $0x228] sm:$0xff]  }
 0x64b   : > { %7143 = vmatmul.mubr.bf16.gmra.mrb[68].mxu1 %v6054_v22  ;;  %v13604_v22 = vld [vmem:[#allocation10 + $0x360] ss:$8 sps:$4 sm:$0xff]  }
 0x64c   : > { %7152 = vmatprep.mubr.bf16.mxu1 %v6063_v6  ;;  %7178 = vmatpush1.bf16.msra.mxu1 %v13592_v3  ;;  %v13616_v6 = vld [vmem:[#allocation10 + $0x3a0] ss:$8 sps:$4 sm:$0xff]   ;;  %v13680_v3 = vld [vmem:[%s18139_s9 + $0x368] sm:$0xff]  }
 0x64d   : > { %7179 = vmatprep.subr.bf16.mxu1 %v13597_v13  ;;  %v13681_v13 = vld [vmem:[%s18139_s9 + $0x328] sm:$0xff]  }
 0x650   : > { %7180 = vmatpush1.bf16.msra.mxu1 %v13595_v26  ;;  %v13682_v26 = vld [vmem:[%s18139_s9 + $0x270] sm:$0xff]  }
 0x651   : > { %7181 = vmatprep.subr.bf16.mxu1 %v13600_v18  ;;  %v13683_v18 = vld [vmem:[%s18139_s9 + $0x230] sm:$0xff]  }
 0x653   : > { %7153 = vmatmul.mubr.bf16.gmra.mrb[72].mxu1 %v6055_v30  ;;  %v13613_v30 = vld [vmem:[#allocation10 + $0x390] ss:$8 sps:$4 sm:$0xff]  }
 0x654   : > { %7162 = vmatprep.mubr.bf16.mxu1 %v6064_v21  ;;  %7182 = vmatpush1.bf16.msra.mxu1 %v13598_v5  ;;  %v13684_v5 = vld [vmem:[%s18139_s9 + $0x370] sm:$0xff]   ;;  %v13686_v21 = vld [vmem:[%s18139_s9 + $0x278] sm:$0xff]  }
 0x655   : > { %7183 = vmatprep.subr.bf16.mxu1 %v13603_v36  ;;  %v13685_v36 = vld [vmem:[%s18139_s9 + $0x330] sm:$0xff]  }
 0x658   : > { %7184 = vmatpush1.bf16.msra.mxu1 %v13601_v50  ;;  %v13687_v50 = vld [vmem:[%s18139_s9 + $0x238] sm:$0xff]  }
 0x659   : > { %7185 = vmatprep.subr.bf16.mxu1 %v13606_v34  ;;  %v13688_v34 = vld [vmem:[%s18139_s9 + $0x378] sm:$0xff]  }
 0x65b   : > { %7163 = vmatmul.mubr.bf16.gmra.mrb[76].mxu1 %v6056_v7  ;;  %v13624_v7 = vld [vmem:[#allocation10 + $0x3c4] ss:$8 sps:$4 sm:$0xff]  }
 0x65c   : > { %7186 = vmatpush1.bf16.msra.mxu1 %v13604_v22  ;;  %7205 = vmatprep.mubr.bf16.mxu1 %v17043_v32  ;;  %v13622_v32 = vld [vmem:[#allocation10 + $0x3c0] ss:$8 sps:$4 sm:$0xff]  }
 0x65d   : > { %7187 = vmatprep.subr.bf16.mxu1 %v13609_v59  ;;  %v13689_v22 = vld [vmem:[%s18139_s9 + $0x338] sm:$0xff]   ;;  %v13690_v59 = vld [vmem:[%s18139_s9 + $0x40] sm:$0xff]  }
 0x660   : > { %7188 = vmatpush1.bf16.msra.mxu1 %v13607_v11  ;;  %v13692_v11 = vld [vmem:[%s18139_s9 + $0x740] sm:$0xff]  }
 0x661   : > { %7189 = vmatprep.subr.bf16.mxu1 %v13612_v38  ;;  %v6224_v38 = vlaneseq }
 0x664   : > { %7190 = vmatpush1.bf16.msra.mxu1 %v13610_v43  ;;  %v6225_v43 = vshrl.u32 %v6224_v38, 7  ;;  %v13693_v38 = vld [vmem:[%s18139_s9 + $0x700] sm:$0xff]  }
 0x665   : > { %7191 = vmatprep.subr.bf16.mxu1 %v13615_v8 }
 0x666   : > { %v6226_v8 = vsub.s32 0, %v6225_v43 }
 0x668   : > { %7192 = vmatpush1.bf16.msra.mxu1 %v13613_v30  ;;  %v6222_v30 = vld [vmem:[%s18138_s8] sm:$0x3] }
 0x669   : > { %7193 = vmatprep.subr.bf16.mxu1 %v13618_v48  ;;  %v6230_v48 = vsub.s32 1, %v6225_v43 }
 0x66c   : > { %7194 = vmatpush1.bf16.msra.mxu1 %v13616_v6  ;;  %v17325_v6 = vrot.slane %v6222_v30, %v6226_v8 }
 0x66d   : > { %7195 = vmatprep.subr.bf16.mxu1 %v13621_v45  ;;  %v17327_v45 = vrot.slane %v6222_v30, %v6230_v48  ;;  %v13695_v48 = vld [vmem:[%s18139_s9 + $0x8] sm:$0xff]  }
 0x670   : > { %7196 = vmatpush1.bf16.msra.mxu1 %v13619_v9 }
 0x671   : > { %7197 = vmatprep.subr.bf16.mxu1 %v13624_v7 }
 0x674   : > { %7198 = vmatpush1.bf16.msra.mxu1 %v13622_v32 }
 0x675   : > { %7199 = vmatprep.subr.bf16.mxu1 %v13627_v0 }
 0x678   : > { %7200 = vmatpush1.bf16.msra.mxu1 %v13625_v51 }
 0x679   : > { %7201 = vmatprep.subr.bf16.mxu1 %v13630_v14 }
 0x67c   : > { %7202 = vmatpush1.bf16.msra.mxu1 %v13628_v28 }
 0x67d   : > { %7203 = vmatprep.subr.bf16.mxu1 %v13633_v10 }
 0x680   : > { %7204 = vmatpush1.bf16.msra.mxu1 %v13631_v24 }
 0x681   : > { %7246 = vmatprep.subr.bf16.mxu1 %v13636_v56 }
 0x683   : > { %7206 = vmatmul.mubr.bf16.vlgmr.msra.gmra.mrb[64].mxu1 %v17074_v17  ;;  %v13646_v17 = vld [vmem:[#allocation10 + $0x440] ss:$8 sps:$4 sm:$0xff]  }
 0x684   : > { %7215 = vmatprep.mubr.bf16.mxu1 %v17102_v61  ;;  %7247 = vmatpush1.bf16.msra.mxu1 %v13634_v20  ;;  %v13651_v61 = vld [vmem:[#allocation10 + $0x454] ss:$8 sps:$4 sm:$0xff]  }
 0x685   : > { %7248 = vmatprep.subr.bf16.mxu1 %v13639_v60 }
 0x688   : > { %7249 = vmatpush1.bf16.msra.mxu1 %v13637_v46 }
 0x689   : > { %7250 = vmatprep.subr.bf16.mxu1 %v13642_v25 }
 0x68b   : > { %7216 = vmatmul.mubr.bf16.gmra.mrb[68].mxu1 %v17151_v19  ;;  %v13654_v19 = vld [vmem:[#allocation10 + $0x464] ss:$8 sps:$4 sm:$0xff]  }
 0x68c   : > { %7225 = vmatprep.mubr.bf16.mxu1 %v17157_v4  ;;  %7251 = vmatpush1.bf16.msra.mxu1 %v13640_v2  ;;  %v13652_v4 = vld [vmem:[#allocation10 + $0x460] ss:$8 sps:$4 sm:$0xff]  }
 0x68d   : > { %7252 = vmatprep.subr.bf16.mxu1 %v13645_v33 }
 0x690   : > { %7253 = vmatpush1.bf16.msra.mxu1 %v13643_v55 }
 0x691   : > { %7254 = vmatprep.subr.bf16.mxu1 %v13648_v62 }
 0x693   : > { %7226 = vmatmul.mubr.bf16.gmra.mrb[72].mxu1 %v17163_v57  ;;  %v13673_v57 = vld [vmem:[%s18139_s9 + $0x318] sm:$0xff]  }
 0x694   : > { %7235 = vmatprep.mubr.bf16.mxu1 %v6072_v52  ;;  %7255 = vmatpush1.bf16.msra.mxu1 %v13646_v17  ;;  %v13667_v52 = vld [vmem:[%s18139_s9 + $0x210] sm:$0xff]  }
 0x695   : > { %7256 = vmatprep.subr.bf16.mxu1 %v13651_v61 }
 0x698   : > { %7257 = vmatpush1.bf16.msra.mxu1 %v13649_v41 }
 0x699   : > { %7258 = vmatprep.subr.bf16.mxu1 %v13654_v19 }
 0x69b   : > { %7236 = vmatmul.mubr.bf16.gmra.mrb[76].mxu1 %v6065_v58 }
 0x69c   : > { %7259 = vmatpush1.bf16.msra.mxu1 %v13652_v4  ;;  %7278 = vmatprep.mubr.bf16.mxu1 %v14116_v53 }
 0x69d   : > { %7260 = vmatprep.subr.bf16.mxu1 %v13657_v49 }
 0x6a0   : > { %7261 = vmatpush1.bf16.msra.mxu1 %v13655_v29 }
 0x6a1   : > { %12769 = vmatprep.subr.bf16.mxu1 %v13660_v40 }
 0x6a3   : > { %7279 = vmatmul.mubr.bf16.vlgmr.msra.gmra.mrb[64].mxu1 %v17056_v27  ;;  %v13666_v27 = vld [vmem:[%s18139_s9 + $0x250] sm:$0xff]  }
 0x6a4   : > { %7288 = vmatprep.mubr.bf16.mxu1 %v14116_v53  ;;  %12770 = vmatpush3.bf16.msra.mxu1 %v13661_v31 }
 0x6a5   : > { %12771 = vmatprep.subr.bf16.mxu1 %v13664_v1  ;;  %12575 = vmatprep.subr.bf16.mxu0 %v13666_v27 }
 0x6a6   : > { %12576 = vmatpush3.bf16.msra.mxu0 %v13667_v52 }
 0x6a7   : > { %12577 = vmatprep.subr.bf16.mxu0 %v13670_v35 }
 0x6a8   : > { %12772 = vmatpush3.bf16.msra.mxu1 %v13665_v54 }
 0x6aa   : > { %12578 = vmatpush3.bf16.msra.mxu0 %v13671_v63 }
 0x6ab   : > { %7289 = vmatmul.mubr.bf16.gmra.mrb[68].mxu1 %v17094_v47  ;;  %v13668_v47 = vld [vmem:[%s18139_s9 + $0x350] sm:$0xff]   ;;  %12579 = vmatprep.subr.bf16.mxu0 %v13674_v39 }
 0x6ac   : > { %7298 = vmatprep.mubr.bf16.mxu1 %v14116_v53  ;;  %12773 = vmatprep.subr.bf16.mxu1 %v13668_v47 }
 0x6ae   : > { %12580 = vmatpush3.bf16.msra.mxu0 %v13675_v42 }
 0x6af   : > { %12581 = vmatprep.subr.bf16.mxu0 %v13678_v16 }
 0x6b2   : > { %12582 = vmatpush3.bf16.msra.mxu0 %v13679_v37 }
 0x6b3   : > { %7299 = vmatmul.mubr.bf16.gmra.mrb[72].mxu1 %v17125_v12  ;;  %v13669_v12 = vld [vmem:[%s18139_s9 + $0x310] sm:$0xff]   ;;  %12583 = vmatprep.subr.bf16.mxu0 %v13682_v26 }
 0x6b4   : > { %7308 = vmatprep.mubr.bf16.mxu1 %v14116_v53  ;;  %12774 = vmatpush3.bf16.msra.mxu1 %v13669_v12 }
 0x6b6   : > { %12584 = vmatpush3.bf16.msra.mxu0 %v13683_v18  ;;  %v13691_v18 = vld [vmem:[%s18139_s9] sm:$0xff]  }
 0x6b7   : > { %12585 = vmatprep.subr.bf16.mxu0 %v13686_v21 }
 0x6ba   : > { %12586 = vmatpush3.bf16.msra.mxu0 %v13687_v50 }
 0x6bb   : > { %7309 = vmatmul.mubr.bf16.gmra.mrb[76].mxu1 %v6077_v44  ;;  %v13672_v44 = vld [vmem:[%s18139_s9 + $0x358] sm:$0xff]   ;;  %12593 = vmatprep.subr.bf16.mxu0 %v13690_v59 }
 0x6bc   : > { %12775 = vmatprep.subr.bf16.mxu1 %v13672_v44 }
 0x6bd   : > { %12776 = vmatpush3.bf16.msra.mxu1 %v13673_v57 }
 0x6be   : > { %12777 = vmatprep.subr.bf16.mxu1 %v13676_v15 }
 0x6c1   : > { %12778 = vmatpush3.bf16.msra.mxu1 %v13677_v23 }
 0x6c2   : > { %12779 = vmatprep.subr.bf16.mxu1 %v13680_v3 }
 0x6c5   : > { %12780 = vmatpush3.bf16.msra.mxu1 %v13681_v13 }
 0x6c6   : > { %12781 = vmatprep.subr.bf16.mxu1 %v13684_v5 }
 0x6c9   : > { %12782 = vmatpush3.bf16.msra.mxu1 %v13685_v36  ;;  %v13694_v36 = vld [vmem:[%s18139_s9 + $0x48] sm:$0xff]  }
 0x6ca   : > { %12783 = vmatprep.subr.bf16.mxu1 %v13688_v34 }
 0x6cd   : > { %12784 = vmatpush3.bf16.msra.mxu1 %v13689_v22 }
 0x6ce   : > { %12813 = vmatprep.subr.bf16.mxu1 %v13692_v11 }
 0x776   : > { %v7280_v9 = vpop.f32.mrb[64].mxu1 }
 0x777   : > { %v13043_v7 = vadd.f32 %v7280_v9, %v17325_v6  ;;  %v7282_v32 = vpop.f32.mrb[65].mxu1  ;;  %v13696_v9 = vld [vmem:[%s18139_s9 + $0x748] sm:$0xff]  }
 0x778   : > { %v13044_v0 = vadd.f32 %v7282_v32, %v17327_v45  ;;  %v7284_v51 = vpop.f32.mrb[66].mxu1 }
 0x779   : > { %v13045_v14 = vadd.f32 %v7284_v51, %v17325_v6  ;;  %v7286_v28 = vpop.f32.mrb[67].mxu1  ;;  %v7319_v24 = vmax.f32 %v13043_v7, 0.0 }
 0x77a   : > { %v13046_v10 = vadd.f32 %v7286_v28, %v17327_v45  ;;  %v7320_v20 = vmax.f32 %v13044_v0, 0.0  ;;  %v13698_v0 = vld [vmem:[%s18139_s9 + $0x50] sm:$0xff]  }
 0x77b   : > { %v7321_v56 = vmax.f32 %v13045_v14, 0.0 }
 0x77c   : > { %v7322_v60 = vmax.f32 %v13046_v10, 0.0  ;;  %v13697_v10 = vld [vmem:[%s18139_s9 + $0x708] sm:$0xff]  }
 0x77d   : > { %v17333_v46 = vmax.f32 %v7319_v24, %v7321_v56 }
 0x77e   : > { %v7336_v25 = vmax.f32 %v7320_v20, %v7322_v60  ;;  %v7290_v2 = vpop.f32.mrb[68].mxu1  ;;  %v13702_v60 = vld [vmem:[%s18139_s9 + $0x58] sm:$0xff]  }
 0x77f   : > { %v13047_v33 = vadd.f32 %v7290_v2, %v17325_v6  ;;  %v7292_v55 = vpop.f32.mrb[69].mxu1  ;;  %v13701_v2 = vld [vmem:[%s18139_s9 + $0x710] sm:$0xff]  }
 0x780   : > { %v13048_v62 = vadd.f32 %v7292_v55, %v17327_v45  ;;  %v7294_v17 = vpop.f32.mrb[70].mxu1  ;;  %v7352_v40 = vrot.slane %v7336_v25, 1  ;;  %v13703_v55 = vld [vmem:[%s18139_s9 + $0x18] sm:$0xff]  }
 0x781   : > { %v13049_v61 = vadd.f32 %v7294_v17, %v17325_v6  ;;  %v7296_v41 = vpop.f32.mrb[71].mxu1  ;;  %v7323_v4 = vmax.f32 %v13047_v33, 0.0  ;;  %v13706_v17 = vld [vmem:[%s18139_s9 + $0x60] sm:$0xff]  }
 0x782   : > { %v13050_v19 = vadd.f32 %v7296_v41, %v17327_v45  ;;  %v7324_v49 = vmax.f32 %v13048_v62, 0.0  ;;  %v7368_v39 = vmax.f32 %v7336_v25, %v7352_v40  ;;  %v13704_v62 = vld [vmem:[%s18139_s9 + $0x758] sm:$0xff]   ;;  %v13711_v40 = vld [vmem:[%s18139_s9 + $0x28] sm:$0xff]  }
 0x783   : > { %v7325_v58 = vmax.f32 %v13049_v61, 0.0  ;;  %v13705_v41 = vld [vmem:[%s18139_s9 + $0x718] sm:$0xff]  }
 0x784   : > { %v7326_v29 = vmax.f32 %v13050_v19, 0.0  ;;  %v17355_v21 = vpack.c.bf16 %v7368_v39, %v7368_v39  ;;  %v13719_v39 = vld [vmem:[%s18139_s9 + $0x38] sm:$0xff]  }
 0x785   : > { %v7337_v53 = vmax.f32 %v7323_v4, %v7325_v58  ;;  %v13707_v4 = vld [vmem:[%s18139_s9 + $0x20] sm:$0xff]  }
 0x786   : > { %v7338_v31 = vmax.f32 %v7324_v49, %v7326_v29  ;;  %v7300_v1 = vpop.f32.mrb[72].mxu1  ;;  %v13708_v58 = vld [vmem:[%s18139_s9 + $0x760] sm:$0xff]   ;;  %v13710_v49 = vld [vmem:[%s18139_s9 + $0x68] sm:$0xff]  }
 0x787   : > { %v7353_v54 = vrot.slane %v7337_v53, 1  ;;  %v13051_v27 = vadd.f32 %v7300_v1, %v17325_v6  ;;  %v7302_v52 = vpop.f32.mrb[73].mxu1  ;;  %v13714_v1 = vld [vmem:[%s18139_s9 + $0x70] sm:$0xff]  }
 0x788   : > { %v7354_v47 = vrot.slane %v7338_v31, 1  ;;  %v13052_v12 = vadd.f32 %v7302_v52, %v17327_v45  ;;  %v7304_v35 = vpop.f32.mrb[74].mxu1  ;;  %v13715_v52 = vld [vmem:[%s18139_s9 + $0x30] sm:$0xff]  }
 0x789   : > { %v7369_v63 = vmax.f32 %v7337_v53, %v7353_v54  ;;  %v13053_v44 = vadd.f32 %v7304_v35, %v17325_v6  ;;  %v7306_v57 = vpop.f32.mrb[75].mxu1  ;;  %v7327_v23 = vmax.f32 %v13051_v27, 0.0  ;;  %v13709_v53 = vld [vmem:[%s18139_s9 + $0x720] sm:$0xff]   ;;  %v13713_v54 = vld [vmem:[%s18139_s9 + $0x728] sm:$0xff]   ;;  %v13718_v35 = vld [vmem:[%s18139_s9 + $0x78] sm:$0xff]  }
 0x78a   : > { %v7370_v42 = vmax.f32 %v7338_v31, %v7354_v47  ;;  %v13054_v15 = vadd.f32 %v7306_v57, %v17327_v45  ;;  %v7328_v13 = vmax.f32 %v13052_v12, 0.0  ;;  %v13712_v31 = vld [vmem:[%s18139_s9 + $0x768] sm:$0xff]   ;;  %v13716_v47 = vld [vmem:[%s18139_s9 + $0x770] sm:$0xff]   ;;  %v7351_v12 = vrot.slane %v17333_v46, 1 }
 0x78b   : > { %v7329_v16 = vmax.f32 %v13053_v44, 0.0  ;;  %v17343_v37 = vpack.c.bf16 %v7369_v63, %v7369_v63  ;;  %v13717_v44 = vld [vmem:[%s18139_s9 + $0x730] sm:$0xff]  }
 0x78c   : > { %v17345_v3 = vpack.c.bf16 %v7370_v42, %v7370_v42  ;;  %v7330_v26 = vmax.f32 %v13054_v15, 0.0  ;;  %v13720_v42 = vld [vmem:[%s18139_s9 + $0x778] sm:$0xff]   ;;  %v7367_v15 = vmax.f32 %v17333_v46, %v7351_v12  ;;  %v13723_v46 = vld [vmem:[%s18139_s9 + $0x400] sm:$0xff]   ;;  %v13761_v12 = vld [vmem:[%s18139_s9 + $0x788] sm:$0xff]  }
 0x78d   : > { %v17350_v5 = vmax.f32 %v7327_v23, %v7329_v16  ;;  %v8971_v43 = vrot.slane %v17343_v37, 2  ;;  %v13722_v23 = vld [vmem:[%s18139_s9 + $0x440] sm:$0xff]  }
 0x78e   : > { %v17357_v50 = vmax.f32 %v7328_v13, %v7330_v26  ;;  %v7310_v34 = vpop.f32.mrb[76].mxu1  ;;  %7572 = vmatprep.mubr.bf16.mxu0 %v17345_v3  ;;  %v8972_v22 = vrot.slane %v17345_v3, 2  ;;  %v13721_v13 = vld [vmem:[%s18139_s9 + $0x738] sm:$0xff]  }
 0x78f   : > { %v13055_v59 = vadd.f32 %v7310_v34, %v17325_v6  ;;  %v7312_v11 = vpop.f32.mrb[77].mxu1  ;;  %7573 = vmatmul.mubr.bf16.vlgmr.msra.gmra.mrb[72].mxu0 %v17343_v37 }
 0x790   : > { %v13056_v8 = vadd.f32 %v7312_v11, %v17327_v45  ;;  %12594 = vmatpush3.bf16.msra.mxu0 %v13691_v18  ;;  %v7314_v30 = vpop.f32.mrb[78].mxu1  ;;  %7708 = vmatprep.mubr.bf16.mxu0 %v17355_v21  ;;  %v7356_v63 = vrot.slane %v17357_v50, 1  ;;  %v17467_v18 = vpack.c.bf16 %v7367_v15, %v7367_v15  ;;  %v13727_v11 = vld [vmem:[%s18139_s9 + $0x408] sm:$0xff]   ;;  %v13770_v15 = vld [vmem:[%s18139_s9 + $0x660] sm:$0xff]  }
 0x791   : > { %v13057_v7 = vadd.f32 %v7314_v30, %v17325_v6  ;;  %9103 = vmatprep.mubr.bf16.mxu1 %v8972_v22  ;;  %v7316_v32 = vpop.f32.mrb[79].mxu1  ;;  %12595 = vmatprep.subr.bf16.mxu0 %v13694_v36  ;;  %v7331_v14 = vmax.f32 %v13055_v59, 0.0  ;;  %v13699_v6 = vld [vmem:[%s18139_s9 + $0x10] sm:$0xff]   ;;  %v13724_v36 = vld [vmem:[%s18139_s9 + $0x3c0] sm:$0xff]   ;;  %v13729_v30 = vld [vmem:[%s18139_s9 + $0x388] sm:$0xff]  }
 0x792   : > { %v13058_v51 = vadd.f32 %v7316_v32, %v17327_v45  ;;  %9104 = vmatmul.mubr.bf16.vlgmr.msra.gmra.mrb[80].mxu1 %v8971_v43  ;;  %v7332_v24 = vmax.f32 %v13056_v8, 0.0  ;;  %v13700_v45 = vld [vmem:[%s18139_s9 + $0x750] sm:$0xff]   ;;  %v7372_v16 = vmax.f32 %v17357_v50, %v7356_v63  ;;  %v13726_v50 = vld [vmem:[%s18139_s9 + $0x448] sm:$0xff]   ;;  %v13725_v22 = vld [vmem:[%s18139_s9 + $0x380] sm:$0xff]   ;;  %v9668_v43 = vrot.slane %v17345_v3, 3 }
 0x793   : > { %v7333_v28 = vmax.f32 %v13057_v7, 0.0  ;;  %12814 = vmatpush3.bf16.msra.mxu1 %v13693_v38  ;;  %v13728_v38 = vld [vmem:[%s18139_s9 + $0x3c8] sm:$0xff]   ;;  %v13730_v8 = vld [vmem:[%s18139_s9 + $0x450] sm:$0xff]   ;;  %v13734_v7 = vld [vmem:[%s18139_s9 + $0x458] sm:$0xff]  }
 0x794   : > { %v7334_v56 = vmax.f32 %v13058_v51, 0.0  ;;  %12596 = vmatpush3.bf16.msra.mxu0 %v13695_v48  ;;  %12815 = vmatprep.subr.bf16.mxu1 %v13696_v9  ;;  %v17475_v34 = vpack.c.bf16 %v7372_v16, %v7372_v16  ;;  %v13731_v48 = vld [vmem:[%s18139_s9 + $0x410] sm:$0xff]   ;;  %v13736_v51 = vld [vmem:[%s18139_s9 + $0x3d8] sm:$0xff]   ;;  %v13771_v16 = vld [vmem:[%s18139_s9 + $0x620] sm:$0xff]  }
 0x795   : > { %v7341_v20 = vmax.f32 %v7331_v14, %v7333_v28  ;;  %12597 = vmatprep.subr.bf16.mxu0 %v13698_v0  ;;  %v13732_v9 = vld [vmem:[%s18139_s9 + $0x3d0] sm:$0xff]   ;;  %v13735_v0 = vld [vmem:[%s18139_s9 + $0x418] sm:$0xff]   ;;  %v13738_v14 = vld [vmem:[%s18139_s9 + $0x460] sm:$0xff]  }
 0x796   : > { %v7342_v25 = vmax.f32 %v7332_v24, %v7334_v56  ;;  %v13733_v32 = vld [vmem:[%s18139_s9 + $0x390] sm:$0xff]   ;;  %v13737_v28 = vld [vmem:[%s18139_s9 + $0x398] sm:$0xff]   ;;  %v13740_v24 = vld [vmem:[%s18139_s9 + $0x3e0] sm:$0xff]  }
 0x797   : > { %12816 = vmatpush3.bf16.msra.mxu1 %v13697_v10  ;;  %v7357_v27 = vrot.slane %v7341_v20, 1  ;;  %v13739_v10 = vld [vmem:[%s18139_s9 + $0x420] sm:$0xff]   ;;  %v13742_v56 = vld [vmem:[%s18139_s9 + $0x468] sm:$0xff]   ;;  %v13764_v63 = vld [vmem:[%s18139_s9 + $0x7d0] sm:$0xff]  }
 0x798   : > { %v7358_v33 = vrot.slane %v7342_v25, 1  ;;  %12598 = vmatpush3.bf16.msra.mxu0 %v13699_v6  ;;  %12817 = vmatprep.subr.bf16.mxu1 %v13700_v45  ;;  %v13741_v6 = vld [vmem:[%s18139_s9 + $0x3a0] sm:$0xff]   ;;  %v13743_v45 = vld [vmem:[%s18139_s9 + $0x428] sm:$0xff]  }
 0x799   : > { %12599 = vmatprep.subr.bf16.mxu0 %v13702_v60  ;;  %v7373_v57 = vmax.f32 %v7341_v20, %v7357_v27  ;;  %v13744_v20 = vld [vmem:[%s18139_s9 + $0x3e8] sm:$0xff]   ;;  %v13746_v60 = vld [vmem:[%s18139_s9 + $0x470] sm:$0xff]  }
 0x79a   : > { %v7374_v61 = vmax.f32 %v7342_v25, %v7358_v33  ;;  %v13745_v25 = vld [vmem:[%s18139_s9 + $0x3a8] sm:$0xff]   ;;  %v13748_v33 = vld [vmem:[%s18139_s9 + $0x3f0] sm:$0xff]  }
 0x79b   : > { %12818 = vmatpush3.bf16.msra.mxu1 %v13701_v2  ;;  %v17462_v26 = vpack.c.bf16 %v7373_v57, %v7373_v57  ;;  %v13747_v2 = vld [vmem:[%s18139_s9 + $0x430] sm:$0xff]   ;;  %v13760_v27 = vld [vmem:[%s18139_s9 + $0x7c8] sm:$0xff]  }
 0x79c   : > { %v17407_v19 = vpack.c.bf16 %v7374_v61, %v7374_v61  ;;  %12600 = vmatpush3.bf16.msra.mxu0 %v13703_v55  ;;  %12819 = vmatprep.subr.bf16.mxu1 %v13704_v62  ;;  %v7355_v55 = vrot.slane %v17350_v5, 1  ;;  %v13750_v62 = vld [vmem:[%s18139_s9 + $0x478] sm:$0xff]   ;;  %v13765_v57 = vld [vmem:[%s18139_s9 + $0x790] sm:$0xff]  }
 0x79d   : > { %12601 = vmatprep.subr.bf16.mxu0 %v13706_v17  ;;  %v9319_v59 = vrot.slane %v17462_v26, 2  ;;  %v13749_v17 = vld [vmem:[%s18139_s9 + $0x3b0] sm:$0xff]   ;;  %v13751_v61 = vld [vmem:[%s18139_s9 + $0x438] sm:$0xff]  }
 0x79e   : > { %v9320_v29 = vrot.slane %v17407_v19, 2 }
 0x79f   : > { %12820 = vmatpush3.bf16.msra.mxu1 %v13705_v41  ;;  %v13752_v41 = vld [vmem:[%s18139_s9 + $0x3f8] sm:$0xff]  }
 0x7a0   : > { %12602 = vmatpush3.bf16.msra.mxu0 %v13707_v4  ;;  %12821 = vmatprep.subr.bf16.mxu1 %v13708_v58  ;;  %v7371_v4 = vmax.f32 %v17350_v5, %v7355_v55  ;;  %v13754_v58 = vld [vmem:[%s18139_s9 + $0x640] sm:$0xff]   ;;  %v13799_v55 = vld [vmem:[%s18139_s9 + $0xb0] sm:$0xff]  }
 0x7a1   : > { %9451 = vmatprep.mubr.bf16.mxu1 %v9320_v29  ;;  %12603 = vmatprep.subr.bf16.mxu0 %v13710_v49  ;;  %v13753_v49 = vld [vmem:[%s18139_s9 + $0x3b8] sm:$0xff]   ;;  %v13755_v29 = vld [vmem:[%s18139_s9 + $0x600] sm:$0xff]  }
 0x7a2   : > { %v13756_v5 = vld [vmem:[%s18139_s9 + $0x7c0] sm:$0xff]  }
 0x7a3   : > { %12822 = vmatpush3.bf16.msra.mxu1 %v13709_v53  ;;  %v17573_v53 = vpack.c.bf16 %v7371_v4, %v7371_v4  ;;  %v8095_v4 = vrot.slane %v17467_v18, 1 }
 0x7a4   : > { %12604 = vmatpush3.bf16.msra.mxu0 %v13711_v40  ;;  %12823 = vmatprep.subr.bf16.mxu1 %v13712_v31  ;;  %v13758_v40 = vld [vmem:[%s18139_s9 + $0x648] sm:$0xff]   ;;  %v13757_v31 = vld [vmem:[%s18139_s9 + $0x780] sm:$0xff]  }
 0x7a5   : > { %12605 = vmatprep.subr.bf16.mxu0 %v13714_v1  ;;  %v9667_v1 = vrot.slane %v17343_v37, 3 }
 0x7a7   : > { %12824 = vmatpush3.bf16.msra.mxu1 %v13713_v54  ;;  %v13759_v54 = vld [vmem:[%s18139_s9 + $0x608] sm:$0xff]  }
 0x7a8   : > { %12606 = vmatpush3.bf16.msra.mxu0 %v13715_v52  ;;  %12825 = vmatprep.subr.bf16.mxu1 %v13716_v47  ;;  %v10016_v52 = vrot.slane %v17407_v19, 3  ;;  %v13762_v47 = vld [vmem:[%s18139_s9 + $0x650] sm:$0xff]  }
 0x7a9   : > { %12607 = vmatprep.subr.bf16.mxu0 %v13718_v35  ;;  %v13763_v35 = vld [vmem:[%s18139_s9 + $0x610] sm:$0xff]  }
 0x7ab   : > { %12826 = vmatpush3.bf16.msra.mxu1 %v13717_v44  ;;  %v13766_v44 = vld [vmem:[%s18139_s9 + $0x658] sm:$0xff]  }
 0x7ac   : > { %12608 = vmatpush3.bf16.msra.mxu0 %v13719_v39  ;;  %12827 = vmatprep.subr.bf16.mxu1 %v13720_v42  ;;  %v13767_v39 = vld [vmem:[%s18139_s9 + $0x618] sm:$0xff]  }
 0x7ad   : > { %12615 = vmatprep.subr.bf16.mxu0 %v13722_v23  ;;  %v13768_v42 = vld [vmem:[%s18139_s9 + $0x7d8] sm:$0xff]  }
 0x7ae   : > { %v13769_v23 = vld [vmem:[%s18139_s9 + $0x798] sm:$0xff]  }
 0x7af   : > { %12828 = vmatpush3.bf16.msra.mxu1 %v13721_v13  ;;  %7709 = vmatmul.mubr.bf16.vlgmr.msra.gmra.mrb[76].mxu0 %v17467_v18  ;;  %v13772_v13 = vld [vmem:[%s18139_s9 + $0x7e0] sm:$0xff]  }
 0x7b0   : > { %12616 = vmatpush3.bf16.msra.mxu0 %v13723_v46  ;;  %7879 = vmatprep.mubr.bf16.mxu0 %v17475_v34  ;;  %v13774_v46 = vld [vmem:[%s18139_s9 + $0x668] sm:$0xff]  }
 0x7b1   : > { %12857 = vmatprep.subr.bf16.mxu1 %v13724_v36  ;;  %12617 = vmatprep.subr.bf16.mxu0 %v13726_v50  ;;  %v13773_v36 = vld [vmem:[%s18139_s9 + $0x7a0] sm:$0xff]   ;;  %v13775_v50 = vld [vmem:[%s18139_s9 + $0x628] sm:$0xff]  }
 0x7b2   : > { %9452 = vmatmul.mubr.bf16.vlgmr.msra.gmra.mrb[84].mxu1 %v9319_v59  ;;  %v13778_v59 = vld [vmem:[%s18139_s9 + $0x670] sm:$0xff]  }
 0x7b3   : > { %12858 = vmatpush3.bf16.msra.mxu1 %v13725_v22  ;;  %9799 = vmatprep.mubr.bf16.mxu1 %v9668_v43  ;;  %v13776_v22 = vld [vmem:[%s18139_s9 + $0x7e8] sm:$0xff]   ;;  %v13780_v43 = vld [vmem:[%s18139_s9 + $0x7f0] sm:$0xff]  }
 0x7b4   : > { %12618 = vmatpush3.bf16.msra.mxu0 %v13727_v11  ;;  %12859 = vmatprep.subr.bf16.mxu1 %v13728_v38  ;;  %v13777_v11 = vld [vmem:[%s18139_s9 + $0x7a8] sm:$0xff]   ;;  %v13779_v38 = vld [vmem:[%s18139_s9 + $0x630] sm:$0xff]  }
 0x7b5   : > { %12619 = vmatprep.subr.bf16.mxu0 %v13730_v8  ;;  %v13782_v8 = vld [vmem:[%s18139_s9 + $0x678] sm:$0xff]  }
 0x7b7   : > { %12860 = vmatpush3.bf16.msra.mxu1 %v13729_v30  ;;  %v13781_v30 = vld [vmem:[%s18139_s9 + $0x7b0] sm:$0xff]  }
 0x7b8   : > { %12620 = vmatpush3.bf16.msra.mxu0 %v13731_v48  ;;  %12861 = vmatprep.subr.bf16.mxu1 %v13732_v9  ;;  %v13783_v48 = vld [vmem:[%s18139_s9 + $0x638] sm:$0xff]  }
 0x7b9   : > { %12621 = vmatprep.subr.bf16.mxu0 %v13734_v7  ;;  %v13784_v9 = vld [vmem:[%s18139_s9 + $0x7f8] sm:$0xff]   ;;  %v13786_v7 = vld [vmem:[%s18139_s9 + $0xc0] sm:$0xff]  }
 0x7bb   : > { %12862 = vmatpush3.bf16.msra.mxu1 %v13733_v32  ;;  %v13785_v32 = vld [vmem:[%s18139_s9 + $0x7b8] sm:$0xff]  }
 0x7bc   : > { %12622 = vmatpush3.bf16.msra.mxu0 %v13735_v0  ;;  %12863 = vmatprep.subr.bf16.mxu1 %v13736_v51  ;;  %v13787_v0 = vld [vmem:[%s18139_s9 + $0x80] sm:$0xff]   ;;  %v13788_v51 = vld [vmem:[%s18139_s9 + $0xc8] sm:$0xff]  }
 0x7bd   : > { %12623 = vmatprep.subr.bf16.mxu0 %v13738_v14  ;;  %v8096_v14 = vrot.slane %v17355_v21, 1 }
 0x7bf   : > { %12864 = vmatpush3.bf16.msra.mxu1 %v13737_v28  ;;  %v10015_v28 = vrot.slane %v17462_v26, 3 }
 0x7c0   : > { %12624 = vmatpush3.bf16.msra.mxu0 %v13739_v10  ;;  %12865 = vmatprep.subr.bf16.mxu1 %v13740_v24  ;;  %v13789_v10 = vld [vmem:[%s18139_s9 + $0x88] sm:$0xff]   ;;  %v13790_v24 = vld [vmem:[%s18139_s9 + $0xd0] sm:$0xff]  }
 0x7c1   : > { %12625 = vmatprep.subr.bf16.mxu0 %v13742_v56  ;;  %v13791_v56 = vld [vmem:[%s18139_s9 + $0x90] sm:$0xff]  }
 0x7c3   : > { %12866 = vmatpush3.bf16.msra.mxu1 %v13741_v6  ;;  %v13792_v6 = vld [vmem:[%s18139_s9 + $0xd8] sm:$0xff]  }
 0x7c4   : > { %12626 = vmatpush3.bf16.msra.mxu0 %v13743_v45  ;;  %12867 = vmatprep.subr.bf16.mxu1 %v13744_v20  ;;  %v13793_v45 = vld [vmem:[%s18139_s9 + $0x98] sm:$0xff]   ;;  %v13794_v20 = vld [vmem:[%s18139_s9 + $0xe0] sm:$0xff]  }
 0x7c5   : > { %12627 = vmatprep.subr.bf16.mxu0 %v13746_v60  ;;  %v13795_v60 = vld [vmem:[%s18139_s9 + $0xa0] sm:$0xff]  }
 0x7c7   : > { %12868 = vmatpush3.bf16.msra.mxu1 %v13745_v25  ;;  %v13796_v25 = vld [vmem:[%s18139_s9 + $0xe8] sm:$0xff]  }
 0x7c8   : > { %12628 = vmatpush3.bf16.msra.mxu0 %v13747_v2  ;;  %12869 = vmatprep.subr.bf16.mxu1 %v13748_v33  ;;  %v13797_v2 = vld [vmem:[%s18139_s9 + $0xa8] sm:$0xff]   ;;  %v13798_v33 = vld [vmem:[%s18139_s9 + $0xf0] sm:$0xff]  }
 0x7c9   : > { %12629 = vmatprep.subr.bf16.mxu0 %v13750_v62  ;;  %v13800_v62 = vld [vmem:[%s18139_s9 + $0xf8] sm:$0xff]  }
 0x7cb   : > { %12870 = vmatpush3.bf16.msra.mxu1 %v13749_v17  ;;  %v13801_v17 = vld [vmem:[%s18139_s9 + $0xb8] sm:$0xff]  }
 0x7cc   : > { %12630 = vmatpush3.bf16.msra.mxu0 %v13751_v61  ;;  %12871 = vmatprep.subr.bf16.mxu1 %v13752_v41  ;;  %v13802_v61 = vld [vmem:[%s18139_s9 + $0x2c0] sm:$0xff]  }
 0x7cd   : > { %12637 = vmatprep.subr.bf16.mxu0 %v13754_v58  ;;  %v13803_v41 = vld [vmem:[%s18139_s9 + $0x280] sm:$0xff]   ;;  %v13804_v58 = vld [vmem:[%s18139_s9 + $0x2c8] sm:$0xff]  }
 0x7cf   : > { %12872 = vmatpush3.bf16.msra.mxu1 %v13753_v49  ;;  %7880 = vmatmul.mubr.bf16.vlgmr.msra.gmra.mrb[80].mxu0 %v17573_v53  ;;  %v8272_v49 = vrot.slane %v17345_v3, 1  ;;  %v13808_v3 = vld [vmem:[%s18139_s9 + $0x2d8] sm:$0xff]  }
 0x7d0   : > { %12638 = vmatpush3.bf16.msra.mxu0 %v13755_v29  ;;  %8051 = vmatprep.mubr.bf16.mxu0 %v17407_v19  ;;  %v13805_v29 = vld [vmem:[%s18139_s9 + $0x288] sm:$0xff]  }
 0x7d1   : > { %12901 = vmatprep.subr.bf16.mxu1 %v13756_v5  ;;  %12639 = vmatprep.subr.bf16.mxu0 %v13758_v40  ;;  %v13806_v5 = vld [vmem:[%s18139_s9 + $0x2d0] sm:$0xff]  }
 0x7d2   : > { %9800 = vmatmul.mubr.bf16.vlgmr.msra.gmra.mrb[88].mxu1 %v9667_v1  ;;  %v13807_v40 = vld [vmem:[%s18139_s9 + $0x290] sm:$0xff]   ;;  %v13810_v1 = vld [vmem:[%s18139_s9 + $0x2e0] sm:$0xff]  }
 0x7d3   : > { %12902 = vmatpush3.bf16.msra.mxu1 %v13757_v31  ;;  %10147 = vmatprep.mubr.bf16.mxu1 %v10016_v52  ;;  %v13809_v31 = vld [vmem:[%s18139_s9 + $0x298] sm:$0xff]   ;;  %v13813_v52 = vld [vmem:[%s18139_s9 + $0x2a8] sm:$0xff]  }
 0x7d4   : > { %12640 = vmatpush3.bf16.msra.mxu0 %v13759_v54  ;;  %12903 = vmatprep.subr.bf16.mxu1 %v13760_v27  ;;  %v13811_v54 = vld [vmem:[%s18139_s9 + $0x2a0] sm:$0xff]   ;;  %v13812_v27 = vld [vmem:[%s18139_s9 + $0x2e8] sm:$0xff]  }
 0x7d5   : > { %12641 = vmatprep.subr.bf16.mxu0 %v13762_v47  ;;  %v13814_v47 = vld [vmem:[%s18139_s9 + $0x2f0] sm:$0xff]  }
 0x7d7   : > { %12904 = vmatpush3.bf16.msra.mxu1 %v13761_v12  ;;  %v13815_v12 = vld [vmem:[%s18139_s9 + $0x2b0] sm:$0xff]  }
 0x7d8   : > { %12642 = vmatpush3.bf16.msra.mxu0 %v13763_v35  ;;  %12905 = vmatprep.subr.bf16.mxu1 %v13764_v63  ;;  %v13816_v35 = vld [vmem:[%s18139_s9 + $0x2f8] sm:$0xff]  }
 0x7d9   : > { %12643 = vmatprep.subr.bf16.mxu0 %v13766_v44  ;;  %v13817_v63 = vld [vmem:[%s18139_s9 + $0x2b8] sm:$0xff]   ;;  %v13818_v44 = vld [vmem:[%s18139_s9 + $0x4c0] sm:$0xff]  }
 0x7db   : > { %12906 = vmatpush3.bf16.msra.mxu1 %v13765_v57  ;;  %v13819_v57 = vld [vmem:[%s18139_s9 + $0x480] sm:$0xff]  }
 0x7dc   : > { %12644 = vmatpush3.bf16.msra.mxu0 %v13767_v39  ;;  %12907 = vmatprep.subr.bf16.mxu1 %v13768_v42  ;;  %v8271_v39 = vrot.slane %v17343_v37, 1  ;;  %v13820_v42 = vld [vmem:[%s18139_s9 + $0x4c8] sm:$0xff]   ;;  %v13823_v37 = vld [vmem:[%s18139_s9 + $0x490] sm:$0xff]  }
 0x7dd   : > { %12645 = vmatprep.subr.bf16.mxu0 %v13770_v15  ;;  %v8448_v15 = vrot.slane %v17475_v34, 1 }
 0x7df   : > { %12908 = vmatpush3.bf16.msra.mxu1 %v13769_v23  ;;  %v13821_v23 = vld [vmem:[%s18139_s9 + $0x488] sm:$0xff]  }
 0x7e0   : > { %12646 = vmatpush3.bf16.msra.mxu0 %v13771_v16  ;;  %12909 = vmatprep.subr.bf16.mxu1 %v13772_v13  ;;  %v13822_v16 = vld [vmem:[%s18139_s9 + $0x4d0] sm:$0xff]   ;;  %v13824_v13 = vld [vmem:[%s18139_s9 + $0x4d8] sm:$0xff]  }
 0x7e1   : > { %12647 = vmatprep.subr.bf16.mxu0 %v13774_v46  ;;  %v13825_v46 = vld [vmem:[%s18139_s9 + $0x498] sm:$0xff]  }
 0x7e3   : > { %12910 = vmatpush3.bf16.msra.mxu1 %v13773_v36  ;;  %v13826_v36 = vld [vmem:[%s18139_s9 + $0x4e0] sm:$0xff]  }
 0x7e4   : > { %12648 = vmatpush3.bf16.msra.mxu0 %v13775_v50  ;;  %12911 = vmatprep.subr.bf16.mxu1 %v13776_v22  ;;  %v13827_v50 = vld [vmem:[%s18139_s9 + $0x4a0] sm:$0xff]   ;;  %v13828_v22 = vld [vmem:[%s18139_s9 + $0x4e8] sm:$0xff]  }
 0x7e5   : > { %12649 = vmatprep.subr.bf16.mxu0 %v13778_v59  ;;  %v13829_v59 = vld [vmem:[%s18139_s9 + $0x4a8] sm:$0xff]  }
 0x7e7   : > { %12912 = vmatpush3.bf16.msra.mxu1 %v13777_v11  ;;  %v13830_v11 = vld [vmem:[%s18139_s9 + $0x4f0] sm:$0xff]  }
 0x7e8   : > { %12650 = vmatpush3.bf16.msra.mxu0 %v13779_v38  ;;  %12913 = vmatprep.subr.bf16.mxu1 %v13780_v43  ;;  %v13831_v38 = vld [vmem:[%s18139_s9 + $0x4b0] sm:$0xff]   ;;  %v13832_v43 = vld [vmem:[%s18139_s9 + $0x4f8] sm:$0xff]  }
 0x7e9   : > { %12651 = vmatprep.subr.bf16.mxu0 %v13782_v8  ;;  %v13833_v8 = vld [vmem:[%s18139_s9 + $0x4b8] sm:$0xff]  }
 0x7eb   : > { %12914 = vmatpush3.bf16.msra.mxu1 %v13781_v30  ;;  %v13834_v30 = vld [vmem:[%s18139_s9 + $0x6c0] sm:$0xff]  }
 0x7ec   : > { %12652 = vmatpush3.bf16.msra.mxu0 %v13783_v48  ;;  %12915 = vmatprep.subr.bf16.mxu1 %v13784_v9  ;;  %v13835_v48 = vld [vmem:[%s18139_s9 + $0x680] sm:$0xff]   ;;  %v8447_v9 = vrot.slane %v17573_v53, 1 }
 0x7ed   : > { %12659 = vmatprep.subr.bf16.mxu0 %v13786_v7  ;;  %v13836_v7 = vld [vmem:[%s18139_s9 + $0x6c8] sm:$0xff]  }
 0x7ef   : > { %12916 = vmatpush3.bf16.msra.mxu1 %v13785_v32  ;;  %8052 = vmatmul.mubr.bf16.vlgmr.msra.gmra.mrb[84].mxu0 %v17462_v26  ;;  %v8624_v32 = vrot.slane %v17407_v19, 1  ;;  %v13840_v19 = vld [vmem:[%s18139_s9 + $0x6d8] sm:$0xff]  }
 0x7f0   : > { %12660 = vmatpush3.bf16.msra.mxu0 %v13787_v0  ;;  %8227 = vmatprep.mubr.bf16.mxu0 %v8096_v14  ;;  %v13837_v0 = vld [vmem:[%s18139_s9 + $0x688] sm:$0xff]   ;;  %v13839_v14 = vld [vmem:[%s18139_s9 + $0x690] sm:$0xff]  }
 0x7f1   : > { %12661 = vmatprep.subr.bf16.mxu0 %v13788_v51  ;;  %v13838_v51 = vld [vmem:[%s18139_s9 + $0x6d0] sm:$0xff]  }
 0x7f2   : > { %10148 = vmatmul.mubr.bf16.vlgmr.msra.gmra.mrb[92].mxu1 %v10015_v28  ;;  %v13841_v28 = vld [vmem:[%s18139_s9 + $0x698] sm:$0xff]  }
 0x7f4   : > { %12662 = vmatpush3.bf16.msra.mxu0 %v13789_v10  ;;  %v13842_v10 = vld [vmem:[%s18139_s9 + $0x6e0] sm:$0xff]  }
 0x7f5   : > { %12663 = vmatprep.subr.bf16.mxu0 %v13790_v24  ;;  %v13843_v24 = vld [vmem:[%s18139_s9 + $0x6a0] sm:$0xff]  }
 0x7f8   : > { %12664 = vmatpush3.bf16.msra.mxu0 %v13791_v56  ;;  %v13844_v56 = vld [vmem:[%s18139_s9 + $0x6e8] sm:$0xff]  }
 0x7f9   : > { %12665 = vmatprep.subr.bf16.mxu0 %v13792_v6  ;;  %v13845_v6 = vld [vmem:[%s18139_s9 + $0x6a8] sm:$0xff]  }
 0x7fc   : > { %12666 = vmatpush3.bf16.msra.mxu0 %v13793_v45  ;;  %v13846_v45 = vld [vmem:[%s18139_s9 + $0x6f0] sm:$0xff]  }
 0x7fd   : > { %12667 = vmatprep.subr.bf16.mxu0 %v13794_v20 }
 0x800   : > { %12668 = vmatpush3.bf16.msra.mxu0 %v13795_v60 }
 0x801   : > { %12669 = vmatprep.subr.bf16.mxu0 %v13796_v25 }
 0x804   : > { %12670 = vmatpush3.bf16.msra.mxu0 %v13797_v2 }
 0x805   : > { %12671 = vmatprep.subr.bf16.mxu0 %v13798_v33  ;;  %v13847_v33 = vld [vmem:[%s18139_s9 + $0x6b0] sm:$0xff]  }
 0x808   : > { %12672 = vmatpush3.bf16.msra.mxu0 %v13799_v55 }
 0x809   : > { %12673 = vmatprep.subr.bf16.mxu0 %v13800_v62 }
 0x80c   : > { %12674 = vmatpush3.bf16.msra.mxu0 %v13801_v17  ;;  %v13848_v17 = vld [vmem:[%s18139_s9 + $0x6f8] sm:$0xff]  }
 0x80d   : > { %12681 = vmatprep.subr.bf16.mxu0 %v13802_v61 }
 0x80f   : > { %8228 = vmatmul.mubr.bf16.vlgmr.msra.gmra.mrb[88].mxu0 %v8095_v4 }
 0x810   : > { %12682 = vmatpush3.bf16.msra.mxu0 %v13803_v41  ;;  %8403 = vmatprep.mubr.bf16.mxu0 %v8272_v49  ;;  %v13849_v49 = vld [vmem:[%s18139_s9 + $0x6b8] sm:$0xff]  }
 0x811   : > { %12683 = vmatprep.subr.bf16.mxu0 %v13804_v58 }
 0x814   : > { %12684 = vmatpush3.bf16.msra.mxu0 %v13805_v29  ;;  %v13850_v29 = vld [vmem:[%s18139_s9 + $0x140] sm:$0xff]  }
 0x815   : > { %12685 = vmatprep.subr.bf16.mxu0 %v13806_v5  ;;  %v13851_v5 = vld [vmem:[%s18139_s9 + $0x100] sm:$0xff]  }
 0x818   : > { %12686 = vmatpush3.bf16.msra.mxu0 %v13807_v40  ;;  %v8623_v40 = vrot.slane %v17462_v26, 1  ;;  %v13855_v26 = vld [vmem:[%s18139_s9 + $0x110] sm:$0xff]  }
 0x819   : > { %12687 = vmatprep.subr.bf16.mxu0 %v13808_v3  ;;  %v13852_v3 = vld [vmem:[%s18139_s9 + $0x148] sm:$0xff]  }
 0x81c   : > { %12688 = vmatpush3.bf16.msra.mxu0 %v13809_v31  ;;  %v8798_v31 = vrot.slane %v17355_v21, 2 }
 0x81d   : > { %12689 = vmatprep.subr.bf16.mxu0 %v13810_v1  ;;  %v13853_v1 = vld [vmem:[%s18139_s9 + $0x108] sm:$0xff]  }
 0x820   : > { %12690 = vmatpush3.bf16.msra.mxu0 %v13811_v54  ;;  %v13854_v54 = vld [vmem:[%s18139_s9 + $0x150] sm:$0xff]  }
 0x821   : > { %12691 = vmatprep.subr.bf16.mxu0 %v13812_v27  ;;  %v13856_v27 = vld [vmem:[%s18139_s9 + $0x158] sm:$0xff]  }
 0x824   : > { %12692 = vmatpush3.bf16.msra.mxu0 %v13813_v52  ;;  %v13857_v52 = vld [vmem:[%s18139_s9 + $0x118] sm:$0xff]  }
 0x825   : > { %12693 = vmatprep.subr.bf16.mxu0 %v13814_v47  ;;  %v13858_v47 = vld [vmem:[%s18139_s9 + $0x160] sm:$0xff]  }
 0x828   : > { %12694 = vmatpush3.bf16.msra.mxu0 %v13815_v12  ;;  %v13859_v12 = vld [vmem:[%s18139_s9 + $0x120] sm:$0xff]  }
 0x829   : > { %12695 = vmatprep.subr.bf16.mxu0 %v13816_v35  ;;  %v13860_v35 = vld [vmem:[%s18139_s9 + $0x168] sm:$0xff]  }
 0x82c   : > { %12696 = vmatpush3.bf16.msra.mxu0 %v13817_v63  ;;  %v13861_v63 = vld [vmem:[%s18139_s9 + $0x128] sm:$0xff]  }
 0x82d   : > { %12703 = vmatprep.subr.bf16.mxu0 %v13818_v44  ;;  %v13862_v44 = vld [vmem:[%s18139_s9 + $0x170] sm:$0xff]  }
 0x82f   : > { %8404 = vmatmul.mubr.bf16.vlgmr.msra.gmra.mrb[92].mxu0 %v8271_v39 }
 0x830   : > { %12704 = vmatpush3.bf16.msra.mxu0 %v13819_v57  ;;  %8579 = vmatprep.mubr.bf16.mxu0 %v8448_v15 }
 0x831   : > { %12705 = vmatprep.subr.bf16.mxu0 %v13820_v42 }
 0x834   : > { %12706 = vmatpush3.bf16.msra.mxu0 %v13821_v23  ;;  %v13863_v23 = vld [vmem:[%s18139_s9 + $0x130] sm:$0xff]  }
 0x835   : > { %12707 = vmatprep.subr.bf16.mxu0 %v13822_v16 }
 0x838   : > { %12708 = vmatpush3.bf16.msra.mxu0 %v13823_v37 }
 0x839   : > { %12709 = vmatprep.subr.bf16.mxu0 %v13824_v13  ;;  %v13864_v13 = vld [vmem:[%s18139_s9 + $0x178] sm:$0xff]  }
 0x83c   : > { %12710 = vmatpush3.bf16.msra.mxu0 %v13825_v46 }
 0x83d   : > { %12711 = vmatprep.subr.bf16.mxu0 %v13826_v36 }
 0x840   : > { %12712 = vmatpush3.bf16.msra.mxu0 %v13827_v50 }
 0x841   : > { %12713 = vmatprep.subr.bf16.mxu0 %v13828_v22 }
 0x844   : > { %12714 = vmatpush3.bf16.msra.mxu0 %v13829_v59 }
 0x845   : > { %12715 = vmatprep.subr.bf16.mxu0 %v13830_v11  ;;  %v13865_v11 = vld [vmem:[%s18139_s9 + $0x138] sm:$0xff]  }
 0x848   : > { %12716 = vmatpush3.bf16.msra.mxu0 %v13831_v38  ;;  %v13866_v38 = vld [vmem:[%s18139_s9 + $0x540] sm:$0xff]  }
 0x849   : > { %12717 = vmatprep.subr.bf16.mxu0 %v13832_v43  ;;  %v13867_v43 = vld [vmem:[%s18139_s9 + $0x500] sm:$0xff]  }
 0x84c   : > { %12718 = vmatpush3.bf16.msra.mxu0 %v13833_v8  ;;  %v8797_v8 = vrot.slane %v17467_v18, 2 }
 0x84d   : > { %12725 = vmatprep.subr.bf16.mxu0 %v13834_v30  ;;  %v13868_v30 = vld [vmem:[%s18139_s9 + $0x548] sm:$0xff]  }
 0x84f   : > { %8580 = vmatmul.mubr.bf16.vlgmr.msra.gmra.mrb[96].mxu0 %v8447_v9  ;;  %v13869_v9 = vld [vmem:[%s18139_s9 + $0x508] sm:$0xff]  }
 0x850   : > { %12726 = vmatpush3.bf16.msra.mxu0 %v13835_v48  ;;  %8755 = vmatprep.mubr.bf16.mxu0 %v8624_v32  ;;  %v9146_v48 = vrot.slane %v17475_v34, 2  ;;  %v13871_v32 = vld [vmem:[%s18139_s9 + $0x510] sm:$0xff]  }
 0x851   : > { %12727 = vmatprep.subr.bf16.mxu0 %v13836_v7  ;;  %v13870_v7 = vld [vmem:[%s18139_s9 + $0x550] sm:$0xff]  }
 0x854   : > { %12728 = vmatpush3.bf16.msra.mxu0 %v13837_v0  ;;  %v13872_v0 = vld [vmem:[%s18139_s9 + $0x558] sm:$0xff]  }
 0x855   : > { %12729 = vmatprep.subr.bf16.mxu0 %v13838_v51  ;;  %v13873_v51 = vld [vmem:[%s18139_s9 + $0x518] sm:$0xff]  }
 0x858   : > { %12730 = vmatpush3.bf16.msra.mxu0 %v13839_v14  ;;  %v13874_v14 = vld [vmem:[%s18139_s9 + $0x560] sm:$0xff]  }
 0x859   : > { %12731 = vmatprep.subr.bf16.mxu0 %v13840_v19  ;;  %v13875_v19 = vld [vmem:[%s18139_s9 + $0x520] sm:$0xff]  }
 0x85c   : > { %12732 = vmatpush3.bf16.msra.mxu0 %v13841_v28  ;;  %v13876_v28 = vld [vmem:[%s18139_s9 + $0x568] sm:$0xff]  }
 0x85d   : > { %12733 = vmatprep.subr.bf16.mxu0 %v13842_v10  ;;  %v13877_v10 = vld [vmem:[%s18139_s9 + $0x528] sm:$0xff]  }
 0x860   : > { %12734 = vmatpush3.bf16.msra.mxu0 %v13843_v24  ;;  %v13878_v24 = vld [vmem:[%s18139_s9 + $0x570] sm:$0xff]  }
 0x861   : > { %12735 = vmatprep.subr.bf16.mxu0 %v13844_v56 }
 0x862   : > { %v12587_v20 = vpop.f32.mrb[72].mxu0 }
 0x863   : > { %v12588_v60 = vpop.f32.mrb[73].mxu0 }
 0x864   : > { %v12589_v25 = vadd.f32 %v12588_v60, %v12587_v20  ;;  %12736 = vmatpush3.bf16.msra.mxu0 %v13845_v6  ;;  %v12590_v2 = vpop.f32.mrb[74].mxu0  ;;  %v13879_v60 = vld [vmem:[%s18139_s9 + $0x530] sm:$0xff]  }
 0x865   : > { %v12785_v55 = vpop.f32.mrb[80].mxu1  ;;  %v12591_v62 = vpop.f32.mrb[75].mxu0  ;;  %12737 = vmatprep.subr.bf16.mxu0 %v13846_v45 }
 0x866   : > { %v12786_v61 = vpop.f32.mrb[81].mxu1 }
 0x867   : > { %v17867_v41 = vadd.f32 %v12786_v61, %v12785_v55  ;;  %v12788_v4 = vpop.f32.mrb[82].mxu1 }
 0x868   : > { %12738 = vmatpush3.bf16.msra.mxu0 %v13847_v33  ;;  %v12789_v58 = vpop.f32.mrb[83].mxu1  ;;  %v13880_v33 = vld [vmem:[%s18139_s9 + $0x578] sm:$0xff]  }
 0x869   : > { %12739 = vmatprep.subr.bf16.mxu0 %v13848_v17  ;;  %v13881_v58 = vld [vmem:[%s18139_s9 + $0x538] sm:$0xff]  }
 0x86c   : > { %12740 = vmatpush3.bf16.msra.mxu0 %v13849_v49  ;;  %v13882_v49 = vld [vmem:[%s18139_s9 + $0x1c0] sm:$0xff]  }
 0x86d   : > { %12747 = vmatprep.subr.bf16.mxu0 %v13850_v29  ;;  %v13883_v29 = vld [vmem:[%s18139_s9 + $0x180] sm:$0xff]  }
 0x86f   : > { %8756 = vmatmul.mubr.bf16.vlgmr.msra.gmra.mrb[100].mxu0 %v8623_v40  ;;  %v13884_v40 = vld [vmem:[%s18139_s9 + $0x1c8] sm:$0xff]  }
 0x870   : > { %12748 = vmatpush3.bf16.msra.mxu0 %v13851_v5  ;;  %8929 = vmatprep.mubr.bf16.mxu0 %v8798_v31  ;;  %v9145_v5 = vrot.slane %v17573_v53, 2  ;;  %v13885_v31 = vld [vmem:[%s18139_s9 + $0x188] sm:$0xff]  }
 0x871   : > { %12749 = vmatprep.subr.bf16.mxu0 %v13852_v3  ;;  %v9494_v3 = vrot.slane %v17355_v21, 3  ;;  %v13888_v21 = vld [vmem:[%s18139_s9 + $0x1d8] sm:$0xff]  }
 0x874   : > { %12750 = vmatpush3.bf16.msra.mxu0 %v13853_v1  ;;  %v13886_v1 = vld [vmem:[%s18139_s9 + $0x1d0] sm:$0xff]  }
 0x875   : > { %12751 = vmatprep.subr.bf16.mxu0 %v13854_v54  ;;  %v13887_v54 = vld [vmem:[%s18139_s9 + $0x190] sm:$0xff]  }
 0x878   : > { %12752 = vmatpush3.bf16.msra.mxu0 %v13855_v26  ;;  %v13889_v26 = vld [vmem:[%s18139_s9 + $0x198] sm:$0xff]  }
 0x879   : > { %12753 = vmatprep.subr.bf16.mxu0 %v13856_v27  ;;  %v13890_v27 = vld [vmem:[%s18139_s9 + $0x1e0] sm:$0xff]  }
 0x87c   : > { %12754 = vmatpush3.bf16.msra.mxu0 %v13857_v52  ;;  %v13891_v52 = vld [vmem:[%s18139_s9 + $0x1a0] sm:$0xff]  }
 0x87d   : > { %12755 = vmatprep.subr.bf16.mxu0 %v13858_v47  ;;  %v13892_v47 = vld [vmem:[%s18139_s9 + $0x1e8] sm:$0xff]  }
 0x880   : > { %12756 = vmatpush3.bf16.msra.mxu0 %v13859_v12  ;;  %v13893_v12 = vld [vmem:[%s18139_s9 + $0x1a8] sm:$0xff]  }
 0x881   : > { %12757 = vmatprep.subr.bf16.mxu0 %v13860_v35  ;;  %v13894_v35 = vld [vmem:[%s18139_s9 + $0x1f0] sm:$0xff]  }
 0x882   : > { %v12609_v57 = vpop.f32.mrb[76].mxu0 }
 0x883   : > { %v12610_v39 = vpop.f32.mrb[77].mxu0 }
 0x884   : > { %v12611_v42 = vadd.f32 %v12610_v39, %v12609_v57  ;;  %v12612_v15 = vpop.f32.mrb[78].mxu0  ;;  %12758 = vmatpush3.bf16.msra.mxu0 %v13861_v63 }
 0x885   : > { %v12829_v16 = vpop.f32.mrb[84].mxu1  ;;  %v12613_v37 = vpop.f32.mrb[79].mxu0  ;;  %12759 = vmatprep.subr.bf16.mxu0 %v13862_v44 }
 0x886   : > { %v7711_v46 = vadd.f32 %v12611_v42, %v12589_v25  ;;  %v12830_v36 = vpop.f32.mrb[85].mxu1  ;;  %v13895_v42 = vld [vmem:[%s18139_s9 + $0x1b0] sm:$0xff]  }
 0x887   : > { %v17919_v50 = vadd.f32 %v12830_v36, %v12829_v16  ;;  %v12832_v22 = vpop.f32.mrb[86].mxu1  ;;  %v13896_v16 = vld [vmem:[%s18139_s9 + $0x1f8] sm:$0xff]  }
 0x888   : > { %v12833_v59 = vpop.f32.mrb[87].mxu1  ;;  %12760 = vmatpush3.bf16.msra.mxu0 %v13863_v23 }
 0x889   : > { %12761 = vmatprep.subr.bf16.mxu0 %v13864_v13  ;;  %v13897_v59 = vld [vmem:[%s18139_s9 + $0x1b8] sm:$0xff]  }
 0x88c   : > { %12762 = vmatpush3.bf16.msra.mxu0 %v13865_v11  ;;  %v13898_v11 = vld [vmem:[%s18139_s9 + $0x5c0] sm:$0xff]  }
 0x88d   : > { %12791 = vmatprep.subr.bf16.mxu0 %v13866_v38  ;;  %v13899_v38 = vld [vmem:[%s18139_s9 + $0x580] sm:$0xff]  }
 0x88f   : > { %8930 = vmatmul.mubr.bf16.vlgmr.msra.gmra.mrb[104].mxu0 %v8797_v8  ;;  %v13900_v8 = vld [vmem:[%s18139_s9 + $0x5c8] sm:$0xff]  }
 0x890   : > { %12792 = vmatpush3.bf16.msra.mxu0 %v13867_v43  ;;  %9277 = vmatprep.mubr.bf16.mxu0 %v9146_v48  ;;  %v9493_v43 = vrot.slane %v17467_v18, 3  ;;  %v13901_v48 = vld [vmem:[%s18139_s9 + $0x588] sm:$0xff]   ;;  %v13903_v18 = vld [vmem:[%s18139_s9 + $0x590] sm:$0xff]  }
 0x891   : > { %12793 = vmatprep.subr.bf16.mxu0 %v13868_v30  ;;  %v9842_v30 = vrot.slane %v17475_v34, 3  ;;  %v13904_v34 = vld [vmem:[%s18139_s9 + $0x5d8] sm:$0xff]  }
 0x894   : > { %12794 = vmatpush3.bf16.msra.mxu0 %v13869_v9  ;;  %v13902_v9 = vld [vmem:[%s18139_s9 + $0x5d0] sm:$0xff]  }
 0x895   : > { %12795 = vmatprep.subr.bf16.mxu0 %v13870_v7  ;;  %v13905_v7 = vld [vmem:[%s18139_s9 + $0x598] sm:$0xff]  }
 0x898   : > { %12796 = vmatpush3.bf16.msra.mxu0 %v13871_v32  ;;  %v13906_v32 = vld [vmem:[%s18139_s9 + $0x5e0] sm:$0xff]  }
 0x899   : > { %12797 = vmatprep.subr.bf16.mxu0 %v13872_v0  ;;  %v13907_v0 = vld [vmem:[%s18139_s9 + $0x5a0] sm:$0xff]  }
 0x89c   : > { %12798 = vmatpush3.bf16.msra.mxu0 %v13873_v51  ;;  %v13908_v51 = vld [vmem:[%s18139_s9 + $0x5e8] sm:$0xff]  }
 0x89d   : > { %12799 = vmatprep.subr.bf16.mxu0 %v13874_v14  ;;  %v13909_v14 = vld [vmem:[%s18139_s9 + $0x5a8] sm:$0xff]  }
 0x8a0   : > { %12800 = vmatpush3.bf16.msra.mxu0 %v13875_v19  ;;  %v13910_v19 = vld [vmem:[%s18139_s9 + $0x5f0] sm:$0xff]  }
 0x8a1   : > { %12801 = vmatprep.subr.bf16.mxu0 %v13876_v28 }
 0x8a2   : > { %v12631_v56 = vpop.f32.mrb[80].mxu0 }
 0x8a3   : > { %v12632_v6 = vpop.f32.mrb[81].mxu0 }
 0x8a4   : > { %v12633_v45 = vadd.f32 %v12632_v6, %v12631_v56  ;;  %v12634_v20 = vpop.f32.mrb[82].mxu0  ;;  %12802 = vmatpush3.bf16.msra.mxu0 %v13877_v10  ;;  %v13911_v6 = vld [vmem:[%s18139_s9 + $0x5b0] sm:$0xff]  }
 0x8a5   : > { %v12873_v25 = vpop.f32.mrb[88].mxu1  ;;  %v12635_v2 = vpop.f32.mrb[83].mxu0  ;;  %12803 = vmatprep.subr.bf16.mxu0 %v13878_v24  ;;  %v13912_v20 = vld [vmem:[%s18139_s9 + $0x5f8] sm:$0xff]  }
 0x8a6   : > { %v7887_v55 = vadd.f32 %v12633_v45, %v7711_v46  ;;  %v12874_v62 = vpop.f32.mrb[89].mxu1  ;;  %v9841_v2 = vrot.slane %v17573_v53, 3 }
 0x8a7   : > { %v17971_v17 = vadd.f32 %v12874_v62, %v12873_v25  ;;  %v12876_v61 = vpop.f32.mrb[90].mxu1  ;;  %v13913_v25 = vld [vmem:[%s18139_s9 + $0x5b8] sm:$0xff]  }
 0x8a8   : > { %v12877_v4 = vpop.f32.mrb[91].mxu1  ;;  %12804 = vmatpush3.bf16.msra.mxu0 %v13879_v60 }
 0x8a9   : > { %12805 = vmatprep.subr.bf16.mxu0 %v13880_v33 }
 0x8ac   : > { %12806 = vmatpush3.bf16.msra.mxu0 %v13881_v58 }
 0x8ad   : > { %12835 = vmatprep.subr.bf16.mxu0 %v13882_v49 }
 0x8af   : > { %9278 = vmatmul.mubr.bf16.vlgmr.msra.gmra.mrb[108].mxu0 %v9145_v5 }
 0x8b0   : > { %12836 = vmatpush3.bf16.msra.mxu0 %v13883_v29  ;;  %9625 = vmatprep.mubr.bf16.mxu0 %v9494_v3 }
 0x8b1   : > { %12837 = vmatprep.subr.bf16.mxu0 %v13884_v40 }
 0x8b4   : > { %12838 = vmatpush3.bf16.msra.mxu0 %v13885_v31 }
 0x8b5   : > { %12839 = vmatprep.subr.bf16.mxu0 %v13886_v1 }
 0x8b8   : > { %12840 = vmatpush3.bf16.msra.mxu0 %v13887_v54 }
 0x8b9   : > { %12841 = vmatprep.subr.bf16.mxu0 %v13888_v21 }
 0x8bc   : > { %12842 = vmatpush3.bf16.msra.mxu0 %v13889_v26 }
 0x8bd   : > { %12843 = vmatprep.subr.bf16.mxu0 %v13890_v27 }
 0x8c0   : > { %12844 = vmatpush3.bf16.msra.mxu0 %v13891_v52 }
 0x8c1   : > { %12845 = vmatprep.subr.bf16.mxu0 %v13892_v47 }
 0x8c2   : > { %v12653_v63 = vpop.f32.mrb[84].mxu0 }
 0x8c3   : > { %v12654_v44 = vpop.f32.mrb[85].mxu0 }
 0x8c4   : > { %v12655_v57 = vadd.f32 %v12654_v44, %v12653_v63  ;;  %v12656_v39 = vpop.f32.mrb[86].mxu0  ;;  %12846 = vmatpush3.bf16.msra.mxu0 %v13893_v12 }
 0x8c5   : > { %v12917_v15 = vpop.f32.mrb[92].mxu1  ;;  %v12657_v23 = vpop.f32.mrb[87].mxu0  ;;  %12847 = vmatprep.subr.bf16.mxu0 %v13894_v35 }
 0x8c6   : > { %v8059_v37 = vadd.f32 %v12655_v57, %v7887_v55  ;;  %v12918_v13 = vpop.f32.mrb[93].mxu1 }
 0x8c7   : > { %v18023_v46 = vadd.f32 %v12918_v13, %v12917_v15  ;;  %v12920_v36 = vpop.f32.mrb[94].mxu1 }
 0x8c8   : > { %v12921_v22 = vpop.f32.mrb[95].mxu1  ;;  %12848 = vmatpush3.bf16.msra.mxu0 %v13895_v42 }
 0x8c9   : > { %12849 = vmatprep.subr.bf16.mxu0 %v13896_v16 }
 0x8cc   : > { %12850 = vmatpush3.bf16.msra.mxu0 %v13897_v59 }
 0x8cd   : > { %12879 = vmatprep.subr.bf16.mxu0 %v13898_v11 }
 0x8cf   : > { %9626 = vmatmul.mubr.bf16.vlgmr.msra.gmra.mrb[112].mxu0 %v9493_v43 }
 0x8d0   : > { %12880 = vmatpush3.bf16.msra.mxu0 %v13899_v38  ;;  %9973 = vmatprep.mubr.bf16.mxu0 %v9842_v30 }
 0x8d1   : > { %12881 = vmatprep.subr.bf16.mxu0 %v13900_v8 }
 0x8d4   : > { %12882 = vmatpush3.bf16.msra.mxu0 %v13901_v48 }
 0x8d5   : > { %12883 = vmatprep.subr.bf16.mxu0 %v13902_v9 }
 0x8d8   : > { %12884 = vmatpush3.bf16.msra.mxu0 %v13903_v18 }
 0x8d9   : > { %12885 = vmatprep.subr.bf16.mxu0 %v13904_v34 }
 0x8dc   : > { %12886 = vmatpush3.bf16.msra.mxu0 %v13905_v7  ;;  %v10156_v7 = vld [vmem:[#allocation11] sm:$0x1] }
 0x8dd   : > { %12887 = vmatprep.subr.bf16.mxu0 %v13906_v32 }
 0x8e0   : > { %12888 = vmatpush3.bf16.msra.mxu0 %v13907_v0 }
 0x8e1   : > { %12889 = vmatprep.subr.bf16.mxu0 %v13908_v51 }
 0x8e2   : > { %v12675_v28 = vpop.f32.mrb[88].mxu0 }
 0x8e3   : > { %v12676_v10 = vpop.f32.mrb[89].mxu0 }
 0x8e4   : > { %v12677_v24 = vadd.f32 %v12676_v10, %v12675_v28  ;;  %v12678_v56 = vpop.f32.mrb[90].mxu0  ;;  %12890 = vmatpush3.bf16.msra.mxu0 %v13909_v14 }
 0x8e5   : > { %v12679_v45 = vpop.f32.mrb[91].mxu0  ;;  %12891 = vmatprep.subr.bf16.mxu0 %v13910_v19 }
 0x8e6   : > { %v8235_v60 = vadd.f32 %v12677_v24, %v8059_v37 }
 0x8e8   : > { %12892 = vmatpush3.bf16.msra.mxu0 %v13911_v6 }
 0x8e9   : > { %12893 = vmatprep.subr.bf16.mxu0 %v13912_v20 }
 0x8ec   : > { %12894 = vmatpush3.bf16.msra.mxu0 %v13913_v25 }
 0x8ef   : > { %9974 = vmatmul.mubr.bf16.vlgmr.msra.gmra.mrb[116].mxu0 %v9841_v2 }
 0x902   : > { %v12697_v33 = vpop.f32.mrb[92].mxu0 }
 0x903   : > { %v12698_v55 = vpop.f32.mrb[93].mxu0 }
 0x904   : > { %v12699_v62 = vadd.f32 %v12698_v55, %v12697_v33  ;;  %v12700_v61 = vpop.f32.mrb[94].mxu0 }
 0x905   : > { %v12701_v4 = vpop.f32.mrb[95].mxu0 }
 0x906   : > { %v8411_v58 = vadd.f32 %v12699_v62, %v8235_v60 }
 0x922   : > { %v12719_v49 = vpop.f32.mrb[96].mxu0 }
 0x923   : > { %v12720_v29 = vpop.f32.mrb[97].mxu0 }
 0x924   : > { %v12721_v5 = vadd.f32 %v12720_v29, %v12719_v49  ;;  %v12722_v40 = vpop.f32.mrb[98].mxu0 }
 0x925   : > { %v12723_v3 = vpop.f32.mrb[99].mxu0 }
 0x926   : > { %v8587_v31 = vadd.f32 %v12721_v5, %v8411_v58 }
 0x942   : > { %v12741_v1 = vpop.f32.mrb[100].mxu0 }
 0x943   : > { %v12742_v54 = vpop.f32.mrb[101].mxu0 }
 0x944   : > { %v12743_v21 = vadd.f32 %v12742_v54, %v12741_v1  ;;  %v12744_v26 = vpop.f32.mrb[102].mxu0 }
 0x945   : > { %v12745_v27 = vpop.f32.mrb[103].mxu0 }
 0x946   : > { %v8763_v52 = vadd.f32 %v12743_v21, %v8587_v31 }
 0x962   : > { %v12763_v53 = vpop.f32.mrb[104].mxu0 }
 0x963   : > { %v12764_v47 = vpop.f32.mrb[105].mxu0 }
 0x964   : > { %v12765_v12 = vadd.f32 %v12764_v47, %v12763_v53  ;;  %v12766_v35 = vpop.f32.mrb[106].mxu0 }
 0x965   : > { %v12767_v63 = vpop.f32.mrb[107].mxu0 }
 0x966   : > { %v8937_v44 = vadd.f32 %v12765_v12, %v8763_v52 }
 0x968   : > { %v9111_v57 = vadd.f32 %v17867_v41, %v8937_v44 }
 0x982   : > { %v12807_v39 = vpop.f32.mrb[108].mxu0 }
 0x983   : > { %v12808_v42 = vpop.f32.mrb[109].mxu0 }
 0x984   : > { %v12809_v15 = vadd.f32 %v12808_v42, %v12807_v39  ;;  %v12810_v23 = vpop.f32.mrb[110].mxu0 }
 0x985   : > { %v12811_v16 = vpop.f32.mrb[111].mxu0 }
 0x986   : > { %v9285_v37 = vadd.f32 %v12809_v15, %v9111_v57 }
 0x988   : > { %v9459_v13 = vadd.f32 %v17919_v50, %v9285_v37 }
 0x9a2   : > { %v12851_v36 = vpop.f32.mrb[112].mxu0 }
 0x9a3   : > { %v12852_v22 = vpop.f32.mrb[113].mxu0 }
 0x9a4   : > { %v12853_v59 = vadd.f32 %v12852_v22, %v12851_v36  ;;  %v12854_v11 = vpop.f32.mrb[114].mxu0 }
 0x9a5   : > { %v12855_v38 = vpop.f32.mrb[115].mxu0 }
 0x9a6   : > { %v9633_v43 = vadd.f32 %v12853_v59, %v9459_v13 }
 0x9a8   : > { %v9807_v8 = vadd.f32 %v17971_v17, %v9633_v43 }
 0x9c2   : > { %v12895_v30 = vpop.f32.mrb[116].mxu0 }
 0x9c3   : > { %v12896_v41 = vpop.f32.mrb[117].mxu0 }
 0x9c4   : > { %v12897_v48 = vadd.f32 %v12896_v41, %v12895_v30  ;;  %v12898_v9 = vpop.f32.mrb[118].mxu0 }
 0x9c5   : > { %v12899_v18 = vpop.f32.mrb[119].mxu0 }
 0x9c6   : > { %v9981_v34 = vadd.f32 %v12897_v48, %v9807_v8 }
 0x9c8   : > { %v10155_v50 = vadd.f32 %v18023_v46, %v9981_v34 }
 0x9ca   : > { %v10157_v32 = vadd.f32 %v10156_v7, %v10155_v50 }
 0x9cc   : > { %10158 = vst [vmem:[%s431_s24] sm:$0x1] %v10157_v32 }
 0x9cd   : > { %14045 = shalt.err (!%p14042_p1)
}
 0x9ce   : > { %s14046_s29 = scalar_lea.hbm %s18088_s17, 16  ;;  %s14050_s25 = scalar_lea.hbm %s18141_s11, 32 }
 0x9cf   : > { %p14047_p0 = scmp.ne.s32.totalorder %s18088_s17, %s14046_s29  ;;  %p14051_p9 = scmp.lt.u32.totalorder %s18088_s17, %s18141_s11 }
 0x9d0   : > { %p14052_p12 = scmp.lt.u32.totalorder %s14050_s25, %s14046_s29  ;;  %p14054_p2 = scmp.lt.u32.totalorder %s14046_s29, %s18088_s17 }
 0x9d1   : > { %p14048_p6 = pnand %p14047_p0, %p18251_p3 }
 0x9d2   : > { %p14053_p10 = por %p14052_p12, %p14051_p9 }
 0x9d3   : > { %p14049_p5 = pneg %p14048_p6 }
 0x9d4   : > { %p14055_p4 = por %p14054_p2, %p14053_p10 }
 0x9d6   : > { %p14056_p7 = pnand %p14055_p4, %p14049_p5 }
 0x9d8   : > { %14059 = shalt.err (!%p14056_p7)
}
 0x9d9   : > { %13140 = dma.vmem_to_hbm [thread:$0]  (%p18251_p3), %s18090_s19, 16, %s18088_s17, %s10160_s28  }
 0x9da PF: > { %s18252_s30 = sld [smem:[#allocation18_spill]]  ;;  %s18253_s16 = sld [smem:[#allocation22_spill]] }
 0x9db   : > { %p13167_p8 = scmp.ge.s32.totalorder %s14106_s20, 2 }
 0x9e0   : > { %s10184_s24 = sand.u32 1, %s18252_s30   ;;  %p18254_p11 = scmp.ne.s32.totalorder %s18253_s16, 0 }
 0x9e1   : > { %s10185_s14 = scalar_lea.sflag [#allocation7], %s10184_s24 }
 0x9e2   : > { %p13156_p13 = pnand %p13167_p8, %p18254_p11 }
 0x9e4   : > { %14089 = dma.done.wait (!%p13156_p13), %s10185_s14, 16  }
 0x9e5   : > { %14091 = vsyncadd (!%p13156_p13), %s10185_s14, 4294967280  ;;  %s18255_s20 = sld [smem:[#allocation20_spill]]  ;;  %s18256_s22 = sld [smem:[#allocation19_spill]] }
 0x9e6   : > { %s18257_s19 = sld [smem:[#allocation21_spill]]  ;;  %s18258_s17 = smov %s14098_s18 }
 0x9eb   : > { %p24_p1 = scmp.ge.s32.totalorder %s18255_s20, 4   ;;  %s18259_s18 = smov %s18256_s22 }
 0x9ed   :  { %26 = sbr.rel (!%p24_p1) target bundleno = 9 (0x9), region = 134 }
 0x9f4   :  { %10189 = vsyncpa [#allocation6], 1 }
 0x9f5   :  { %10191 = vsyncpa [#allocation6 + $0x1], 1 }
 0x9f6   :  { %10192 = vsyncpa [#allocation9], 1 }
 0x9f7   :  { %10193 = vsyncpa [#allocation12], 1 }
 0x9f8   :  { %10194 = vsyncpa [#allocation7], 1 }
 0x9f9   :  { %10196 = vsyncpa [#allocation7 + $0x1], 1 }

</bundles_post_ra>
